<compile_context>
chip_gen: v5e
topology: v5e:2x2
jax: 0.10.0
libtpu: 0.0.40
codegen_flags: <defaults>
</compile_context>

<pallas_src>
import functools

import numpy as np
import jax
import jax.numpy as jnp
from jax import lax
from jax.experimental import pallas as pl
from jax.experimental.pallas import tpu as pltpu


# ----------------------------------------------------------------------------
# Host-side construction of the interpolation + pad matrices (pure glue).
# ----------------------------------------------------------------------------
def _upsample_matrix_align_corners(n_in: int, n_out: int) -> np.ndarray:
    """M (n_out x n_in) s.t. M @ v is 1-D linear upsampling, align_corners=True."""
    M = np.zeros((n_out, n_in), dtype=np.float64)
    if n_in == 1 or n_out == 1:
        M[:, 0] = 1.0
        return M
    idx = np.arange(n_out)
    src = idx * (n_in - 1) / (n_out - 1)
    i0 = np.clip(np.floor(src).astype(np.int64), 0, n_in - 2)
    frac = src - i0
    M[idx, i0] += 1.0 - frac
    M[idx, np.minimum(i0 + 1, n_in - 1)] += frac
    return M


def _pad_matrix(n_up: int, n_target: int) -> np.ndarray:
    """P (n_target x n_up) implementing F.pad-style zero pad (or crop),
    trunc-rounded front pad like torch.div(..., rounding_mode='trunc')."""
    diff = n_target - n_up
    front = int(np.trunc(diff / 2.0))
    P = np.zeros((n_target, n_up), dtype=np.float64)
    for j in range(n_up):
        r = front + j
        if 0 <= r < n_target:
            P[r, j] = 1.0
    return P


def _build_maps_np(h1, w1, h2, w2):
    h_up, w_up = 2 * h1, 2 * w1
    Wh = _pad_matrix(h_up, h2) @ _upsample_matrix_align_corners(h1, h_up)  # (h2, h1)
    Ww = _pad_matrix(w_up, w2) @ _upsample_matrix_align_corners(w1, w_up)  # (w2, w1)
    return Wh, Ww


# ----------------------------------------------------------------------------
# Generation-aware planning (VMEM budgets, plane-block sizing).
# ----------------------------------------------------------------------------
def _tpu_params():
    kind = ""
    try:
        kind = (getattr(jax.devices()[0], "device_kind", "") or "").lower()
    except Exception:
        pass
    vmem_cap = 0
    try:
        vmem_cap = int(getattr(pltpu.get_tpu_info(), "vmem_capacity_bytes", 0))
    except Exception:
        vmem_cap = 0
    if vmem_cap <= 0:
        # v5e/v6e: 128 MiB VMEM per TensorCore; assume 64 MiB (v7x per-core)
        # otherwise to stay conservative on unknown hardware.
        vmem_cap = 128 * 2**20 if ("v5" in kind or "v6" in kind) else 64 * 2**20
    small_vmem = vmem_cap < 100 * 2**20
    # 2 TensorCores/chip (v7x-like): keep >= 2 grid steps so the "parallel"
    # axis can shard; single-TC chips (v5e/v6e) get the largest block instead.
    multi_tc = small_vmem and not ("v5" in kind or "v6" in kind)
    weak_mxu = "v5" in kind  # v5e MXU is ~4.7x slower than v6e/v7x
    return dict(
        vmem_cap=vmem_cap,
        vmem_target=(vmem_cap * 3) // 4,   # leave headroom for Mosaic scratch
        weight_budget=(8 if vmem_cap >= 100 * 2**20 else 5) * 2**20,
        multi_tc=multi_tc,
        inflation_cap=12.0 if weak_mxu else 40.0,
    )


def _pick_divisor_block(nc, b_max, mults, prefer_even_steps):
    """Largest divisor b of nc with b <= b_max and b % mult == 0 (or b == nc),
    preferring an even number of grid steps on 2-TensorCore chips."""
    b_max = max(1, min(int(b_max), nc))
    divisors = [b for b in range(b_max, 0, -1) if nc % b == 0]
    for need_even in ((True, False) if prefer_even_steps else (False,)):
        for mult in mults:
            for b in divisors:
                if b % mult and b != nc:
                    continue
                if need_even and (nc // b) % 2:
                    continue
                return b
    return None


def _plan_blocks(nc, per_plane_bytes, resident_bytes, prm, mults):
    """Pick the per-step plane block B (a divisor of nc whenever possible, so
    no host-side pad/slice copy) and a generation-aware VMEM limit."""
    headroom = 4 * 2**20
    per_plane_bytes = max(int(per_plane_bytes), 1)
    avail = prm["vmem_target"] - resident_bytes - headroom
    b_max = max(1, avail // (2 * per_plane_bytes))   # in/out blocks double-buffer
    b_max = min(b_max, nc)
    if prm["multi_tc"] and nc >= 2:
        b_max = min(b_max, max(1, nc // 2))          # keep >= 2 steps for 2 TCs
    b = _pick_divisor_block(nc, b_max, mults, prm["multi_tc"])
    nc_pad = nc
    if b is None:
        # No aligned divisor within budget: try a single full-extent step.
        single_need = resident_bytes + 2 * nc * per_plane_bytes + headroom
        if single_need <= int(prm["vmem_cap"] * 0.9):
            b = nc
        else:
            # Last resort (rare): pad nc up to an aligned block.
            align = mults[-1]
            b = max(align, (int(b_max) // align) * align) if align > 1 else max(1, int(b_max))
            b = min(b, nc)
            nc_pad = -(-nc // b) * b
    need = resident_bytes + 2 * b * per_plane_bytes + headroom
    vmem_limit = int(min(max(prm["vmem_target"], need), int(prm["vmem_cap"] * 0.9)))
    return int(b), int(nc_pad), vmem_limit


# ----------------------------------------------------------------------------
# Kernels
# ----------------------------------------------------------------------------
def _full_gemm_kernel(x_ref, w_ref, o_ref, *, precision):
    # x_ref: (B, H1*W1), w_ref: (H1*W1, H2*W2) -> o_ref: (B, H2*W2) lane-dense.
    o_ref[...] = jnp.dot(
        x_ref[...], w_ref[...],
        preferred_element_type=jnp.float32, precision=precision,
    ).astype(o_ref.dtype)


def _separable_kernel(wh_ref, x_ref, wwT_ref, o_ref, *, precision):
    # wh_ref: (H2, H1), x_ref: (B, H1, W1), wwT_ref: (W1, W2) -> (B, H2, W2).
    b, h1, w1 = x_ref.shape
    h2, w2 = wh_ref.shape[0], wwT_ref.shape[1]
    x = x_ref[...]
    # Width pass: ONE flat GEMM with M = B*H1 rows (fills MXU rows, no
    # per-plane weight broadcast).
    xw = jnp.dot(x.reshape(b * h1, w1), wwT_ref[...],
                 preferred_element_type=jnp.float32, precision=precision)
    xw = xw.astype(x.dtype).reshape(b, h1, w2)
    # Height pass: flat GEMM on the (H1, B*W2) view.  The (1,0,2) transposes
    # keep the lane axis (W2) in place, so they are VMEM copies, not lane
    # shuffles.
    xw_t = jnp.transpose(xw, (1, 0, 2)).reshape(h1, b * w2)
    out = jnp.dot(wh_ref[...], xw_t,
                  preferred_element_type=jnp.float32, precision=precision)
    out = out.reshape(h2, b, w2)
    o_ref[...] = jnp.transpose(out, (1, 0, 2)).astype(o_ref.dtype)


def _separable_kernel_batched(wh_ref, x_ref, wwT_ref, o_ref, *, precision):
    # Fallback formulation (batched dot_general with broadcast weights); only
    # used if the flat-GEMM kernel fails to lower on this jax/libtpu version.
    x = x_ref[...]
    b = x.shape[0]
    wwT_b = jnp.broadcast_to(wwT_ref[...], (b,) + wwT_ref.shape)
    xw = lax.dot_general(x, wwT_b, (((2,), (1,)), ((0,), (0,))),
                         preferred_element_type=jnp.float32,
                         precision=precision)
    xw = xw.astype(x.dtype)
    wh_b = jnp.broadcast_to(wh_ref[...], (b,) + wh_ref.shape)
    out = lax.dot_general(wh_b, xw, (((2,), (1,)), ((0,), (0,))),
                          preferred_element_type=jnp.float32,
                          precision=precision)
    o_ref[...] = out.astype(o_ref.dtype)


# ----------------------------------------------------------------------------
# Wrapper
# ----------------------------------------------------------------------------
def up_with_crop(x1: jax.Array, x2: jax.Array, force_path: str | None = None) -> jax.Array:
    """Pallas equivalent of UpwithCrop.forward(x1, x2). x1, x2 are NCHW."""
    n, c, h1, w1 = (int(d) for d in x1.shape)
    h2, w2 = int(x2.shape[2]), int(x2.shape[3])
    nc, k, m = n * c, h1 * w1, h2 * w2

    prm = _tpu_params()

    # bf16 weights/activations for the native MXU path when the input is bf16;
    # otherwise keep f32 (parity with the f32 PyTorch reference).
    compute_dtype = jnp.bfloat16 if x1.dtype == jnp.bfloat16 else jnp.float32
    csize = np.dtype(compute_dtype).itemsize
    osize = x1.dtype.itemsize
    precision = (lax.Precision.HIGHEST if compute_dtype == jnp.float32
                 else lax.Precision.DEFAULT)
    # TODO(synk): on v7x (bf16-only MXU), f32 inputs could pre-split the static
    # weights into bf16 hi/lo pairs (bf16x2) to halve MXU passes if MXU-bound.

    wh_np, ww_np = _build_maps_np(h1, w1, h2, w2)

    # Path selection: fused single-GEMM when the kron weight fits VMEM and the
    # FLOP inflation over the separable form is acceptable; W2 < 128 strongly
    # prefers the full path (lane-dense stores vs masked vst.msk).
    inflation = (w1 * h2) / max(w1 + h2, 1)
    fits = (k * m * csize) <= prm["weight_budget"]
    use_full = fits and (w2 < 128 or inflation <= prm["inflation_cap"])
    if force_path == "full":
        use_full = True
    elif force_path == "separable":
        use_full = False

    mults_2d = (16, 8) if compute_dtype == jnp.bfloat16 else (8,)

    if use_full:
        # ---------------- Full-GEMM path ----------------
        # W_full[(r1*W1+c1), (r2*W2+c2)] = Wh[r2, r1] * Ww[c2, c1]
        w_full = jnp.asarray(np.kron(wh_np, ww_np).T, dtype=compute_dtype)  # (k, m)

        resident = k * m * csize                   # single-buffered weight
        per_plane = k * csize + m * osize + m * 4  # in/out blocks + f32 accum
        b, nc_pad, vmem_limit = _plan_blocks(nc, per_plane, resident, prm, mults_2d)

        x_flat = x1.reshape(nc, k).astype(compute_dtype)
        if nc_pad != nc:   # rare fallback; divisor search usually avoids this
            x_flat = jnp.pad(x_flat, ((0, nc_pad - nc), (0, 0)))

        cost = pl.CostEstimate(
            flops=2 * nc_pad * k * m,
            transcendentals=0,
            bytes_accessed=nc_pad * (k * csize + m * osize) + k * m * csize)

        out_flat = pl.pallas_call(
            functools.partial(_full_gemm_kernel, precision=precision),
            out_shape=jax.ShapeDtypeStruct((nc_pad, m), x1.dtype),
            grid_spec=pltpu.PrefetchScalarGridSpec(
                num_scalar_prefetch=0,
                grid=(nc_pad // b,),
                in_specs=[
                    pl.BlockSpec((b, k), lambda i: (i, 0)),       # activations
                    pl.BlockSpec((k, m), lambda i: (0, 0),
                                 pipeline_mode=pl.Buffered(1)),   # resident weight
                ],
                out_specs=pl.BlockSpec((b, m), lambda i: (i, 0)),
            ),
            compiler_params=pltpu.CompilerParams(
                dimension_semantics=("parallel",),
                vmem_limit_bytes=vmem_limit),
            cost_estimate=cost,
        )(x_flat, w_full)

        if nc_pad != nc:
            out_flat = out_flat[:nc]
        return out_flat.reshape(n, c, h2, w2)

    # ---------------- Separable (two flat GEMMs) path ----------------
    wh = jnp.asarray(wh_np, dtype=compute_dtype)      # (h2, h1)
    wwT = jnp.asarray(ww_np.T, dtype=compute_dtype)   # (w1, w2)

    resident = (h2 * h1 + w1 * w2) * csize            # single-buffered weights
    per_plane = (k * csize + m * osize                # DMA'd in/out blocks
                 + 2 * h1 * w2 * (4 + csize)          # width-pass intermediates
                 + 2 * m * 4)                         # height-pass f32 + transpose
    b, nc_pad, vmem_limit = _plan_blocks(nc, per_plane, resident, prm, (1,))

    x_pl = x1.reshape(nc, h1, w1).astype(compute_dtype)
    if nc_pad != nc:
        x_pl = jnp.pad(x_pl, ((0, nc_pad - nc), (0, 0), (0, 0)))

    cost = pl.CostEstimate(
        flops=2 * nc_pad * (h1 * w1 * w2 + h1 * w2 * h2),
        transcendentals=0,
        bytes_accessed=nc_pad * (k * csize + m * osize) + resident)

    def run(kernel_fn):
        return pl.pallas_call(
            functools.partial(kernel_fn, precision=precision),
            out_shape=jax.ShapeDtypeStruct((nc_pad, h2, w2), x1.dtype),
            grid_spec=pltpu.PrefetchScalarGridSpec(
                num_scalar_prefetch=0,
                grid=(nc_pad // b,),
                in_specs=[
                    pl.BlockSpec((h2, h1), lambda i: (0, 0),
                                 pipeline_mode=pl.Buffered(1)),   # resident Wh
                    pl.BlockSpec((b, h1, w1), lambda i: (i, 0, 0)),
                    pl.BlockSpec((w1, w2), lambda i: (0, 0),
                                 pipeline_mode=pl.Buffered(1)),   # resident Ww^T
                ],
                out_specs=pl.BlockSpec((b, h2, w2), lambda i: (i, 0, 0)),
            ),
            compiler_params=pltpu.CompilerParams(
                dimension_semantics=("parallel",),
                vmem_limit_bytes=vmem_limit),
            cost_estimate=cost,
        )(wh, x_pl, wwT)

    try:
        out3 = run(_separable_kernel)
    except Exception:
        # Safety net: if the flat-GEMM formulation hits a lowering gap
        # (reshape/relayout support), fall back to the batched formulation.
        out3 = run(_separable_kernel_batched)

    if nc_pad != nc:
        out3 = out3[:nc]
    return out3.reshape(n, c, h2, w2)


# ----------------------------------------------------------------------------
# Pure-numpy reference (independent gather-based bilinear + pad) for sanity.
# ----------------------------------------------------------------------------
def _reference(x1: np.ndarray, h2: int, w2: int) -> np.ndarray:
    n, c, h1, w1 = x1.shape
    h_up, w_up = 2 * h1, 2 * w1

    def interp_axis(a, n_in, n_out, axis):
        if n_in == 1 or n_out == 1:
            reps = [1] * a.ndim
            reps[axis] = n_out
            return np.tile(np.take(a, [0], axis=axis), reps)
        idx = np.arange(n_out)
        src = idx * (n_in - 1) / (n_out - 1)
        i0 = np.clip(np.floor(src).astype(np.int64), 0, n_in - 2)
        frac = (src - i0).reshape([-1 if d == axis else 1 for d in range(a.ndim)])
        a0 = np.take(a, i0, axis=axis)
        a1 = np.take(a, i0 + 1, axis=axis)
        return a0 * (1.0 - frac) + a1 * frac

    up = interp_axis(x1.astype(np.float64), h1, h_up, axis=2)
    up = interp_axis(up, w1, w_up, axis=3)

    diffY, diffX = h2 - h_up, w2 - w_up
    padT = int(np.trunc(diffY / 2.0))
    padL = int(np.trunc(diffX / 2.0))
    out = np.zeros((n, c, h2, w2), dtype=np.float64)
    for r in range(h_up):
        rr = padT + r
        if not (0 <= rr < h2):
            continue
        for col in range(w_up):
            cc = padL + col
            if 0 <= cc < w2:
                out[:, :, rr, cc] = up[:, :, r, col]
    return out.astype(np.float32)


if __name__ == "__main__":
    key = jax.random.PRNGKey(0)
    k1, k2 = jax.random.split(key)
    # x1: feature map to upsample; x2: only its spatial size matters.
    x1 = jax.random.normal(k1, (2, 4, 16, 16), dtype=jnp.float32)
    x2 = jax.random.normal(k2, (2, 4, 36, 36), dtype=jnp.float32)

    ref = _reference(np.asarray(x1), 36, 36)

    # Default (auto) path: fused single-GEMM, lane-dense output.
    out = jax.block_until_ready(up_with_crop(x1, x2))
    np.testing.assert_allclose(np.asarray(out), ref, rtol=1e-4, atol=1e-4)

    # Separable path (used for large spatial sizes); forced here for coverage.
    out_sep = jax.block_until_ready(up_with_crop(x1, x2, force_path="separable"))
    np.testing.assert_allclose(np.asarray(out_sep), ref, rtol=1e-4, atol=1e-4)

    # bf16 activations (native-MXU weights); looser tolerance.
    x1_bf16 = x1.astype(jnp.bfloat16)
    ref_bf16 = _reference(np.asarray(x1_bf16.astype(jnp.float32)), 36, 36)
    out_bf16 = jax.block_until_ready(up_with_crop(x1_bf16, x2))
    np.testing.assert_allclose(np.asarray(out_bf16.astype(jnp.float32)), ref_bf16,
                               rtol=5e-2, atol=8e-2)

    print("KERNEL_OK")
</pallas_src>

<mosaic_0001>
module attributes {stable_mosaic.version = 11 : i64} {
  func.func @_full_gemm_kernel(%arg0: i32, %arg1: memref<8x256xf32, #tpu.memory_space<vmem>>, %arg2: memref<256x1296xf32, #tpu.memory_space<vmem>>, %arg3: memref<8x1296xf32, #tpu.memory_space<vmem>>) attributes {dimension_semantics = [#tpu.dimension_semantics<parallel>], iteration_bounds = array<i64: 1>, scalar_prefetch = 0 : i64, scratch_operands = 0 : i64, tpu.core_type = #tpu.core_type<tc>, window_params = [{transform_indices = @transform_0, window_bounds = array<i64: 8, 256>}, {pipeline_mode = #tpu.pipeline_mode<synchronous>, transform_indices = @transform_1, window_bounds = array<i64: 256, 1296>}, {transform_indices = @transform_2, window_bounds = array<i64: 8, 1296>}]} {
    %c0 = arith.constant 0 : index
    %c0_0 = arith.constant 0 : index
    %0 = vector.load %arg1[%c0, %c0_0] : memref<8x256xf32, #tpu.memory_space<vmem>>, vector<8x256xf32>
    %c0_1 = arith.constant 0 : index
    %c0_2 = arith.constant 0 : index
    %1 = vector.load %arg2[%c0_1, %c0_2] : memref<256x1296xf32, #tpu.memory_space<vmem>>, vector<256x1296xf32>
    %cst = arith.constant dense<0.000000e+00> : vector<8x1296xf32>
    %2 = tpu.matmul %0, %1, %cst {dimension_numbers = #tpu.dot_dimension_numbers<[1], [0], [0], [1], [0, 0, 1, 1], [], []>, precision = #tpu.contract_precision<fp32>} : vector<8x256xf32>, vector<256x1296xf32>, vector<8x1296xf32> -> vector<8x1296xf32>
    %c0_3 = arith.constant 0 : index
    %c0_4 = arith.constant 0 : index
    %3 = vector.load %arg3[%c0_3, %c0_4] : memref<8x1296xf32, #tpu.memory_space<vmem>>, vector<8x1296xf32>
    tpu.vector_store %arg3[%c0_3, %c0_4], %2 {strides = array<i32>} : memref<8x1296xf32, #tpu.memory_space<vmem>>, vector<8x1296xf32>,
    return
  }
  func.func @transform_0(%arg0: i32) -> (i32, i32) {
    %c0_i32 = arith.constant 0 : i32
    %c0_i32_0 = arith.constant 0 : i32
    return %arg0, %c0_i32 : i32, i32
  }
  func.func @transform_1(%arg0: i32) -> (i32, i32) {
    %c0_i32 = arith.constant 0 : i32
    %c0_i32_0 = arith.constant 0 : i32
    %c0_i32_1 = arith.constant 0 : i32
    return %c0_i32, %c0_i32_0 : i32, i32
  }
  func.func @transform_2(%arg0: i32) -> (i32, i32) {
    %c0_i32 = arith.constant 0 : i32
    %c0_i32_0 = arith.constant 0 : i32
    return %arg0, %c0_i32 : i32, i32
  }
}

</mosaic_0001>

<bundles_post_ra>
// kernel: tpu_custom_call.1
= control target key start
LH: loop header
LB: loop body
LE: loop exit
PB: predicated region body
PF: predicated region fallthrough
CT: control target
= control target key end

     0   :  { %s14440_s0 = inlined_call_operand.vmem [shape: f32[8,256], index: 0, kind: input, shape index: {}]   ;;  %s14441_s1 = inlined_call_operand.vmem [shape: f32[256,1296], index: 1, kind: input, shape index: {}]   ;;  %s14442_s2 = inlined_call_operand.hbm [shape: f32[8,1296], index: 2, kind: output, shape index: {}]  }
   0x1   :  { %v179_v0 = vld [vmem:[%s14441_s1 + $0x528] sm:$0xff]  ;;  %v168_v1 = vld [vmem:[%s14441_s1 + $0x4d0] sm:$0xff]  ;;  %v157_v2 = vld [vmem:[%s14441_s1 + $0x478] sm:$0xff] }
   0x2   :  { %v7948_v3 = vand.u32 4294901760, %v179_v0  ;;  %v7950_v4 = vand.u32 4294901760, %v168_v1  ;;  %v7952_v5 = vand.u32 4294901760, %v157_v2  ;;  %v146_v6 = vld [vmem:[%s14441_s1 + $0x420] sm:$0xff]  ;;  %v135_v7 = vld [vmem:[%s14441_s1 + $0x3c8] sm:$0xff]  ;;  %v124_v8 = vld [vmem:[%s14441_s1 + $0x370] sm:$0xff] }
   0x3   :  { %v7963_v9 = vand.u32 4294901760, %v146_v6  ;;  %v7965_v10 = vand.u32 4294901760, %v135_v7  ;;  %v7967_v11 = vand.u32 4294901760, %v124_v8  ;;  %v113_v12 = vld [vmem:[%s14441_s1 + $0x318] sm:$0xff]  ;;  %v102_v13 = vld [vmem:[%s14441_s1 + $0x2c0] sm:$0xff]  ;;  %v91_v18 = vld [vmem:[%s14441_s1 + $0x268] sm:$0xff] }
   0x4   :  { %367 = vmatpush.msra.mxu0 %v7948_v3  ;;  %v7977_v14 = vsub.f32 %v179_v0, %v7948_v3  ;;  %v7980_v15 = vsub.f32 %v168_v1, %v7950_v4  ;;  %563 = vmatpush.msra.mxu3 %v7948_v3  ;;  %v7984_v16 = vsub.f32 %v157_v2, %v7952_v5  ;;  %v7986_v17 = vand.u32 4294901760, %v113_v12  ;;  %v80_v26 = vld [vmem:[%s14441_s1 + $0x210] sm:$0xff]  ;;  %v69_v34 = vld [vmem:[%s14441_s1 + $0x1b8] sm:$0xff] }
   0x5   :  { %v7992_v19 = vsub.f32 %v146_v6, %v7963_v9  ;;  %v7995_v20 = vsub.f32 %v135_v7, %v7965_v10  ;;  %v7998_v21 = vsub.f32 %v124_v8, %v7967_v11  ;;  %v8005_v25 = vand.u32 4294901760, %v102_v13 }
   0x6   :  { %369 = vmatpush.msra.mxu0 %v7950_v4  ;;  %510 = vmatpush.msra.mxu2 %v7977_v14  ;;  %v409_v22 = vand.u32 4294901760, %v7977_v14  ;;  %v14458_v23 = vand.u32 4294901760, %v7980_v15  ;;  %v14456_v24 = vand.u32 4294901760, %v7984_v16  ;;  %v8012_v28 = vand.u32 4294901760, %v91_v18 }
   0x7   :  { %565 = vmatpush.msra.mxu3 %v7950_v4  ;;  %v14454_v27 = vand.u32 4294901760, %v7992_v19  ;;  %v8015_v29 = vsub.f32 %v113_v12, %v7986_v17  ;;  %v14452_v33 = vand.u32 4294901760, %v7995_v20 }
   0x8   :  { %371 = vmatpush.msra.mxu0 %v7952_v5  ;;  %513 = vmatpush.msra.mxu2 %v7980_v15  ;;  %v410_v30 = vsub.f32 %v7977_v14, %v409_v22  ;;  %v416_v31 = vsub.f32 %v7980_v15, %v14458_v23  ;;  %v422_v32 = vsub.f32 %v7984_v16, %v14456_v24 }
   0x9   :  { %7 = vsyncpa [#allocation3], 0  ;;  %567 = vmatpush.msra.mxu3 %v7952_v5  ;;  %v8033_v35 = vand.u32 4294901760, %v80_v26  ;;  %v14451_v36 = vand.u32 4294901760, %v7998_v21  ;;  %v428_v39 = vsub.f32 %v7992_v19, %v14454_v27  ;;  %v8042_v40 = vsub.f32 %v102_v13, %v8005_v25  ;;  %v58_v42 = vld [vmem:[%s14441_s1 + $0x160] sm:$0xff]  ;;  %v47_v48 = vld [vmem:[%s14441_s1 + $0x108] sm:$0xff] }
   0xa   :  { %373 = vmatpush.msra.mxu0 %v7963_v9  ;;  %v411_v37 = vand.u32 4294901760, %v410_v30  ;;  %516 = vmatpush.msra.mxu2 %v7984_v16  ;;  %v417_v38 = vand.u32 4294901760, %v416_v31  ;;  %v8045_v41 = vand.u32 4294901760, %v69_v34  ;;  %v423_v43 = vand.u32 4294901760, %v422_v32  ;;  %v36_v54 = vld [vmem:[%s14441_s1 + $0xb0] sm:$0xff]  ;;  %v355_v59 = vld [vmem:[%s14441_s1 + $0xaa8] sm:$0xff] }
   0xb   :  { %569 = vmatpush.msra.mxu3 %v7963_v9  ;;  %v434_v44 = vsub.f32 %v7995_v20, %v14452_v33  ;;  %v14449_v45 = vand.u32 4294901760, %v8015_v29  ;;  %v8056_v46 = vsub.f32 %v91_v18, %v8012_v28  ;;  %v440_v47 = vsub.f32 %v7998_v21, %v14451_v36  ;;  %v25_v61 = vld [vmem:[%s14441_s1 + $0x58] sm:$0xff]  ;;  %v14_v2 = vld [vmem:[%s14441_s1] sm:$0xff]  ;;  %v344_v6 = vld [vmem:[%s14441_s1 + $0xa50] sm:$0xff]  ;;  %s7887_s25 = sshll.u32 %s14442_s2, 4  ;;  %s7888_s25 = int_to_ptr.hbm [resolvable:$true] %s7887_s25 }
   0xc   :  { %375 = vmatpush.msra.mxu0 %v7965_v10  ;;  %412 = vmatpush.msra.mxu1 %v411_v37  ;;  %v429_v49 = vand.u32 4294901760, %v428_v39  ;;  %v8067_v50 = vand.u32 4294901760, %v58_v42  ;;  %v14448_v51 = vand.u32 4294901760, %v8042_v40  ;;  %v8071_v52 = vsub.f32 %v80_v26, %v8033_v35  ;;  %v333_v32 = vld [vmem:[%s14441_s1 + $0x9f8] sm:$0xff] }
   0xd   :  { %519 = vmatpush.msra.mxu2 %v7992_v19  ;;  %571 = vmatpush.msra.mxu3 %v7965_v10  ;;  %v8076_v53 = vsub.f32 %v69_v34, %v8045_v41  ;;  %v435_v55 = vand.u32 4294901760, %v434_v44  ;;  %v446_v56 = vsub.f32 %v8015_v29, %v14449_v45  ;;  %v8085_v57 = vand.u32 4294901760, %v47_v48  ;;  %v322_v44 = vld [vmem:[%s14441_s1 + $0x9a0] sm:$0xff] }
   0xe   :  { %377 = vmatpush.msra.mxu0 %v7967_v11  ;;  %418 = vmatpush.msra.mxu1 %v417_v38  ;;  %v14447_v58 = vand.u32 4294901760, %v8056_v46  ;;  %v441_v60 = vand.u32 4294901760, %v440_v47  ;;  %v452_v62 = vsub.f32 %v8042_v40, %v14448_v51  ;;  %v8100_v63 = vand.u32 4294901760, %v36_v54  ;;  %v278_v45 = vld [vmem:[%s14441_s1 + $0x840] sm:$0xff] }
   0xf   :  { %522 = vmatpush.msra.mxu2 %v7995_v20  ;;  %573 = vmatpush.msra.mxu3 %v7967_v11  ;;  %v14445_v0 = vand.u32 4294901760, %v8071_v52  ;;  %v8104_v1 = vsub.f32 %v58_v42, %v8067_v50  ;;  %v14444_v7 = vand.u32 4294901760, %v8076_v53  ;;  %v8115_v8 = vand.u32 4294901760, %v355_v59 }
  0x10   :  { %379 = vmatpush.msra.mxu0 %v7986_v17  ;;  %424 = vmatpush.msra.mxu1 %v423_v43  ;;  %v447_v12 = vand.u32 4294901760, %v446_v56  ;;  %v458_v13 = vsub.f32 %v8056_v46, %v14447_v58  ;;  %v8121_v18 = vand.u32 4294901760, %v25_v61  ;;  %v8124_v26 = vsub.f32 %v47_v48, %v8085_v57 }
  0x11   :  { %525 = vmatpush.msra.mxu2 %v7998_v21  ;;  %575 = vmatpush.msra.mxu3 %v7986_v17  ;;  %v8128_v30 = vand.u32 4294901760, %v14_v2  ;;  %v8130_v31 = vand.u32 4294901760, %v344_v6  ;;  %v453_v34 = vand.u32 4294901760, %v452_v62  ;;  %v464_v37 = vsub.f32 %v8071_v52, %v14445_v0 }
  0x12   :  { %381 = vmatpush.msra.mxu0 %v8005_v25  ;;  %430 = vmatpush.msra.mxu1 %v429_v49  ;;  %v14443_v38 = vand.u32 4294901760, %v8104_v1  ;;  %v8141_v39 = vsub.f32 %v36_v54, %v8100_v63  ;;  %v470_v42 = vsub.f32 %v8076_v53, %v14444_v7  ;;  %v8149_v43 = vsub.f32 %v355_v59, %v8115_v8  ;;  %v311_v59 = vld [vmem:[%s14441_s1 + $0x948] sm:$0xff]  ;;  %v289_v7 = vld [vmem:[%s14441_s1 + $0x898] sm:$0xff] }
  0x13   :  { %528 = vmatpush.msra.mxu2 %v8015_v29  ;;  %577 = vmatpush.msra.mxu3 %v8005_v25  ;;  %v459_v47 = vand.u32 4294901760, %v458_v13  ;;  %v14446_v48 = vand.u32 4294901760, %v8124_v26  ;;  %v8157_v49 = vsub.f32 %v25_v61, %v8121_v18  ;;  %v8159_v54 = vand.u32 4294901760, %v333_v32  ;;  %v300_v13 = vld [vmem:[%s14441_s1 + $0x8f0] sm:$0xff] }
  0x14   :  { %383 = vmatpush.msra.mxu0 %v8012_v28  ;;  %436 = vmatpush.msra.mxu1 %v435_v55  ;;  %v8164_v55 = vsub.f32 %v14_v2, %v8128_v30  ;;  %v8167_v56 = vsub.f32 %v344_v6, %v8130_v31  ;;  %v476_v61 = vsub.f32 %v8104_v1, %v14443_v38  ;;  %v14450_v62 = vand.u32 4294901760, %v8141_v39 }
  0x15   :  { %531 = vmatpush.msra.mxu2 %v8042_v40  ;;  %579 = vmatpush.msra.mxu3 %v8012_v28  ;;  %v471_v2 = vand.u32 4294901760, %v470_v42  ;;  %v14453_v6 = vand.u32 4294901760, %v8149_v43  ;;  %v8191_v38 = vsub.f32 %v333_v32, %v8159_v54  ;;  %v8193_v42 = vand.u32 4294901760, %v311_v59 }
  0x16   :  { %385 = vmatpush.msra.mxu0 %v8033_v35  ;;  %442 = vmatpush.msra.mxu1 %v441_v60  ;;  %v465_v60 = vand.u32 4294901760, %v464_v37  ;;  %v14455_v37 = vand.u32 4294901760, %v8157_v49  ;;  %v14457_v0 = vand.u32 4294901760, %v8167_v56  ;;  %v488_v32 = vsub.f32 %v8141_v39, %v14450_v62 }
  0x17   :  { %534 = vmatpush.msra.mxu2 %v8056_v46  ;;  %581 = vmatpush.msra.mxu3 %v8033_v35  ;;  %v8209_v51 = vand.u32 4294901760, %v300_v13  ;;  %v14460_v36 = vand.u32 4294901760, %v8191_v38  ;;  %v8227_v33 = vsub.f32 %v311_v59, %v8193_v42  ;;  %v8234_v27 = vand.u32 4294901760, %v278_v45 }
  0x18   :  { %387 = vmatpush.msra.mxu0 %v8045_v41  ;;  %448 = vmatpush.msra.mxu1 %v447_v12  ;;  %v8177_v12 = vand.u32 4294901760, %v322_v44  ;;  %v494_v62 = vsub.f32 %v8157_v49, %v14455_v37  ;;  %vm7878_vm0 = vcmask 130048  }
  0x19   :  { %537 = vmatpush.msra.mxu2 %v8071_v52  ;;  %583 = vmatpush.msra.mxu3 %v8045_v41  ;;  %v8245_v24 = vsub.f32 %v300_v13, %v8209_v51  ;;  %v763_v13 = vsub.f32 %v8191_v38, %v14460_v36  ;;  %v14462_v14 = vand.u32 4294901760, %v8227_v33 }
  0x1a   :  { %389 = vmatpush.msra.mxu0 %v8067_v50  ;;  %454 = vmatpush.msra.mxu1 %v453_v34  ;;  %v482_v34 = vsub.f32 %v8124_v26, %v14446_v48  ;;  %v477_v48 = vand.u32 4294901760, %v476_v61  ;;  %v8207_v58 = vsub.f32 %v322_v44, %v8177_v12  ;;  %v8219_v61 = vand.u32 4294901760, %v289_v7 }
  0x1b   :  { %540 = vmatpush.msra.mxu2 %v8076_v53  ;;  %585 = vmatpush.msra.mxu3 %v8067_v50 }
  0x1c   :  { %391 = vmatpush.msra.mxu0 %v8085_v57  ;;  %460 = vmatpush.msra.mxu1 %v459_v47  ;;  %v14459_v47 = vand.u32 4294901760, %v8164_v55  ;;  %v483_v44 = vand.u32 4294901760, %v482_v34  ;;  %v489_v34 = vand.u32 4294901760, %v488_v32  ;;  %v14461_v37 = vand.u32 4294901760, %v8207_v58 }
  0x1d   :  { %543 = vmatpush.msra.mxu2 %v8104_v1  ;;  %587 = vmatpush.msra.mxu3 %v8085_v57  ;;  %v8251_v23 = vsub.f32 %v289_v7, %v8219_v61  ;;  %v495_v32 = vand.u32 4294901760, %v494_v62  ;;  %v245_v62 = vld [vmem:[%s14441_s1 + $0x738] sm:$0xff] }
  0x1e   :  { %393 = vmatpush.msra.mxu0 %v8100_v63  ;;  %466 = vmatpush.msra.mxu1 %v465_v60  ;;  %v751_v60 = vsub.f32 %v8149_v43, %v14453_v6  ;;  %v757_v6 = vsub.f32 %v8167_v56, %v14457_v0  ;;  %v500_v59 = vsub.f32 %v8164_v55, %v14459_v47 }
  0x1f   :  { %546 = vmatpush.msra.mxu2 %v8124_v26  ;;  %589 = vmatpush.msra.mxu3 %v8100_v63  ;;  %v8267_v47 = vsub.f32 %v278_v45, %v8234_v27  ;;  %v769_v36 = vsub.f32 %v8207_v58, %v14461_v37  ;;  %v775_v37 = vsub.f32 %v8227_v33, %v14462_v14  ;;  %v14690_v14 = vand.u32 4294901760, %v8245_v24 }
  0x20   :  { %395 = vmatpush.msra.mxu0 %v8121_v18  ;;  %472 = vmatpush.msra.mxu1 %v471_v2  ;;  %v267_v2 = vld [vmem:[%s14441_s1 + $0x7e8] sm:$0xff]  ;;  %v752_v0 = vand.u32 4294901760, %v751_v60  ;;  %v14687_v60 = vand.u32 4294901760, %v7980_v15  ;;  %v758_v7 = vand.u32 4294901760, %v757_v6  ;;  %v14688_v6 = vand.u32 4294901760, %v7984_v16 }
  0x21   :  { %549 = vmatpush.msra.mxu2 %v8141_v39  ;;  %591 = vmatpush.msra.mxu3 %v8121_v18  ;;  %v8292_v16 = vand.u32 4294901760, %v245_v62 }
  0x22   :  { %397 = vmatpush.msra.mxu0 %v8128_v30  ;;  %478 = vmatpush.msra.mxu1 %v477_v48  ;;  %v256_v48 = vld [vmem:[%s14441_s1 + $0x790] sm:$0xff] }
  0x23   :  { %552 = vmatpush.msra.mxu2 %v8157_v49  ;;  %593 = vmatpush.msra.mxu3 %v8128_v30 }
  0x24   :  { %604 = vmatpush.msrb.mxu0 %v409_v22  ;;  %484 = vmatpush.msra.mxu1 %v483_v44  ;;  %v8261_v22 = vand.u32 4294901760, %v267_v2  ;;  %v501_v44 = vand.u32 4294901760, %v500_v59  ;;  %v764_v59 = vand.u32 4294901760, %v763_v13  ;;  %v770_v13 = vand.u32 4294901760, %v769_v36  ;;  %v12_v36 = vld [vmem:[%s14440_s0] sm:$0xff] }
  0x25   :  { %555 = vmatpush.msra.mxu2 %v8164_v55  ;;  %753 = vmatpush.msrb.mxu3 %v752_v0  ;;  %v14689_v0 = vand.u32 4294901760, %v7992_v19 }
  0x26   :  { %608 = vmatpush.msrb.mxu0 %v14687_v60  ;;  %490 = vmatpush.msra.mxu1 %v489_v34  ;;  %v8277_v60 = vand.u32 4294901760, %v256_v48  ;;  %v234_v34 = vld [vmem:[%s14441_s1 + $0x6e0] sm:$0xff]  ;;  %v8290_v15 = vsub.f32 %v267_v2, %v8261_v22  ;;  %v781_v2 = vsub.f32 %v8245_v24, %v14690_v14 }
  0x27   :  { %708 = vmatpush.msrb.mxu2 %v8115_v8  ;;  %759 = vmatpush.msrb.mxu3 %v758_v7  ;;  %v8307_v19 = vand.u32 4294901760, %v234_v34  ;;  %v14691_v7 = vand.u32 4294901760, %v7995_v20 }
  0x28   :  { %612 = vmatpush.msrb.mxu0 %v14688_v6  ;;  %496 = vmatpush.msra.mxu1 %v495_v32  ;;  %v223_v32 = vld [vmem:[%s14441_s1 + $0x688] sm:$0xff]  ;;  %v8305_v45 = vsub.f32 %v256_v48, %v8277_v60  ;;  %v776_v48 = vand.u32 4294901760, %v775_v37  ;;  %v8321_v6 = vsub.f32 %v245_v62, %v8292_v16  ;;  %v212_v37 = vld [vmem:[%s14441_s1 + $0x630] sm:$0xff]  ;;  %v782_v62 = vand.u32 4294901760, %v781_v2 }
  0x29   :  { %710 = vmatpush.msrb.mxu2 %v8130_v31  ;;  %765 = vmatpush.msrb.mxu3 %v764_v59  ;;  %v8323_v20 = vand.u32 4294901760, %v223_v32  ;;  %v8337_v14 = vsub.f32 %v234_v34, %v8307_v19  ;;  %v8352_v59 = vand.u32 4294901760, %v212_v37 }
  0x2a   :  { %616 = vmatpush.msrb.mxu0 %v14689_v0  ;;  %502 = vmatpush.msra.mxu1 %v501_v44  ;;  %v14692_v0 = vand.u32 4294901760, %v8251_v23 }
  0x2b   :  { %712 = vmatpush.msrb.mxu2 %v8159_v54  ;;  %771 = vmatpush.msrb.mxu3 %v770_v13  ;;  %v14697_v13 = vand.u32 4294901760, %v8290_v15 }
  0x2c   :  { %620 = vmatpush.msrb.mxu0 %v14691_v7  ;;  %671 = vmatpush.msrb.mxu1 %v7948_v3  ;;  %v787_v44 = vsub.f32 %v8251_v23, %v14692_v0  ;;  %v14693_v3 = vand.u32 4294901760, %v7998_v21  ;;  %v14694_v7 = vand.u32 4294901760, %v8267_v47  ;;  %v8339_v21 = vand.u32 4294901760, %v12_v36 }
  0x2d   :  { %714 = vmatpush.msrb.mxu2 %v8177_v12  ;;  %777 = vmatpush.msrb.mxu3 %v776_v48  ;;  %v799_v34 = vsub.f32 %v8290_v15, %v14697_v13  ;;  %v14699_v48 = vand.u32 4294901760, %v8305_v45  ;;  %v14702_v13 = vand.u32 4294901760, %v8071_v52  ;;  %v14705_v52 = vand.u32 4294901760, %v8076_v53 }
  0x2e   :  { %624 = vmatpush.msrb.mxu0 %v14693_v3  ;;  %673 = vmatpush.msrb.mxu1 %v7950_v4  ;;  %v793_v0 = vsub.f32 %v8267_v47, %v14694_v7  ;;  %14695 = vst [vmem:[#allocation5_spill] sm:$0xff] %v8339_v21  ;;  %v14696_v4 = vand.u32 4294901760, %v8015_v29  ;;  %v788_v3 = vand.u32 4294901760, %v787_v44  ;;  %v201_v7 = vld [vmem:[%s14441_s1 + $0x5d8] sm:$0xff]  ;;  %v8355_v29 = vsub.f32 %v223_v32, %v8323_v20 }
  0x2f   :  { %716 = vmatpush.msrb.mxu2 %v8193_v42  ;;  %783 = vmatpush.msrb.mxu3 %v782_v62  ;;  %v8366_v2 = vsub.f32 %v12_v36, %v8339_v21  ;;  %v8368_v32 = vand.u32 4294901760, %v201_v7  ;;  %v14701_v62 = vand.u32 4294901760, %v8321_v6 }
  0x30   :  { %628 = vmatpush.msrb.mxu0 %v14696_v4  ;;  %675 = vmatpush.msrb.mxu1 %v7952_v5  ;;  %v14698_v5 = vand.u32 4294901760, %v8042_v40  ;;  %v794_v44 = vand.u32 4294901760, %v793_v0  ;;  %v805_v4 = vsub.f32 %v8305_v45, %v14699_v48  ;;  %v190_v40 = vld [vmem:[%s14441_s1 + $0x580] sm:$0xff]  ;;  %v800_v0 = vand.u32 4294901760, %v799_v34 }
  0x31   :  { %718 = vmatpush.msrb.mxu2 %v8209_v51  ;;  %789 = vmatpush.msrb.mxu3 %v788_v3  ;;  %v811_v36 = vsub.f32 %v8321_v6, %v14701_v62  ;;  %v8382_v48 = vsub.f32 %v212_v37, %v8352_v59  ;;  %v14703_v3 = vand.u32 4294901760, %v8337_v14  ;;  %v8397_v37 = vsub.f32 %v201_v7, %v8368_v32 }
  0x32   :  { %632 = vmatpush.msrb.mxu0 %v14698_v5  ;;  %677 = vmatpush.msrb.mxu1 %v7963_v9  ;;  %v14700_v9 = vand.u32 4294901760, %v8056_v46  ;;  %v822_v5 = vand.u32 4294901760, %v8355_v29  ;;  %v8387_v46 = vand.u32 4294901760, %v190_v40 }
  0x33   :  { %720 = vmatpush.msrb.mxu2 %v8219_v61  ;;  %795 = vmatpush.msrb.mxu3 %v794_v44  ;;  %v817_v34 = vsub.f32 %v8337_v14, %v14703_v3  ;;  %v812_v44 = vand.u32 4294901760, %v811_v36  ;;  %v828_v7 = vand.u32 4294901760, %v8382_v48  ;;  %v834_v62 = vand.u32 4294901760, %v8397_v37 }
  0x34   :  { %636 = vmatpush.msrb.mxu0 %v14700_v9  ;;  %679 = vmatpush.msrb.mxu1 %v7965_v10  ;;  %v806_v10 = vand.u32 4294901760, %v805_v4  ;;  %v8394_v9 = vand.u32 4294901760, %v8366_v2  ;;  %v823_v4 = vsub.f32 %v8355_v29, %v822_v5  ;;  %v14708_v3 = vand.u32 4294901760, %v8124_v26 }
  0x35   :  { %722 = vmatpush.msrb.mxu2 %v8234_v27  ;;  %801 = vmatpush.msrb.mxu3 %v800_v0  ;;  %v818_v53 = vand.u32 4294901760, %v817_v34 }
  0x36   :  { %640 = vmatpush.msrb.mxu0 %v14702_v13  ;;  %681 = vmatpush.msrb.mxu1 %v7967_v11  ;;  %14704 = vst [vmem:[#allocation6_spill] sm:$0xff] %v8394_v9  ;;  %v13_v11 = vld [vmem:[%s14440_s0 + $0x8] sm:$0xff]  ;;  %v14706_v13 = vand.u32 4294901760, %v8104_v1  ;;  %v401_v0 = vsub.f32 %v8366_v2, %v8394_v9  ;;  %v829_v1 = vsub.f32 %v8382_v48, %v828_v7 }
  0x37   :  { %724 = vmatpush.msrb.mxu2 %v8261_v22  ;;  %807 = vmatpush.msrb.mxu3 %v806_v10  ;;  %v8420_v36 = vand.u32 4294901760, %v13_v11 }
  0x38   :  { %644 = vmatpush.msrb.mxu0 %v14705_v52  ;;  %683 = vmatpush.msrb.mxu1 %v7986_v17  ;;  %v8414_v17 = vsub.f32 %v190_v40, %v8387_v46  ;;  %v14709_v40 = vand.u32 4294901760, %v8141_v39  ;;  %v8434_v26 = vand.u32 4294901760, %v401_v0  ;;  %v14711_v52 = vand.u32 4294901760, %v8157_v49 }
  0x39   :  { %726 = vmatpush.msrb.mxu2 %v8277_v60  ;;  %14707 = vst [vmem:[#allocation7_spill] sm:$0xff] %v8420_v36  ;;  %813 = vmatpush.msrb.mxu3 %v812_v44  ;;  %v8440_v34 = vsub.f32 %v13_v11, %v8420_v36  ;;  %v14712_v39 = vand.u32 4294901760, %v8164_v55 }
  0x3a   :  { %648 = vmatpush.msrb.mxu0 %v14706_v13  ;;  %685 = vmatpush.msrb.mxu1 %v8005_v25  ;;  %v824_v25 = vand.u32 4294901760, %v823_v4  ;;  %v840_v10 = vand.u32 4294901760, %v8414_v17 }
  0x3b   :  { %728 = vmatpush.msrb.mxu2 %v8292_v16  ;;  %819 = vmatpush.msrb.mxu3 %v818_v53  ;;  %14710 = vst [vmem:[#allocation8_spill] sm:$0xff] %v8440_v34 }
  0x3c   :  { %652 = vmatpush.msrb.mxu0 %v14708_v3  ;;  %687 = vmatpush.msrb.mxu1 %v8012_v28  ;;  %v835_v28 = vsub.f32 %v8397_v37, %v834_v62  ;;  %v841_v44 = vsub.f32 %v8414_v17, %v840_v10  ;;  %v81_v3 = vld [vmem:[%s14441_s1 + $0x218] sm:$0xff] }
  0x3d   :  { %730 = vmatpush.msrb.mxu2 %v8307_v19  ;;  %825 = vmatpush.msrb.mxu3 %v824_v25 }
  0x3e   :  { %656 = vmatpush.msrb.mxu0 %v14709_v40  ;;  %689 = vmatpush.msrb.mxu1 %v8033_v35  ;;  %v830_v35 = vand.u32 4294901760, %v829_v1  ;;  %v836_v49 = vand.u32 4294901760, %v835_v28 }
  0x3f   :  { %732 = vmatpush.msrb.mxu2 %v8323_v20  ;;  %403 = vmatmul.f32.vlgmr.msra.gmra.mxu0 %v8434_v26 }
  0x40   :  { %660 = vmatpush.msrb.mxu0 %v14711_v52  ;;  %691 = vmatpush.msrb.mxu1 %v8045_v41  ;;  %v8455_v41 = vand.u32 4294901760, %v8440_v34  ;;  %v70_v52 = vld [vmem:[%s14441_s1 + $0x1c0] sm:$0xff] }
  0x41   :  { %734 = vmatpush.msrb.mxu2 %v8352_v59  ;;  %831 = vmatpush.msrb.mxu3 %v830_v35 }
  0x42   :  { %664 = vmatpush.msrb.mxu0 %v14712_v39  ;;  %693 = vmatpush.msrb.mxu1 %v8067_v50  ;;  %14713 = vst [vmem:[#allocation9_spill] sm:$0xff] %v8455_v41  ;;  %v842_v50 = vand.u32 4294901760, %v841_v44  ;;  %v742_v55 = vsub.f32 %v8440_v34, %v8455_v41 }
  0x43   :  { %736 = vmatpush.msrb.mxu2 %v8368_v32  ;;  %837 = vmatpush.msrb.mxu3 %v836_v49 }
  0x44   :  { %851 = vmatpush.msra.mxu0 %v8149_v43  ;;  %695 = vmatpush.msrb.mxu1 %v8085_v57  ;;  %v14714_v57 = vand.u32 4294901760, %v8149_v43  ;;  %v8474_v11 = vand.u32 4294901760, %v742_v55  ;;  %v14718_v43 = vand.u32 4294901760, %v8207_v58 }
  0x45   :  { %558 = vmatmul.f32.vlgmr.msra.gmra.mxu2 %v8366_v2  ;;  %597 = vmatmul.f32.vlgmr.msra.gmra.mxu3 %v8394_v9 }
  0x46   :  { %854 = vmatpush.msra.mxu0 %v8167_v56  ;;  %697 = vmatpush.msrb.mxu1 %v8100_v63  ;;  %v14715_v63 = vand.u32 4294901760, %v8167_v56  ;;  %14716 = vst [vmem:[#allocation10_spill] sm:$0xff] %v8474_v11 }
  0x47   :  { %738 = vmatpush.msrb.mxu2 %v8387_v46  ;;  %843 = vmatpush.msrb.mxu3 %v842_v50 }
  0x48   :  { %857 = vmatpush.msra.mxu0 %v8191_v38  ;;  %699 = vmatpush.msrb.mxu1 %v8121_v18  ;;  %v14717_v18 = vand.u32 4294901760, %v8191_v38 }
  0x49   :  { %945 = vmatpush.msra.mxu2 %v14714_v57  ;;  %504 = vmatmul.f32.vlgmr.msra.gmra.mxu1 %v8339_v21 }
  0x4a   :  { %860 = vmatpush.msra.mxu0 %v8207_v58  ;;  %1012 = vmatpush.msra.mxu3 %v8115_v8  ;;  %v14720_v58 = vand.u32 4294901760, %v8245_v24 }
  0x4b   :  { %949 = vmatpush.msra.mxu2 %v14715_v63  ;;  %701 = vmatpush.msrb.mxu1 %v8128_v30  ;;  %v14722_v30 = vand.u32 4294901760, %v8267_v47  ;;  %v8671_v63 = vand.u32 4294901760, %v70_v52 }
  0x4c   :  { %863 = vmatpush.msra.mxu0 %v8227_v33  ;;  %1014 = vmatpush.msra.mxu3 %v8130_v31 }
  0x4d   :  { %904 = vmatpush.msra.mxu1 %v8115_v8  ;;  %953 = vmatpush.msra.mxu2 %v14717_v18  ;;  %v14719_v8 = vand.u32 4294901760, %v8227_v33  ;;  %v14721_v33 = vand.u32 4294901760, %v8251_v23 }
  0x4e   :  { %744 = vmatmul.f32.vlgmr.msrb.gmra.mxu2 %v8474_v11  ;;  %866 = vmatpush.msra.mxu0 %v8245_v24  ;;  %v14723_v24 = vand.u32 4294901760, %v8290_v15 }
  0x4f   :  { %906 = vmatpush.msra.mxu1 %v8130_v31  ;;  %957 = vmatpush.msra.mxu2 %v14718_v43  ;;  %v14724_v31 = vand.u32 4294901760, %v8305_v45 }
  0x50   :  { %1016 = vmatpush.msra.mxu3 %v8159_v54  ;;  %666 = vmatmul.f32.vlgmr.msrb.gmra.mxu0 %v8339_v21 }
  0x51   :  { %845 = vmatmul.f32.vlgmr.msrb.gmra.mxu3 %v8420_v36  ;;  %869 = vmatpush.msra.mxu0 %v8251_v23  ;;  %v180_v23 = vld [vmem:[%s14441_s1 + $0x530] sm:$0xff] }
  0x52   :  { %908 = vmatpush.msra.mxu1 %v8159_v54  ;;  %961 = vmatpush.msra.mxu2 %v14719_v8  ;;  %v8528_v38 = vand.u32 4294901760, %v180_v23  ;;  %v158_v54 = vld [vmem:[%s14441_s1 + $0x480] sm:$0xff]  ;;  %v48_v8 = vld [vmem:[%s14441_s1 + $0x110] sm:$0xff] }
  0x53   :  { %1018 = vmatpush.msra.mxu3 %v8177_v12  ;;  %703 = vmatmul.f32.vlgmr.msrb.gmra.mxu1 %v8339_v21 }
  0x54   :  { %872 = vmatpush.msra.mxu0 %v8267_v47  ;;  %910 = vmatpush.msra.mxu1 %v8177_v12  ;;  %v147_v12 = vld [vmem:[%s14441_s1 + $0x428] sm:$0xff]  ;;  %v8548_v47 = vand.u32 4294901760, %v158_v54 }
  0x55   :  { %965 = vmatpush.msra.mxu2 %v14720_v58  ;;  %1020 = vmatpush.msra.mxu3 %v8193_v42 }
  0x56   :  { %875 = vmatpush.msra.mxu0 %v8290_v15  ;;  %912 = vmatpush.msra.mxu1 %v8193_v42  ;;  %v14726_v42 = vand.u32 4294901760, %v8337_v14  ;;  %v8561_v15 = vand.u32 4294901760, %v147_v12 }
  0x57   :  { %969 = vmatpush.msra.mxu2 %v14721_v33  ;;  %1022 = vmatpush.msra.mxu3 %v8209_v51 }
  0x58   :  { %878 = vmatpush.msra.mxu0 %v8305_v45  ;;  %914 = vmatpush.msra.mxu1 %v8209_v51  ;;  %v169_v51 = vld [vmem:[%s14441_s1 + $0x4d8] sm:$0xff] }
  0x59   :  { %973 = vmatpush.msra.mxu2 %v14722_v30  ;;  %1024 = vmatpush.msra.mxu3 %v8219_v61  ;;  %v8538_v56 = vand.u32 4294901760, %v169_v51  ;;  %v125_v45 = vld [vmem:[%s14441_s1 + $0x378] sm:$0xff] }
  0x5a   :  { %881 = vmatpush.msra.mxu0 %v8321_v6  ;;  %916 = vmatpush.msra.mxu1 %v8219_v61  ;;  %v8551_v61 = vsub.f32 %v180_v23, %v8528_v38 }
  0x5b   :  { %977 = vmatpush.msra.mxu2 %v14723_v24  ;;  %1026 = vmatpush.msra.mxu3 %v8234_v27 }
  0x5c   :  { %884 = vmatpush.msra.mxu0 %v8337_v14  ;;  %918 = vmatpush.msra.mxu1 %v8234_v27  ;;  %v14725_v27 = vand.u32 4294901760, %v8321_v6  ;;  %v14476_v6 = vand.u32 4294901760, %v8551_v61  ;;  %v8578_v14 = vsub.f32 %v158_v54, %v8548_v47 }
  0x5d   :  { %981 = vmatpush.msra.mxu2 %v14724_v31  ;;  %1028 = vmatpush.msra.mxu3 %v8261_v22 }
  0x5e   :  { %887 = vmatpush.msra.mxu0 %v8355_v29  ;;  %920 = vmatpush.msra.mxu1 %v8261_v22  ;;  %v136_v22 = vld [vmem:[%s14441_s1 + $0x3d0] sm:$0xff]  ;;  %v8588_v29 = vand.u32 4294901760, %v125_v45 }
  0x5f   :  { %985 = vmatpush.msra.mxu2 %v14725_v27  ;;  %1030 = vmatpush.msra.mxu3 %v8277_v60  ;;  %v8699_v27 = vand.u32 4294901760, %v48_v8 }
  0x60   :  { %890 = vmatpush.msra.mxu0 %v8382_v48  ;;  %922 = vmatpush.msra.mxu1 %v8277_v60  ;;  %v8564_v60 = vsub.f32 %v169_v51, %v8538_v56  ;;  %v8592_v48 = vsub.f32 %v147_v12, %v8561_v15  ;;  %v37_v51 = vld [vmem:[%s14441_s1 + $0xb8] sm:$0xff]  ;;  %v8702_v12 = vsub.f32 %v70_v52, %v8671_v63 }
  0x61   :  { %989 = vmatpush.msra.mxu2 %v14726_v42  ;;  %1032 = vmatpush.msra.mxu3 %v8292_v16 }
  0x62   :  { %893 = vmatpush.msra.mxu0 %v8397_v37  ;;  %924 = vmatpush.msra.mxu1 %v8292_v16  ;;  %v8574_v16 = vand.u32 4294901760, %v136_v22  ;;  %v1092_v37 = vsub.f32 %v8551_v61, %v14476_v6  ;;  %v14471_v0 = vand.u32 4294901760, %v8592_v48  ;;  %v14465_v52 = vand.u32 4294901760, %v8702_v12 }
  0x63   :  { %993 = vmatpush.msra.mxu2 %v822_v5  ;;  %1034 = vmatpush.msra.mxu3 %v8307_v19  ;;  %v14474_v5 = vand.u32 4294901760, %v8564_v60 }
  0x64   :  { %896 = vmatpush.msra.mxu0 %v8414_v17  ;;  %926 = vmatpush.msra.mxu1 %v8307_v19  ;;  %v114_v19 = vld [vmem:[%s14441_s1 + $0x320] sm:$0xff]  ;;  %v8609_v13 = vsub.f32 %v136_v22, %v8574_v16  ;;  %v1093_v1 = vand.u32 4294901760, %v1092_v37  ;;  %v1110_v39 = vsub.f32 %v8592_v48, %v14471_v0 }
  0x65   :  { %997 = vmatpush.msra.mxu2 %v828_v7  ;;  %1036 = vmatpush.msra.mxu3 %v8323_v20  ;;  %v8605_v4 = vand.u32 4294901760, %v114_v19  ;;  %v14473_v7 = vand.u32 4294901760, %v8578_v14  ;;  %v1098_v17 = vsub.f32 %v8564_v60, %v14474_v5  ;;  %v26_v22 = vld [vmem:[%s14441_s1 + $0x60] sm:$0xff] }
  0x66   :  { %899 = vmatmul.f32.vlgmr.msra.gmra.mxu0 %v8440_v34  ;;  %928 = vmatpush.msra.mxu1 %v8323_v20  ;;  %v103_v20 = vld [vmem:[%s14441_s1 + $0x2c8] sm:$0xff]  ;;  %v1111_v58 = vand.u32 4294901760, %v1110_v39 }
  0x67   :  { %1049 = vmatpush.msrb.mxu0 %v8528_v38  ;;  %1001 = vmatpush.msra.mxu2 %v834_v62  ;;  %v8621_v53 = vand.u32 4294901760, %v103_v20  ;;  %v8625_v62 = vsub.f32 %v125_v45, %v8588_v29  ;;  %v1104_v40 = vsub.f32 %v8578_v14, %v14473_v7  ;;  %v8641_v28 = vsub.f32 %v114_v19, %v8605_v4 }
  0x68   :  { %1038 = vmatpush.msra.mxu3 %v8352_v59  ;;  %930 = vmatpush.msra.mxu1 %v8352_v59  ;;  %v92_v59 = vld [vmem:[%s14441_s1 + $0x270] sm:$0xff]  ;;  %v1099_v35 = vand.u32 4294901760, %v1098_v17 }
  0x69   :  { %1051 = vmatpush.msrb.mxu0 %v8538_v56  ;;  %1005 = vmatpush.msra.mxu2 %v840_v10  ;;  %v8632_v25 = vand.u32 4294901760, %v92_v59  ;;  %v14470_v10 = vand.u32 4294901760, %v8609_v13  ;;  %v14469_v44 = vand.u32 4294901760, %v8625_v62  ;;  %v8657_v49 = vsub.f32 %v103_v20, %v8621_v53 }
  0x6a   :  { %1040 = vmatpush.msra.mxu3 %v8368_v32  ;;  %1007 = vmatmul.f32.vlgmr.msra.gmra.mxu2 %v8420_v36  ;;  %v1105_v55 = vand.u32 4294901760, %v1104_v40  ;;  %v14467_v18 = vand.u32 4294901760, %v8641_v28  ;;  %v8714_v20 = vand.u32 4294901760, %v37_v51  ;;  %v8731_v40 = vand.u32 4294901760, %v26_v22 }
  0x6b   :  { %1053 = vmatpush.msrb.mxu0 %v8548_v47  ;;  %1192 = vmatpush.msrb.mxu2 %v8551_v61  ;;  %v8662_v50 = vsub.f32 %v92_v59, %v8632_v25  ;;  %v1116_v57 = vsub.f32 %v8609_v13, %v14470_v10  ;;  %v1122_v33 = vsub.f32 %v8625_v62, %v14469_v44  ;;  %v14466_v23 = vand.u32 4294901760, %v8657_v49  ;;  %v356_v59 = vld [vmem:[%s14441_s1 + $0xab0] sm:$0xff] }
  0x6c   :  { %932 = vmatpush.msra.mxu1 %v8368_v32  ;;  %1042 = vmatpush.msra.mxu3 %v8387_v46  ;;  %v8645_v32 = vand.u32 4294901760, %v81_v3  ;;  %v1128_v54 = vsub.f32 %v8641_v28, %v14467_v18 }
  0x6d   :  { %1044 = vmatmul.f32.vlgmr.msra.gmra.mxu3 %v8420_v36  ;;  %1055 = vmatpush.msrb.mxu0 %v8561_v15  ;;  %v14464_v24 = vand.u32 4294901760, %v8662_v50  ;;  %v1117_v31 = vand.u32 4294901760, %v1116_v57  ;;  %v1123_v45 = vand.u32 4294901760, %v1122_v33  ;;  %v1134_v19 = vsub.f32 %v8657_v49, %v14466_v23 }
  0x6e   :  { %1195 = vmatpush.msrb.mxu2 %v8564_v60  ;;  %1245 = vmatpush.msrb.mxu3 %v8528_v38  ;;  %v8677_v43 = vsub.f32 %v81_v3, %v8645_v32  ;;  %v15_v3 = vld [vmem:[%s14441_s1 + $0x8] sm:$0xff]  ;;  %v8752_v33 = vsub.f32 %v37_v51, %v8714_v20  ;;  %v8765_v51 = vsub.f32 %v26_v22, %v8731_v40 }
  0x6f   :  { %934 = vmatpush.msra.mxu1 %v8387_v46  ;;  %1057 = vmatpush.msrb.mxu0 %v8574_v16  ;;  %v59_v46 = vld [vmem:[%s14441_s1 + $0x168] sm:$0xff]  ;;  %v1140_v17 = vsub.f32 %v8662_v50, %v14464_v24  ;;  %v1135_v57 = vand.u32 4294901760, %v1134_v19 }
  0x70   :  { %938 = vmatmul.f32.vlgmr.msra.gmra.mxu1 %v8455_v41  ;;  %1198 = vmatpush.msrb.mxu2 %v8578_v14  ;;  %v8686_v30 = vand.u32 4294901760, %v59_v46  ;;  %v14463_v42 = vand.u32 4294901760, %v8677_v43 }
  0x71   :  { %1094 = vmatpush.msrb.mxu1 %v1093_v1  ;;  %1247 = vmatpush.msrb.mxu3 %v8538_v56  ;;  %v1129_v1 = vand.u32 4294901760, %v1128_v54  ;;  %v334_v54 = vld [vmem:[%s14441_s1 + $0xa00] sm:$0xff] }
  0x72   :  { %1059 = vmatpush.msrb.mxu0 %v8588_v29  ;;  %1201 = vmatpush.msrb.mxu2 %v8592_v48  ;;  %v8717_v37 = vsub.f32 %v59_v46, %v8686_v30  ;;  %v1146_v39 = vsub.f32 %v8677_v43, %v14463_v42  ;;  %v8742_v46 = vand.u32 4294901760, %v356_v59  ;;  %v8785_v18 = vand.u32 4294901760, %v334_v54 }
  0x73   :  { %1100 = vmatpush.msrb.mxu1 %v1099_v35  ;;  %1249 = vmatpush.msrb.mxu3 %v8548_v47  ;;  %v8735_v35 = vsub.f32 %v48_v8, %v8699_v27  ;;  %v8748_v8 = vand.u32 4294901760, %v15_v3 }
  0x74   :  { %1061 = vmatpush.msrb.mxu0 %v8605_v4  ;;  %1204 = vmatpush.msrb.mxu2 %v8609_v13  ;;  %14727 = vst [vmem:[#allocation11_spill] sm:$0xff] %v8742_v46  ;;  %v8775_v24 = vsub.f32 %v356_v59, %v8742_v46  ;;  %v8816_v7 = vsub.f32 %v334_v54, %v8785_v18 }
  0x75   :  { %1106 = vmatpush.msrb.mxu1 %v1105_v55  ;;  %1251 = vmatpush.msrb.mxu3 %v8561_v15  ;;  %v345_v55 = vld [vmem:[%s14441_s1 + $0xa58] sm:$0xff]  ;;  %v14472_v19 = vand.u32 4294901760, %v8735_v35  ;;  %v8783_v23 = vsub.f32 %v15_v3, %v8748_v8 }
  0x76   :  { %1063 = vmatpush.msrb.mxu0 %v8621_v53  ;;  %1207 = vmatpush.msrb.mxu2 %v8625_v62  ;;  %v8767_v42 = vand.u32 4294901760, %v345_v55  ;;  %v14482_v10 = vand.u32 4294901760, %v8775_v24 }
  0x77   :  { %1112 = vmatpush.msrb.mxu1 %v1111_v58  ;;  %1253 = vmatpush.msrb.mxu3 %v8574_v16  ;;  %v14468_v58 = vand.u32 4294901760, %v8717_v37  ;;  %v1164_v3 = vsub.f32 %v8735_v35, %v14472_v19  ;;  %v14483_v19 = vand.u32 4294901760, %v8783_v23 }
  0x78   :  { %1065 = vmatpush.msrb.mxu0 %v8632_v25  ;;  %1210 = vmatpush.msrb.mxu2 %v8641_v28  ;;  %14728 = vst [vmem:[#allocation12_spill] sm:$0xff] %v8767_v42  ;;  %v8800_v44 = vsub.f32 %v345_v55, %v8767_v42 }
  0x79   :  { %1118 = vmatpush.msrb.mxu1 %v1117_v31  ;;  %1255 = vmatpush.msrb.mxu3 %v8588_v29  ;;  %v1141_v31 = vand.u32 4294901760, %v1140_v17  ;;  %v323_v17 = vld [vmem:[%s14441_s1 + $0x9a8] sm:$0xff]  ;;  %v1158_v22 = vsub.f32 %v8717_v37, %v14468_v58  ;;  %v14477_v58 = vand.u32 4294901760, %v8765_v51 }
  0x7a   :  { %1067 = vmatpush.msrb.mxu0 %v8645_v32  ;;  %1213 = vmatpush.msrb.mxu2 %v8657_v49  ;;  %v8792_v59 = vand.u32 4294901760, %v323_v17 }
  0x7b   :  { %1124 = vmatpush.msrb.mxu1 %v1123_v45  ;;  %1257 = vmatpush.msrb.mxu3 %v8605_v4  ;;  %v1152_v45 = vsub.f32 %v8702_v12, %v14465_v52  ;;  %v14475_v52 = vand.u32 4294901760, %v8752_v33  ;;  %v1176_v54 = vsub.f32 %v8765_v51, %v14477_v58 }
  0x7c   :  { %1069 = vmatpush.msrb.mxu0 %v8671_v63  ;;  %1216 = vmatpush.msrb.mxu2 %v8662_v50  ;;  %v8821_v5 = vsub.f32 %v323_v17, %v8792_v59  ;;  %v1433_v17 = vsub.f32 %v8775_v24, %v14482_v10  ;;  %v14729_v10 = vand.u32 4294901760, %v8551_v61 }
  0x7d   :  { %1130 = vmatpush.msrb.mxu1 %v1129_v1  ;;  %1259 = vmatpush.msrb.mxu3 %v8621_v53  ;;  %v1147_v1 = vand.u32 4294901760, %v1146_v39  ;;  %v312_v39 = vld [vmem:[%s14441_s1 + $0x950] sm:$0xff]  ;;  %v1170_v55 = vsub.f32 %v8752_v33, %v14475_v52  ;;  %v1182_v52 = vsub.f32 %v8783_v23, %v14483_v19  ;;  %v14730_v19 = vand.u32 4294901760, %v8800_v44 }
  0x7e   :  { %1071 = vmatpush.msrb.mxu0 %v8686_v30  ;;  %1219 = vmatpush.msrb.mxu2 %v8677_v43  ;;  %v8805_v0 = vand.u32 4294901760, %v312_v39 }
  0x7f   :  { %1136 = vmatpush.msrb.mxu1 %v1135_v57  ;;  %1261 = vmatpush.msrb.mxu3 %v8632_v25  ;;  %v1153_v57 = vand.u32 4294901760, %v1152_v45  ;;  %v1159_v45 = vand.u32 4294901760, %v1158_v22  ;;  %v1165_v22 = vand.u32 4294901760, %v1164_v3  ;;  %v279_v3 = vld [vmem:[%s14441_s1 + $0x848] sm:$0xff]  ;;  %v1171_v58 = vand.u32 4294901760, %v1170_v55 }
  0x80   :  { %1073 = vmatpush.msrb.mxu0 %v8699_v27  ;;  %1222 = vmatpush.msrb.mxu2 %v8702_v12  ;;  %v1177_v55 = vand.u32 4294901760, %v1176_v54  ;;  %v1439_v41 = vsub.f32 %v8800_v44, %v14730_v19  ;;  %v8865_v61 = vand.u32 4294901760, %v279_v3  ;;  %v257_v54 = vld [vmem:[%s14441_s1 + $0x798] sm:$0xff]  ;;  %v1183_v19 = vand.u32 4294901760, %v1182_v52  ;;  %v246_v52 = vld [vmem:[%s14441_s1 + $0x740] sm:$0xff] }
  0x81   :  { %1142 = vmatpush.msrb.mxu1 %v1141_v31  ;;  %1263 = vmatpush.msrb.mxu3 %v8645_v32  ;;  %v301_v31 = vld [vmem:[%s14441_s1 + $0x8f8] sm:$0xff] }
  0x82   :  { %1075 = vmatpush.msrb.mxu0 %v8714_v20  ;;  %1225 = vmatpush.msrb.mxu2 %v8717_v37  ;;  %v8831_v6 = vand.u32 4294901760, %v301_v31  ;;  %v8895_v21 = vsub.f32 %v279_v3, %v8865_v61 }
  0x83   :  { %1148 = vmatpush.msrb.mxu1 %v1147_v1  ;;  %1265 = vmatpush.msrb.mxu3 %v8671_v63  ;;  %v290_v1 = vld [vmem:[%s14441_s1 + $0x8a0] sm:$0xff] }
  0x84   :  { %1077 = vmatpush.msrb.mxu0 %v8731_v40  ;;  %1228 = vmatpush.msrb.mxu2 %v8735_v35  ;;  %v8849_v34 = vand.u32 4294901760, %v290_v1  ;;  %v8863_v36 = vsub.f32 %v301_v31, %v8831_v6  ;;  %v14732_v31 = vand.u32 4294901760, %v8816_v7 }
  0x85   :  { %1154 = vmatpush.msrb.mxu1 %v1153_v57  ;;  %1267 = vmatpush.msrb.mxu3 %v8686_v30  ;;  %v8839_v57 = vsub.f32 %v312_v39, %v8805_v0  ;;  %v1434_v39 = vand.u32 4294901760, %v1433_v17  ;;  %v14733_v17 = vand.u32 4294901760, %v8578_v14  ;;  %v8897_v14 = vand.u32 4294901760, %v257_v54 }
  0x86   :  { %1079 = vmatpush.msrb.mxu0 %v8748_v8  ;;  %1231 = vmatpush.msrb.mxu2 %v8752_v33  ;;  %v1445_v11 = vsub.f32 %v8816_v7, %v14732_v31 }
  0x87   :  { %1160 = vmatpush.msrb.mxu1 %v1159_v45  ;;  %1269 = vmatpush.msrb.mxu3 %v8699_v27  ;;  %v268_v45 = vld [vmem:[%s14441_s1 + $0x7f0] sm:$0xff] }
  0x88   :  { %1286 = vmatpush.msra.mxu0 %v14729_v10  ;;  %1234 = vmatpush.msrb.mxu2 %v8765_v51  ;;  %v14731_v10 = vand.u32 4294901760, %v8564_v60  ;;  %v8879_v60 = vsub.f32 %v290_v1, %v8849_v34  ;;  %v1440_v1 = vand.u32 4294901760, %v1439_v41  ;;  %v235_v41 = vld [vmem:[%s14441_s1 + $0x6e8] sm:$0xff] }
  0x89   :  { %1166 = vmatpush.msrb.mxu1 %v1165_v22  ;;  %1271 = vmatpush.msrb.mxu3 %v8714_v20  ;;  %v14734_v22 = vand.u32 4294901760, %v8821_v5 }
  0x8a   :  { %1290 = vmatpush.msra.mxu0 %v14731_v10  ;;  %1237 = vmatpush.msrb.mxu2 %v8783_v23  ;;  %v8881_v10 = vand.u32 4294901760, %v268_v45  ;;  %v1468_v3 = vand.u32 4294901760, %v8879_v60 }
  0x8b   :  { %1172 = vmatpush.msrb.mxu1 %v1171_v58  ;;  %1273 = vmatpush.msrb.mxu3 %v8731_v40  ;;  %v1451_v58 = vsub.f32 %v8821_v5, %v14734_v22  ;;  %v14736_v22 = vand.u32 4294901760, %v8839_v57 }
  0x8c   :  { %1294 = vmatpush.msra.mxu0 %v14733_v17  ;;  %1390 = vmatpush.msra.mxu2 %v8742_v46  ;;  %v14735_v17 = vand.u32 4294901760, %v8592_v48  ;;  %v8910_v31 = vsub.f32 %v268_v45, %v8881_v10  ;;  %v8912_v48 = vand.u32 4294901760, %v246_v52  ;;  %v14494_v45 = vand.u32 4294901760, %v8895_v21 }
  0x8d   :  { %1178 = vmatpush.msrb.mxu1 %v1177_v55  ;;  %1275 = vmatpush.msrb.mxu3 %v8748_v8  ;;  %v1457_v46 = vsub.f32 %v8839_v57, %v14736_v22  ;;  %v1446_v55 = vand.u32 4294901760, %v1445_v11  ;;  %v1452_v22 = vand.u32 4294901760, %v1451_v58  ;;  %v14738_v11 = vand.u32 4294901760, %v8863_v36 }
  0x8e   :  { %1298 = vmatpush.msra.mxu0 %v14735_v17  ;;  %1392 = vmatpush.msra.mxu2 %v8767_v42  ;;  %v14737_v17 = vand.u32 4294901760, %v8609_v13  ;;  %v224_v42 = vld [vmem:[%s14441_s1 + $0x690] sm:$0xff]  ;;  %v8928_v13 = vand.u32 4294901760, %v235_v41 }
  0x8f   :  { %1435 = vmatpush.msra.mxu3 %v1434_v39  ;;  %1184 = vmatpush.msrb.mxu1 %v1183_v19  ;;  %v1463_v39 = vsub.f32 %v8863_v36, %v14738_v11  ;;  %v8926_v19 = vsub.f32 %v257_v54, %v8897_v14  ;;  %v1458_v58 = vand.u32 4294901760, %v1457_v46  ;;  %v8939_v54 = vsub.f32 %v246_v52, %v8912_v48 }
  0x90   :  { %1302 = vmatpush.msra.mxu0 %v14737_v17  ;;  %1394 = vmatpush.msra.mxu2 %v8785_v18  ;;  %v1480_v17 = vand.u32 4294901760, %v8910_v31  ;;  %v8941_v11 = vand.u32 4294901760, %v224_v42  ;;  %v1475_v52 = vsub.f32 %v8895_v21, %v14494_v45 }
  0x91   :  { %1353 = vmatpush.msra.mxu1 %v8528_v38  ;;  %1441 = vmatpush.msra.mxu3 %v1440_v1  ;;  %v14739_v38 = vand.u32 4294901760, %v8625_v62  ;;  %v1469_v1 = vsub.f32 %v8879_v60, %v1468_v3  ;;  %v213_v62 = vld [vmem:[%s14441_s1 + $0x638] sm:$0xff]  ;;  %v1464_v46 = vand.u32 4294901760, %v1463_v39  ;;  %v1492_v39 = vand.u32 4294901760, %v8939_v54 }
  0x92   :  { %1396 = vmatpush.msra.mxu2 %v8792_v59  ;;  %v8971_v45 = vsub.f32 %v224_v42, %v8941_v11  ;;  %1085 = vmatmul.f32.vlgmr.msrb.gmra.mxu0 %v8434_v26 }
  0x93   :  { %1306 = vmatpush.msra.mxu0 %v14739_v38  ;;  %1355 = vmatpush.msra.mxu1 %v8538_v56  ;;  %v14740_v56 = vand.u32 4294901760, %v8641_v28  ;;  %v8955_v38 = vsub.f32 %v235_v41, %v8928_v13  ;;  %v202_v28 = vld [vmem:[%s14441_s1 + $0x5e0] sm:$0xff]  ;;  %v1481_v41 = vsub.f32 %v8910_v31, %v1480_v17 }
  0x94   :  { %1447 = vmatpush.msra.mxu3 %v1446_v55  ;;  %1398 = vmatpush.msra.mxu2 %v8805_v0  ;;  %v14495_v55 = vand.u32 4294901760, %v8926_v19 }
  0x95   :  { %1310 = vmatpush.msra.mxu0 %v14740_v56  ;;  %1357 = vmatpush.msra.mxu1 %v8548_v47  ;;  %v14741_v56 = vand.u32 4294901760, %v8657_v49  ;;  %v8963_v47 = vand.u32 4294901760, %v213_v62  ;;  %v14742_v49 = vand.u32 4294901760, %v8662_v50  ;;  %v14743_v50 = vand.u32 4294901760, %v8677_v43 }
  0x96   :  { %1453 = vmatpush.msra.mxu3 %v1452_v22  ;;  %1400 = vmatpush.msra.mxu2 %v8831_v6  ;;  %v1470_v22 = vand.u32 4294901760, %v1469_v1  ;;  %v1476_v1 = vand.u32 4294901760, %v1475_v52  ;;  %v1487_v42 = vsub.f32 %v8926_v19, %v14495_v55  ;;  %v1504_v52 = vand.u32 4294901760, %v8971_v45 }
  0x97   :  { %1314 = vmatpush.msra.mxu0 %v14741_v56  ;;  %1359 = vmatpush.msra.mxu1 %v8561_v15  ;;  %v8976_v15 = vand.u32 4294901760, %v202_v28  ;;  %v1498_v56 = vand.u32 4294901760, %v8955_v38  ;;  %v14744_v43 = vand.u32 4294901760, %v8702_v12 }
  0x98   :  { %1459 = vmatpush.msra.mxu3 %v1458_v58  ;;  %v191_v58 = vld [vmem:[%s14441_s1 + $0x588] sm:$0xff]  ;;  %1402 = vmatpush.msra.mxu2 %v8849_v34 }
  0x99   :  { %1318 = vmatpush.msra.mxu0 %v14742_v49  ;;  %1361 = vmatpush.msra.mxu1 %v8574_v16  ;;  %v8990_v16 = vsub.f32 %v213_v62, %v8963_v47  ;;  %v1482_v49 = vand.u32 4294901760, %v1481_v41  ;;  %v8997_v55 = vand.u32 4294901760, %v191_v58  ;;  %v1488_v62 = vand.u32 4294901760, %v1487_v42 }
  0x9a   :  { %1465 = vmatpush.msra.mxu3 %v1464_v46  ;;  %1404 = vmatpush.msra.mxu2 %v8865_v61  ;;  %v1493_v46 = vsub.f32 %v8939_v54, %v1492_v39  ;;  %v14745_v41 = vand.u32 4294901760, %v8717_v37  ;;  %v14746_v42 = vand.u32 4294901760, %v8735_v35 }
  0x9b   :  { %1322 = vmatpush.msra.mxu0 %v14743_v50  ;;  %1363 = vmatpush.msra.mxu1 %v8588_v29  ;;  %v9003_v29 = vsub.f32 %v202_v28, %v8976_v15  ;;  %v1510_v12 = vand.u32 4294901760, %v8990_v16  ;;  %v1505_v28 = vsub.f32 %v8971_v45, %v1504_v52  ;;  %v14747_v50 = vand.u32 4294901760, %v8752_v33 }
  0x9c   :  { %1471 = vmatpush.msra.mxu3 %v1470_v22  ;;  %1406 = vmatpush.msra.mxu2 %v8881_v10  ;;  %v1499_v22 = vsub.f32 %v8955_v38, %v1498_v56 }
  0x9d   :  { %1326 = vmatpush.msra.mxu0 %v14744_v43  ;;  %1365 = vmatpush.msra.mxu1 %v8605_v4  ;;  %v1494_v4 = vand.u32 4294901760, %v1493_v46  ;;  %v1506_v35 = vand.u32 4294901760, %v1505_v28  ;;  %v14753_v43 = vld [vmem:[#allocation11_spill] sm:$0xff] }
  0x9e   :  { %1477 = vmatpush.msra.mxu3 %v1476_v1  ;;  %1408 = vmatpush.msra.mxu2 %v8897_v14  ;;  %v9018_v1 = vsub.f32 %v191_v58, %v8997_v55  ;;  %v1500_v37 = vand.u32 4294901760, %v1499_v22  ;;  %v1511_v58 = vsub.f32 %v8990_v16, %v1510_v12  ;;  %v93_v22 = vld [vmem:[%s14441_s1 + $0x278] sm:$0xff] }
  0x9f   :  { %1330 = vmatpush.msra.mxu0 %v14745_v41  ;;  %1367 = vmatpush.msra.mxu1 %v8621_v53  ;;  %v1516_v53 = vand.u32 4294901760, %v9003_v29 }
  0xa0   :  { %1483 = vmatpush.msra.mxu3 %v1482_v49  ;;  %1410 = vmatpush.msra.mxu2 %v8912_v48  ;;  %v14748_v49 = vand.u32 4294901760, %v8765_v51  ;;  %v1512_v46 = vand.u32 4294901760, %v1511_v58 }
  0xa1   :  { %1334 = vmatpush.msra.mxu0 %v14746_v42  ;;  %1369 = vmatpush.msra.mxu1 %v8632_v25  ;;  %v1522_v25 = vand.u32 4294901760, %v9018_v1  ;;  %v1517_v33 = vsub.f32 %v9003_v29, %v1516_v53  ;;  %v82_v42 = vld [vmem:[%s14441_s1 + $0x220] sm:$0xff] }
  0xa2   :  { %1489 = vmatpush.msra.mxu3 %v1488_v62  ;;  %1412 = vmatpush.msra.mxu2 %v8928_v13  ;;  %v14756_v62 = vld [vmem:[#allocation10_spill] sm:$0xff] }
  0xa3   :  { %1338 = vmatpush.msra.mxu0 %v14747_v50  ;;  %1371 = vmatpush.msra.mxu1 %v8645_v32  ;;  %v14749_v32 = vand.u32 4294901760, %v8783_v23  ;;  %v1518_v51 = vand.u32 4294901760, %v1517_v33  ;;  %v14750_v23 = vand.u32 4294901760, %v8775_v24  ;;  %v71_v33 = vld [vmem:[%s14441_s1 + $0x1c8] sm:$0xff] }
  0xa4   :  { %1495 = vmatpush.msra.mxu3 %v1494_v4  ;;  %1414 = vmatpush.msra.mxu2 %v8941_v11 }
  0xa5   :  { %1342 = vmatpush.msra.mxu0 %v14748_v49  ;;  %1373 = vmatpush.msra.mxu1 %v8671_v63  ;;  %v1523_v63 = vsub.f32 %v9018_v1, %v1522_v25 }
  0xa6   :  { %1501 = vmatpush.msra.mxu3 %v1500_v37  ;;  %1416 = vmatpush.msra.mxu2 %v8963_v47  ;;  %v9220_v37 = vand.u32 4294901760, %v93_v22 }
  0xa7   :  { %1346 = vmatpush.msra.mxu0 %v14749_v32  ;;  %1375 = vmatpush.msra.mxu1 %v8686_v30  ;;  %v1524_v30 = vand.u32 4294901760, %v1523_v63 }
  0xa8   :  { %1507 = vmatpush.msra.mxu3 %v1506_v35  ;;  %1418 = vmatpush.msra.mxu2 %v8976_v15 }
  0xa9   :  { %1377 = vmatpush.msra.mxu1 %v8699_v27  ;;  %1533 = vmatpush.msrb.mxu0 %v8775_v24  ;;  %v14751_v27 = vld [vmem:[#allocation5_spill] sm:$0xff]  ;;  %v14754_v24 = vand.u32 4294901760, %v8816_v7 }
  0xaa   :  { %1513 = vmatpush.msra.mxu3 %v1512_v46  ;;  %1240 = vmatmul.f32.vlgmr.msrb.gmra.mxu2 %v8366_v2 }
  0xab   :  { %1536 = vmatpush.msrb.mxu0 %v8800_v44  ;;  %1379 = vmatpush.msra.mxu1 %v8714_v20  ;;  %v14752_v20 = vand.u32 4294901760, %v8800_v44  ;;  %v14757_v44 = vand.u32 4294901760, %v8821_v5 }
  0xac   :  { %1420 = vmatpush.msra.mxu2 %v8997_v55  ;;  %1519 = vmatpush.msra.mxu3 %v1518_v51 }
  0xad   :  { %1279 = vmatmul.f32.vlgmr.msrb.gmra.mxu3 %v8394_v9  ;;  %1539 = vmatpush.msrb.mxu0 %v8816_v7  ;;  %v14759_v7 = vand.u32 4294901760, %v8839_v57 }
  0xae   :  { %1627 = vmatpush.msrb.mxu2 %v14750_v23  ;;  %1381 = vmatpush.msra.mxu1 %v8731_v40  ;;  %v14755_v40 = vld [vmem:[#allocation12_spill] sm:$0xff] }
  0xaf   :  { %1525 = vmatpush.msra.mxu3 %v1524_v30  ;;  %1186 = vmatmul.f32.vlgmr.msrb.gmra.mxu1 %v14751_v27  ;;  %v14764_v30 = vld [vmem:[#allocation9_spill] sm:$0xff] }
  0xb0   :  { %1542 = vmatpush.msrb.mxu0 %v8821_v5  ;;  %1631 = vmatpush.msrb.mxu2 %v14752_v20  ;;  %v14760_v5 = vand.u32 4294901760, %v8863_v36  ;;  %v9250_v20 = vsub.f32 %v93_v22, %v9220_v37 }
  0xb1   :  { %1694 = vmatpush.msrb.mxu3 %v14753_v43  ;;  %1383 = vmatpush.msra.mxu1 %v8748_v8  ;;  %v14758_v8 = vld [vmem:[#allocation7_spill] sm:$0xff] }
  0xb2   :  { %1545 = vmatpush.msrb.mxu0 %v8839_v57  ;;  %1635 = vmatpush.msrb.mxu2 %v14754_v24  ;;  %v148_v57 = vld [vmem:[%s14441_s1 + $0x430] sm:$0xff] }
  0xb3   :  { %1586 = vmatpush.msrb.mxu1 %v14753_v43  ;;  %1696 = vmatpush.msrb.mxu3 %v14755_v40 }
  0xb4   :  { %1426 = vmatmul.f32.vlgmr.msra.gmra.mxu2 %v14756_v62  ;;  %1548 = vmatpush.msrb.mxu0 %v8863_v36  ;;  %v181_v36 = vld [vmem:[%s14441_s1 + $0x538] sm:$0xff] }
  0xb5   :  { %1588 = vmatpush.msrb.mxu1 %v14755_v40  ;;  %1639 = vmatpush.msrb.mxu2 %v14757_v44  ;;  %v9259_v44 = vand.u32 4294901760, %v71_v33 }
  0xb6   :  { %1698 = vmatpush.msrb.mxu3 %v8785_v18  ;;  %1348 = vmatmul.f32.vlgmr.msra.gmra.mxu0 %v14751_v27 }
  0xb7   :  { %1527 = vmatmul.f32.vlgmr.msra.gmra.mxu3 %v14758_v8  ;;  %1551 = vmatpush.msrb.mxu0 %v8879_v60  ;;  %v9290_v22 = vsub.f32 %v71_v33, %v9259_v44 }
  0xb8   :  { %1590 = vmatpush.msrb.mxu1 %v8785_v18  ;;  %1643 = vmatpush.msrb.mxu2 %v14759_v7  ;;  %v14761_v18 = vand.u32 4294901760, %v8895_v21 }
  0xb9   :  { %1700 = vmatpush.msrb.mxu3 %v8792_v59  ;;  %1385 = vmatmul.f32.vlgmr.msra.gmra.mxu1 %v14751_v27 }
  0xba   :  { %1554 = vmatpush.msrb.mxu0 %v8895_v21  ;;  %1592 = vmatpush.msrb.mxu1 %v8792_v59  ;;  %v170_v21 = vld [vmem:[%s14441_s1 + $0x4e0] sm:$0xff] }
  0xbb   :  { %1647 = vmatpush.msrb.mxu2 %v14760_v5  ;;  %1702 = vmatpush.msrb.mxu3 %v8805_v0  ;;  %v9126_v59 = vand.u32 4294901760, %v170_v21 }
  0xbc   :  { %1557 = vmatpush.msrb.mxu0 %v8910_v31  ;;  %1594 = vmatpush.msrb.mxu1 %v8805_v0  ;;  %v159_v0 = vld [vmem:[%s14441_s1 + $0x488] sm:$0xff]  ;;  %v9149_v31 = vand.u32 4294901760, %v148_v57  ;;  %v404_v41 = vpop.f32.mrf.mxu0 }
  0xbd   :  { %1651 = vmatpush.msrb.mxu2 %v1468_v3  ;;  %1704 = vmatpush.msrb.mxu3 %v8831_v6  ;;  %v126_v3 = vld [vmem:[%s14441_s1 + $0x380] sm:$0xff] }
  0xbe   :  { %1560 = vmatpush.msrb.mxu0 %v8926_v19  ;;  %1596 = vmatpush.msrb.mxu1 %v8831_v6  ;;  %v14762_v6 = vand.u32 4294901760, %v8926_v19 }
  0xbf   :  { %1655 = vmatpush.msrb.mxu2 %v14761_v18  ;;  %1706 = vmatpush.msrb.mxu3 %v8849_v34  ;;  %v49_v18 = vld [vmem:[%s14441_s1 + $0x118] sm:$0xff] }
  0xc0   :  { %1563 = vmatpush.msrb.mxu0 %v8939_v54  ;;  %1598 = vmatpush.msrb.mxu1 %v8849_v34  ;;  %v9116_v34 = vand.u32 4294901760, %v181_v36  ;;  %v9176_v54 = vand.u32 4294901760, %v126_v3 }
  0xc1   :  { %1659 = vmatpush.msrb.mxu2 %v1480_v17  ;;  %1708 = vmatpush.msrb.mxu3 %v8865_v61  ;;  %v14763_v17 = vld [vmem:[#allocation8_spill] sm:$0xff] }
  0xc2   :  { %1566 = vmatpush.msrb.mxu0 %v8955_v38  ;;  %1600 = vmatpush.msrb.mxu1 %v8865_v61  ;;  %v9136_v61 = vand.u32 4294901760, %v159_v0  ;;  %v9139_v60 = vsub.f32 %v181_v36, %v9116_v34 }
  0xc3   :  { %1663 = vmatpush.msrb.mxu2 %v14762_v6  ;;  %1710 = vmatpush.msrb.mxu3 %v8881_v10 }
  0xc4   :  { %1569 = vmatpush.msrb.mxu0 %v8971_v45  ;;  %1602 = vmatpush.msrb.mxu1 %v8881_v10  ;;  %v137_v10 = vld [vmem:[%s14441_s1 + $0x3d8] sm:$0xff]  ;;  %v14508_v45 = vand.u32 4294901760, %v9139_v60  ;;  %v9166_v19 = vsub.f32 %v159_v0, %v9136_v61 }
  0xc5   :  { %1667 = vmatpush.msrb.mxu2 %v1492_v39  ;;  %1712 = vmatpush.msrb.mxu3 %v8897_v14  ;;  %v9180_v39 = vsub.f32 %v148_v57, %v9149_v31 }
  0xc6   :  { %1572 = vmatpush.msrb.mxu0 %v8990_v16  ;;  %1604 = vmatpush.msrb.mxu1 %v8897_v14  ;;  %v9152_v14 = vsub.f32 %v170_v21, %v9126_v59  ;;  %v1774_v16 = vsub.f32 %v9139_v60, %v14508_v45 }
  0xc7   :  { %1671 = vmatpush.msrb.mxu2 %v1498_v56  ;;  %1714 = vmatpush.msrb.mxu3 %v8912_v48  ;;  %v505_v56 = vpop.f32.mrf.mxu1  ;;  %v14503_v28 = vand.u32 4294901760, %v9180_v39 }
  0xc8   :  { %1575 = vmatpush.msrb.mxu0 %v9003_v29  ;;  %1606 = vmatpush.msrb.mxu1 %v8912_v48  ;;  %v9162_v48 = vand.u32 4294901760, %v137_v10  ;;  %v14506_v38 = vand.u32 4294901760, %v9152_v14  ;;  %v14505_v29 = vand.u32 4294901760, %v9166_v19  ;;  %v1775_v50 = vand.u32 4294901760, %v1774_v16  ;;  %v559_v58 = vpop.f32.mrf.mxu2  ;;  %v598_v43 = vpop.f32.mrf.mxu3 }
  0xc9   :  { %1675 = vmatpush.msrb.mxu2 %v1504_v52  ;;  %1716 = vmatpush.msrb.mxu3 %v8928_v13  ;;  %v1792_v46 = vsub.f32 %v9180_v39, %v14503_v28  ;;  %v9287_v16 = vand.u32 4294901760, %v49_v18 }
  0xca   :  { %1578 = vmatpush.msrb.mxu0 %v9018_v1  ;;  %1608 = vmatpush.msrb.mxu1 %v8928_v13  ;;  %v115_v13 = vld [vmem:[%s14441_s1 + $0x328] sm:$0xff]  ;;  %v9213_v1 = vsub.f32 %v126_v3, %v9176_v54  ;;  %v1786_v35 = vsub.f32 %v9166_v19, %v14505_v29  ;;  %v38_v3 = vld [vmem:[%s14441_s1 + $0xc0] sm:$0xff] }
  0xcb   :  { %1679 = vmatpush.msrb.mxu2 %v1510_v12  ;;  %1718 = vmatpush.msrb.mxu3 %v8941_v11  ;;  %v9193_v52 = vand.u32 4294901760, %v115_v13  ;;  %v1780_v12 = vsub.f32 %v9152_v14, %v14506_v38  ;;  %v1793_v36 = vand.u32 4294901760, %v1792_v46  ;;  %v16_v46 = vld [vmem:[%s14441_s1 + $0x10] sm:$0xff] }
  0xcc   :  { %1581 = vmatmul.f32.vlgmr.msrb.gmra.mxu0 %v14763_v17  ;;  %1610 = vmatpush.msrb.mxu1 %v8941_v11  ;;  %v104_v11 = vld [vmem:[%s14441_s1 + $0x2d0] sm:$0xff]  ;;  %v14501_v63 = vand.u32 4294901760, %v9213_v1  ;;  %v1787_v24 = vand.u32 4294901760, %v1786_v35  ;;  %v357_v35 = vld [vmem:[%s14441_s1 + $0xab8] sm:$0xff] }
  0xcd   :  { %1731 = vmatpush.msra.mxu0 %v9116_v34  ;;  %1683 = vmatpush.msrb.mxu2 %v1516_v53  ;;  %v9209_v4 = vand.u32 4294901760, %v104_v11  ;;  %v506_v53 = vadd.f32 %v505_v56, %v404_v41  ;;  %v9229_v49 = vsub.f32 %v115_v13, %v9193_v52  ;;  %v1781_v32 = vand.u32 4294901760, %v1780_v12  ;;  %v667_v13 = vpop.f32.mrf.mxu0  ;;  %v27_v12 = vld [vmem:[%s14441_s1 + $0x68] sm:$0xff] }
  0xce   :  { %1720 = vmatpush.msrb.mxu3 %v8963_v47  ;;  %1612 = vmatpush.msrb.mxu1 %v8963_v47  ;;  %v9197_v47 = vsub.f32 %v137_v10, %v9162_v48  ;;  %v1804_v21 = vsub.f32 %v9213_v1, %v14501_v63  ;;  %v14496_v10 = vand.u32 4294901760, %v9250_v20 }
  0xcf   :  { %1733 = vmatpush.msra.mxu0 %v9126_v59  ;;  %1687 = vmatpush.msrb.mxu2 %v1522_v25  ;;  %v9245_v51 = vsub.f32 %v104_v11, %v9209_v4  ;;  %v560_v23 = vadd.f32 %v559_v58, %v506_v53  ;;  %v14499_v7 = vand.u32 4294901760, %v9229_v49 }
  0xd0   :  { %1722 = vmatpush.msrb.mxu3 %v8976_v15  ;;  %1689 = vmatmul.f32.vlgmr.msrb.gmra.mxu2 %v14758_v8  ;;  %v14502_v25 = vand.u32 4294901760, %v9197_v47 }
  0xd1   :  { %1735 = vmatpush.msra.mxu0 %v9136_v61  ;;  %1874 = vmatpush.msra.mxu2 %v9139_v60  ;;  %v14498_v0 = vand.u32 4294901760, %v9245_v51  ;;  %v599_v57 = vadd.f32 %v598_v43, %v560_v23  ;;  %v1810_v56 = vsub.f32 %v9229_v49, %v14499_v7  ;;  %v704_v23 = vpop.f32.mrf.mxu1  ;;  %v9319_v43 = vand.u32 4294901760, %v27_v12 }
  0xd2   :  { %1614 = vmatpush.msrb.mxu1 %v8976_v15  ;;  %1724 = vmatpush.msrb.mxu3 %v8997_v55  ;;  %v9233_v15 = vand.u32 4294901760, %v82_v42  ;;  %v1798_v40 = vsub.f32 %v9197_v47, %v14502_v25 }
  0xd3   :  { %1726 = vmatmul.f32.vlgmr.msrb.gmra.mxu3 %v14758_v8  ;;  %1737 = vmatpush.msra.mxu0 %v9149_v31  ;;  %v1816_v53 = vsub.f32 %v9245_v51, %v14498_v0  ;;  %v668_v33 = vadd.f32 %v667_v13, %v599_v57  ;;  %v346_v57 = vld [vmem:[%s14441_s1 + $0xa60] sm:$0xff]  ;;  %v745_v0 = vpop.f32.mrf.mxu2 }
  0xd4   :  { %1877 = vmatpush.msra.mxu2 %v9152_v14  ;;  %1927 = vmatpush.msra.mxu3 %v9116_v34  ;;  %v9265_v5 = vsub.f32 %v82_v42, %v9233_v15  ;;  %v1799_v11 = vand.u32 4294901760, %v1798_v40  ;;  %v1805_v42 = vand.u32 4294901760, %v1804_v21  ;;  %v9323_v40 = vsub.f32 %v49_v18, %v9287_v16  ;;  %v846_v28 = vpop.f32.mrf.mxu3 }
  0xd5   :  { %1616 = vmatpush.msrb.mxu1 %v8997_v55  ;;  %1739 = vmatpush.msra.mxu0 %v9162_v48  ;;  %v60_v55 = vld [vmem:[%s14441_s1 + $0x170] sm:$0xff]  ;;  %v9330_v21 = vand.u32 4294901760, %v357_v35  ;;  %v1817_v13 = vand.u32 4294901760, %v1816_v53  ;;  %v9336_v18 = vand.u32 4294901760, %v16_v46 }
  0xd6   :  { %1620 = vmatmul.f32.vlgmr.msrb.gmra.mxu1 %v14764_v30  ;;  %1880 = vmatpush.msra.mxu2 %v9166_v19  ;;  %v9274_v6 = vand.u32 4294901760, %v60_v55  ;;  %v14497_v41 = vand.u32 4294901760, %v9265_v5 }
  0xd7   :  { %1776 = vmatpush.msra.mxu1 %v1775_v50  ;;  %1929 = vmatpush.msra.mxu3 %v9126_v59  ;;  %v9302_v50 = vand.u32 4294901760, %v38_v3  ;;  %14766 = vst [vmem:[#allocation12_spill] sm:$0xff] %v9330_v21  ;;  %v9363_v7 = vsub.f32 %v357_v35, %v9330_v21  ;;  %v9371_v63 = vsub.f32 %v16_v46, %v9336_v18 }
  0xd8   :  { %1741 = vmatpush.msra.mxu0 %v9176_v54  ;;  %1883 = vmatpush.msra.mxu2 %v9180_v39  ;;  %v9305_v58 = vsub.f32 %v60_v55, %v9274_v6  ;;  %v1811_v55 = vand.u32 4294901760, %v1810_v56 }
  0xd9   :  { %1782 = vmatpush.msra.mxu1 %v1781_v32  ;;  %1931 = vmatpush.msra.mxu3 %v9136_v61  ;;  %14765 = vst [vmem:[#allocation11_spill] sm:$0xff] %v9302_v50  ;;  %v1822_v32 = vsub.f32 %v9250_v20, %v14496_v10  ;;  %v9340_v56 = vsub.f32 %v38_v3, %v9302_v50  ;;  %v14507_v3 = vand.u32 4294901760, %v9323_v40  ;;  %v14768_v30 = vand.u32 4294901760, %v9363_v7 }
  0xda   :  { %1743 = vmatpush.msra.mxu0 %v9193_v52  ;;  %1886 = vmatpush.msra.mxu2 %v9197_v47  ;;  %v705_v10 = vadd.f32 %v704_v23, %v668_v33  ;;  %v9353_v33 = vsub.f32 %v27_v12, %v9319_v43  ;;  %v9355_v23 = vand.u32 4294901760, %v346_v57 }
  0xdb   :  { %1788 = vmatpush.msra.mxu1 %v1787_v24  ;;  %1933 = vmatpush.msra.mxu3 %v9149_v31  ;;  %v14500_v24 = vand.u32 4294901760, %v9290_v22  ;;  %v1846_v46 = vsub.f32 %v9323_v40, %v14507_v3 }
  0xdc   :  { %1745 = vmatpush.msra.mxu0 %v9209_v4  ;;  %1889 = vmatpush.msra.mxu2 %v9213_v1  ;;  %v746_v35 = vadd.f32 %v745_v0, %v705_v10  ;;  %v9388_v38 = vsub.f32 %v346_v57, %v9355_v23  ;;  %v14767_v45 = vand.u32 4294901760, %v9353_v33 }
  0xdd   :  { %1794 = vmatpush.msra.mxu1 %v1793_v36  ;;  %1935 = vmatpush.msra.mxu3 %v9162_v48  ;;  %v1828_v36 = vsub.f32 %v9265_v5, %v14497_v41  ;;  %v1823_v41 = vand.u32 4294901760, %v1822_v32  ;;  %v1834_v53 = vsub.f32 %v9290_v22, %v14500_v24  ;;  %v324_v32 = vld [vmem:[%s14441_s1 + $0x9b0] sm:$0xff]  ;;  %v14509_v24 = vand.u32 4294901760, %v9340_v56 }
  0xde   :  { %1747 = vmatpush.msra.mxu0 %v9220_v37  ;;  %1892 = vmatpush.msra.mxu2 %v9229_v49  ;;  %v847_v0 = vadd.f32 %v846_v28, %v746_v35  ;;  %v14769_v28 = vand.u32 4294901760, %v9371_v63 }
  0xdf   :  { %1800 = vmatpush.msra.mxu1 %v1799_v11  ;;  %1937 = vmatpush.msra.mxu3 %v9176_v54  ;;  %v14504_v11 = vand.u32 4294901760, %v9305_v58  ;;  %v1852_v57 = vsub.f32 %v9340_v56, %v14509_v24  ;;  %v1847_v24 = vand.u32 4294901760, %v1846_v46 }
  0xe0   :  { %1749 = vmatpush.msra.mxu0 %v9233_v15  ;;  %1895 = vmatpush.msra.mxu2 %v9245_v51  ;;  %v1864_v8 = vsub.f32 %v9371_v63, %v14769_v28 }
  0xe1   :  { %1806 = vmatpush.msra.mxu1 %v1805_v42  ;;  %1939 = vmatpush.msra.mxu3 %v9193_v52  ;;  %v335_v42 = vld [vmem:[%s14441_s1 + $0xa08] sm:$0xff]  ;;  %v1840_v12 = vsub.f32 %v9305_v58, %v14504_v11  ;;  %v1835_v11 = vand.u32 4294901760, %v1834_v53  ;;  %v1853_v46 = vand.u32 4294901760, %v1852_v57  ;;  %v269_v57 = vld [vmem:[%s14441_s1 + $0x7f8] sm:$0xff] }
  0xe2   :  { %1751 = vmatpush.msra.mxu0 %v9259_v44  ;;  %1898 = vmatpush.msra.mxu2 %v9250_v20  ;;  %v9373_v25 = vand.u32 4294901760, %v335_v42 }
  0xe3   :  { %1812 = vmatpush.msra.mxu1 %v1811_v55  ;;  %1941 = vmatpush.msra.mxu3 %v9209_v4  ;;  %v1829_v55 = vand.u32 4294901760, %v1828_v36  ;;  %v313_v36 = vld [vmem:[%s14441_s1 + $0x958] sm:$0xff]  ;;  %v1841_v53 = vand.u32 4294901760, %v1840_v12  ;;  %v900_v3 = vpop.f32.mrf.mxu0  ;;  %v291_v12 = vld [vmem:[%s14441_s1 + $0x8a8] sm:$0xff] }
  0xe4   :  { %1753 = vmatpush.msra.mxu0 %v9274_v6  ;;  %1901 = vmatpush.msra.mxu2 %v9265_v5  ;;  %v9393_v10 = vand.u32 4294901760, %v313_v36  ;;  %v9404_v29 = vsub.f32 %v335_v42, %v9373_v25  ;;  %v1858_v42 = vsub.f32 %v9353_v33, %v14767_v45  ;;  %v280_v45 = vld [vmem:[%s14441_s1 + $0x850] sm:$0xff] }
  0xe5   :  { %1818 = vmatpush.msra.mxu1 %v1817_v13  ;;  %1943 = vmatpush.msra.mxu3 %v9220_v37  ;;  %v9380_v13 = vand.u32 4294901760, %v324_v32 }
  0xe6   :  { %1755 = vmatpush.msra.mxu0 %v9287_v16  ;;  %1904 = vmatpush.msra.mxu2 %v9290_v22  ;;  %v9427_v17 = vsub.f32 %v313_v36, %v9393_v10  ;;  %v14770_v36 = vand.u32 4294901760, %v9139_v60  ;;  %v1859_v28 = vand.u32 4294901760, %v1858_v42  ;;  %v258_v42 = vld [vmem:[%s14441_s1 + $0x7a0] sm:$0xff] }
  0xe7   :  { %1824 = vmatpush.msra.mxu1 %v1823_v41  ;;  %1945 = vmatpush.msra.mxu3 %v9233_v15  ;;  %v302_v41 = vld [vmem:[%s14441_s1 + $0x900] sm:$0xff] }
  0xe8   :  { %1757 = vmatpush.msra.mxu0 %v9302_v50  ;;  %1907 = vmatpush.msra.mxu2 %v9305_v58  ;;  %v9419_v35 = vand.u32 4294901760, %v302_v41 }
  0xe9   :  { %1830 = vmatpush.msra.mxu1 %v1829_v55  ;;  %1947 = vmatpush.msra.mxu3 %v9259_v44  ;;  %v9409_v55 = vsub.f32 %v324_v32, %v9380_v13  ;;  %v901_v32 = vadd.f32 %v900_v3, %v847_v0  ;;  %v14771_v0 = vand.u32 4294901760, %v9388_v38 }
  0xea   :  { %1759 = vmatpush.msra.mxu0 %v9319_v43  ;;  %1910 = vmatpush.msra.mxu2 %v9323_v40  ;;  %v9451_v60 = vsub.f32 %v302_v41, %v9419_v35  ;;  %v1865_v41 = vand.u32 4294901760, %v1864_v8  ;;  %v247_v8 = vld [vmem:[%s14441_s1 + $0x748] sm:$0xff] }
  0xeb   :  { %1836 = vmatpush.msra.mxu1 %v1835_v11  ;;  %1949 = vmatpush.msra.mxu3 %v9274_v6  ;;  %v2115_v11 = vsub.f32 %v9363_v7, %v14768_v30  ;;  %v9437_v30 = vand.u32 4294901760, %v291_v12  ;;  %v2121_v9 = vsub.f32 %v9388_v38, %v14771_v0  ;;  %v14773_v0 = vand.u32 4294901760, %v9404_v29 }
  0xec   :  { %1761 = vmatpush.msra.mxu0 %v9336_v18  ;;  %1913 = vmatpush.msra.mxu2 %v9340_v56 }
  0xed   :  { %1842 = vmatpush.msra.mxu1 %v1841_v53  ;;  %1951 = vmatpush.msra.mxu3 %v9287_v16  ;;  %v939_v3 = vpop.f32.mrf.mxu1  ;;  %v1008_v62 = vpop.f32.mrf.mxu2 }
  0xee   :  { %1968 = vmatpush.msrb.mxu0 %v14770_v36  ;;  %1916 = vmatpush.msra.mxu2 %v9353_v33  ;;  %v940_v27 = vadd.f32 %v939_v3, %v901_v32  ;;  %v9453_v36 = vand.u32 4294901760, %v280_v45  ;;  %v14772_v32 = vand.u32 4294901760, %v9152_v14  ;;  %v2116_v3 = vand.u32 4294901760, %v2115_v11 }
  0xef   :  { %1848 = vmatpush.msra.mxu1 %v1847_v24  ;;  %1953 = vmatpush.msra.mxu3 %v9302_v50  ;;  %v2127_v14 = vsub.f32 %v9404_v29, %v14773_v0  ;;  %v9469_v11 = vand.u32 4294901760, %v269_v57  ;;  %v2144_v0 = vand.u32 4294901760, %v9451_v60 }
  0xf0   :  { %1972 = vmatpush.msrb.mxu0 %v14772_v32  ;;  %1919 = vmatpush.msra.mxu2 %v9371_v63  ;;  %v1009_v53 = vadd.f32 %v1008_v62, %v940_v27  ;;  %v1045_v24 = vpop.f32.mrf.mxu3  ;;  %v9467_v32 = vsub.f32 %v291_v12, %v9437_v30  ;;  %v14774_v27 = vand.u32 4294901760, %v9166_v19  ;;  %v14775_v62 = vand.u32 4294901760, %v9409_v55 }
  0xf1   :  { %1854 = vmatpush.msra.mxu1 %v1853_v46  ;;  %1955 = vmatpush.msra.mxu3 %v9319_v43  ;;  %v2122_v12 = vand.u32 4294901760, %v2121_v9  ;;  %v9483_v19 = vsub.f32 %v280_v45, %v9453_v36  ;;  %v236_v9 = vld [vmem:[%s14441_s1 + $0x6f0] sm:$0xff]  ;;  %v2128_v45 = vand.u32 4294901760, %v2127_v14 }
  0xf2   :  { %1976 = vmatpush.msrb.mxu0 %v14774_v27  ;;  %2072 = vmatpush.msrb.mxu2 %v9330_v21  ;;  %v2133_v46 = vsub.f32 %v9409_v55, %v14775_v62  ;;  %v1046_v50 = vadd.f32 %v1045_v24, %v1009_v53  ;;  %v9485_v27 = vand.u32 4294901760, %v258_v42  ;;  %v14776_v21 = vand.u32 4294901760, %v9180_v39 }
  0xf3   :  { %1860 = vmatpush.msra.mxu1 %v1859_v28  ;;  %1957 = vmatpush.msra.mxu3 %v9336_v18  ;;  %v14777_v53 = vand.u32 4294901760, %v9427_v17  ;;  %v2150_v24 = vand.u32 4294901760, %v9467_v32  ;;  %v9498_v62 = vsub.f32 %v269_v57, %v9469_v11  ;;  %v9500_v39 = vand.u32 4294901760, %v247_v8 }
  0xf4   :  { %1980 = vmatpush.msrb.mxu0 %v14776_v21  ;;  %2074 = vmatpush.msrb.mxu2 %v9355_v23  ;;  %7868 = vst [vmem:[#allocation2] sm:$0xff] %v1046_v50  ;;  %v14778_v50 = vand.u32 4294901760, %v9197_v47  ;;  %v2134_v21 = vand.u32 4294901760, %v2133_v46  ;;  %v2145_v57 = vsub.f32 %v9451_v60, %v2144_v0  ;;  %v9516_v47 = vand.u32 4294901760, %v236_v9 }
  0xf5   :  { %v2139_v28 = vsub.f32 %v9427_v17, %v14777_v53  ;;  %2117 = vmatpush.msrb.mxu3 %v2116_v3  ;;  %1866 = vmatpush.msra.mxu1 %v1865_v41  ;;  %v225_v53 = vld [vmem:[%s14441_s1 + $0x698] sm:$0xff]  ;;  %v14517_v3 = vand.u32 4294901760, %v9483_v19  ;;  %v9514_v41 = vsub.f32 %v258_v42, %v9485_v27  ;;  %v2151_v46 = vsub.f32 %v9467_v32, %v2150_v24 }
  0xf6   :  { %1984 = vmatpush.msrb.mxu0 %v14778_v50  ;;  %2076 = vmatpush.msrb.mxu2 %v9373_v25  ;;  %v9527_v42 = vsub.f32 %v247_v8, %v9500_v39  ;;  %v9529_v50 = vand.u32 4294901760, %v225_v53 }
  0xf7   :  { %2035 = vmatpush.msrb.mxu1 %v9116_v34  ;;  %2123 = vmatpush.msrb.mxu3 %v2122_v12  ;;  %v14779_v34 = vand.u32 4294901760, %v9213_v1  ;;  %v2140_v14 = vand.u32 4294901760, %v2139_v28  ;;  %v2162_v12 = vand.u32 4294901760, %v9498_v62  ;;  %v214_v1 = vld [vmem:[%s14441_s1 + $0x640] sm:$0xff]  ;;  %v2146_v28 = vand.u32 4294901760, %v2145_v57 }
  0xf8   :  { %2078 = vmatpush.msrb.mxu2 %v9380_v13  ;;  %v2157_v8 = vsub.f32 %v9483_v19, %v14517_v3  ;;  %v2174_v57 = vand.u32 4294901760, %v9527_v42  ;;  %v9559_v3 = vsub.f32 %v225_v53, %v9529_v50  ;;  %1767 = vmatmul.f32.vlgmr.msra.gmra.mxu0 %v8434_v26 }
  0xf9   :  { %1988 = vmatpush.msrb.mxu0 %v14779_v34  ;;  %2037 = vmatpush.msrb.mxu1 %v9126_v59  ;;  %v14780_v59 = vand.u32 4294901760, %v9229_v49  ;;  %v9543_v34 = vsub.f32 %v236_v9, %v9516_v47  ;;  %v203_v49 = vld [vmem:[%s14441_s1 + $0x5e8] sm:$0xff]  ;;  %v2163_v9 = vsub.f32 %v9498_v62, %v2162_v12 }
  0xfa   :  { %2129 = vmatpush.msrb.mxu3 %v2128_v45  ;;  %2080 = vmatpush.msrb.mxu2 %v9393_v10  ;;  %v14518_v45 = vand.u32 4294901760, %v9514_v41 }
  0xfb   :  { %1992 = vmatpush.msrb.mxu0 %v14780_v59  ;;  %2039 = vmatpush.msrb.mxu1 %v9136_v61  ;;  %v14781_v59 = vand.u32 4294901760, %v9245_v51  ;;  %v9551_v61 = vand.u32 4294901760, %v214_v1  ;;  %v14782_v51 = vand.u32 4294901760, %v9250_v20  ;;  %v14783_v20 = vand.u32 4294901760, %v9265_v5 }
  0xfc   :  { %2135 = vmatpush.msrb.mxu3 %v2134_v21  ;;  %2082 = vmatpush.msrb.mxu2 %v9419_v35  ;;  %v2152_v21 = vand.u32 4294901760, %v2151_v46  ;;  %v2158_v46 = vand.u32 4294901760, %v2157_v8  ;;  %v2169_v53 = vsub.f32 %v9514_v41, %v14518_v45  ;;  %v2186_v8 = vand.u32 4294901760, %v9559_v3 }
  0xfd   :  { %1996 = vmatpush.msrb.mxu0 %v14781_v59  ;;  %2041 = vmatpush.msrb.mxu1 %v9149_v31  ;;  %v9564_v31 = vand.u32 4294901760, %v203_v49  ;;  %v2180_v59 = vand.u32 4294901760, %v9543_v34  ;;  %v14784_v5 = vand.u32 4294901760, %v9290_v22 }
  0xfe   :  { %2141 = vmatpush.msrb.mxu3 %v2140_v14  ;;  %v192_v14 = vld [vmem:[%s14441_s1 + $0x590] sm:$0xff]  ;;  %2084 = vmatpush.msrb.mxu2 %v9437_v30 }
  0xff   :  { %2000 = vmatpush.msrb.mxu0 %v14782_v51  ;;  %2043 = vmatpush.msrb.mxu1 %v9162_v48  ;;  %v9578_v48 = vsub.f32 %v214_v1, %v9551_v61  ;;  %v2164_v51 = vand.u32 4294901760, %v2163_v9  ;;  %v9585_v45 = vand.u32 4294901760, %v192_v14  ;;  %v2170_v1 = vand.u32 4294901760, %v2169_v53 }
 0x100   :  { %2147 = vmatpush.msrb.mxu3 %v2146_v28  ;;  %2086 = vmatpush.msrb.mxu2 %v9453_v36  ;;  %v2175_v28 = vsub.f32 %v9527_v42, %v2174_v57  ;;  %v14785_v9 = vand.u32 4294901760, %v9305_v58  ;;  %v14786_v53 = vand.u32 4294901760, %v9323_v40 }
 0x101   :  { %2004 = vmatpush.msrb.mxu0 %v14783_v20  ;;  %2045 = vmatpush.msrb.mxu1 %v9176_v54  ;;  %v9591_v54 = vsub.f32 %v203_v49, %v9564_v31  ;;  %v2192_v22 = vand.u32 4294901760, %v9578_v48  ;;  %v2187_v49 = vsub.f32 %v9559_v3, %v2186_v8  ;;  %v14787_v20 = vand.u32 4294901760, %v9340_v56 }
 0x102   :  { %2153 = vmatpush.msrb.mxu3 %v2152_v21  ;;  %2088 = vmatpush.msrb.mxu2 %v9469_v11  ;;  %v2181_v21 = vsub.f32 %v9543_v34, %v2180_v59 }
 0x103   :  { %2008 = vmatpush.msrb.mxu0 %v14784_v5  ;;  %2047 = vmatpush.msrb.mxu1 %v9193_v52  ;;  %v2176_v52 = vand.u32 4294901760, %v2175_v28  ;;  %v2188_v40 = vand.u32 4294901760, %v2187_v49  ;;  %v14791_v5 = vld [vmem:[#allocation6_spill] sm:$0xff] }
 0x104   :  { %2159 = vmatpush.msrb.mxu3 %v2158_v46  ;;  %2090 = vmatpush.msrb.mxu2 %v9485_v27  ;;  %v9606_v46 = vsub.f32 %v192_v14, %v9585_v45  ;;  %v2182_v58 = vand.u32 4294901760, %v2181_v21  ;;  %v2193_v14 = vsub.f32 %v9578_v48, %v2192_v22  ;;  %v14794_v21 = vand.u32 4294901760, %v9388_v38 }
 0x105   :  { %2012 = vmatpush.msrb.mxu0 %v14785_v9  ;;  %2049 = vmatpush.msrb.mxu1 %v9209_v4  ;;  %v2198_v4 = vand.u32 4294901760, %v9591_v54  ;;  %v14795_v9 = vld [vmem:[#allocation12_spill] sm:$0xff] }
 0x106   :  { %2165 = vmatpush.msrb.mxu3 %v2164_v51  ;;  %2092 = vmatpush.msrb.mxu2 %v9500_v39  ;;  %v14788_v51 = vand.u32 4294901760, %v9353_v33  ;;  %v2194_v28 = vand.u32 4294901760, %v2193_v14 }
 0x107   :  { %2016 = vmatpush.msrb.mxu0 %v14786_v53  ;;  %2051 = vmatpush.msrb.mxu1 %v9220_v37  ;;  %v2204_v37 = vand.u32 4294901760, %v9606_v46  ;;  %v2199_v56 = vsub.f32 %v9591_v54, %v2198_v4 }
 0x108   :  { %2171 = vmatpush.msrb.mxu3 %v2170_v1  ;;  %2094 = vmatpush.msrb.mxu2 %v9516_v47  ;;  %v14793_v1 = vld [vmem:[#allocation5_spill] sm:$0xff] }
 0x109   :  { %2020 = vmatpush.msrb.mxu0 %v14787_v20  ;;  %2053 = vmatpush.msrb.mxu1 %v9233_v15  ;;  %v14789_v15 = vand.u32 4294901760, %v9371_v63  ;;  %v2200_v33 = vand.u32 4294901760, %v2199_v56  ;;  %v14790_v63 = vld [vmem:[#allocation11_spill] sm:$0xff] }
 0x10a   :  { %2177 = vmatpush.msrb.mxu3 %v2176_v52  ;;  %2096 = vmatpush.msrb.mxu2 %v9529_v50 }
 0x10b   :  { %2024 = vmatpush.msrb.mxu0 %v14788_v51  ;;  %2055 = vmatpush.msrb.mxu1 %v9259_v44  ;;  %v2205_v44 = vsub.f32 %v9606_v46, %v2204_v37  ;;  %v72_v51 = vld [vmem:[%s14441_s1 + $0x1d0] sm:$0xff] }
 0x10c   :  { %2183 = vmatpush.msrb.mxu3 %v2182_v58  ;;  %2098 = vmatpush.msrb.mxu2 %v9551_v61 }
 0x10d   :  { %2028 = vmatpush.msrb.mxu0 %v14789_v15  ;;  %2057 = vmatpush.msrb.mxu1 %v9274_v6  ;;  %v2206_v6 = vand.u32 4294901760, %v2205_v44 }
 0x10e   :  { %2189 = vmatpush.msrb.mxu3 %v2188_v40  ;;  %2100 = vmatpush.msrb.mxu2 %v9564_v31 }
 0x10f   :  { %2059 = vmatpush.msrb.mxu1 %v9287_v16  ;;  %2215 = vmatpush.msra.mxu0 %v9363_v7  ;;  %v14792_v16 = vand.u32 4294901760, %v9363_v7  ;;  %v14796_v7 = vand.u32 4294901760, %v9404_v29 }
 0x110   :  { %2195 = vmatpush.msrb.mxu3 %v2194_v28  ;;  %1922 = vmatmul.f32.vlgmr.msra.gmra.mxu2 %v8366_v2 }
 0x111   :  { %2218 = vmatpush.msra.mxu0 %v9388_v38  ;;  %2061 = vmatpush.msrb.mxu1 %v14790_v63  ;;  %v14798_v38 = vand.u32 4294901760, %v9409_v55 }
 0x112   :  { %2102 = vmatpush.msrb.mxu2 %v9585_v45  ;;  %2201 = vmatpush.msrb.mxu3 %v2200_v33  ;;  %v14804_v33 = vld [vmem:[#allocation9_spill] sm:$0xff] }
 0x113   :  { %1961 = vmatmul.f32.vlgmr.msra.gmra.mxu3 %v14791_v5  ;;  %2221 = vmatpush.msra.mxu0 %v9404_v29  ;;  %v14800_v29 = vand.u32 4294901760, %v9427_v17 }
 0x114   :  { %2309 = vmatpush.msra.mxu2 %v14792_v16  ;;  %2063 = vmatpush.msrb.mxu1 %v9319_v43  ;;  %v14797_v43 = vld [vmem:[#allocation10_spill] sm:$0xff] }
 0x115   :  { %2207 = vmatpush.msrb.mxu3 %v2206_v6  ;;  %1868 = vmatmul.f32.vlgmr.msra.gmra.mxu1 %v14793_v1 }
 0x116   :  { %2224 = vmatpush.msra.mxu0 %v9409_v55  ;;  %2313 = vmatpush.msra.mxu2 %v14794_v21  ;;  %v160_v55 = vld [vmem:[%s14441_s1 + $0x490] sm:$0xff] }
 0x117   :  { %2376 = vmatpush.msra.mxu3 %v14795_v9  ;;  %2065 = vmatpush.msrb.mxu1 %v9336_v18  ;;  %v14799_v18 = vld [vmem:[#allocation7_spill] sm:$0xff] }
 0x118   :  { %2227 = vmatpush.msra.mxu0 %v9427_v17  ;;  %2317 = vmatpush.msra.mxu2 %v14796_v7  ;;  %v14801_v17 = vand.u32 4294901760, %v9483_v19  ;;  %v9847_v7 = vand.u32 4294901760, %v72_v51 }
 0x119   :  { %2268 = vmatpush.msra.mxu1 %v14795_v9  ;;  %2378 = vmatpush.msra.mxu3 %v9355_v23 }
 0x11a   :  { %2108 = vmatmul.f32.vlgmr.msrb.gmra.mxu2 %v14797_v43  ;;  %2230 = vmatpush.msra.mxu0 %v9451_v60  ;;  %v9724_v60 = vand.u32 4294901760, %v160_v55 }
 0x11b   :  { %2270 = vmatpush.msra.mxu1 %v9355_v23  ;;  %2321 = vmatpush.msra.mxu2 %v14798_v38  ;;  %v171_v23 = vld [vmem:[%s14441_s1 + $0x4e8] sm:$0xff] }
 0x11c   :  { %2380 = vmatpush.msra.mxu3 %v9373_v25  ;;  %2030 = vmatmul.f32.vlgmr.msrb.gmra.mxu0 %v14793_v1 }
 0x11d   :  { %2209 = vmatmul.f32.vlgmr.msrb.gmra.mxu3 %v14799_v18  ;;  %2233 = vmatpush.msra.mxu0 %v9467_v32  ;;  %v138_v32 = vld [vmem:[%s14441_s1 + $0x3e0] sm:$0xff] }
 0x11e   :  { %2272 = vmatpush.msra.mxu1 %v9373_v25  ;;  %2325 = vmatpush.msra.mxu2 %v14800_v29  ;;  %v182_v25 = vld [vmem:[%s14441_s1 + $0x540] sm:$0xff] }
 0x11f   :  { %2382 = vmatpush.msra.mxu3 %v9380_v13  ;;  %2067 = vmatmul.f32.vlgmr.msrb.gmra.mxu1 %v14793_v1 }
 0x120   :  { %2236 = vmatpush.msra.mxu0 %v9483_v19  ;;  %2274 = vmatpush.msra.mxu1 %v9380_v13  ;;  %v14802_v13 = vand.u32 4294901760, %v9514_v41  ;;  %v127_v19 = vld [vmem:[%s14441_s1 + $0x388] sm:$0xff] }
 0x121   :  { %2329 = vmatpush.msra.mxu2 %v2144_v0  ;;  %2384 = vmatpush.msra.mxu3 %v9393_v10 }
 0x122   :  { %2239 = vmatpush.msra.mxu0 %v9498_v62  ;;  %2276 = vmatpush.msra.mxu1 %v9393_v10  ;;  %v9704_v10 = vand.u32 4294901760, %v182_v25  ;;  %v9754_v62 = vsub.f32 %v160_v55, %v9724_v60 }
 0x123   :  { %2333 = vmatpush.msra.mxu2 %v2150_v24  ;;  %2386 = vmatpush.msra.mxu3 %v9419_v35 }
 0x124   :  { %2242 = vmatpush.msra.mxu0 %v9514_v41  ;;  %2278 = vmatpush.msra.mxu1 %v9419_v35  ;;  %v9714_v35 = vand.u32 4294901760, %v171_v23  ;;  %v9764_v41 = vand.u32 4294901760, %v127_v19 }
 0x125   :  { %2337 = vmatpush.msra.mxu2 %v14801_v17  ;;  %2388 = vmatpush.msra.mxu3 %v9437_v30  ;;  %v50_v17 = vld [vmem:[%s14441_s1 + $0x120] sm:$0xff] }
 0x126   :  { %2245 = vmatpush.msra.mxu0 %v9527_v42  ;;  %2280 = vmatpush.msra.mxu1 %v9437_v30  ;;  %v149_v30 = vld [vmem:[%s14441_s1 + $0x438] sm:$0xff]  ;;  %v9740_v0 = vsub.f32 %v171_v23, %v9714_v35  ;;  %v9801_v49 = vsub.f32 %v127_v19, %v9764_v41  ;;  %v39_v19 = vld [vmem:[%s14441_s1 + $0xc8] sm:$0xff] }
 0x127   :  { %2341 = vmatpush.msra.mxu2 %v2162_v12  ;;  %2390 = vmatpush.msra.mxu3 %v9453_v36  ;;  %v105_v42 = vld [vmem:[%s14441_s1 + $0x2d8] sm:$0xff] }
 0x128   :  { %2248 = vmatpush.msra.mxu0 %v9543_v34  ;;  %2282 = vmatpush.msra.mxu1 %v9453_v36  ;;  %v9727_v36 = vsub.f32 %v182_v25, %v9704_v10  ;;  %v14524_v28 = vand.u32 4294901760, %v9801_v49 }
 0x129   :  { %2345 = vmatpush.msra.mxu2 %v14802_v13  ;;  %2392 = vmatpush.msra.mxu3 %v9469_v11 }
 0x12a   :  { %2251 = vmatpush.msra.mxu0 %v9559_v3  ;;  %2284 = vmatpush.msra.mxu1 %v9469_v11  ;;  %v9737_v11 = vand.u32 4294901760, %v149_v30  ;;  %v14531_v24 = vand.u32 4294901760, %v9727_v36  ;;  %v116_v3 = vld [vmem:[%s14441_s1 + $0x330] sm:$0xff]  ;;  %v2486_v23 = vsub.f32 %v9801_v49, %v14524_v28 }
 0x12b   :  { %2349 = vmatpush.msra.mxu2 %v2174_v57  ;;  %2394 = vmatpush.msra.mxu3 %v9485_v27  ;;  %v9781_v57 = vand.u32 4294901760, %v116_v3 }
 0x12c   :  { %2254 = vmatpush.msra.mxu0 %v9578_v48  ;;  %2286 = vmatpush.msra.mxu1 %v9485_v27  ;;  %v9750_v27 = vand.u32 4294901760, %v138_v32  ;;  %v9768_v12 = vsub.f32 %v149_v30, %v9737_v11  ;;  %v2456_v34 = vsub.f32 %v9727_v36, %v14531_v24  ;;  %v94_v48 = vld [vmem:[%s14441_s1 + $0x280] sm:$0xff] }
 0x12d   :  { %2353 = vmatpush.msra.mxu2 %v2180_v59  ;;  %2396 = vmatpush.msra.mxu3 %v9500_v39  ;;  %v14528_v59 = vand.u32 4294901760, %v9754_v62  ;;  %v1241_v20 = vpop.f32.mrf.mxu2 }
 0x12e   :  { %2257 = vmatpush.msra.mxu0 %v9591_v54  ;;  %2288 = vmatpush.msra.mxu1 %v9500_v39  ;;  %v14803_v39 = vld [vmem:[#allocation8_spill] sm:$0xff]  ;;  %v14526_v52 = vand.u32 4294901760, %v9768_v12  ;;  %v2457_v58 = vand.u32 4294901760, %v2456_v34  ;;  %v9875_v34 = vand.u32 4294901760, %v50_v17 }
 0x12f   :  { %2357 = vmatpush.msra.mxu2 %v2186_v8  ;;  %2398 = vmatpush.msra.mxu3 %v9516_v47  ;;  %v1086_v8 = vpop.f32.mrf.mxu0  ;;  %v2468_v14 = vsub.f32 %v9754_v62, %v14528_v59 }
 0x130   :  { %2260 = vmatpush.msra.mxu0 %v9606_v46  ;;  %2290 = vmatpush.msra.mxu1 %v9516_v47  ;;  %v14529_v47 = vand.u32 4294901760, %v9740_v0  ;;  %v83_v46 = vld [vmem:[%s14441_s1 + $0x228] sm:$0xff]  ;;  %v2474_v15 = vsub.f32 %v9768_v12, %v14526_v52  ;;  %v1280_v16 = vpop.f32.mrf.mxu3 }
 0x131   :  { %2361 = vmatpush.msra.mxu2 %v2192_v22  ;;  %2400 = vmatpush.msra.mxu3 %v9529_v50  ;;  %v9797_v22 = vand.u32 4294901760, %v105_v42  ;;  %v2469_v21 = vand.u32 4294901760, %v2468_v14  ;;  %v358_v14 = vld [vmem:[%s14441_s1 + $0xac0] sm:$0xff] }
 0x132   :  { %2263 = vmatmul.f32.vlgmr.msra.gmra.mxu0 %v14803_v39  ;;  %2292 = vmatpush.msra.mxu1 %v9529_v50  ;;  %v1187_v50 = vpop.f32.mrf.mxu1  ;;  %v2462_v54 = vsub.f32 %v9740_v0, %v14529_v47  ;;  %v2475_v25 = vand.u32 4294901760, %v2474_v15  ;;  %v17_v15 = vld [vmem:[%s14441_s1 + $0x18] sm:$0xff] }
 0x133   :  { %2413 = vmatpush.msrb.mxu0 %v9704_v10  ;;  %2365 = vmatpush.msra.mxu2 %v2198_v4  ;;  %v1188_v53 = vadd.f32 %v1187_v50, %v1086_v8  ;;  %v9808_v4 = vand.u32 4294901760, %v94_v48  ;;  %v9833_v44 = vsub.f32 %v105_v42, %v9797_v22 }
 0x134   :  { %2402 = vmatpush.msra.mxu3 %v9551_v61  ;;  %2294 = vmatpush.msra.mxu1 %v9551_v61  ;;  %v9785_v61 = vsub.f32 %v138_v32, %v9750_v27  ;;  %v2463_v56 = vand.u32 4294901760, %v2462_v54  ;;  %v28_v54 = vld [vmem:[%s14441_s1 + $0x70] sm:$0xff] }
 0x135   :  { %2415 = vmatpush.msrb.mxu0 %v9714_v35  ;;  %2369 = vmatpush.msra.mxu2 %v2204_v37  ;;  %v9817_v37 = vsub.f32 %v116_v3, %v9781_v57  ;;  %v1242_v63 = vadd.f32 %v1241_v20, %v1188_v53  ;;  %v9838_v6 = vsub.f32 %v94_v48, %v9808_v4  ;;  %v14521_v55 = vand.u32 4294901760, %v9833_v44 }
 0x136   :  { %2404 = vmatpush.msra.mxu3 %v9564_v31  ;;  %2371 = vmatmul.f32.vlgmr.msra.gmra.mxu2 %v14799_v18  ;;  %v14525_v40 = vand.u32 4294901760, %v9785_v61  ;;  %v9878_v48 = vsub.f32 %v72_v51, %v9847_v7 }
 0x137   :  { %2417 = vmatpush.msrb.mxu0 %v9724_v60  ;;  %2556 = vmatpush.msrb.mxu2 %v9727_v36  ;;  %v14522_v38 = vand.u32 4294901760, %v9817_v37  ;;  %v1281_v30 = vadd.f32 %v1280_v16, %v1242_v63  ;;  %v14519_v32 = vand.u32 4294901760, %v9838_v6  ;;  %v1349_v3 = vpop.f32.mrf.mxu0  ;;  %v2498_v53 = vsub.f32 %v9833_v44, %v14521_v55  ;;  %v1427_v55 = vpop.f32.mrf.mxu2 }
 0x138   :  { %2296 = vmatpush.msra.mxu1 %v9564_v31  ;;  %2406 = vmatpush.msra.mxu3 %v9585_v45  ;;  %v9821_v31 = vand.u32 4294901760, %v83_v46  ;;  %v2480_v9 = vsub.f32 %v9785_v61, %v14525_v40  ;;  %v9907_v16 = vand.u32 4294901760, %v28_v54 }
 0x139   :  { %2408 = vmatmul.f32.vlgmr.msra.gmra.mxu3 %v14799_v18  ;;  %2419 = vmatpush.msrb.mxu0 %v9737_v11  ;;  %v2492_v50 = vsub.f32 %v9817_v37, %v14522_v38  ;;  %v1350_v51 = vadd.f32 %v1349_v3, %v1281_v30  ;;  %v347_v30 = vld [vmem:[%s14441_s1 + $0xa68] sm:$0xff]  ;;  %v2499_v3 = vand.u32 4294901760, %v2498_v53 }
 0x13a   :  { %2559 = vmatpush.msrb.mxu2 %v9740_v0  ;;  %2609 = vmatpush.msrb.mxu3 %v9704_v10  ;;  %v9853_v29 = vsub.f32 %v83_v46, %v9821_v31  ;;  %v2481_v42 = vand.u32 4294901760, %v2480_v9  ;;  %v2487_v46 = vand.u32 4294901760, %v2486_v23  ;;  %v1386_v63 = vpop.f32.mrf.mxu1  ;;  %v9911_v9 = vsub.f32 %v50_v17, %v9875_v34  ;;  %v1528_v52 = vpop.f32.mrf.mxu3 }
 0x13b   :  { %2298 = vmatpush.msra.mxu1 %v9585_v45  ;;  %2421 = vmatpush.msrb.mxu0 %v9750_v27  ;;  %v61_v45 = vld [vmem:[%s14441_s1 + $0x178] sm:$0xff]  ;;  %v9918_v23 = vand.u32 4294901760, %v358_v14  ;;  %v9924_v17 = vand.u32 4294901760, %v17_v15 }
 0x13c   :  { %2302 = vmatmul.f32.vlgmr.msra.gmra.mxu1 %v14804_v33  ;;  %2562 = vmatpush.msrb.mxu2 %v9754_v62  ;;  %v9862_v13 = vand.u32 4294901760, %v61_v45  ;;  %v14520_v8 = vand.u32 4294901760, %v9853_v29 }
 0x13d   :  { %2458 = vmatpush.msrb.mxu1 %v2457_v58  ;;  %2611 = vmatpush.msrb.mxu3 %v9714_v35  ;;  %v9890_v58 = vand.u32 4294901760, %v39_v19  ;;  %14806 = vst [vmem:[#allocation12_spill] sm:$0xff] %v9918_v23  ;;  %v9951_v38 = vsub.f32 %v358_v14, %v9918_v23  ;;  %v9959_v28 = vsub.f32 %v17_v15, %v9924_v17 }
 0x13e   :  { %2423 = vmatpush.msrb.mxu0 %v9764_v41  ;;  %2565 = vmatpush.msrb.mxu2 %v9768_v12  ;;  %v9893_v20 = vsub.f32 %v61_v45, %v9862_v13  ;;  %v2493_v45 = vand.u32 4294901760, %v2492_v50 }
 0x13f   :  { %2464 = vmatpush.msrb.mxu1 %v2463_v56  ;;  %2613 = vmatpush.msrb.mxu3 %v9724_v60  ;;  %14805 = vst [vmem:[#allocation11_spill] sm:$0xff] %v9890_v58  ;;  %v2504_v56 = vsub.f32 %v9838_v6, %v14519_v32  ;;  %v9928_v50 = vsub.f32 %v39_v19, %v9890_v58  ;;  %v14530_v19 = vand.u32 4294901760, %v9911_v9  ;;  %v14808_v33 = vand.u32 4294901760, %v9951_v38 }
 0x140   :  { %2425 = vmatpush.msrb.mxu0 %v9781_v57  ;;  %2568 = vmatpush.msrb.mxu2 %v9785_v61  ;;  %v1387_v32 = vadd.f32 %v1386_v63, %v1350_v51  ;;  %v9941_v51 = vsub.f32 %v28_v54, %v9907_v16  ;;  %v9943_v63 = vand.u32 4294901760, %v347_v30 }
 0x141   :  { %2470 = vmatpush.msrb.mxu1 %v2469_v21  ;;  %2615 = vmatpush.msrb.mxu3 %v9737_v11  ;;  %v14523_v21 = vand.u32 4294901760, %v9878_v48  ;;  %v2528_v15 = vsub.f32 %v9911_v9, %v14530_v19 }
 0x142   :  { %2427 = vmatpush.msrb.mxu0 %v9797_v22  ;;  %2571 = vmatpush.msrb.mxu2 %v9801_v49  ;;  %v1428_v14 = vadd.f32 %v1427_v55, %v1387_v32  ;;  %v9976_v47 = vsub.f32 %v347_v30, %v9943_v63  ;;  %v14807_v24 = vand.u32 4294901760, %v9941_v51 }
 0x143   :  { %2476 = vmatpush.msrb.mxu1 %v2475_v25  ;;  %2617 = vmatpush.msrb.mxu3 %v9750_v27  ;;  %v2510_v25 = vsub.f32 %v9853_v29, %v14520_v8  ;;  %v2505_v8 = vand.u32 4294901760, %v2504_v56  ;;  %v2516_v53 = vsub.f32 %v9878_v48, %v14523_v21  ;;  %v325_v56 = vld [vmem:[%s14441_s1 + $0x9b8] sm:$0xff]  ;;  %v14532_v21 = vand.u32 4294901760, %v9928_v50 }
 0x144   :  { %2429 = vmatpush.msrb.mxu0 %v9808_v4  ;;  %2574 = vmatpush.msrb.mxu2 %v9817_v37  ;;  %v1529_v55 = vadd.f32 %v1528_v52, %v1428_v14  ;;  %v14809_v52 = vand.u32 4294901760, %v9959_v28 }
 0x145   :  { %2482 = vmatpush.msrb.mxu1 %v2481_v42  ;;  %2619 = vmatpush.msrb.mxu3 %v9764_v41  ;;  %v14527_v42 = vand.u32 4294901760, %v9893_v20  ;;  %v2534_v30 = vsub.f32 %v9928_v50, %v14532_v21  ;;  %v2529_v21 = vand.u32 4294901760, %v2528_v15 }
 0x146   :  { %2431 = vmatpush.msrb.mxu0 %v9821_v31  ;;  %2577 = vmatpush.msrb.mxu2 %v9833_v44  ;;  %v2546_v18 = vsub.f32 %v9959_v28, %v14809_v52 }
 0x147   :  { %2488 = vmatpush.msrb.mxu1 %v2487_v46  ;;  %2621 = vmatpush.msrb.mxu3 %v9781_v57  ;;  %v336_v46 = vld [vmem:[%s14441_s1 + $0xa10] sm:$0xff]  ;;  %v2522_v54 = vsub.f32 %v9893_v20, %v14527_v42  ;;  %v2517_v42 = vand.u32 4294901760, %v2516_v53  ;;  %v2535_v15 = vand.u32 4294901760, %v2534_v30  ;;  %v270_v30 = vld [vmem:[%s14441_s1 + $0x800] sm:$0xff] }
 0x148   :  { %2433 = vmatpush.msrb.mxu0 %v9847_v7  ;;  %2580 = vmatpush.msrb.mxu2 %v9838_v6  ;;  %v9961_v40 = vand.u32 4294901760, %v336_v46 }
 0x149   :  { %2494 = vmatpush.msrb.mxu1 %v2493_v45  ;;  %2623 = vmatpush.msrb.mxu3 %v9797_v22  ;;  %v2511_v45 = vand.u32 4294901760, %v2510_v25  ;;  %v314_v25 = vld [vmem:[%s14441_s1 + $0x960] sm:$0xff]  ;;  %v2523_v53 = vand.u32 4294901760, %v2522_v54  ;;  %v1582_v19 = vpop.f32.mrf.mxu0  ;;  %v292_v54 = vld [vmem:[%s14441_s1 + $0x8b0] sm:$0xff] }
 0x14a   :  { %2435 = vmatpush.msrb.mxu0 %v9862_v13  ;;  %2583 = vmatpush.msrb.mxu2 %v9853_v29  ;;  %v9981_v32 = vand.u32 4294901760, %v314_v25  ;;  %v9992_v59 = vsub.f32 %v336_v46, %v9961_v40  ;;  %v2540_v46 = vsub.f32 %v9941_v51, %v14807_v24  ;;  %v281_v24 = vld [vmem:[%s14441_s1 + $0x858] sm:$0xff] }
 0x14b   :  { %2500 = vmatpush.msrb.mxu1 %v2499_v3  ;;  %2625 = vmatpush.msrb.mxu3 %v9808_v4  ;;  %v9968_v3 = vand.u32 4294901760, %v325_v56 }
 0x14c   :  { %2437 = vmatpush.msrb.mxu0 %v9875_v34  ;;  %2586 = vmatpush.msrb.mxu2 %v9878_v48  ;;  %v10015_v39 = vsub.f32 %v314_v25, %v9981_v32  ;;  %v14810_v25 = vand.u32 4294901760, %v9727_v36  ;;  %v2541_v52 = vand.u32 4294901760, %v2540_v46  ;;  %v259_v46 = vld [vmem:[%s14441_s1 + $0x7a8] sm:$0xff] }
 0x14d   :  { %2506 = vmatpush.msrb.mxu1 %v2505_v8  ;;  %2627 = vmatpush.msrb.mxu3 %v9821_v31  ;;  %v303_v8 = vld [vmem:[%s14441_s1 + $0x908] sm:$0xff] }
 0x14e   :  { %2439 = vmatpush.msrb.mxu0 %v9890_v58  ;;  %2589 = vmatpush.msrb.mxu2 %v9893_v20  ;;  %v10007_v14 = vand.u32 4294901760, %v303_v8 }
 0x14f   :  { %2512 = vmatpush.msrb.mxu1 %v2511_v45  ;;  %2629 = vmatpush.msrb.mxu3 %v9847_v7  ;;  %v9997_v45 = vsub.f32 %v325_v56, %v9968_v3  ;;  %v1583_v56 = vadd.f32 %v1582_v19, %v1529_v55  ;;  %v14811_v55 = vand.u32 4294901760, %v9976_v47 }
 0x150   :  { %2441 = vmatpush.msrb.mxu0 %v9907_v16  ;;  %2592 = vmatpush.msrb.mxu2 %v9911_v9  ;;  %v10039_v36 = vsub.f32 %v303_v8, %v10007_v14  ;;  %v2547_v8 = vand.u32 4294901760, %v2546_v18  ;;  %v248_v18 = vld [vmem:[%s14441_s1 + $0x750] sm:$0xff] }
 0x151   :  { %2518 = vmatpush.msrb.mxu1 %v2517_v42  ;;  %2631 = vmatpush.msrb.mxu3 %v9862_v13  ;;  %v2797_v42 = vsub.f32 %v9951_v38, %v14808_v33  ;;  %v10025_v33 = vand.u32 4294901760, %v292_v54  ;;  %v2803_v5 = vsub.f32 %v9976_v47, %v14811_v55  ;;  %v14813_v55 = vand.u32 4294901760, %v9992_v59 }
 0x152   :  { %2443 = vmatpush.msrb.mxu0 %v9924_v17  ;;  %2595 = vmatpush.msrb.mxu2 %v9928_v50 }
 0x153   :  { %2524 = vmatpush.msrb.mxu1 %v2523_v53  ;;  %2633 = vmatpush.msrb.mxu3 %v9875_v34  ;;  %v1621_v19 = vpop.f32.mrf.mxu1  ;;  %v1690_v43 = vpop.f32.mrf.mxu2 }
 0x154   :  { %2650 = vmatpush.msra.mxu0 %v14810_v25  ;;  %2598 = vmatpush.msrb.mxu2 %v9941_v51  ;;  %v1622_v1 = vadd.f32 %v1621_v19, %v1583_v56  ;;  %v10041_v25 = vand.u32 4294901760, %v281_v24  ;;  %v14812_v56 = vand.u32 4294901760, %v9740_v0  ;;  %v2798_v19 = vand.u32 4294901760, %v2797_v42 }
 0x155   :  { %2530 = vmatpush.msrb.mxu1 %v2529_v21  ;;  %2635 = vmatpush.msrb.mxu3 %v9890_v58  ;;  %v2809_v0 = vsub.f32 %v9992_v59, %v14813_v55  ;;  %v10057_v42 = vand.u32 4294901760, %v270_v30  ;;  %v2826_v55 = vand.u32 4294901760, %v10039_v36 }
 0x156   :  { %2654 = vmatpush.msra.mxu0 %v14812_v56  ;;  %2601 = vmatpush.msrb.mxu2 %v9959_v28  ;;  %v1691_v53 = vadd.f32 %v1690_v43, %v1622_v1  ;;  %v1727_v21 = vpop.f32.mrf.mxu3  ;;  %v10055_v56 = vsub.f32 %v292_v54, %v10025_v33  ;;  %v14814_v1 = vand.u32 4294901760, %v9754_v62  ;;  %v14815_v43 = vand.u32 4294901760, %v9997_v45 }
 0x157   :  { %2536 = vmatpush.msrb.mxu1 %v2535_v15  ;;  %2637 = vmatpush.msrb.mxu3 %v9907_v16  ;;  %v2804_v54 = vand.u32 4294901760, %v2803_v5  ;;  %v10071_v62 = vsub.f32 %v281_v24, %v10041_v25  ;;  %v237_v5 = vld [vmem:[%s14441_s1 + $0x6f8] sm:$0xff]  ;;  %v2810_v24 = vand.u32 4294901760, %v2809_v0 }
 0x158   :  { %2658 = vmatpush.msra.mxu0 %v14814_v1  ;;  %2754 = vmatpush.msra.mxu2 %v9918_v23  ;;  %v2815_v15 = vsub.f32 %v9997_v45, %v14815_v43  ;;  %v1728_v58 = vadd.f32 %v1727_v21, %v1691_v53  ;;  %v10073_v1 = vand.u32 4294901760, %v259_v46  ;;  %v14816_v23 = vand.u32 4294901760, %v9768_v12 }
 0x159   :  { %2542 = vmatpush.msrb.mxu1 %v2541_v52  ;;  %2639 = vmatpush.msrb.mxu3 %v9924_v17  ;;  %v14817_v53 = vand.u32 4294901760, %v10015_v39  ;;  %v2832_v21 = vand.u32 4294901760, %v10055_v56  ;;  %v10086_v43 = vsub.f32 %v270_v30, %v10057_v42  ;;  %v10088_v12 = vand.u32 4294901760, %v248_v18 }
 0x15a   :  { %2662 = vmatpush.msra.mxu0 %v14816_v23  ;;  %2756 = vmatpush.msra.mxu2 %v9943_v63  ;;  %7869 = vst [vmem:[#allocation2 + $0x8] sm:$0xff] %v1728_v58  ;;  %v14818_v58 = vand.u32 4294901760, %v9785_v61  ;;  %v2816_v23 = vand.u32 4294901760, %v2815_v15  ;;  %v2827_v30 = vsub.f32 %v10039_v36, %v2826_v55  ;;  %v10104_v61 = vand.u32 4294901760, %v237_v5 }
 0x15b   :  { %v2821_v52 = vsub.f32 %v10015_v39, %v14817_v53  ;;  %2799 = vmatpush.msra.mxu3 %v2798_v19  ;;  %2548 = vmatpush.msrb.mxu1 %v2547_v8  ;;  %v226_v53 = vld [vmem:[%s14441_s1 + $0x6a0] sm:$0xff]  ;;  %v14538_v19 = vand.u32 4294901760, %v10071_v62  ;;  %v10102_v8 = vsub.f32 %v259_v46, %v10073_v1  ;;  %v2833_v15 = vsub.f32 %v10055_v56, %v2832_v21 }
 0x15c   :  { %2666 = vmatpush.msra.mxu0 %v14818_v58  ;;  %2758 = vmatpush.msra.mxu2 %v9961_v40  ;;  %v10115_v46 = vsub.f32 %v248_v18, %v10088_v12  ;;  %v10117_v58 = vand.u32 4294901760, %v226_v53 }
 0x15d   :  { %2717 = vmatpush.msra.mxu1 %v9704_v10  ;;  %2805 = vmatpush.msra.mxu3 %v2804_v54  ;;  %v14819_v10 = vand.u32 4294901760, %v9801_v49  ;;  %v2822_v0 = vand.u32 4294901760, %v2821_v52  ;;  %v2844_v54 = vand.u32 4294901760, %v10086_v43  ;;  %v215_v49 = vld [vmem:[%s14441_s1 + $0x648] sm:$0xff]  ;;  %v2828_v52 = vand.u32 4294901760, %v2827_v30 }
 0x15e   :  { %2760 = vmatpush.msra.mxu2 %v9968_v3  ;;  %v2839_v18 = vsub.f32 %v10071_v62, %v14538_v19  ;;  %v2856_v30 = vand.u32 4294901760, %v10115_v46  ;;  %v10147_v19 = vsub.f32 %v226_v53, %v10117_v58  ;;  %2449 = vmatmul.f32.vlgmr.msrb.gmra.mxu0 %v8434_v26 }
 0x15f   :  { %2670 = vmatpush.msra.mxu0 %v14819_v10  ;;  %2719 = vmatpush.msra.mxu1 %v9714_v35  ;;  %v14820_v35 = vand.u32 4294901760, %v9817_v37  ;;  %v10131_v10 = vsub.f32 %v237_v5, %v10104_v61  ;;  %v204_v37 = vld [vmem:[%s14441_s1 + $0x5f0] sm:$0xff]  ;;  %v2845_v5 = vsub.f32 %v10086_v43, %v2844_v54 }
 0x160   :  { %2811 = vmatpush.msra.mxu3 %v2810_v24  ;;  %2762 = vmatpush.msra.mxu2 %v9981_v32  ;;  %v14539_v24 = vand.u32 4294901760, %v10102_v8 }
 0x161   :  { %2674 = vmatpush.msra.mxu0 %v14820_v35  ;;  %2721 = vmatpush.msra.mxu1 %v9724_v60  ;;  %v14821_v35 = vand.u32 4294901760, %v9833_v44  ;;  %v10139_v60 = vand.u32 4294901760, %v215_v49  ;;  %v14822_v44 = vand.u32 4294901760, %v9838_v6  ;;  %v14823_v6 = vand.u32 4294901760, %v9853_v29 }
 0x162   :  { %2817 = vmatpush.msra.mxu3 %v2816_v23  ;;  %2764 = vmatpush.msra.mxu2 %v10007_v14  ;;  %v2834_v23 = vand.u32 4294901760, %v2833_v15  ;;  %v2840_v15 = vand.u32 4294901760, %v2839_v18  ;;  %v2851_v53 = vsub.f32 %v10102_v8, %v14539_v24  ;;  %v2868_v18 = vand.u32 4294901760, %v10147_v19 }
 0x163   :  { %2678 = vmatpush.msra.mxu0 %v14821_v35  ;;  %2723 = vmatpush.msra.mxu1 %v9737_v11  ;;  %v10152_v11 = vand.u32 4294901760, %v204_v37  ;;  %v2862_v35 = vand.u32 4294901760, %v10131_v10  ;;  %v14824_v29 = vand.u32 4294901760, %v9878_v48 }
 0x164   :  { %2823 = vmatpush.msra.mxu3 %v2822_v0  ;;  %v193_v0 = vld [vmem:[%s14441_s1 + $0x598] sm:$0xff]  ;;  %2766 = vmatpush.msra.mxu2 %v10025_v33 }
 0x165   :  { %2682 = vmatpush.msra.mxu0 %v14822_v44  ;;  %2725 = vmatpush.msra.mxu1 %v9750_v27  ;;  %v10166_v27 = vsub.f32 %v215_v49, %v10139_v60  ;;  %v2846_v44 = vand.u32 4294901760, %v2845_v5  ;;  %v10173_v24 = vand.u32 4294901760, %v193_v0  ;;  %v2852_v49 = vand.u32 4294901760, %v2851_v53 }
 0x166   :  { %2829 = vmatpush.msra.mxu3 %v2828_v52  ;;  %2768 = vmatpush.msra.mxu2 %v10041_v25  ;;  %v2857_v52 = vsub.f32 %v10115_v46, %v2856_v30  ;;  %v14825_v5 = vand.u32 4294901760, %v9893_v20  ;;  %v14826_v53 = vand.u32 4294901760, %v9911_v9 }
 0x167   :  { %2686 = vmatpush.msra.mxu0 %v14823_v6  ;;  %2727 = vmatpush.msra.mxu1 %v9764_v41  ;;  %v10179_v41 = vsub.f32 %v204_v37, %v10152_v11  ;;  %v2874_v48 = vand.u32 4294901760, %v10166_v27  ;;  %v2869_v37 = vsub.f32 %v10147_v19, %v2868_v18  ;;  %v14827_v6 = vand.u32 4294901760, %v9928_v50 }
 0x168   :  { %2835 = vmatpush.msra.mxu3 %v2834_v23  ;;  %2770 = vmatpush.msra.mxu2 %v10057_v42  ;;  %v2863_v23 = vsub.f32 %v10131_v10, %v2862_v35 }
 0x169   :  { %2690 = vmatpush.msra.mxu0 %v14824_v29  ;;  %2729 = vmatpush.msra.mxu1 %v9781_v57  ;;  %v2858_v57 = vand.u32 4294901760, %v2857_v52  ;;  %v2870_v9 = vand.u32 4294901760, %v2869_v37  ;;  %v14831_v29 = vld [vmem:[#allocation6_spill] sm:$0xff] }
 0x16a   :  { %2841 = vmatpush.msra.mxu3 %v2840_v15  ;;  %2772 = vmatpush.msra.mxu2 %v10073_v1  ;;  %v10194_v15 = vsub.f32 %v193_v0, %v10173_v24  ;;  %v2864_v20 = vand.u32 4294901760, %v2863_v23  ;;  %v2875_v0 = vsub.f32 %v10166_v27, %v2874_v48  ;;  %v14834_v23 = vand.u32 4294901760, %v9976_v47 }
 0x16b   :  { %2694 = vmatpush.msra.mxu0 %v14825_v5  ;;  %2731 = vmatpush.msra.mxu1 %v9797_v22  ;;  %v2880_v22 = vand.u32 4294901760, %v10179_v41  ;;  %v14835_v5 = vld [vmem:[#allocation12_spill] sm:$0xff] }
 0x16c   :  { %2847 = vmatpush.msra.mxu3 %v2846_v44  ;;  %2774 = vmatpush.msra.mxu2 %v10088_v12  ;;  %v14828_v44 = vand.u32 4294901760, %v9941_v51  ;;  %v2876_v52 = vand.u32 4294901760, %v2875_v0 }
 0x16d   :  { %2698 = vmatpush.msra.mxu0 %v14826_v53  ;;  %2733 = vmatpush.msra.mxu1 %v9808_v4  ;;  %v2886_v4 = vand.u32 4294901760, %v10194_v15  ;;  %v2881_v50 = vsub.f32 %v10179_v41, %v2880_v22 }
 0x16e   :  { %2853 = vmatpush.msra.mxu3 %v2852_v49  ;;  %2776 = vmatpush.msra.mxu2 %v10104_v61  ;;  %v14833_v49 = vld [vmem:[#allocation5_spill] sm:$0xff] }
 0x16f   :  { %2702 = vmatpush.msra.mxu0 %v14827_v6  ;;  %2735 = vmatpush.msra.mxu1 %v9821_v31  ;;  %v14829_v31 = vand.u32 4294901760, %v9959_v28  ;;  %v2882_v51 = vand.u32 4294901760, %v2881_v50  ;;  %v14830_v28 = vld [vmem:[#allocation11_spill] sm:$0xff] }
 0x170   :  { %2859 = vmatpush.msra.mxu3 %v2858_v57  ;;  %2778 = vmatpush.msra.mxu2 %v10117_v58 }
 0x171   :  { %2706 = vmatpush.msra.mxu0 %v14828_v44  ;;  %2737 = vmatpush.msra.mxu1 %v9847_v7  ;;  %v2887_v7 = vsub.f32 %v10194_v15, %v2886_v4  ;;  %v73_v44 = vld [vmem:[%s14441_s1 + $0x1d8] sm:$0xff] }
 0x172   :  { %2865 = vmatpush.msra.mxu3 %v2864_v20  ;;  %2780 = vmatpush.msra.mxu2 %v10139_v60 }
 0x173   :  { %2710 = vmatpush.msra.mxu0 %v14829_v31  ;;  %2739 = vmatpush.msra.mxu1 %v9862_v13  ;;  %v2888_v13 = vand.u32 4294901760, %v2887_v7 }
 0x174   :  { %2871 = vmatpush.msra.mxu3 %v2870_v9  ;;  %2782 = vmatpush.msra.mxu2 %v10152_v11 }
 0x175   :  { %2741 = vmatpush.msra.mxu1 %v9875_v34  ;;  %2897 = vmatpush.msrb.mxu0 %v9951_v38  ;;  %v14832_v34 = vand.u32 4294901760, %v9951_v38  ;;  %v14836_v38 = vand.u32 4294901760, %v9992_v59 }
 0x176   :  { %2877 = vmatpush.msra.mxu3 %v2876_v52  ;;  %2604 = vmatmul.f32.vlgmr.msrb.gmra.mxu2 %v8366_v2 }
 0x177   :  { %2900 = vmatpush.msrb.mxu0 %v9976_v47  ;;  %2743 = vmatpush.msra.mxu1 %v14830_v28  ;;  %v14838_v47 = vand.u32 4294901760, %v9997_v45 }
 0x178   :  { %2784 = vmatpush.msra.mxu2 %v10173_v24  ;;  %2883 = vmatpush.msra.mxu3 %v2882_v51  ;;  %v14844_v51 = vld [vmem:[#allocation9_spill] sm:$0xff] }
 0x179   :  { %2643 = vmatmul.f32.vlgmr.msrb.gmra.mxu3 %v14831_v29  ;;  %2903 = vmatpush.msrb.mxu0 %v9992_v59  ;;  %v14840_v59 = vand.u32 4294901760, %v10015_v39 }
 0x17a   :  { %2991 = vmatpush.msrb.mxu2 %v14832_v34  ;;  %2745 = vmatpush.msra.mxu1 %v9907_v16  ;;  %v14837_v16 = vld [vmem:[#allocation10_spill] sm:$0xff] }
 0x17b   :  { %2889 = vmatpush.msra.mxu3 %v2888_v13  ;;  %2550 = vmatmul.f32.vlgmr.msrb.gmra.mxu1 %v14833_v49 }
 0x17c   :  { %2906 = vmatpush.msrb.mxu0 %v9997_v45  ;;  %2995 = vmatpush.msrb.mxu2 %v14834_v23  ;;  %v161_v45 = vld [vmem:[%s14441_s1 + $0x498] sm:$0xff] }
 0x17d   :  { %3058 = vmatpush.msrb.mxu3 %v14835_v5  ;;  %2747 = vmatpush.msra.mxu1 %v9924_v17  ;;  %v14839_v17 = vld [vmem:[#allocation7_spill] sm:$0xff] }
 0x17e   :  { %2909 = vmatpush.msrb.mxu0 %v10015_v39  ;;  %2999 = vmatpush.msrb.mxu2 %v14836_v38  ;;  %v14841_v39 = vand.u32 4294901760, %v10071_v62  ;;  %v10435_v38 = vand.u32 4294901760, %v73_v44 }
 0x17f   :  { %2950 = vmatpush.msrb.mxu1 %v14835_v5  ;;  %3060 = vmatpush.msrb.mxu3 %v9943_v63 }
 0x180   :  { %2790 = vmatmul.f32.vlgmr.msra.gmra.mxu2 %v14837_v16  ;;  %2912 = vmatpush.msrb.mxu0 %v10039_v36  ;;  %v10312_v36 = vand.u32 4294901760, %v161_v45 }
 0x181   :  { %2952 = vmatpush.msrb.mxu1 %v9943_v63  ;;  %3003 = vmatpush.msrb.mxu2 %v14838_v47  ;;  %v172_v63 = vld [vmem:[%s14441_s1 + $0x4f0] sm:$0xff] }
 0x182   :  { %3062 = vmatpush.msrb.mxu3 %v9961_v40  ;;  %2712 = vmatmul.f32.vlgmr.msra.gmra.mxu0 %v14833_v49 }
 0x183   :  { %2891 = vmatmul.f32.vlgmr.msra.gmra.mxu3 %v14839_v17  ;;  %2915 = vmatpush.msrb.mxu0 %v10055_v56  ;;  %v139_v56 = vld [vmem:[%s14441_s1 + $0x3e8] sm:$0xff] }
 0x184   :  { %2954 = vmatpush.msrb.mxu1 %v9961_v40  ;;  %3007 = vmatpush.msrb.mxu2 %v14840_v59  ;;  %v183_v40 = vld [vmem:[%s14441_s1 + $0x548] sm:$0xff] }
 0x185   :  { %3064 = vmatpush.msrb.mxu3 %v9968_v3  ;;  %2749 = vmatmul.f32.vlgmr.msra.gmra.mxu1 %v14833_v49 }
 0x186   :  { %2918 = vmatpush.msrb.mxu0 %v10071_v62  ;;  %2956 = vmatpush.msrb.mxu1 %v9968_v3  ;;  %v14842_v3 = vand.u32 4294901760, %v10102_v8  ;;  %v128_v62 = vld [vmem:[%s14441_s1 + $0x390] sm:$0xff] }
 0x187   :  { %3011 = vmatpush.msrb.mxu2 %v2826_v55  ;;  %3066 = vmatpush.msrb.mxu3 %v9981_v32 }
 0x188   :  { %2921 = vmatpush.msrb.mxu0 %v10086_v43  ;;  %2958 = vmatpush.msrb.mxu1 %v9981_v32  ;;  %v10292_v32 = vand.u32 4294901760, %v183_v40  ;;  %v10342_v43 = vsub.f32 %v161_v45, %v10312_v36 }
 0x189   :  { %3015 = vmatpush.msrb.mxu2 %v2832_v21  ;;  %3068 = vmatpush.msrb.mxu3 %v10007_v14 }
 0x18a   :  { %2924 = vmatpush.msrb.mxu0 %v10102_v8  ;;  %2960 = vmatpush.msrb.mxu1 %v10007_v14  ;;  %v10302_v14 = vand.u32 4294901760, %v172_v63  ;;  %v10352_v8 = vand.u32 4294901760, %v128_v62 }
 0x18b   :  { %3019 = vmatpush.msrb.mxu2 %v14841_v39  ;;  %3070 = vmatpush.msrb.mxu3 %v10025_v33  ;;  %v51_v39 = vld [vmem:[%s14441_s1 + $0x128] sm:$0xff] }
 0x18c   :  { %2927 = vmatpush.msrb.mxu0 %v10115_v46  ;;  %2962 = vmatpush.msrb.mxu1 %v10025_v33  ;;  %v150_v33 = vld [vmem:[%s14441_s1 + $0x440] sm:$0xff]  ;;  %v10328_v55 = vsub.f32 %v172_v63, %v10302_v14  ;;  %v10389_v37 = vsub.f32 %v128_v62, %v10352_v8  ;;  %v40_v62 = vld [vmem:[%s14441_s1 + $0xd0] sm:$0xff] }
 0x18d   :  { %3023 = vmatpush.msrb.mxu2 %v2844_v54  ;;  %3072 = vmatpush.msrb.mxu3 %v10041_v25  ;;  %v106_v46 = vld [vmem:[%s14441_s1 + $0x2e0] sm:$0xff] }
 0x18e   :  { %2930 = vmatpush.msrb.mxu0 %v10131_v10  ;;  %2964 = vmatpush.msrb.mxu1 %v10041_v25  ;;  %v10315_v25 = vsub.f32 %v183_v40, %v10292_v32  ;;  %v14545_v52 = vand.u32 4294901760, %v10389_v37 }
 0x18f   :  { %3027 = vmatpush.msrb.mxu2 %v14842_v3  ;;  %3074 = vmatpush.msrb.mxu3 %v10057_v42 }
 0x190   :  { %2933 = vmatpush.msrb.mxu0 %v10147_v19  ;;  %2966 = vmatpush.msrb.mxu1 %v10057_v42  ;;  %v10325_v42 = vand.u32 4294901760, %v150_v33  ;;  %v14552_v21 = vand.u32 4294901760, %v10315_v25  ;;  %v117_v19 = vld [vmem:[%s14441_s1 + $0x338] sm:$0xff]  ;;  %v3168_v63 = vsub.f32 %v10389_v37, %v14545_v52 }
 0x191   :  { %3031 = vmatpush.msrb.mxu2 %v2856_v30  ;;  %3076 = vmatpush.msrb.mxu3 %v10073_v1  ;;  %v10369_v30 = vand.u32 4294901760, %v117_v19 }
 0x192   :  { %2936 = vmatpush.msrb.mxu0 %v10166_v27  ;;  %2968 = vmatpush.msrb.mxu1 %v10073_v1  ;;  %v10338_v1 = vand.u32 4294901760, %v139_v56  ;;  %v10356_v54 = vsub.f32 %v150_v33, %v10325_v42  ;;  %v3138_v10 = vsub.f32 %v10315_v25, %v14552_v21  ;;  %v95_v27 = vld [vmem:[%s14441_s1 + $0x288] sm:$0xff] }
 0x193   :  { %3035 = vmatpush.msrb.mxu2 %v2862_v35  ;;  %3078 = vmatpush.msrb.mxu3 %v10088_v12  ;;  %v14549_v35 = vand.u32 4294901760, %v10342_v43  ;;  %v1923_v6 = vpop.f32.mrf.mxu2 }
 0x194   :  { %2939 = vmatpush.msrb.mxu0 %v10179_v41  ;;  %2970 = vmatpush.msrb.mxu1 %v10088_v12  ;;  %v14843_v12 = vld [vmem:[#allocation8_spill] sm:$0xff]  ;;  %v14547_v57 = vand.u32 4294901760, %v10356_v54  ;;  %v3139_v20 = vand.u32 4294901760, %v3138_v10  ;;  %v10463_v10 = vand.u32 4294901760, %v51_v39 }
 0x195   :  { %3039 = vmatpush.msrb.mxu2 %v2868_v18  ;;  %3080 = vmatpush.msrb.mxu3 %v10104_v61  ;;  %v1768_v18 = vpop.f32.mrf.mxu0  ;;  %v3150_v0 = vsub.f32 %v10342_v43, %v14549_v35 }
 0x196   :  { %2942 = vmatpush.msrb.mxu0 %v10194_v15  ;;  %2972 = vmatpush.msrb.mxu1 %v10104_v61  ;;  %v14550_v61 = vand.u32 4294901760, %v10328_v55  ;;  %v84_v15 = vld [vmem:[%s14441_s1 + $0x230] sm:$0xff]  ;;  %v3156_v31 = vsub.f32 %v10356_v54, %v14547_v57  ;;  %v1962_v34 = vpop.f32.mrf.mxu3 }
 0x197   :  { %3043 = vmatpush.msrb.mxu2 %v2874_v48  ;;  %3082 = vmatpush.msrb.mxu3 %v10117_v58  ;;  %v10385_v48 = vand.u32 4294901760, %v106_v46  ;;  %v3151_v23 = vand.u32 4294901760, %v3150_v0  ;;  %v359_v0 = vld [vmem:[%s14441_s1 + $0xac8] sm:$0xff] }
 0x198   :  { %2945 = vmatmul.f32.vlgmr.msrb.gmra.mxu0 %v14843_v12  ;;  %2974 = vmatpush.msrb.mxu1 %v10117_v58  ;;  %v1869_v58 = vpop.f32.mrf.mxu1  ;;  %v3144_v41 = vsub.f32 %v10328_v55, %v14550_v61  ;;  %v3157_v40 = vand.u32 4294901760, %v3156_v31  ;;  %v18_v31 = vld [vmem:[%s14441_s1 + $0x20] sm:$0xff] }
 0x199   :  { %3095 = vmatpush.msra.mxu0 %v10292_v32  ;;  %3047 = vmatpush.msrb.mxu2 %v2880_v22  ;;  %v1870_v53 = vadd.f32 %v1869_v58, %v1768_v18  ;;  %v10396_v22 = vand.u32 4294901760, %v95_v27  ;;  %v10421_v7 = vsub.f32 %v106_v46, %v10385_v48 }
 0x19a   :  { %3084 = vmatpush.msrb.mxu3 %v10139_v60  ;;  %2976 = vmatpush.msrb.mxu1 %v10139_v60  ;;  %v10373_v60 = vsub.f32 %v139_v56, %v10338_v1  ;;  %v3145_v50 = vand.u32 4294901760, %v3144_v41  ;;  %v29_v41 = vld [vmem:[%s14441_s1 + $0x78] sm:$0xff] }
 0x19b   :  { %3097 = vmatpush.msra.mxu0 %v10302_v14  ;;  %3051 = vmatpush.msrb.mxu2 %v2886_v4  ;;  %v10405_v4 = vsub.f32 %v117_v19, %v10369_v30  ;;  %v1924_v28 = vadd.f32 %v1923_v6, %v1870_v53  ;;  %v10426_v13 = vsub.f32 %v95_v27, %v10396_v22  ;;  %v14542_v45 = vand.u32 4294901760, %v10421_v7 }
 0x19c   :  { %3086 = vmatpush.msrb.mxu3 %v10152_v11  ;;  %3053 = vmatmul.f32.vlgmr.msrb.gmra.mxu2 %v14839_v17  ;;  %v14546_v9 = vand.u32 4294901760, %v10373_v60  ;;  %v10466_v27 = vsub.f32 %v73_v44, %v10435_v38 }
 0x19d   :  { %3099 = vmatpush.msra.mxu0 %v10312_v36  ;;  %3238 = vmatpush.msra.mxu2 %v10315_v25  ;;  %v14543_v47 = vand.u32 4294901760, %v10405_v4  ;;  %v1963_v33 = vadd.f32 %v1962_v34, %v1924_v28  ;;  %v14540_v56 = vand.u32 4294901760, %v10426_v13  ;;  %v2031_v19 = vpop.f32.mrf.mxu0  ;;  %v3180_v53 = vsub.f32 %v10421_v7, %v14542_v45  ;;  %v2109_v45 = vpop.f32.mrf.mxu2 }
 0x19e   :  { %2978 = vmatpush.msrb.mxu1 %v10152_v11  ;;  %3088 = vmatpush.msrb.mxu3 %v10173_v24  ;;  %v10409_v11 = vand.u32 4294901760, %v84_v15  ;;  %v3162_v5 = vsub.f32 %v10373_v60, %v14546_v9  ;;  %v10495_v34 = vand.u32 4294901760, %v29_v41 }
 0x19f   :  { %3090 = vmatmul.f32.vlgmr.msrb.gmra.mxu3 %v14839_v17  ;;  %3101 = vmatpush.msra.mxu0 %v10325_v42  ;;  %v3174_v58 = vsub.f32 %v10405_v4, %v14543_v47  ;;  %v2032_v44 = vadd.f32 %v2031_v19, %v1963_v33  ;;  %v348_v33 = vld [vmem:[%s14441_s1 + $0xa70] sm:$0xff]  ;;  %v3181_v19 = vand.u32 4294901760, %v3180_v53 }
 0x1a0   :  { %3241 = vmatpush.msra.mxu2 %v10328_v55  ;;  %3291 = vmatpush.msra.mxu3 %v10292_v32  ;;  %v10441_v59 = vsub.f32 %v84_v15, %v10409_v11  ;;  %v3163_v46 = vand.u32 4294901760, %v3162_v5  ;;  %v3169_v15 = vand.u32 4294901760, %v3168_v63  ;;  %v2068_v28 = vpop.f32.mrf.mxu1  ;;  %v10499_v5 = vsub.f32 %v51_v39, %v10463_v10  ;;  %v2210_v57 = vpop.f32.mrf.mxu3 }
 0x1a1   :  { %2980 = vmatpush.msrb.mxu1 %v10173_v24  ;;  %3103 = vmatpush.msra.mxu0 %v10338_v1  ;;  %v62_v24 = vld [vmem:[%s14441_s1 + $0x180] sm:$0xff]  ;;  %v10506_v63 = vand.u32 4294901760, %v359_v0  ;;  %v10512_v39 = vand.u32 4294901760, %v18_v31 }
 0x1a2   :  { %2984 = vmatmul.f32.vlgmr.msrb.gmra.mxu1 %v14844_v51  ;;  %3244 = vmatpush.msra.mxu2 %v10342_v43  ;;  %v10450_v3 = vand.u32 4294901760, %v62_v24  ;;  %v14541_v18 = vand.u32 4294901760, %v10441_v59 }
 0x1a3   :  { %3140 = vmatpush.msra.mxu1 %v3139_v20  ;;  %3293 = vmatpush.msra.mxu3 %v10302_v14  ;;  %v10478_v20 = vand.u32 4294901760, %v40_v62  ;;  %14846 = vst [vmem:[#allocation12_spill] sm:$0xff] %v10506_v63  ;;  %v10539_v47 = vsub.f32 %v359_v0, %v10506_v63  ;;  %v10547_v52 = vsub.f32 %v18_v31, %v10512_v39 }
 0x1a4   :  { %3105 = vmatpush.msra.mxu0 %v10352_v8  ;;  %3247 = vmatpush.msra.mxu2 %v10356_v54  ;;  %v10481_v6 = vsub.f32 %v62_v24, %v10450_v3  ;;  %v3175_v24 = vand.u32 4294901760, %v3174_v58 }
 0x1a5   :  { %3146 = vmatpush.msra.mxu1 %v3145_v50  ;;  %3295 = vmatpush.msra.mxu3 %v10312_v36  ;;  %14845 = vst [vmem:[#allocation11_spill] sm:$0xff] %v10478_v20  ;;  %v3186_v50 = vsub.f32 %v10426_v13, %v14540_v56  ;;  %v10516_v58 = vsub.f32 %v40_v62, %v10478_v20  ;;  %v14551_v62 = vand.u32 4294901760, %v10499_v5  ;;  %v14848_v51 = vand.u32 4294901760, %v10539_v47 }
 0x1a6   :  { %3107 = vmatpush.msra.mxu0 %v10369_v30  ;;  %3250 = vmatpush.msra.mxu2 %v10373_v60  ;;  %v2069_v56 = vadd.f32 %v2068_v28, %v2032_v44  ;;  %v10529_v44 = vsub.f32 %v29_v41, %v10495_v34  ;;  %v10531_v28 = vand.u32 4294901760, %v348_v33 }
 0x1a7   :  { %3152 = vmatpush.msra.mxu1 %v3151_v23  ;;  %3297 = vmatpush.msra.mxu3 %v10325_v42  ;;  %v14544_v23 = vand.u32 4294901760, %v10466_v27  ;;  %v3210_v31 = vsub.f32 %v10499_v5, %v14551_v62 }
 0x1a8   :  { %3109 = vmatpush.msra.mxu0 %v10385_v48  ;;  %3253 = vmatpush.msra.mxu2 %v10389_v37  ;;  %v2110_v0 = vadd.f32 %v2109_v45, %v2069_v56  ;;  %v10564_v61 = vsub.f32 %v348_v33, %v10531_v28  ;;  %v14847_v21 = vand.u32 4294901760, %v10529_v44 }
 0x1a9   :  { %3158 = vmatpush.msra.mxu1 %v3157_v40  ;;  %3299 = vmatpush.msra.mxu3 %v10338_v1  ;;  %v3192_v40 = vsub.f32 %v10441_v59, %v14541_v18  ;;  %v3187_v18 = vand.u32 4294901760, %v3186_v50  ;;  %v3198_v53 = vsub.f32 %v10466_v27, %v14544_v23  ;;  %v326_v50 = vld [vmem:[%s14441_s1 + $0x9c0] sm:$0xff]  ;;  %v14553_v23 = vand.u32 4294901760, %v10516_v58 }
 0x1aa   :  { %3111 = vmatpush.msra.mxu0 %v10396_v22  ;;  %3256 = vmatpush.msra.mxu2 %v10405_v4  ;;  %v2211_v45 = vadd.f32 %v2210_v57, %v2110_v0  ;;  %v14849_v57 = vand.u32 4294901760, %v10547_v52 }
 0x1ab   :  { %3164 = vmatpush.msra.mxu1 %v3163_v46  ;;  %3301 = vmatpush.msra.mxu3 %v10352_v8  ;;  %v14548_v46 = vand.u32 4294901760, %v10481_v6  ;;  %v3216_v33 = vsub.f32 %v10516_v58, %v14553_v23  ;;  %v3211_v23 = vand.u32 4294901760, %v3210_v31 }
 0x1ac   :  { %3113 = vmatpush.msra.mxu0 %v10409_v11  ;;  %3259 = vmatpush.msra.mxu2 %v10421_v7  ;;  %v3228_v17 = vsub.f32 %v10547_v52, %v14849_v57 }
 0x1ad   :  { %3170 = vmatpush.msra.mxu1 %v3169_v15  ;;  %3303 = vmatpush.msra.mxu3 %v10369_v30  ;;  %v337_v15 = vld [vmem:[%s14441_s1 + $0xa18] sm:$0xff]  ;;  %v3204_v41 = vsub.f32 %v10481_v6, %v14548_v46  ;;  %v3199_v46 = vand.u32 4294901760, %v3198_v53  ;;  %v3217_v31 = vand.u32 4294901760, %v3216_v33  ;;  %v271_v33 = vld [vmem:[%s14441_s1 + $0x808] sm:$0xff] }
 0x1ae   :  { %3115 = vmatpush.msra.mxu0 %v10435_v38  ;;  %3262 = vmatpush.msra.mxu2 %v10426_v13  ;;  %v10549_v9 = vand.u32 4294901760, %v337_v15 }
 0x1af   :  { %3176 = vmatpush.msra.mxu1 %v3175_v24  ;;  %3305 = vmatpush.msra.mxu3 %v10385_v48  ;;  %v3193_v24 = vand.u32 4294901760, %v3192_v40  ;;  %v315_v40 = vld [vmem:[%s14441_s1 + $0x968] sm:$0xff]  ;;  %v3205_v53 = vand.u32 4294901760, %v3204_v41  ;;  %v2264_v62 = vpop.f32.mrf.mxu0  ;;  %v293_v41 = vld [vmem:[%s14441_s1 + $0x8b8] sm:$0xff] }
 0x1b0   :  { %3117 = vmatpush.msra.mxu0 %v10450_v3  ;;  %3265 = vmatpush.msra.mxu2 %v10441_v59  ;;  %v10569_v56 = vand.u32 4294901760, %v315_v40  ;;  %v10580_v35 = vsub.f32 %v337_v15, %v10549_v9  ;;  %v3222_v15 = vsub.f32 %v10529_v44, %v14847_v21  ;;  %v282_v21 = vld [vmem:[%s14441_s1 + $0x860] sm:$0xff] }
 0x1b1   :  { %3182 = vmatpush.msra.mxu1 %v3181_v19  ;;  %3307 = vmatpush.msra.mxu3 %v10396_v22  ;;  %v10556_v19 = vand.u32 4294901760, %v326_v50 }
 0x1b2   :  { %3119 = vmatpush.msra.mxu0 %v10463_v10  ;;  %3268 = vmatpush.msra.mxu2 %v10466_v27  ;;  %v10603_v12 = vsub.f32 %v315_v40, %v10569_v56  ;;  %v14850_v40 = vand.u32 4294901760, %v10315_v25  ;;  %v3223_v57 = vand.u32 4294901760, %v3222_v15  ;;  %v260_v15 = vld [vmem:[%s14441_s1 + $0x7b0] sm:$0xff] }
 0x1b3   :  { %3188 = vmatpush.msra.mxu1 %v3187_v18  ;;  %3309 = vmatpush.msra.mxu3 %v10409_v11  ;;  %v304_v18 = vld [vmem:[%s14441_s1 + $0x910] sm:$0xff] }
 0x1b4   :  { %3121 = vmatpush.msra.mxu0 %v10478_v20  ;;  %3271 = vmatpush.msra.mxu2 %v10481_v6  ;;  %v10595_v0 = vand.u32 4294901760, %v304_v18 }
 0x1b5   :  { %3194 = vmatpush.msra.mxu1 %v3193_v24  ;;  %3311 = vmatpush.msra.mxu3 %v10435_v38  ;;  %v10585_v24 = vsub.f32 %v326_v50, %v10556_v19  ;;  %v2265_v50 = vadd.f32 %v2264_v62, %v2211_v45  ;;  %v14851_v45 = vand.u32 4294901760, %v10564_v61 }
 0x1b6   :  { %3123 = vmatpush.msra.mxu0 %v10495_v34  ;;  %3274 = vmatpush.msra.mxu2 %v10499_v5  ;;  %v10627_v25 = vsub.f32 %v304_v18, %v10595_v0  ;;  %v3229_v18 = vand.u32 4294901760, %v3228_v17  ;;  %v249_v17 = vld [vmem:[%s14441_s1 + $0x758] sm:$0xff] }
 0x1b7   :  { %3200 = vmatpush.msra.mxu1 %v3199_v46  ;;  %3313 = vmatpush.msra.mxu3 %v10450_v3  ;;  %v3479_v46 = vsub.f32 %v10539_v47, %v14848_v51  ;;  %v10613_v51 = vand.u32 4294901760, %v293_v41  ;;  %v3485_v29 = vsub.f32 %v10564_v61, %v14851_v45  ;;  %v14853_v45 = vand.u32 4294901760, %v10580_v35 }
 0x1b8   :  { %3125 = vmatpush.msra.mxu0 %v10512_v39  ;;  %3277 = vmatpush.msra.mxu2 %v10516_v58 }
 0x1b9   :  { %3206 = vmatpush.msra.mxu1 %v3205_v53  ;;  %3315 = vmatpush.msra.mxu3 %v10463_v10  ;;  %v2303_v62 = vpop.f32.mrf.mxu1  ;;  %v2372_v16 = vpop.f32.mrf.mxu2 }
 0x1ba   :  { %3332 = vmatpush.msrb.mxu0 %v14850_v40  ;;  %3280 = vmatpush.msra.mxu2 %v10529_v44  ;;  %v2304_v49 = vadd.f32 %v2303_v62, %v2265_v50  ;;  %v10629_v40 = vand.u32 4294901760, %v282_v21  ;;  %v14852_v50 = vand.u32 4294901760, %v10328_v55  ;;  %v3480_v62 = vand.u32 4294901760, %v3479_v46 }
 0x1bb   :  { %3212 = vmatpush.msra.mxu1 %v3211_v23  ;;  %3317 = vmatpush.msra.mxu3 %v10478_v20  ;;  %v3491_v55 = vsub.f32 %v10580_v35, %v14853_v45  ;;  %v10645_v46 = vand.u32 4294901760, %v271_v33  ;;  %v3508_v45 = vand.u32 4294901760, %v10627_v25 }
 0x1bc   :  { %3336 = vmatpush.msrb.mxu0 %v14852_v50  ;;  %3283 = vmatpush.msra.mxu2 %v10547_v52  ;;  %v2373_v53 = vadd.f32 %v2372_v16, %v2304_v49  ;;  %v2409_v23 = vpop.f32.mrf.mxu3  ;;  %v10643_v50 = vsub.f32 %v293_v41, %v10613_v51  ;;  %v14854_v49 = vand.u32 4294901760, %v10342_v43  ;;  %v14855_v16 = vand.u32 4294901760, %v10585_v24 }
 0x1bd   :  { %3218 = vmatpush.msra.mxu1 %v3217_v31  ;;  %3319 = vmatpush.msra.mxu3 %v10495_v34  ;;  %v3486_v41 = vand.u32 4294901760, %v3485_v29  ;;  %v10659_v43 = vsub.f32 %v282_v21, %v10629_v40  ;;  %v238_v29 = vld [vmem:[%s14441_s1 + $0x700] sm:$0xff]  ;;  %v3492_v21 = vand.u32 4294901760, %v3491_v55 }
 0x1be   :  { %3340 = vmatpush.msrb.mxu0 %v14854_v49  ;;  %3436 = vmatpush.msrb.mxu2 %v10506_v63  ;;  %v3497_v31 = vsub.f32 %v10585_v24, %v14855_v16  ;;  %v2410_v20 = vadd.f32 %v2409_v23, %v2373_v53  ;;  %v10661_v49 = vand.u32 4294901760, %v260_v15  ;;  %v14856_v63 = vand.u32 4294901760, %v10356_v54 }
 0x1bf   :  { %3224 = vmatpush.msra.mxu1 %v3223_v57  ;;  %3321 = vmatpush.msra.mxu3 %v10512_v39  ;;  %v14857_v53 = vand.u32 4294901760, %v10603_v12  ;;  %v3514_v23 = vand.u32 4294901760, %v10643_v50  ;;  %v10674_v16 = vsub.f32 %v271_v33, %v10645_v46  ;;  %v10676_v54 = vand.u32 4294901760, %v249_v17 }
 0x1c0   :  { %3344 = vmatpush.msrb.mxu0 %v14856_v63  ;;  %3438 = vmatpush.msrb.mxu2 %v10531_v28  ;;  %7870 = vst [vmem:[#allocation2 + $0x10] sm:$0xff] %v2410_v20  ;;  %v14858_v20 = vand.u32 4294901760, %v10373_v60  ;;  %v3498_v63 = vand.u32 4294901760, %v3497_v31  ;;  %v3509_v33 = vsub.f32 %v10627_v25, %v3508_v45  ;;  %v10692_v60 = vand.u32 4294901760, %v238_v29 }
 0x1c1   :  { %v3503_v57 = vsub.f32 %v10603_v12, %v14857_v53  ;;  %3481 = vmatpush.msrb.mxu3 %v3480_v62  ;;  %3230 = vmatpush.msra.mxu1 %v3229_v18  ;;  %v227_v53 = vld [vmem:[%s14441_s1 + $0x6a8] sm:$0xff]  ;;  %v14559_v62 = vand.u32 4294901760, %v10659_v43  ;;  %v10690_v18 = vsub.f32 %v260_v15, %v10661_v49  ;;  %v3515_v31 = vsub.f32 %v10643_v50, %v3514_v23 }
 0x1c2   :  { %3348 = vmatpush.msrb.mxu0 %v14858_v20  ;;  %3440 = vmatpush.msrb.mxu2 %v10549_v9  ;;  %v10703_v15 = vsub.f32 %v249_v17, %v10676_v54  ;;  %v10705_v20 = vand.u32 4294901760, %v227_v53 }
 0x1c3   :  { %3399 = vmatpush.msrb.mxu1 %v10292_v32  ;;  %3487 = vmatpush.msrb.mxu3 %v3486_v41  ;;  %v14859_v32 = vand.u32 4294901760, %v10389_v37  ;;  %v3504_v55 = vand.u32 4294901760, %v3503_v57  ;;  %v3526_v41 = vand.u32 4294901760, %v10674_v16  ;;  %v216_v37 = vld [vmem:[%s14441_s1 + $0x650] sm:$0xff]  ;;  %v3510_v57 = vand.u32 4294901760, %v3509_v33 }
 0x1c4   :  { %3442 = vmatpush.msrb.mxu2 %v10556_v19  ;;  %v3521_v17 = vsub.f32 %v10659_v43, %v14559_v62  ;;  %v3538_v33 = vand.u32 4294901760, %v10703_v15  ;;  %v10735_v62 = vsub.f32 %v227_v53, %v10705_v20  ;;  %3131 = vmatmul.f32.vlgmr.msra.gmra.mxu0 %v8434_v26 }
 0x1c5   :  { %3352 = vmatpush.msrb.mxu0 %v14859_v32  ;;  %3401 = vmatpush.msrb.mxu1 %v10302_v14  ;;  %v14860_v14 = vand.u32 4294901760, %v10405_v4  ;;  %v10719_v32 = vsub.f32 %v238_v29, %v10692_v60  ;;  %v205_v4 = vld [vmem:[%s14441_s1 + $0x5f8] sm:$0xff]  ;;  %v3527_v29 = vsub.f32 %v10674_v16, %v3526_v41 }
 0x1c6   :  { %3493 = vmatpush.msrb.mxu3 %v3492_v21  ;;  %3444 = vmatpush.msrb.mxu2 %v10569_v56  ;;  %v14560_v21 = vand.u32 4294901760, %v10690_v18 }
 0x1c7   :  { %3356 = vmatpush.msrb.mxu0 %v14860_v14  ;;  %3403 = vmatpush.msrb.mxu1 %v10312_v36  ;;  %v14861_v14 = vand.u32 4294901760, %v10421_v7  ;;  %v10727_v36 = vand.u32 4294901760, %v216_v37  ;;  %v14862_v7 = vand.u32 4294901760, %v10426_v13  ;;  %v14863_v13 = vand.u32 4294901760, %v10441_v59 }
 0x1c8   :  { %3499 = vmatpush.msrb.mxu3 %v3498_v63  ;;  %3446 = vmatpush.msrb.mxu2 %v10595_v0  ;;  %v3516_v63 = vand.u32 4294901760, %v3515_v31  ;;  %v3522_v31 = vand.u32 4294901760, %v3521_v17  ;;  %v3533_v53 = vsub.f32 %v10690_v18, %v14560_v21  ;;  %v3550_v17 = vand.u32 4294901760, %v10735_v62 }
 0x1c9   :  { %3360 = vmatpush.msrb.mxu0 %v14861_v14  ;;  %3405 = vmatpush.msrb.mxu1 %v10325_v42  ;;  %v10740_v42 = vand.u32 4294901760, %v205_v4  ;;  %v3544_v14 = vand.u32 4294901760, %v10719_v32  ;;  %v14864_v59 = vand.u32 4294901760, %v10466_v27 }
 0x1ca   :  { %3505 = vmatpush.msrb.mxu3 %v3504_v55  ;;  %v194_v55 = vld [vmem:[%s14441_s1 + $0x5a0] sm:$0xff]  ;;  %3448 = vmatpush.msrb.mxu2 %v10613_v51 }
 0x1cb   :  { %3364 = vmatpush.msrb.mxu0 %v14862_v7  ;;  %3407 = vmatpush.msrb.mxu1 %v10338_v1  ;;  %v10754_v1 = vsub.f32 %v216_v37, %v10727_v36  ;;  %v3528_v7 = vand.u32 4294901760, %v3527_v29  ;;  %v10761_v21 = vand.u32 4294901760, %v194_v55  ;;  %v3534_v37 = vand.u32 4294901760, %v3533_v53 }
 0x1cc   :  { %3511 = vmatpush.msrb.mxu3 %v3510_v57  ;;  %3450 = vmatpush.msrb.mxu2 %v10629_v40  ;;  %v3539_v57 = vsub.f32 %v10703_v15, %v3538_v33  ;;  %v14865_v29 = vand.u32 4294901760, %v10481_v6  ;;  %v14866_v53 = vand.u32 4294901760, %v10499_v5 }
 0x1cd   :  { %3368 = vmatpush.msrb.mxu0 %v14863_v13  ;;  %3409 = vmatpush.msrb.mxu1 %v10352_v8  ;;  %v10767_v8 = vsub.f32 %v205_v4, %v10740_v42  ;;  %v3556_v27 = vand.u32 4294901760, %v10754_v1  ;;  %v3551_v4 = vsub.f32 %v10735_v62, %v3550_v17  ;;  %v14867_v13 = vand.u32 4294901760, %v10516_v58 }
 0x1ce   :  { %3517 = vmatpush.msrb.mxu3 %v3516_v63  ;;  %3452 = vmatpush.msrb.mxu2 %v10645_v46  ;;  %v3545_v63 = vsub.f32 %v10719_v32, %v3544_v14 }
 0x1cf   :  { %3372 = vmatpush.msrb.mxu0 %v14864_v59  ;;  %3411 = vmatpush.msrb.mxu1 %v10369_v30  ;;  %v3540_v30 = vand.u32 4294901760, %v3539_v57  ;;  %v3552_v5 = vand.u32 4294901760, %v3551_v4  ;;  %v14871_v59 = vld [vmem:[#allocation6_spill] sm:$0xff] }
 0x1d0   :  { %3523 = vmatpush.msrb.mxu3 %v3522_v31  ;;  %3454 = vmatpush.msrb.mxu2 %v10661_v49  ;;  %v10782_v31 = vsub.f32 %v194_v55, %v10761_v21  ;;  %v3546_v6 = vand.u32 4294901760, %v3545_v63  ;;  %v3557_v55 = vsub.f32 %v10754_v1, %v3556_v27  ;;  %v14874_v63 = vand.u32 4294901760, %v10564_v61 }
 0x1d1   :  { %3376 = vmatpush.msrb.mxu0 %v14865_v29  ;;  %3413 = vmatpush.msrb.mxu1 %v10385_v48  ;;  %v3562_v48 = vand.u32 4294901760, %v10767_v8  ;;  %v14875_v29 = vld [vmem:[#allocation12_spill] sm:$0xff] }
 0x1d2   :  { %3529 = vmatpush.msrb.mxu3 %v3528_v7  ;;  %3456 = vmatpush.msrb.mxu2 %v10676_v54  ;;  %v14868_v7 = vand.u32 4294901760, %v10529_v44  ;;  %v3558_v57 = vand.u32 4294901760, %v3557_v55 }
 0x1d3   :  { %3380 = vmatpush.msrb.mxu0 %v14866_v53  ;;  %3415 = vmatpush.msrb.mxu1 %v10396_v22  ;;  %v3568_v22 = vand.u32 4294901760, %v10782_v31  ;;  %v3563_v58 = vsub.f32 %v10767_v8, %v3562_v48 }
 0x1d4   :  { %3535 = vmatpush.msrb.mxu3 %v3534_v37  ;;  %3458 = vmatpush.msrb.mxu2 %v10692_v60  ;;  %v14873_v37 = vld [vmem:[#allocation5_spill] sm:$0xff] }
 0x1d5   :  { %3384 = vmatpush.msrb.mxu0 %v14867_v13  ;;  %3417 = vmatpush.msrb.mxu1 %v10409_v11  ;;  %v14869_v11 = vand.u32 4294901760, %v10547_v52  ;;  %v3564_v44 = vand.u32 4294901760, %v3563_v58  ;;  %v14870_v52 = vld [vmem:[#allocation11_spill] sm:$0xff] }
 0x1d6   :  { %3541 = vmatpush.msrb.mxu3 %v3540_v30  ;;  %3460 = vmatpush.msrb.mxu2 %v10705_v20 }
 0x1d7   :  { %3388 = vmatpush.msrb.mxu0 %v14868_v7  ;;  %3419 = vmatpush.msrb.mxu1 %v10435_v38  ;;  %v3569_v38 = vsub.f32 %v10782_v31, %v3568_v22  ;;  %v74_v7 = vld [vmem:[%s14441_s1 + $0x1e0] sm:$0xff] }
 0x1d8   :  { %3547 = vmatpush.msrb.mxu3 %v3546_v6  ;;  %3462 = vmatpush.msrb.mxu2 %v10727_v36 }
 0x1d9   :  { %3392 = vmatpush.msrb.mxu0 %v14869_v11  ;;  %3421 = vmatpush.msrb.mxu1 %v10450_v3  ;;  %v3570_v3 = vand.u32 4294901760, %v3569_v38 }
 0x1da   :  { %3553 = vmatpush.msrb.mxu3 %v3552_v5  ;;  %3464 = vmatpush.msrb.mxu2 %v10740_v42 }
 0x1db   :  { %3423 = vmatpush.msrb.mxu1 %v10463_v10  ;;  %3579 = vmatpush.msra.mxu0 %v10539_v47  ;;  %v14872_v10 = vand.u32 4294901760, %v10539_v47  ;;  %v14876_v47 = vand.u32 4294901760, %v10580_v35 }
 0x1dc   :  { %3559 = vmatpush.msrb.mxu3 %v3558_v57  ;;  %3286 = vmatmul.f32.vlgmr.msra.gmra.mxu2 %v8366_v2 }
 0x1dd   :  { %3582 = vmatpush.msra.mxu0 %v10564_v61  ;;  %3425 = vmatpush.msrb.mxu1 %v14870_v52  ;;  %v14878_v61 = vand.u32 4294901760, %v10585_v24 }
 0x1de   :  { %3466 = vmatpush.msrb.mxu2 %v10761_v21  ;;  %3565 = vmatpush.msrb.mxu3 %v3564_v44  ;;  %v14884_v44 = vld [vmem:[#allocation9_spill] sm:$0xff] }
 0x1df   :  { %3325 = vmatmul.f32.vlgmr.msra.gmra.mxu3 %v14871_v59  ;;  %3585 = vmatpush.msra.mxu0 %v10580_v35  ;;  %v14880_v35 = vand.u32 4294901760, %v10603_v12 }
 0x1e0   :  { %3673 = vmatpush.msra.mxu2 %v14872_v10  ;;  %3427 = vmatpush.msrb.mxu1 %v10495_v34  ;;  %v14877_v34 = vld [vmem:[#allocation10_spill] sm:$0xff] }
 0x1e1   :  { %3571 = vmatpush.msrb.mxu3 %v3570_v3  ;;  %3232 = vmatmul.f32.vlgmr.msra.gmra.mxu1 %v14873_v37 }
 0x1e2   :  { %3588 = vmatpush.msra.mxu0 %v10585_v24  ;;  %3677 = vmatpush.msra.mxu2 %v14874_v63  ;;  %v162_v24 = vld [vmem:[%s14441_s1 + $0x4a0] sm:$0xff] }
 0x1e3   :  { %3740 = vmatpush.msra.mxu3 %v14875_v29  ;;  %3429 = vmatpush.msrb.mxu1 %v10512_v39  ;;  %v14879_v39 = vld [vmem:[#allocation7_spill] sm:$0xff] }
 0x1e4   :  { %3591 = vmatpush.msra.mxu0 %v10603_v12  ;;  %3681 = vmatpush.msra.mxu2 %v14876_v47  ;;  %v14881_v12 = vand.u32 4294901760, %v10659_v43  ;;  %v11023_v47 = vand.u32 4294901760, %v74_v7 }
 0x1e5   :  { %3632 = vmatpush.msra.mxu1 %v14875_v29  ;;  %3742 = vmatpush.msra.mxu3 %v10531_v28 }
 0x1e6   :  { %3472 = vmatmul.f32.vlgmr.msrb.gmra.mxu2 %v14877_v34  ;;  %3594 = vmatpush.msra.mxu0 %v10627_v25  ;;  %v10900_v25 = vand.u32 4294901760, %v162_v24 }
 0x1e7   :  { %3634 = vmatpush.msra.mxu1 %v10531_v28  ;;  %3685 = vmatpush.msra.mxu2 %v14878_v61  ;;  %v173_v28 = vld [vmem:[%s14441_s1 + $0x4f8] sm:$0xff] }
 0x1e8   :  { %3744 = vmatpush.msra.mxu3 %v10549_v9  ;;  %3394 = vmatmul.f32.vlgmr.msrb.gmra.mxu0 %v14873_v37 }
 0x1e9   :  { %3573 = vmatmul.f32.vlgmr.msrb.gmra.mxu3 %v14879_v39  ;;  %3597 = vmatpush.msra.mxu0 %v10643_v50  ;;  %v140_v50 = vld [vmem:[%s14441_s1 + $0x3f0] sm:$0xff] }
 0x1ea   :  { %3636 = vmatpush.msra.mxu1 %v10549_v9  ;;  %3689 = vmatpush.msra.mxu2 %v14880_v35  ;;  %v184_v9 = vld [vmem:[%s14441_s1 + $0x550] sm:$0xff] }
 0x1eb   :  { %3746 = vmatpush.msra.mxu3 %v10556_v19  ;;  %3431 = vmatmul.f32.vlgmr.msrb.gmra.mxu1 %v14873_v37 }
 0x1ec   :  { %3600 = vmatpush.msra.mxu0 %v10659_v43  ;;  %3638 = vmatpush.msra.mxu1 %v10556_v19  ;;  %v14882_v19 = vand.u32 4294901760, %v10690_v18  ;;  %v129_v43 = vld [vmem:[%s14441_s1 + $0x398] sm:$0xff] }
 0x1ed   :  { %3693 = vmatpush.msra.mxu2 %v3508_v45  ;;  %3748 = vmatpush.msra.mxu3 %v10569_v56 }
 0x1ee   :  { %3603 = vmatpush.msra.mxu0 %v10674_v16  ;;  %3640 = vmatpush.msra.mxu1 %v10569_v56  ;;  %v10880_v56 = vand.u32 4294901760, %v184_v9  ;;  %v10930_v16 = vsub.f32 %v162_v24, %v10900_v25 }
 0x1ef   :  { %3697 = vmatpush.msra.mxu2 %v3514_v23  ;;  %3750 = vmatpush.msra.mxu3 %v10595_v0 }
 0x1f0   :  { %3606 = vmatpush.msra.mxu0 %v10690_v18  ;;  %3642 = vmatpush.msra.mxu1 %v10595_v0  ;;  %v10890_v0 = vand.u32 4294901760, %v173_v28  ;;  %v10940_v18 = vand.u32 4294901760, %v129_v43 }
 0x1f1   :  { %3701 = vmatpush.msra.mxu2 %v14881_v12  ;;  %3752 = vmatpush.msra.mxu3 %v10613_v51  ;;  %v52_v12 = vld [vmem:[%s14441_s1 + $0x130] sm:$0xff] }
 0x1f2   :  { %3609 = vmatpush.msra.mxu0 %v10703_v15  ;;  %3644 = vmatpush.msra.mxu1 %v10613_v51  ;;  %v151_v51 = vld [vmem:[%s14441_s1 + $0x448] sm:$0xff]  ;;  %v10916_v45 = vsub.f32 %v173_v28, %v10890_v0  ;;  %v10977_v4 = vsub.f32 %v129_v43, %v10940_v18  ;;  %v41_v43 = vld [vmem:[%s14441_s1 + $0xd8] sm:$0xff] }
 0x1f3   :  { %3705 = vmatpush.msra.mxu2 %v3526_v41  ;;  %3754 = vmatpush.msra.mxu3 %v10629_v40  ;;  %v107_v15 = vld [vmem:[%s14441_s1 + $0x2e8] sm:$0xff] }
 0x1f4   :  { %3612 = vmatpush.msra.mxu0 %v10719_v32  ;;  %3646 = vmatpush.msra.mxu1 %v10629_v40  ;;  %v10903_v40 = vsub.f32 %v184_v9, %v10880_v56  ;;  %v14566_v57 = vand.u32 4294901760, %v10977_v4 }
 0x1f5   :  { %3709 = vmatpush.msra.mxu2 %v14882_v19  ;;  %3756 = vmatpush.msra.mxu3 %v10645_v46 }
 0x1f6   :  { %3615 = vmatpush.msra.mxu0 %v10735_v62  ;;  %3648 = vmatpush.msra.mxu1 %v10645_v46  ;;  %v10913_v46 = vand.u32 4294901760, %v151_v51  ;;  %v14573_v23 = vand.u32 4294901760, %v10903_v40  ;;  %v118_v62 = vld [vmem:[%s14441_s1 + $0x340] sm:$0xff]  ;;  %v3850_v28 = vsub.f32 %v10977_v4, %v14566_v57 }
 0x1f7   :  { %3713 = vmatpush.msra.mxu2 %v3538_v33  ;;  %3758 = vmatpush.msra.mxu3 %v10661_v49  ;;  %v10957_v33 = vand.u32 4294901760, %v118_v62 }
 0x1f8   :  { %3618 = vmatpush.msra.mxu0 %v10754_v1  ;;  %3650 = vmatpush.msra.mxu1 %v10661_v49  ;;  %v10926_v49 = vand.u32 4294901760, %v140_v50  ;;  %v10944_v41 = vsub.f32 %v151_v51, %v10913_v46  ;;  %v3820_v32 = vsub.f32 %v10903_v40, %v14573_v23  ;;  %v96_v1 = vld [vmem:[%s14441_s1 + $0x290] sm:$0xff] }
 0x1f9   :  { %3717 = vmatpush.msra.mxu2 %v3544_v14  ;;  %3760 = vmatpush.msra.mxu3 %v10676_v54  ;;  %v14570_v14 = vand.u32 4294901760, %v10930_v16  ;;  %v2605_v13 = vpop.f32.mrf.mxu2 }
 0x1fa   :  { %3621 = vmatpush.msra.mxu0 %v10767_v8  ;;  %3652 = vmatpush.msra.mxu1 %v10676_v54  ;;  %v14883_v54 = vld [vmem:[#allocation8_spill] sm:$0xff]  ;;  %v14568_v30 = vand.u32 4294901760, %v10944_v41  ;;  %v3821_v6 = vand.u32 4294901760, %v3820_v32  ;;  %v11051_v32 = vand.u32 4294901760, %v52_v12 }
 0x1fb   :  { %3721 = vmatpush.msra.mxu2 %v3550_v17  ;;  %3762 = vmatpush.msra.mxu3 %v10692_v60  ;;  %v2450_v17 = vpop.f32.mrf.mxu0  ;;  %v3832_v55 = vsub.f32 %v10930_v16, %v14570_v14 }
 0x1fc   :  { %3624 = vmatpush.msra.mxu0 %v10782_v31  ;;  %3654 = vmatpush.msra.mxu1 %v10692_v60  ;;  %v14571_v60 = vand.u32 4294901760, %v10916_v45  ;;  %v85_v31 = vld [vmem:[%s14441_s1 + $0x238] sm:$0xff]  ;;  %v3838_v11 = vsub.f32 %v10944_v41, %v14568_v30  ;;  %v2644_v10 = vpop.f32.mrf.mxu3 }
 0x1fd   :  { %3725 = vmatpush.msra.mxu2 %v3556_v27  ;;  %3764 = vmatpush.msra.mxu3 %v10705_v20  ;;  %v10973_v27 = vand.u32 4294901760, %v107_v15  ;;  %v3833_v63 = vand.u32 4294901760, %v3832_v55  ;;  %v360_v55 = vld [vmem:[%s14441_s1 + $0xad0] sm:$0xff] }
 0x1fe   :  { %3627 = vmatmul.f32.vlgmr.msra.gmra.mxu0 %v14883_v54  ;;  %3656 = vmatpush.msra.mxu1 %v10705_v20  ;;  %v2551_v20 = vpop.f32.mrf.mxu1  ;;  %v3826_v8 = vsub.f32 %v10916_v45, %v14571_v60  ;;  %v3839_v9 = vand.u32 4294901760, %v3838_v11  ;;  %v19_v11 = vld [vmem:[%s14441_s1 + $0x28] sm:$0xff] }
 0x1ff   :  { %3777 = vmatpush.msrb.mxu0 %v10880_v56  ;;  %3729 = vmatpush.msra.mxu2 %v3562_v48  ;;  %v2552_v53 = vadd.f32 %v2551_v20, %v2450_v17  ;;  %v10984_v48 = vand.u32 4294901760, %v96_v1  ;;  %v11009_v38 = vsub.f32 %v107_v15, %v10973_v27 }
 0x200   :  { %3766 = vmatpush.msra.mxu3 %v10727_v36  ;;  %3658 = vmatpush.msra.mxu1 %v10727_v36  ;;  %v10961_v36 = vsub.f32 %v140_v50, %v10926_v49  ;;  %v3827_v58 = vand.u32 4294901760, %v3826_v8  ;;  %v30_v8 = vld [vmem:[%s14441_s1 + $0x80] sm:$0xff] }
 0x201   :  { %3779 = vmatpush.msrb.mxu0 %v10890_v0  ;;  %3733 = vmatpush.msra.mxu2 %v3568_v22  ;;  %v10993_v22 = vsub.f32 %v118_v62, %v10957_v33  ;;  %v2606_v52 = vadd.f32 %v2605_v13, %v2552_v53  ;;  %v11014_v3 = vsub.f32 %v96_v1, %v10984_v48  ;;  %v14563_v24 = vand.u32 4294901760, %v11009_v38 }
 0x202   :  { %3768 = vmatpush.msra.mxu3 %v10740_v42  ;;  %3735 = vmatmul.f32.vlgmr.msra.gmra.mxu2 %v14879_v39  ;;  %v14567_v5 = vand.u32 4294901760, %v10961_v36  ;;  %v11054_v1 = vsub.f32 %v74_v7, %v11023_v47 }
 0x203   :  { %3781 = vmatpush.msrb.mxu0 %v10900_v25  ;;  %3920 = vmatpush.msrb.mxu2 %v10903_v40  ;;  %v14564_v61 = vand.u32 4294901760, %v10993_v22  ;;  %v2645_v51 = vadd.f32 %v2644_v10, %v2606_v52  ;;  %v14561_v50 = vand.u32 4294901760, %v11014_v3  ;;  %v2713_v62 = vpop.f32.mrf.mxu0  ;;  %v3862_v53 = vsub.f32 %v11009_v38, %v14563_v24  ;;  %v2791_v24 = vpop.f32.mrf.mxu2 }
 0x204   :  { %3660 = vmatpush.msra.mxu1 %v10740_v42  ;;  %3770 = vmatpush.msra.mxu3 %v10761_v21  ;;  %v10997_v42 = vand.u32 4294901760, %v85_v31  ;;  %v3844_v29 = vsub.f32 %v10961_v36, %v14567_v5  ;;  %v11083_v10 = vand.u32 4294901760, %v30_v8 }
 0x205   :  { %3772 = vmatmul.f32.vlgmr.msra.gmra.mxu3 %v14879_v39  ;;  %3783 = vmatpush.msrb.mxu0 %v10913_v46  ;;  %v3856_v20 = vsub.f32 %v10993_v22, %v14564_v61  ;;  %v2714_v7 = vadd.f32 %v2713_v62, %v2645_v51  ;;  %v349_v51 = vld [vmem:[%s14441_s1 + $0xa78] sm:$0xff]  ;;  %v3863_v62 = vand.u32 4294901760, %v3862_v53 }
 0x206   :  { %3923 = vmatpush.msrb.mxu2 %v10916_v45  ;;  %3973 = vmatpush.msrb.mxu3 %v10880_v56  ;;  %v11029_v35 = vsub.f32 %v85_v31, %v10997_v42  ;;  %v3845_v15 = vand.u32 4294901760, %v3844_v29  ;;  %v3851_v31 = vand.u32 4294901760, %v3850_v28  ;;  %v2750_v52 = vpop.f32.mrf.mxu1  ;;  %v11087_v29 = vsub.f32 %v52_v12, %v11051_v32  ;;  %v2892_v30 = vpop.f32.mrf.mxu3 }
 0x207   :  { %3662 = vmatpush.msra.mxu1 %v10761_v21  ;;  %3785 = vmatpush.msrb.mxu0 %v10926_v49  ;;  %v63_v21 = vld [vmem:[%s14441_s1 + $0x188] sm:$0xff]  ;;  %v11094_v28 = vand.u32 4294901760, %v360_v55  ;;  %v11100_v12 = vand.u32 4294901760, %v19_v11 }
 0x208   :  { %3666 = vmatmul.f32.vlgmr.msra.gmra.mxu1 %v14884_v44  ;;  %3926 = vmatpush.msrb.mxu2 %v10930_v16  ;;  %v11038_v19 = vand.u32 4294901760, %v63_v21  ;;  %v14562_v17 = vand.u32 4294901760, %v11029_v35 }
 0x209   :  { %3822 = vmatpush.msrb.mxu1 %v3821_v6  ;;  %3975 = vmatpush.msrb.mxu3 %v10890_v0  ;;  %v11066_v6 = vand.u32 4294901760, %v41_v43  ;;  %14886 = vst [vmem:[#allocation12_spill] sm:$0xff] %v11094_v28  ;;  %v11127_v61 = vsub.f32 %v360_v55, %v11094_v28  ;;  %v11135_v57 = vsub.f32 %v19_v11, %v11100_v12 }
 0x20a   :  { %3787 = vmatpush.msrb.mxu0 %v10940_v18  ;;  %3929 = vmatpush.msrb.mxu2 %v10944_v41  ;;  %v11069_v13 = vsub.f32 %v63_v21, %v11038_v19  ;;  %v3857_v21 = vand.u32 4294901760, %v3856_v20 }
 0x20b   :  { %3828 = vmatpush.msrb.mxu1 %v3827_v58  ;;  %3977 = vmatpush.msrb.mxu3 %v10900_v25  ;;  %14885 = vst [vmem:[#allocation11_spill] sm:$0xff] %v11066_v6  ;;  %v3868_v58 = vsub.f32 %v11014_v3, %v14561_v50  ;;  %v11104_v20 = vsub.f32 %v41_v43, %v11066_v6  ;;  %v14572_v43 = vand.u32 4294901760, %v11087_v29  ;;  %v14888_v44 = vand.u32 4294901760, %v11127_v61 }
 0x20c   :  { %3789 = vmatpush.msrb.mxu0 %v10957_v33  ;;  %3932 = vmatpush.msrb.mxu2 %v10961_v36  ;;  %v2751_v50 = vadd.f32 %v2750_v52, %v2714_v7  ;;  %v11117_v7 = vsub.f32 %v30_v8, %v11083_v10  ;;  %v11119_v52 = vand.u32 4294901760, %v349_v51 }
 0x20d   :  { %3834 = vmatpush.msrb.mxu1 %v3833_v63  ;;  %3979 = vmatpush.msrb.mxu3 %v10913_v46  ;;  %v14565_v63 = vand.u32 4294901760, %v11054_v1  ;;  %v3892_v11 = vsub.f32 %v11087_v29, %v14572_v43 }
 0x20e   :  { %3791 = vmatpush.msrb.mxu0 %v10973_v27  ;;  %3935 = vmatpush.msrb.mxu2 %v10977_v4  ;;  %v2792_v55 = vadd.f32 %v2791_v24, %v2751_v50  ;;  %v11152_v60 = vsub.f32 %v349_v51, %v11119_v52  ;;  %v14887_v23 = vand.u32 4294901760, %v11117_v7 }
 0x20f   :  { %3840 = vmatpush.msrb.mxu1 %v3839_v9  ;;  %3981 = vmatpush.msrb.mxu3 %v10926_v49  ;;  %v3874_v9 = vsub.f32 %v11029_v35, %v14562_v17  ;;  %v3869_v17 = vand.u32 4294901760, %v3868_v58  ;;  %v3880_v53 = vsub.f32 %v11054_v1, %v14565_v63  ;;  %v327_v58 = vld [vmem:[%s14441_s1 + $0x9c8] sm:$0xff]  ;;  %v14574_v63 = vand.u32 4294901760, %v11104_v20 }
 0x210   :  { %3793 = vmatpush.msrb.mxu0 %v10984_v48  ;;  %3938 = vmatpush.msrb.mxu2 %v10993_v22  ;;  %v2893_v24 = vadd.f32 %v2892_v30, %v2792_v55  ;;  %v14889_v30 = vand.u32 4294901760, %v11135_v57 }
 0x211   :  { %3846 = vmatpush.msrb.mxu1 %v3845_v15  ;;  %3983 = vmatpush.msrb.mxu3 %v10940_v18  ;;  %v14569_v15 = vand.u32 4294901760, %v11069_v13  ;;  %v3898_v51 = vsub.f32 %v11104_v20, %v14574_v63  ;;  %v3893_v63 = vand.u32 4294901760, %v3892_v11 }
 0x212   :  { %3795 = vmatpush.msrb.mxu0 %v10997_v42  ;;  %3941 = vmatpush.msrb.mxu2 %v11009_v38  ;;  %v3910_v39 = vsub.f32 %v11135_v57, %v14889_v30 }
 0x213   :  { %3852 = vmatpush.msrb.mxu1 %v3851_v31  ;;  %3985 = vmatpush.msrb.mxu3 %v10957_v33  ;;  %v338_v31 = vld [vmem:[%s14441_s1 + $0xa20] sm:$0xff]  ;;  %v3886_v8 = vsub.f32 %v11069_v13, %v14569_v15  ;;  %v3881_v15 = vand.u32 4294901760, %v3880_v53  ;;  %v3899_v11 = vand.u32 4294901760, %v3898_v51  ;;  %v272_v51 = vld [vmem:[%s14441_s1 + $0x810] sm:$0xff] }
 0x214   :  { %3797 = vmatpush.msrb.mxu0 %v11023_v47  ;;  %3944 = vmatpush.msrb.mxu2 %v11014_v3  ;;  %v11137_v5 = vand.u32 4294901760, %v338_v31 }
 0x215   :  { %3858 = vmatpush.msrb.mxu1 %v3857_v21  ;;  %3987 = vmatpush.msrb.mxu3 %v10973_v27  ;;  %v3875_v21 = vand.u32 4294901760, %v3874_v9  ;;  %v316_v9 = vld [vmem:[%s14441_s1 + $0x970] sm:$0xff]  ;;  %v3887_v53 = vand.u32 4294901760, %v3886_v8  ;;  %v2946_v43 = vpop.f32.mrf.mxu0  ;;  %v294_v8 = vld [vmem:[%s14441_s1 + $0x8c0] sm:$0xff] }
 0x216   :  { %3799 = vmatpush.msrb.mxu0 %v11038_v19  ;;  %3947 = vmatpush.msrb.mxu2 %v11029_v35  ;;  %v11157_v50 = vand.u32 4294901760, %v316_v9  ;;  %v11168_v14 = vsub.f32 %v338_v31, %v11137_v5  ;;  %v3904_v31 = vsub.f32 %v11117_v7, %v14887_v23  ;;  %v283_v23 = vld [vmem:[%s14441_s1 + $0x868] sm:$0xff] }
 0x217   :  { %3864 = vmatpush.msrb.mxu1 %v3863_v62  ;;  %3989 = vmatpush.msrb.mxu3 %v10984_v48  ;;  %v11144_v62 = vand.u32 4294901760, %v327_v58 }
 0x218   :  { %3801 = vmatpush.msrb.mxu0 %v11051_v32  ;;  %3950 = vmatpush.msrb.mxu2 %v11054_v1  ;;  %v11191_v54 = vsub.f32 %v316_v9, %v11157_v50  ;;  %v14890_v9 = vand.u32 4294901760, %v10903_v40  ;;  %v3905_v30 = vand.u32 4294901760, %v3904_v31  ;;  %v261_v31 = vld [vmem:[%s14441_s1 + $0x7b8] sm:$0xff] }
 0x219   :  { %3870 = vmatpush.msrb.mxu1 %v3869_v17  ;;  %3991 = vmatpush.msrb.mxu3 %v10997_v42  ;;  %v305_v17 = vld [vmem:[%s14441_s1 + $0x918] sm:$0xff] }
 0x21a   :  { %3803 = vmatpush.msrb.mxu0 %v11066_v6  ;;  %3953 = vmatpush.msrb.mxu2 %v11069_v13  ;;  %v11183_v55 = vand.u32 4294901760, %v305_v17 }
 0x21b   :  { %3876 = vmatpush.msrb.mxu1 %v3875_v21  ;;  %3993 = vmatpush.msrb.mxu3 %v11023_v47  ;;  %v11173_v21 = vsub.f32 %v327_v58, %v11144_v62  ;;  %v2947_v58 = vadd.f32 %v2946_v43, %v2893_v24  ;;  %v14891_v24 = vand.u32 4294901760, %v11152_v60 }
 0x21c   :  { %3805 = vmatpush.msrb.mxu0 %v11083_v10  ;;  %3956 = vmatpush.msrb.mxu2 %v11087_v29  ;;  %v11215_v40 = vsub.f32 %v305_v17, %v11183_v55  ;;  %v3911_v17 = vand.u32 4294901760, %v3910_v39  ;;  %v250_v39 = vld [vmem:[%s14441_s1 + $0x760] sm:$0xff] }
 0x21d   :  { %3882 = vmatpush.msrb.mxu1 %v3881_v15  ;;  %3995 = vmatpush.msrb.mxu3 %v11038_v19  ;;  %v4161_v15 = vsub.f32 %v11127_v61, %v14888_v44  ;;  %v11201_v44 = vand.u32 4294901760, %v294_v8  ;;  %v4167_v59 = vsub.f32 %v11152_v60, %v14891_v24  ;;  %v14893_v24 = vand.u32 4294901760, %v11168_v14 }
 0x21e   :  { %3807 = vmatpush.msrb.mxu0 %v11100_v12  ;;  %3959 = vmatpush.msrb.mxu2 %v11104_v20 }
 0x21f   :  { %3888 = vmatpush.msrb.mxu1 %v3887_v53  ;;  %3997 = vmatpush.msrb.mxu3 %v11051_v32  ;;  %v2985_v43 = vpop.f32.mrf.mxu1  ;;  %v3054_v34 = vpop.f32.mrf.mxu2 }
 0x220   :  { %4014 = vmatpush.msra.mxu0 %v14890_v9  ;;  %3962 = vmatpush.msrb.mxu2 %v11117_v7  ;;  %v2986_v37 = vadd.f32 %v2985_v43, %v2947_v58  ;;  %v11217_v9 = vand.u32 4294901760, %v283_v23  ;;  %v14892_v58 = vand.u32 4294901760, %v10916_v45  ;;  %v4162_v43 = vand.u32 4294901760, %v4161_v15 }
 0x221   :  { %3894 = vmatpush.msrb.mxu1 %v3893_v63  ;;  %3999 = vmatpush.msrb.mxu3 %v11066_v6  ;;  %v4173_v45 = vsub.f32 %v11168_v14, %v14893_v24  ;;  %v11233_v15 = vand.u32 4294901760, %v272_v51  ;;  %v4190_v24 = vand.u32 4294901760, %v11215_v40 }
 0x222   :  { %4018 = vmatpush.msra.mxu0 %v14892_v58  ;;  %3965 = vmatpush.msrb.mxu2 %v11135_v57  ;;  %v3055_v53 = vadd.f32 %v3054_v34, %v2986_v37  ;;  %v3091_v63 = vpop.f32.mrf.mxu3  ;;  %v11231_v58 = vsub.f32 %v294_v8, %v11201_v44  ;;  %v14894_v37 = vand.u32 4294901760, %v10930_v16  ;;  %v14895_v34 = vand.u32 4294901760, %v11173_v21 }
 0x223   :  { %3900 = vmatpush.msrb.mxu1 %v3899_v11  ;;  %4001 = vmatpush.msrb.mxu3 %v11083_v10  ;;  %v4168_v8 = vand.u32 4294901760, %v4167_v59  ;;  %v11247_v16 = vsub.f32 %v283_v23, %v11217_v9  ;;  %v239_v59 = vld [vmem:[%s14441_s1 + $0x708] sm:$0xff]  ;;  %v4174_v23 = vand.u32 4294901760, %v4173_v45 }
 0x224   :  { %4022 = vmatpush.msra.mxu0 %v14894_v37  ;;  %4118 = vmatpush.msra.mxu2 %v11094_v28  ;;  %v4179_v11 = vsub.f32 %v11173_v21, %v14895_v34  ;;  %v3092_v6 = vadd.f32 %v3091_v63, %v3055_v53  ;;  %v11249_v37 = vand.u32 4294901760, %v261_v31  ;;  %v14896_v28 = vand.u32 4294901760, %v10944_v41 }
 0x225   :  { %3906 = vmatpush.msrb.mxu1 %v3905_v30  ;;  %4003 = vmatpush.msrb.mxu3 %v11100_v12  ;;  %v14897_v53 = vand.u32 4294901760, %v11191_v54  ;;  %v4196_v63 = vand.u32 4294901760, %v11231_v58  ;;  %v11262_v34 = vsub.f32 %v272_v51, %v11233_v15  ;;  %v11264_v41 = vand.u32 4294901760, %v250_v39 }
 0x226   :  { %4026 = vmatpush.msra.mxu0 %v14896_v28  ;;  %4120 = vmatpush.msra.mxu2 %v11119_v52  ;;  %7871 = vst [vmem:[#allocation2 + $0x18] sm:$0xff] %v3092_v6  ;;  %v14898_v6 = vand.u32 4294901760, %v10961_v36  ;;  %v4180_v28 = vand.u32 4294901760, %v4179_v11  ;;  %v4191_v51 = vsub.f32 %v11215_v40, %v4190_v24  ;;  %v11280_v36 = vand.u32 4294901760, %v239_v59 }
 0x227   :  { %v4185_v30 = vsub.f32 %v11191_v54, %v14897_v53  ;;  %4163 = vmatpush.msra.mxu3 %v4162_v43  ;;  %3912 = vmatpush.msrb.mxu1 %v3911_v17  ;;  %v228_v53 = vld [vmem:[%s14441_s1 + $0x6b0] sm:$0xff]  ;;  %v14580_v43 = vand.u32 4294901760, %v11247_v16  ;;  %v11278_v17 = vsub.f32 %v261_v31, %v11249_v37  ;;  %v4197_v11 = vsub.f32 %v11231_v58, %v4196_v63 }
 0x228   :  { %4030 = vmatpush.msra.mxu0 %v14898_v6  ;;  %4122 = vmatpush.msra.mxu2 %v11137_v5  ;;  %v11291_v31 = vsub.f32 %v250_v39, %v11264_v41  ;;  %v11293_v6 = vand.u32 4294901760, %v228_v53 }
 0x229   :  { %4081 = vmatpush.msra.mxu1 %v10880_v56  ;;  %4169 = vmatpush.msra.mxu3 %v4168_v8  ;;  %v14899_v56 = vand.u32 4294901760, %v10977_v4  ;;  %v4186_v45 = vand.u32 4294901760, %v4185_v30  ;;  %v4208_v8 = vand.u32 4294901760, %v11262_v34  ;;  %v217_v4 = vld [vmem:[%s14441_s1 + $0x658] sm:$0xff]  ;;  %v4192_v30 = vand.u32 4294901760, %v4191_v51 }
 0x22a   :  { %4124 = vmatpush.msra.mxu2 %v11144_v62  ;;  %v4203_v39 = vsub.f32 %v11247_v16, %v14580_v43  ;;  %v4220_v51 = vand.u32 4294901760, %v11291_v31  ;;  %v11323_v43 = vsub.f32 %v228_v53, %v11293_v6  ;;  %3813 = vmatmul.f32.vlgmr.msrb.gmra.mxu0 %v8434_v26 }
 0x22b   :  { %4034 = vmatpush.msra.mxu0 %v14899_v56  ;;  %4083 = vmatpush.msra.mxu1 %v10890_v0  ;;  %v14900_v0 = vand.u32 4294901760, %v10993_v22  ;;  %v11307_v56 = vsub.f32 %v239_v59, %v11280_v36  ;;  %v206_v22 = vld [vmem:[%s14441_s1 + $0x600] sm:$0xff]  ;;  %v4209_v59 = vsub.f32 %v11262_v34, %v4208_v8 }
 0x22c   :  { %4175 = vmatpush.msra.mxu3 %v4174_v23  ;;  %4126 = vmatpush.msra.mxu2 %v11157_v50  ;;  %v14581_v23 = vand.u32 4294901760, %v11278_v17 }
 0x22d   :  { %4038 = vmatpush.msra.mxu0 %v14900_v0  ;;  %4085 = vmatpush.msra.mxu1 %v10900_v25  ;;  %v14901_v0 = vand.u32 4294901760, %v11009_v38  ;;  %v11315_v25 = vand.u32 4294901760, %v217_v4  ;;  %v14902_v38 = vand.u32 4294901760, %v11014_v3  ;;  %v14903_v3 = vand.u32 4294901760, %v11029_v35 }
 0x22e   :  { %4181 = vmatpush.msra.mxu3 %v4180_v28  ;;  %4128 = vmatpush.msra.mxu2 %v11183_v55  ;;  %v4198_v28 = vand.u32 4294901760, %v4197_v11  ;;  %v4204_v11 = vand.u32 4294901760, %v4203_v39  ;;  %v4215_v53 = vsub.f32 %v11278_v17, %v14581_v23  ;;  %v4232_v39 = vand.u32 4294901760, %v11323_v43 }
 0x22f   :  { %4042 = vmatpush.msra.mxu0 %v14901_v0  ;;  %4087 = vmatpush.msra.mxu1 %v10913_v46  ;;  %v11328_v46 = vand.u32 4294901760, %v206_v22  ;;  %v4226_v0 = vand.u32 4294901760, %v11307_v56  ;;  %v14904_v35 = vand.u32 4294901760, %v11054_v1 }
 0x230   :  { %4187 = vmatpush.msra.mxu3 %v4186_v45  ;;  %v195_v45 = vld [vmem:[%s14441_s1 + $0x5a8] sm:$0xff]  ;;  %4130 = vmatpush.msra.mxu2 %v11201_v44 }
 0x231   :  { %4046 = vmatpush.msra.mxu0 %v14902_v38  ;;  %4089 = vmatpush.msra.mxu1 %v10926_v49  ;;  %v11342_v49 = vsub.f32 %v217_v4, %v11315_v25  ;;  %v4210_v38 = vand.u32 4294901760, %v4209_v59  ;;  %v11349_v23 = vand.u32 4294901760, %v195_v45  ;;  %v4216_v4 = vand.u32 4294901760, %v4215_v53 }
 0x232   :  { %4193 = vmatpush.msra.mxu3 %v4192_v30  ;;  %4132 = vmatpush.msra.mxu2 %v11217_v9  ;;  %v4221_v30 = vsub.f32 %v11291_v31, %v4220_v51  ;;  %v14905_v59 = vand.u32 4294901760, %v11069_v13  ;;  %v14906_v53 = vand.u32 4294901760, %v11087_v29 }
 0x233   :  { %4050 = vmatpush.msra.mxu0 %v14903_v3  ;;  %4091 = vmatpush.msra.mxu1 %v10940_v18  ;;  %v11355_v18 = vsub.f32 %v206_v22, %v11328_v46  ;;  %v4238_v1 = vand.u32 4294901760, %v11342_v49  ;;  %v4233_v22 = vsub.f32 %v11323_v43, %v4232_v39  ;;  %v14907_v3 = vand.u32 4294901760, %v11104_v20 }
 0x234   :  { %4199 = vmatpush.msra.mxu3 %v4198_v28  ;;  %4134 = vmatpush.msra.mxu2 %v11233_v15  ;;  %v4227_v28 = vsub.f32 %v11307_v56, %v4226_v0 }
 0x235   :  { %4054 = vmatpush.msra.mxu0 %v14904_v35  ;;  %4093 = vmatpush.msra.mxu1 %v10957_v33  ;;  %v4222_v33 = vand.u32 4294901760, %v4221_v30  ;;  %v4234_v29 = vand.u32 4294901760, %v4233_v22  ;;  %v14911_v35 = vld [vmem:[#allocation6_spill] sm:$0xff] }
 0x236   :  { %4205 = vmatpush.msra.mxu3 %v4204_v11  ;;  %4136 = vmatpush.msra.mxu2 %v11249_v37  ;;  %v11370_v11 = vsub.f32 %v195_v45, %v11349_v23  ;;  %v4228_v13 = vand.u32 4294901760, %v4227_v28  ;;  %v4239_v45 = vsub.f32 %v11342_v49, %v4238_v1  ;;  %v14914_v28 = vand.u32 4294901760, %v11152_v60 }
 0x237   :  { %4058 = vmatpush.msra.mxu0 %v14905_v59  ;;  %4095 = vmatpush.msra.mxu1 %v10973_v27  ;;  %v4244_v27 = vand.u32 4294901760, %v11355_v18  ;;  %v14915_v59 = vld [vmem:[#allocation12_spill] sm:$0xff] }
 0x238   :  { %4211 = vmatpush.msra.mxu3 %v4210_v38  ;;  %4138 = vmatpush.msra.mxu2 %v11264_v41  ;;  %v14908_v38 = vand.u32 4294901760, %v11117_v7  ;;  %v4240_v30 = vand.u32 4294901760, %v4239_v45 }
 0x239   :  { %4062 = vmatpush.msra.mxu0 %v14906_v53  ;;  %4097 = vmatpush.msra.mxu1 %v10984_v48  ;;  %v4250_v48 = vand.u32 4294901760, %v11370_v11  ;;  %v4245_v20 = vsub.f32 %v11355_v18, %v4244_v27 }
 0x23a   :  { %4217 = vmatpush.msra.mxu3 %v4216_v4  ;;  %4140 = vmatpush.msra.mxu2 %v11280_v36  ;;  %v14913_v4 = vld [vmem:[#allocation5_spill] sm:$0xff] }
 0x23b   :  { %4066 = vmatpush.msra.mxu0 %v14907_v3  ;;  %4099 = vmatpush.msra.mxu1 %v10997_v42  ;;  %v14909_v42 = vand.u32 4294901760, %v11135_v57  ;;  %v4246_v7 = vand.u32 4294901760, %v4245_v20  ;;  %v14910_v57 = vld [vmem:[#allocation11_spill] sm:$0xff] }
 0x23c   :  { %4223 = vmatpush.msra.mxu3 %v4222_v33  ;;  %4142 = vmatpush.msra.mxu2 %v11293_v6 }
 0x23d   :  { %4070 = vmatpush.msra.mxu0 %v14908_v38  ;;  %4101 = vmatpush.msra.mxu1 %v11023_v47  ;;  %v4251_v47 = vsub.f32 %v11370_v11, %v4250_v48  ;;  %v75_v38 = vld [vmem:[%s14441_s1 + $0x1e8] sm:$0xff] }
 0x23e   :  { %4229 = vmatpush.msra.mxu3 %v4228_v13  ;;  %4144 = vmatpush.msra.mxu2 %v11315_v25 }
 0x23f   :  { %4074 = vmatpush.msra.mxu0 %v14909_v42  ;;  %4103 = vmatpush.msra.mxu1 %v11038_v19  ;;  %v4252_v19 = vand.u32 4294901760, %v4251_v47 }
 0x240   :  { %4235 = vmatpush.msra.mxu3 %v4234_v29  ;;  %4146 = vmatpush.msra.mxu2 %v11328_v46 }
 0x241   :  { %4105 = vmatpush.msra.mxu1 %v11051_v32  ;;  %4261 = vmatpush.msrb.mxu0 %v11127_v61  ;;  %v14912_v32 = vand.u32 4294901760, %v11127_v61  ;;  %v14916_v61 = vand.u32 4294901760, %v11168_v14 }
 0x242   :  { %4241 = vmatpush.msra.mxu3 %v4240_v30  ;;  %3968 = vmatmul.f32.vlgmr.msrb.gmra.mxu2 %v8366_v2 }
 0x243   :  { %4264 = vmatpush.msrb.mxu0 %v11152_v60  ;;  %4107 = vmatpush.msra.mxu1 %v14910_v57  ;;  %v14918_v60 = vand.u32 4294901760, %v11173_v21 }
 0x244   :  { %4148 = vmatpush.msra.mxu2 %v11349_v23  ;;  %4247 = vmatpush.msra.mxu3 %v4246_v7  ;;  %v14924_v7 = vld [vmem:[#allocation9_spill] sm:$0xff] }
 0x245   :  { %4007 = vmatmul.f32.vlgmr.msrb.gmra.mxu3 %v14911_v35  ;;  %4267 = vmatpush.msrb.mxu0 %v11168_v14  ;;  %v14920_v14 = vand.u32 4294901760, %v11191_v54 }
 0x246   :  { %4355 = vmatpush.msrb.mxu2 %v14912_v32  ;;  %4109 = vmatpush.msra.mxu1 %v11083_v10  ;;  %v14917_v10 = vld [vmem:[#allocation10_spill] sm:$0xff] }
 0x247   :  { %4253 = vmatpush.msra.mxu3 %v4252_v19  ;;  %3914 = vmatmul.f32.vlgmr.msrb.gmra.mxu1 %v14913_v4 }
 0x248   :  { %4270 = vmatpush.msrb.mxu0 %v11173_v21  ;;  %4359 = vmatpush.msrb.mxu2 %v14914_v28  ;;  %v163_v21 = vld [vmem:[%s14441_s1 + $0x4a8] sm:$0xff] }
 0x249   :  { %4422 = vmatpush.msrb.mxu3 %v14915_v59  ;;  %4111 = vmatpush.msra.mxu1 %v11100_v12  ;;  %v14919_v12 = vld [vmem:[#allocation7_spill] sm:$0xff] }
 0x24a   :  { %4273 = vmatpush.msrb.mxu0 %v11191_v54  ;;  %4363 = vmatpush.msrb.mxu2 %v14916_v61  ;;  %v14921_v54 = vand.u32 4294901760, %v11247_v16  ;;  %v11611_v61 = vand.u32 4294901760, %v75_v38 }
 0x24b   :  { %4314 = vmatpush.msrb.mxu1 %v14915_v59  ;;  %4424 = vmatpush.msrb.mxu3 %v11119_v52 }
 0x24c   :  { %4154 = vmatmul.f32.vlgmr.msra.gmra.mxu2 %v14917_v10  ;;  %4276 = vmatpush.msrb.mxu0 %v11215_v40  ;;  %v11488_v40 = vand.u32 4294901760, %v163_v21 }
 0x24d   :  { %4316 = vmatpush.msrb.mxu1 %v11119_v52  ;;  %4367 = vmatpush.msrb.mxu2 %v14918_v60  ;;  %v174_v52 = vld [vmem:[%s14441_s1 + $0x500] sm:$0xff] }
 0x24e   :  { %4426 = vmatpush.msrb.mxu3 %v11137_v5  ;;  %4076 = vmatmul.f32.vlgmr.msra.gmra.mxu0 %v14913_v4 }
 0x24f   :  { %4255 = vmatmul.f32.vlgmr.msra.gmra.mxu3 %v14919_v12  ;;  %4279 = vmatpush.msrb.mxu0 %v11231_v58  ;;  %v141_v58 = vld [vmem:[%s14441_s1 + $0x3f8] sm:$0xff] }
 0x250   :  { %4318 = vmatpush.msrb.mxu1 %v11137_v5  ;;  %4371 = vmatpush.msrb.mxu2 %v14920_v14  ;;  %v185_v5 = vld [vmem:[%s14441_s1 + $0x558] sm:$0xff] }
 0x251   :  { %4428 = vmatpush.msrb.mxu3 %v11144_v62  ;;  %4113 = vmatmul.f32.vlgmr.msra.gmra.mxu1 %v14913_v4 }
 0x252   :  { %4282 = vmatpush.msrb.mxu0 %v11247_v16  ;;  %4320 = vmatpush.msrb.mxu1 %v11144_v62  ;;  %v14922_v62 = vand.u32 4294901760, %v11278_v17  ;;  %v130_v16 = vld [vmem:[%s14441_s1 + $0x3a0] sm:$0xff] }
 0x253   :  { %4375 = vmatpush.msrb.mxu2 %v4190_v24  ;;  %4430 = vmatpush.msrb.mxu3 %v11157_v50 }
 0x254   :  { %4285 = vmatpush.msrb.mxu0 %v11262_v34  ;;  %4322 = vmatpush.msrb.mxu1 %v11157_v50  ;;  %v11468_v50 = vand.u32 4294901760, %v185_v5  ;;  %v11518_v34 = vsub.f32 %v163_v21, %v11488_v40 }
 0x255   :  { %4379 = vmatpush.msrb.mxu2 %v4196_v63  ;;  %4432 = vmatpush.msrb.mxu3 %v11183_v55 }
 0x256   :  { %4288 = vmatpush.msrb.mxu0 %v11278_v17  ;;  %4324 = vmatpush.msrb.mxu1 %v11183_v55  ;;  %v11478_v55 = vand.u32 4294901760, %v174_v52  ;;  %v11528_v17 = vand.u32 4294901760, %v130_v16 }
 0x257   :  { %4383 = vmatpush.msrb.mxu2 %v14921_v54  ;;  %4434 = vmatpush.msrb.mxu3 %v11201_v44  ;;  %v53_v54 = vld [vmem:[%s14441_s1 + $0x138] sm:$0xff] }
 0x258   :  { %4291 = vmatpush.msrb.mxu0 %v11291_v31  ;;  %4326 = vmatpush.msrb.mxu1 %v11201_v44  ;;  %v152_v44 = vld [vmem:[%s14441_s1 + $0x450] sm:$0xff]  ;;  %v11504_v24 = vsub.f32 %v174_v52, %v11478_v55  ;;  %v11565_v22 = vsub.f32 %v130_v16, %v11528_v17  ;;  %v42_v16 = vld [vmem:[%s14441_s1 + $0xe0] sm:$0xff] }
 0x259   :  { %4387 = vmatpush.msrb.mxu2 %v4208_v8  ;;  %4436 = vmatpush.msrb.mxu3 %v11217_v9  ;;  %v108_v31 = vld [vmem:[%s14441_s1 + $0x2f0] sm:$0xff] }
 0x25a   :  { %4294 = vmatpush.msrb.mxu0 %v11307_v56  ;;  %4328 = vmatpush.msrb.mxu1 %v11217_v9  ;;  %v11491_v9 = vsub.f32 %v185_v5, %v11468_v50  ;;  %v14587_v30 = vand.u32 4294901760, %v11565_v22 }
 0x25b   :  { %4391 = vmatpush.msrb.mxu2 %v14922_v62  ;;  %4438 = vmatpush.msrb.mxu3 %v11233_v15 }
 0x25c   :  { %4297 = vmatpush.msrb.mxu0 %v11323_v43  ;;  %4330 = vmatpush.msrb.mxu1 %v11233_v15  ;;  %v11501_v15 = vand.u32 4294901760, %v152_v44  ;;  %v14594_v63 = vand.u32 4294901760, %v11491_v9  ;;  %v119_v43 = vld [vmem:[%s14441_s1 + $0x348] sm:$0xff]  ;;  %v4532_v52 = vsub.f32 %v11565_v22, %v14587_v30 }
 0x25d   :  { %4395 = vmatpush.msrb.mxu2 %v4220_v51  ;;  %4440 = vmatpush.msrb.mxu3 %v11249_v37  ;;  %v11545_v51 = vand.u32 4294901760, %v119_v43 }
 0x25e   :  { %4300 = vmatpush.msrb.mxu0 %v11342_v49  ;;  %4332 = vmatpush.msrb.mxu1 %v11249_v37  ;;  %v11514_v37 = vand.u32 4294901760, %v141_v58  ;;  %v11532_v8 = vsub.f32 %v152_v44, %v11501_v15  ;;  %v4502_v56 = vsub.f32 %v11491_v9, %v14594_v63  ;;  %v97_v49 = vld [vmem:[%s14441_s1 + $0x298] sm:$0xff] }
 0x25f   :  { %4399 = vmatpush.msrb.mxu2 %v4226_v0  ;;  %4442 = vmatpush.msrb.mxu3 %v11264_v41  ;;  %v14591_v0 = vand.u32 4294901760, %v11518_v34  ;;  %v3287_v3 = vpop.f32.mrf.mxu2 }
 0x260   :  { %4303 = vmatpush.msrb.mxu0 %v11355_v18  ;;  %4334 = vmatpush.msrb.mxu1 %v11264_v41  ;;  %v14923_v41 = vld [vmem:[#allocation8_spill] sm:$0xff]  ;;  %v14589_v33 = vand.u32 4294901760, %v11532_v8  ;;  %v4503_v13 = vand.u32 4294901760, %v4502_v56  ;;  %v11639_v56 = vand.u32 4294901760, %v53_v54 }
 0x261   :  { %4403 = vmatpush.msrb.mxu2 %v4232_v39  ;;  %4444 = vmatpush.msrb.mxu3 %v11280_v36  ;;  %v3132_v39 = vpop.f32.mrf.mxu0  ;;  %v4514_v45 = vsub.f32 %v11518_v34, %v14591_v0 }
 0x262   :  { %4306 = vmatpush.msrb.mxu0 %v11370_v11  ;;  %4336 = vmatpush.msrb.mxu1 %v11280_v36  ;;  %v14592_v36 = vand.u32 4294901760, %v11504_v24  ;;  %v86_v11 = vld [vmem:[%s14441_s1 + $0x240] sm:$0xff]  ;;  %v4520_v42 = vsub.f32 %v11532_v8, %v14589_v33  ;;  %v3326_v32 = vpop.f32.mrf.mxu3 }
 0x263   :  { %4407 = vmatpush.msrb.mxu2 %v4238_v1  ;;  %4446 = vmatpush.msrb.mxu3 %v11293_v6  ;;  %v11561_v1 = vand.u32 4294901760, %v108_v31  ;;  %v4515_v28 = vand.u32 4294901760, %v4514_v45  ;;  %v361_v45 = vld [vmem:[%s14441_s1 + $0xad8] sm:$0xff] }
 0x264   :  { %4309 = vmatmul.f32.vlgmr.msrb.gmra.mxu0 %v14923_v41  ;;  %4338 = vmatpush.msrb.mxu1 %v11293_v6  ;;  %v3233_v6 = vpop.f32.mrf.mxu1  ;;  %v4508_v18 = vsub.f32 %v11504_v24, %v14592_v36  ;;  %v4521_v5 = vand.u32 4294901760, %v4520_v42  ;;  %v20_v42 = vld [vmem:[%s14441_s1 + $0x30] sm:$0xff] }
 0x265   :  { %4459 = vmatpush.msra.mxu0 %v11468_v50  ;;  %4411 = vmatpush.msrb.mxu2 %v4244_v27  ;;  %v3234_v53 = vadd.f32 %v3233_v6, %v3132_v39  ;;  %v11572_v27 = vand.u32 4294901760, %v97_v49  ;;  %v11597_v47 = vsub.f32 %v108_v31, %v11561_v1 }
 0x266   :  { %4448 = vmatpush.msrb.mxu3 %v11315_v25  ;;  %4340 = vmatpush.msrb.mxu1 %v11315_v25  ;;  %v11549_v25 = vsub.f32 %v141_v58, %v11514_v37  ;;  %v4509_v20 = vand.u32 4294901760, %v4508_v18  ;;  %v31_v18 = vld [vmem:[%s14441_s1 + $0x88] sm:$0xff] }
 0x267   :  { %4461 = vmatpush.msra.mxu0 %v11478_v55  ;;  %4415 = vmatpush.msrb.mxu2 %v4250_v48  ;;  %v11581_v48 = vsub.f32 %v119_v43, %v11545_v51  ;;  %v3288_v57 = vadd.f32 %v3287_v3, %v3234_v53  ;;  %v11602_v19 = vsub.f32 %v97_v49, %v11572_v27  ;;  %v14584_v21 = vand.u32 4294901760, %v11597_v47 }
 0x268   :  { %4450 = vmatpush.msrb.mxu3 %v11328_v46  ;;  %4417 = vmatmul.f32.vlgmr.msrb.gmra.mxu2 %v14919_v12  ;;  %v14588_v29 = vand.u32 4294901760, %v11549_v25  ;;  %v11642_v49 = vsub.f32 %v75_v38, %v11611_v61 }
 0x269   :  { %4463 = vmatpush.msra.mxu0 %v11488_v40  ;;  %4602 = vmatpush.msra.mxu2 %v11491_v9  ;;  %v14585_v60 = vand.u32 4294901760, %v11581_v48  ;;  %v3327_v44 = vadd.f32 %v3326_v32, %v3288_v57  ;;  %v14582_v58 = vand.u32 4294901760, %v11602_v19  ;;  %v3395_v43 = vpop.f32.mrf.mxu0  ;;  %v4544_v53 = vsub.f32 %v11597_v47, %v14584_v21  ;;  %v3473_v21 = vpop.f32.mrf.mxu2 }
 0x26a   :  { %4342 = vmatpush.msrb.mxu1 %v11328_v46  ;;  %4452 = vmatpush.msrb.mxu3 %v11349_v23  ;;  %v11585_v46 = vand.u32 4294901760, %v86_v11  ;;  %v4526_v59 = vsub.f32 %v11549_v25, %v14588_v29  ;;  %v11671_v32 = vand.u32 4294901760, %v31_v18 }
 0x26b   :  { %4454 = vmatmul.f32.vlgmr.msrb.gmra.mxu3 %v14919_v12  ;;  %4465 = vmatpush.msra.mxu0 %v11501_v15  ;;  %v4538_v6 = vsub.f32 %v11581_v48, %v14585_v60  ;;  %v3396_v38 = vadd.f32 %v3395_v43, %v3327_v44  ;;  %v350_v44 = vld [vmem:[%s14441_s1 + $0xa80] sm:$0xff]  ;;  %v4545_v43 = vand.u32 4294901760, %v4544_v53 }
 0x26c   :  { %4605 = vmatpush.msra.mxu2 %v11504_v24  ;;  %4655 = vmatpush.msra.mxu3 %v11468_v50  ;;  %v11617_v14 = vsub.f32 %v86_v11, %v11585_v46  ;;  %v4527_v31 = vand.u32 4294901760, %v4526_v59  ;;  %v4533_v11 = vand.u32 4294901760, %v4532_v52  ;;  %v3432_v57 = vpop.f32.mrf.mxu1  ;;  %v11675_v59 = vsub.f32 %v53_v54, %v11639_v56  ;;  %v3574_v33 = vpop.f32.mrf.mxu3 }
 0x26d   :  { %4344 = vmatpush.msrb.mxu1 %v11349_v23  ;;  %4467 = vmatpush.msra.mxu0 %v11514_v37  ;;  %v64_v23 = vld [vmem:[%s14441_s1 + $0x190] sm:$0xff]  ;;  %v11682_v52 = vand.u32 4294901760, %v361_v45  ;;  %v11688_v54 = vand.u32 4294901760, %v20_v42 }
 0x26e   :  { %4348 = vmatmul.f32.vlgmr.msrb.gmra.mxu1 %v14924_v7  ;;  %4608 = vmatpush.msra.mxu2 %v11518_v34  ;;  %v11626_v62 = vand.u32 4294901760, %v64_v23  ;;  %v14583_v39 = vand.u32 4294901760, %v11617_v14 }
 0x26f   :  { %4504 = vmatpush.msra.mxu1 %v4503_v13  ;;  %4657 = vmatpush.msra.mxu3 %v11478_v55  ;;  %v11654_v13 = vand.u32 4294901760, %v42_v16  ;;  %14926 = vst [vmem:[#allocation12_spill] sm:$0xff] %v11682_v52  ;;  %v11715_v60 = vsub.f32 %v361_v45, %v11682_v52  ;;  %v11723_v30 = vsub.f32 %v20_v42, %v11688_v54 }
 0x270   :  { %4469 = vmatpush.msra.mxu0 %v11528_v17  ;;  %4611 = vmatpush.msra.mxu2 %v11532_v8  ;;  %v11657_v3 = vsub.f32 %v64_v23, %v11626_v62  ;;  %v4539_v23 = vand.u32 4294901760, %v4538_v6 }
 0x271   :  { %4510 = vmatpush.msra.mxu1 %v4509_v20  ;;  %4659 = vmatpush.msra.mxu3 %v11488_v40  ;;  %14925 = vst [vmem:[#allocation11_spill] sm:$0xff] %v11654_v13  ;;  %v4550_v20 = vsub.f32 %v11602_v19, %v14582_v58  ;;  %v11692_v6 = vsub.f32 %v42_v16, %v11654_v13  ;;  %v14593_v16 = vand.u32 4294901760, %v11675_v59  ;;  %v14928_v7 = vand.u32 4294901760, %v11715_v60 }
 0x272   :  { %4471 = vmatpush.msra.mxu0 %v11545_v51  ;;  %4614 = vmatpush.msra.mxu2 %v11549_v25  ;;  %v3433_v58 = vadd.f32 %v3432_v57, %v3396_v38  ;;  %v11705_v38 = vsub.f32 %v31_v18, %v11671_v32  ;;  %v11707_v57 = vand.u32 4294901760, %v350_v44 }
 0x273   :  { %4516 = vmatpush.msra.mxu1 %v4515_v28  ;;  %4661 = vmatpush.msra.mxu3 %v11501_v15  ;;  %v14586_v28 = vand.u32 4294901760, %v11642_v49  ;;  %v4574_v42 = vsub.f32 %v11675_v59, %v14593_v16 }
 0x274   :  { %4473 = vmatpush.msra.mxu0 %v11561_v1  ;;  %4617 = vmatpush.msra.mxu2 %v11565_v22  ;;  %v3474_v45 = vadd.f32 %v3473_v21, %v3433_v58  ;;  %v11740_v36 = vsub.f32 %v350_v44, %v11707_v57  ;;  %v14927_v63 = vand.u32 4294901760, %v11705_v38 }
 0x275   :  { %4522 = vmatpush.msra.mxu1 %v4521_v5  ;;  %4663 = vmatpush.msra.mxu3 %v11514_v37  ;;  %v4556_v5 = vsub.f32 %v11617_v14, %v14583_v39  ;;  %v4551_v39 = vand.u32 4294901760, %v4550_v20  ;;  %v4562_v53 = vsub.f32 %v11642_v49, %v14586_v28  ;;  %v328_v20 = vld [vmem:[%s14441_s1 + $0x9d0] sm:$0xff]  ;;  %v14595_v28 = vand.u32 4294901760, %v11692_v6 }
 0x276   :  { %4475 = vmatpush.msra.mxu0 %v11572_v27  ;;  %4620 = vmatpush.msra.mxu2 %v11581_v48  ;;  %v3575_v21 = vadd.f32 %v3574_v33, %v3474_v45  ;;  %v14929_v33 = vand.u32 4294901760, %v11723_v30 }
 0x277   :  { %4528 = vmatpush.msra.mxu1 %v4527_v31  ;;  %4665 = vmatpush.msra.mxu3 %v11528_v17  ;;  %v14590_v31 = vand.u32 4294901760, %v11657_v3  ;;  %v4580_v44 = vsub.f32 %v11692_v6, %v14595_v28  ;;  %v4575_v28 = vand.u32 4294901760, %v4574_v42 }
 0x278   :  { %4477 = vmatpush.msra.mxu0 %v11585_v46  ;;  %4623 = vmatpush.msra.mxu2 %v11597_v47  ;;  %v4592_v12 = vsub.f32 %v11723_v30, %v14929_v33 }
 0x279   :  { %4534 = vmatpush.msra.mxu1 %v4533_v11  ;;  %4667 = vmatpush.msra.mxu3 %v11545_v51  ;;  %v339_v11 = vld [vmem:[%s14441_s1 + $0xa28] sm:$0xff]  ;;  %v4568_v18 = vsub.f32 %v11657_v3, %v14590_v31  ;;  %v4563_v31 = vand.u32 4294901760, %v4562_v53  ;;  %v4581_v42 = vand.u32 4294901760, %v4580_v44  ;;  %v273_v44 = vld [vmem:[%s14441_s1 + $0x818] sm:$0xff] }
 0x27a   :  { %4479 = vmatpush.msra.mxu0 %v11611_v61  ;;  %4626 = vmatpush.msra.mxu2 %v11602_v19  ;;  %v11725_v29 = vand.u32 4294901760, %v339_v11 }
 0x27b   :  { %4540 = vmatpush.msra.mxu1 %v4539_v23  ;;  %4669 = vmatpush.msra.mxu3 %v11561_v1  ;;  %v4557_v23 = vand.u32 4294901760, %v4556_v5  ;;  %v317_v5 = vld [vmem:[%s14441_s1 + $0x978] sm:$0xff]  ;;  %v4569_v53 = vand.u32 4294901760, %v4568_v18  ;;  %v3628_v16 = vpop.f32.mrf.mxu0  ;;  %v295_v18 = vld [vmem:[%s14441_s1 + $0x8c8] sm:$0xff] }
 0x27c   :  { %4481 = vmatpush.msra.mxu0 %v11626_v62  ;;  %4629 = vmatpush.msra.mxu2 %v11617_v14  ;;  %v11745_v58 = vand.u32 4294901760, %v317_v5  ;;  %v11756_v0 = vsub.f32 %v339_v11, %v11725_v29  ;;  %v4586_v11 = vsub.f32 %v11705_v38, %v14927_v63  ;;  %v284_v63 = vld [vmem:[%s14441_s1 + $0x870] sm:$0xff] }
 0x27d   :  { %4546 = vmatpush.msra.mxu1 %v4545_v43  ;;  %4671 = vmatpush.msra.mxu3 %v11572_v27  ;;  %v11732_v43 = vand.u32 4294901760, %v328_v20 }
 0x27e   :  { %4483 = vmatpush.msra.mxu0 %v11639_v56  ;;  %4632 = vmatpush.msra.mxu2 %v11642_v49  ;;  %v11779_v41 = vsub.f32 %v317_v5, %v11745_v58  ;;  %v14930_v5 = vand.u32 4294901760, %v11491_v9  ;;  %v4587_v33 = vand.u32 4294901760, %v4586_v11  ;;  %v262_v11 = vld [vmem:[%s14441_s1 + $0x7c0] sm:$0xff] }
 0x27f   :  { %4552 = vmatpush.msra.mxu1 %v4551_v39  ;;  %4673 = vmatpush.msra.mxu3 %v11585_v46  ;;  %v306_v39 = vld [vmem:[%s14441_s1 + $0x920] sm:$0xff] }
 0x280   :  { %4485 = vmatpush.msra.mxu0 %v11654_v13  ;;  %4635 = vmatpush.msra.mxu2 %v11657_v3  ;;  %v11771_v45 = vand.u32 4294901760, %v306_v39 }
 0x281   :  { %4558 = vmatpush.msra.mxu1 %v4557_v23  ;;  %4675 = vmatpush.msra.mxu3 %v11611_v61  ;;  %v11761_v23 = vsub.f32 %v328_v20, %v11732_v43  ;;  %v3629_v20 = vadd.f32 %v3628_v16, %v3575_v21  ;;  %v14931_v21 = vand.u32 4294901760, %v11740_v36 }
 0x282   :  { %4487 = vmatpush.msra.mxu0 %v11671_v32  ;;  %4638 = vmatpush.msra.mxu2 %v11675_v59  ;;  %v11803_v9 = vsub.f32 %v306_v39, %v11771_v45  ;;  %v4593_v39 = vand.u32 4294901760, %v4592_v12  ;;  %v251_v12 = vld [vmem:[%s14441_s1 + $0x768] sm:$0xff] }
 0x283   :  { %4564 = vmatpush.msra.mxu1 %v4563_v31  ;;  %4677 = vmatpush.msra.mxu3 %v11626_v62  ;;  %v4843_v31 = vsub.f32 %v11715_v60, %v14928_v7  ;;  %v11789_v7 = vand.u32 4294901760, %v295_v18  ;;  %v4849_v35 = vsub.f32 %v11740_v36, %v14931_v21  ;;  %v14933_v21 = vand.u32 4294901760, %v11756_v0 }
 0x284   :  { %4489 = vmatpush.msra.mxu0 %v11688_v54  ;;  %4641 = vmatpush.msra.mxu2 %v11692_v6 }
 0x285   :  { %4570 = vmatpush.msra.mxu1 %v4569_v53  ;;  %4679 = vmatpush.msra.mxu3 %v11639_v56  ;;  %v3667_v16 = vpop.f32.mrf.mxu1  ;;  %v3736_v10 = vpop.f32.mrf.mxu2 }
 0x286   :  { %4696 = vmatpush.msrb.mxu0 %v14930_v5  ;;  %4644 = vmatpush.msra.mxu2 %v11705_v38  ;;  %v3668_v4 = vadd.f32 %v3667_v16, %v3629_v20  ;;  %v11805_v5 = vand.u32 4294901760, %v284_v63  ;;  %v14932_v20 = vand.u32 4294901760, %v11504_v24  ;;  %v4844_v16 = vand.u32 4294901760, %v4843_v31 }
 0x287   :  { %4576 = vmatpush.msra.mxu1 %v4575_v28  ;;  %4681 = vmatpush.msra.mxu3 %v11654_v13  ;;  %v4855_v24 = vsub.f32 %v11756_v0, %v14933_v21  ;;  %v11821_v31 = vand.u32 4294901760, %v273_v44  ;;  %v4872_v21 = vand.u32 4294901760, %v11803_v9 }
 0x288   :  { %4700 = vmatpush.msrb.mxu0 %v14932_v20  ;;  %4647 = vmatpush.msra.mxu2 %v11723_v30  ;;  %v3737_v53 = vadd.f32 %v3736_v10, %v3668_v4  ;;  %v3773_v28 = vpop.f32.mrf.mxu3  ;;  %v11819_v20 = vsub.f32 %v295_v18, %v11789_v7  ;;  %v14934_v4 = vand.u32 4294901760, %v11518_v34  ;;  %v14935_v10 = vand.u32 4294901760, %v11761_v23 }
 0x289   :  { %4582 = vmatpush.msra.mxu1 %v4581_v42  ;;  %4683 = vmatpush.msra.mxu3 %v11671_v32  ;;  %v4850_v18 = vand.u32 4294901760, %v4849_v35  ;;  %v11835_v34 = vsub.f32 %v284_v63, %v11805_v5  ;;  %v240_v35 = vld [vmem:[%s14441_s1 + $0x710] sm:$0xff]  ;;  %v4856_v63 = vand.u32 4294901760, %v4855_v24 }
 0x28a   :  { %4704 = vmatpush.msrb.mxu0 %v14934_v4  ;;  %4800 = vmatpush.msrb.mxu2 %v11682_v52  ;;  %v4861_v42 = vsub.f32 %v11761_v23, %v14935_v10  ;;  %v3774_v13 = vadd.f32 %v3773_v28, %v3737_v53  ;;  %v11837_v4 = vand.u32 4294901760, %v262_v11  ;;  %v14936_v52 = vand.u32 4294901760, %v11532_v8 }
 0x28b   :  { %4588 = vmatpush.msra.mxu1 %v4587_v33  ;;  %4685 = vmatpush.msra.mxu3 %v11688_v54  ;;  %v14937_v53 = vand.u32 4294901760, %v11779_v41  ;;  %v4878_v28 = vand.u32 4294901760, %v11819_v20  ;;  %v11850_v10 = vsub.f32 %v273_v44, %v11821_v31  ;;  %v11852_v8 = vand.u32 4294901760, %v251_v12 }
 0x28c   :  { %4708 = vmatpush.msrb.mxu0 %v14936_v52  ;;  %4802 = vmatpush.msrb.mxu2 %v11707_v57  ;;  %7872 = vst [vmem:[#allocation2 + $0x20] sm:$0xff] %v3774_v13  ;;  %v14938_v13 = vand.u32 4294901760, %v11549_v25  ;;  %v4862_v52 = vand.u32 4294901760, %v4861_v42  ;;  %v4873_v44 = vsub.f32 %v11803_v9, %v4872_v21  ;;  %v11868_v25 = vand.u32 4294901760, %v240_v35 }
 0x28d   :  { %v4867_v33 = vsub.f32 %v11779_v41, %v14937_v53  ;;  %4845 = vmatpush.msrb.mxu3 %v4844_v16  ;;  %4594 = vmatpush.msra.mxu1 %v4593_v39  ;;  %v229_v53 = vld [vmem:[%s14441_s1 + $0x6b8] sm:$0xff]  ;;  %v14601_v16 = vand.u32 4294901760, %v11835_v34  ;;  %v11866_v39 = vsub.f32 %v262_v11, %v11837_v4  ;;  %v4879_v42 = vsub.f32 %v11819_v20, %v4878_v28 }
 0x28e   :  { %4712 = vmatpush.msrb.mxu0 %v14938_v13  ;;  %4804 = vmatpush.msrb.mxu2 %v11725_v29  ;;  %v11879_v11 = vsub.f32 %v251_v12, %v11852_v8  ;;  %v11881_v13 = vand.u32 4294901760, %v229_v53 }
 0x28f   :  { %4763 = vmatpush.msrb.mxu1 %v11468_v50  ;;  %4851 = vmatpush.msrb.mxu3 %v4850_v18  ;;  %v14939_v50 = vand.u32 4294901760, %v11565_v22  ;;  %v4868_v24 = vand.u32 4294901760, %v4867_v33  ;;  %v4890_v18 = vand.u32 4294901760, %v11850_v10  ;;  %v218_v22 = vld [vmem:[%s14441_s1 + $0x660] sm:$0xff]  ;;  %v4874_v33 = vand.u32 4294901760, %v4873_v44 }
 0x290   :  { %4806 = vmatpush.msrb.mxu2 %v11732_v43  ;;  %v4885_v12 = vsub.f32 %v11835_v34, %v14601_v16  ;;  %v4902_v44 = vand.u32 4294901760, %v11879_v11  ;;  %v11911_v16 = vsub.f32 %v229_v53, %v11881_v13  ;;  %4495 = vmatmul.f32.vlgmr.msra.gmra.mxu0 %v8434_v26 }
 0x291   :  { %4716 = vmatpush.msrb.mxu0 %v14939_v50  ;;  %4765 = vmatpush.msrb.mxu1 %v11478_v55  ;;  %v14940_v55 = vand.u32 4294901760, %v11581_v48  ;;  %v11895_v50 = vsub.f32 %v240_v35, %v11868_v25  ;;  %v207_v48 = vld [vmem:[%s14441_s1 + $0x608] sm:$0xff]  ;;  %v4891_v35 = vsub.f32 %v11850_v10, %v4890_v18 }
 0x292   :  { %4857 = vmatpush.msrb.mxu3 %v4856_v63  ;;  %4808 = vmatpush.msrb.mxu2 %v11745_v58  ;;  %v14602_v63 = vand.u32 4294901760, %v11866_v39 }
 0x293   :  { %4720 = vmatpush.msrb.mxu0 %v14940_v55  ;;  %4767 = vmatpush.msrb.mxu1 %v11488_v40  ;;  %v14941_v55 = vand.u32 4294901760, %v11597_v47  ;;  %v11903_v40 = vand.u32 4294901760, %v218_v22  ;;  %v14942_v47 = vand.u32 4294901760, %v11602_v19  ;;  %v14943_v19 = vand.u32 4294901760, %v11617_v14 }
 0x294   :  { %4863 = vmatpush.msrb.mxu3 %v4862_v52  ;;  %4810 = vmatpush.msrb.mxu2 %v11771_v45  ;;  %v4880_v52 = vand.u32 4294901760, %v4879_v42  ;;  %v4886_v42 = vand.u32 4294901760, %v4885_v12  ;;  %v4897_v53 = vsub.f32 %v11866_v39, %v14602_v63  ;;  %v4914_v12 = vand.u32 4294901760, %v11911_v16 }
 0x295   :  { %4724 = vmatpush.msrb.mxu0 %v14941_v55  ;;  %4769 = vmatpush.msrb.mxu1 %v11501_v15  ;;  %v11916_v15 = vand.u32 4294901760, %v207_v48  ;;  %v4908_v55 = vand.u32 4294901760, %v11895_v50  ;;  %v14944_v14 = vand.u32 4294901760, %v11642_v49 }
 0x296   :  { %4869 = vmatpush.msrb.mxu3 %v4868_v24  ;;  %v196_v24 = vld [vmem:[%s14441_s1 + $0x5b0] sm:$0xff]  ;;  %4812 = vmatpush.msrb.mxu2 %v11789_v7 }
 0x297   :  { %4728 = vmatpush.msrb.mxu0 %v14942_v47  ;;  %4771 = vmatpush.msrb.mxu1 %v11514_v37  ;;  %v11930_v37 = vsub.f32 %v218_v22, %v11903_v40  ;;  %v4892_v47 = vand.u32 4294901760, %v4891_v35  ;;  %v11937_v63 = vand.u32 4294901760, %v196_v24  ;;  %v4898_v22 = vand.u32 4294901760, %v4897_v53 }
 0x298   :  { %4875 = vmatpush.msrb.mxu3 %v4874_v33  ;;  %4814 = vmatpush.msrb.mxu2 %v11805_v5  ;;  %v4903_v33 = vsub.f32 %v11879_v11, %v4902_v44  ;;  %v14945_v35 = vand.u32 4294901760, %v11657_v3  ;;  %v14946_v53 = vand.u32 4294901760, %v11675_v59 }
 0x299   :  { %4732 = vmatpush.msrb.mxu0 %v14943_v19  ;;  %4773 = vmatpush.msrb.mxu1 %v11528_v17  ;;  %v11943_v17 = vsub.f32 %v207_v48, %v11916_v15  ;;  %v4920_v49 = vand.u32 4294901760, %v11930_v37  ;;  %v4915_v48 = vsub.f32 %v11911_v16, %v4914_v12  ;;  %v14947_v19 = vand.u32 4294901760, %v11692_v6 }
 0x29a   :  { %4881 = vmatpush.msrb.mxu3 %v4880_v52  ;;  %4816 = vmatpush.msrb.mxu2 %v11821_v31  ;;  %v4909_v52 = vsub.f32 %v11895_v50, %v4908_v55 }
 0x29b   :  { %4736 = vmatpush.msrb.mxu0 %v14944_v14  ;;  %4775 = vmatpush.msrb.mxu1 %v11545_v51  ;;  %v4904_v51 = vand.u32 4294901760, %v4903_v33  ;;  %v4916_v59 = vand.u32 4294901760, %v4915_v48  ;;  %v14951_v14 = vld [vmem:[#allocation6_spill] sm:$0xff] }
 0x29c   :  { %4887 = vmatpush.msrb.mxu3 %v4886_v42  ;;  %4818 = vmatpush.msrb.mxu2 %v11837_v4  ;;  %v11958_v42 = vsub.f32 %v196_v24, %v11937_v63  ;;  %v4910_v3 = vand.u32 4294901760, %v4909_v52  ;;  %v4921_v24 = vsub.f32 %v11930_v37, %v4920_v49  ;;  %v14954_v52 = vand.u32 4294901760, %v11740_v36 }
 0x29d   :  { %4740 = vmatpush.msrb.mxu0 %v14945_v35  ;;  %4777 = vmatpush.msrb.mxu1 %v11561_v1  ;;  %v4926_v1 = vand.u32 4294901760, %v11943_v17  ;;  %v14955_v35 = vld [vmem:[#allocation12_spill] sm:$0xff] }
 0x29e   :  { %4893 = vmatpush.msrb.mxu3 %v4892_v47  ;;  %4820 = vmatpush.msrb.mxu2 %v11852_v8  ;;  %v14948_v47 = vand.u32 4294901760, %v11705_v38  ;;  %v4922_v33 = vand.u32 4294901760, %v4921_v24 }
 0x29f   :  { %4744 = vmatpush.msrb.mxu0 %v14946_v53  ;;  %4779 = vmatpush.msrb.mxu1 %v11572_v27  ;;  %v4932_v27 = vand.u32 4294901760, %v11958_v42  ;;  %v4927_v6 = vsub.f32 %v11943_v17, %v4926_v1 }
 0x2a0   :  { %4899 = vmatpush.msrb.mxu3 %v4898_v22  ;;  %4822 = vmatpush.msrb.mxu2 %v11868_v25  ;;  %v14953_v22 = vld [vmem:[#allocation5_spill] sm:$0xff] }
 0x2a1   :  { %4748 = vmatpush.msrb.mxu0 %v14947_v19  ;;  %4781 = vmatpush.msrb.mxu1 %v11585_v46  ;;  %v14949_v46 = vand.u32 4294901760, %v11723_v30  ;;  %v4928_v38 = vand.u32 4294901760, %v4927_v6  ;;  %v14950_v30 = vld [vmem:[#allocation11_spill] sm:$0xff] }
 0x2a2   :  { %4905 = vmatpush.msrb.mxu3 %v4904_v51  ;;  %4824 = vmatpush.msrb.mxu2 %v11881_v13 }
 0x2a3   :  { %4752 = vmatpush.msrb.mxu0 %v14948_v47  ;;  %4783 = vmatpush.msrb.mxu1 %v11611_v61  ;;  %v4933_v61 = vsub.f32 %v11958_v42, %v4932_v27  ;;  %v76_v47 = vld [vmem:[%s14441_s1 + $0x1f0] sm:$0xff] }
 0x2a4   :  { %4911 = vmatpush.msrb.mxu3 %v4910_v3  ;;  %4826 = vmatpush.msrb.mxu2 %v11903_v40 }
 0x2a5   :  { %4756 = vmatpush.msrb.mxu0 %v14949_v46  ;;  %4785 = vmatpush.msrb.mxu1 %v11626_v62  ;;  %v4934_v62 = vand.u32 4294901760, %v4933_v61 }
 0x2a6   :  { %4917 = vmatpush.msrb.mxu3 %v4916_v59  ;;  %4828 = vmatpush.msrb.mxu2 %v11916_v15 }
 0x2a7   :  { %4787 = vmatpush.msrb.mxu1 %v11639_v56  ;;  %4943 = vmatpush.msra.mxu0 %v11715_v60  ;;  %v14952_v56 = vand.u32 4294901760, %v11715_v60  ;;  %v14956_v60 = vand.u32 4294901760, %v11756_v0 }
 0x2a8   :  { %4923 = vmatpush.msrb.mxu3 %v4922_v33  ;;  %4650 = vmatmul.f32.vlgmr.msra.gmra.mxu2 %v8366_v2 }
 0x2a9   :  { %4946 = vmatpush.msra.mxu0 %v11740_v36  ;;  %4789 = vmatpush.msrb.mxu1 %v14950_v30  ;;  %v14958_v36 = vand.u32 4294901760, %v11761_v23 }
 0x2aa   :  { %4830 = vmatpush.msrb.mxu2 %v11937_v63  ;;  %4929 = vmatpush.msrb.mxu3 %v4928_v38  ;;  %v14964_v38 = vld [vmem:[#allocation9_spill] sm:$0xff] }
 0x2ab   :  { %4689 = vmatmul.f32.vlgmr.msra.gmra.mxu3 %v14951_v14  ;;  %4949 = vmatpush.msra.mxu0 %v11756_v0  ;;  %v14960_v0 = vand.u32 4294901760, %v11779_v41 }
 0x2ac   :  { %5037 = vmatpush.msra.mxu2 %v14952_v56  ;;  %4791 = vmatpush.msrb.mxu1 %v11671_v32  ;;  %v14957_v32 = vld [vmem:[#allocation10_spill] sm:$0xff] }
 0x2ad   :  { %4935 = vmatpush.msrb.mxu3 %v4934_v62  ;;  %4596 = vmatmul.f32.vlgmr.msra.gmra.mxu1 %v14953_v22 }
 0x2ae   :  { %4952 = vmatpush.msra.mxu0 %v11761_v23  ;;  %5041 = vmatpush.msra.mxu2 %v14954_v52  ;;  %v164_v23 = vld [vmem:[%s14441_s1 + $0x4b0] sm:$0xff] }
 0x2af   :  { %5104 = vmatpush.msra.mxu3 %v14955_v35  ;;  %4793 = vmatpush.msrb.mxu1 %v11688_v54  ;;  %v14959_v54 = vld [vmem:[#allocation7_spill] sm:$0xff] }
 0x2b0   :  { %4955 = vmatpush.msra.mxu0 %v11779_v41  ;;  %5045 = vmatpush.msra.mxu2 %v14956_v60  ;;  %v14961_v41 = vand.u32 4294901760, %v11835_v34  ;;  %v12199_v60 = vand.u32 4294901760, %v76_v47 }
 0x2b1   :  { %4996 = vmatpush.msra.mxu1 %v14955_v35  ;;  %5106 = vmatpush.msra.mxu3 %v11707_v57 }
 0x2b2   :  { %4836 = vmatmul.f32.vlgmr.msrb.gmra.mxu2 %v14957_v32  ;;  %4958 = vmatpush.msra.mxu0 %v11803_v9  ;;  %v12076_v9 = vand.u32 4294901760, %v164_v23 }
 0x2b3   :  { %4998 = vmatpush.msra.mxu1 %v11707_v57  ;;  %5049 = vmatpush.msra.mxu2 %v14958_v36  ;;  %v175_v57 = vld [vmem:[%s14441_s1 + $0x508] sm:$0xff] }
 0x2b4   :  { %5108 = vmatpush.msra.mxu3 %v11725_v29  ;;  %4758 = vmatmul.f32.vlgmr.msrb.gmra.mxu0 %v14953_v22 }
 0x2b5   :  { %4937 = vmatmul.f32.vlgmr.msrb.gmra.mxu3 %v14959_v54  ;;  %4961 = vmatpush.msra.mxu0 %v11819_v20  ;;  %v142_v20 = vld [vmem:[%s14441_s1 + $0x400] sm:$0xff] }
 0x2b6   :  { %5000 = vmatpush.msra.mxu1 %v11725_v29  ;;  %5053 = vmatpush.msra.mxu2 %v14960_v0  ;;  %v186_v29 = vld [vmem:[%s14441_s1 + $0x560] sm:$0xff] }
 0x2b7   :  { %5110 = vmatpush.msra.mxu3 %v11732_v43  ;;  %4795 = vmatmul.f32.vlgmr.msrb.gmra.mxu1 %v14953_v22 }
 0x2b8   :  { %4964 = vmatpush.msra.mxu0 %v11835_v34  ;;  %5002 = vmatpush.msra.mxu1 %v11732_v43  ;;  %v14962_v43 = vand.u32 4294901760, %v11866_v39  ;;  %v131_v34 = vld [vmem:[%s14441_s1 + $0x3a8] sm:$0xff] }
 0x2b9   :  { %5057 = vmatpush.msra.mxu2 %v4872_v21  ;;  %5112 = vmatpush.msra.mxu3 %v11745_v58 }
 0x2ba   :  { %4967 = vmatpush.msra.mxu0 %v11850_v10  ;;  %5004 = vmatpush.msra.mxu1 %v11745_v58  ;;  %v12056_v58 = vand.u32 4294901760, %v186_v29  ;;  %v12106_v10 = vsub.f32 %v164_v23, %v12076_v9 }
 0x2bb   :  { %5061 = vmatpush.msra.mxu2 %v4878_v28  ;;  %5114 = vmatpush.msra.mxu3 %v11771_v45 }
 0x2bc   :  { %4970 = vmatpush.msra.mxu0 %v11866_v39  ;;  %5006 = vmatpush.msra.mxu1 %v11771_v45  ;;  %v12066_v45 = vand.u32 4294901760, %v175_v57  ;;  %v12116_v39 = vand.u32 4294901760, %v131_v34 }
 0x2bd   :  { %5065 = vmatpush.msra.mxu2 %v14961_v41  ;;  %5116 = vmatpush.msra.mxu3 %v11789_v7  ;;  %v54_v41 = vld [vmem:[%s14441_s1 + $0x140] sm:$0xff] }
 0x2be   :  { %4973 = vmatpush.msra.mxu0 %v11879_v11  ;;  %5008 = vmatpush.msra.mxu1 %v11789_v7  ;;  %v153_v7 = vld [vmem:[%s14441_s1 + $0x458] sm:$0xff]  ;;  %v12092_v21 = vsub.f32 %v175_v57, %v12066_v45  ;;  %v12153_v48 = vsub.f32 %v131_v34, %v12116_v39  ;;  %v43_v34 = vld [vmem:[%s14441_s1 + $0xe8] sm:$0xff] }
 0x2bf   :  { %5069 = vmatpush.msra.mxu2 %v4890_v18  ;;  %5118 = vmatpush.msra.mxu3 %v11805_v5  ;;  %v109_v11 = vld [vmem:[%s14441_s1 + $0x2f8] sm:$0xff] }
 0x2c0   :  { %4976 = vmatpush.msra.mxu0 %v11895_v50  ;;  %5010 = vmatpush.msra.mxu1 %v11805_v5  ;;  %v12079_v5 = vsub.f32 %v186_v29, %v12056_v58  ;;  %v14608_v33 = vand.u32 4294901760, %v12153_v48 }
 0x2c1   :  { %5073 = vmatpush.msra.mxu2 %v14962_v43  ;;  %5120 = vmatpush.msra.mxu3 %v11821_v31 }
 0x2c2   :  { %4979 = vmatpush.msra.mxu0 %v11911_v16  ;;  %5012 = vmatpush.msra.mxu1 %v11821_v31  ;;  %v12089_v31 = vand.u32 4294901760, %v153_v7  ;;  %v14615_v28 = vand.u32 4294901760, %v12079_v5  ;;  %v120_v16 = vld [vmem:[%s14441_s1 + $0x350] sm:$0xff]  ;;  %v5214_v57 = vsub.f32 %v12153_v48, %v14608_v33 }
 0x2c3   :  { %5077 = vmatpush.msra.mxu2 %v4902_v44  ;;  %5122 = vmatpush.msra.mxu3 %v11837_v4  ;;  %v12133_v44 = vand.u32 4294901760, %v120_v16 }
 0x2c4   :  { %4982 = vmatpush.msra.mxu0 %v11930_v37  ;;  %5014 = vmatpush.msra.mxu1 %v11837_v4  ;;  %v12102_v4 = vand.u32 4294901760, %v142_v20  ;;  %v12120_v18 = vsub.f32 %v153_v7, %v12089_v31  ;;  %v5184_v50 = vsub.f32 %v12079_v5, %v14615_v28  ;;  %v98_v37 = vld [vmem:[%s14441_s1 + $0x2a0] sm:$0xff] }
 0x2c5   :  { %5081 = vmatpush.msra.mxu2 %v4908_v55  ;;  %5124 = vmatpush.msra.mxu3 %v11852_v8  ;;  %v14612_v55 = vand.u32 4294901760, %v12106_v10  ;;  %v3969_v19 = vpop.f32.mrf.mxu2 }
 0x2c6   :  { %4985 = vmatpush.msra.mxu0 %v11943_v17  ;;  %5016 = vmatpush.msra.mxu1 %v11852_v8  ;;  %v14963_v8 = vld [vmem:[#allocation8_spill] sm:$0xff]  ;;  %v14610_v51 = vand.u32 4294901760, %v12120_v18  ;;  %v5185_v3 = vand.u32 4294901760, %v5184_v50  ;;  %v12227_v50 = vand.u32 4294901760, %v54_v41 }
 0x2c7   :  { %5085 = vmatpush.msra.mxu2 %v4914_v12  ;;  %5126 = vmatpush.msra.mxu3 %v11868_v25  ;;  %v3814_v12 = vpop.f32.mrf.mxu0  ;;  %v5196_v24 = vsub.f32 %v12106_v10, %v14612_v55 }
 0x2c8   :  { %4988 = vmatpush.msra.mxu0 %v11958_v42  ;;  %5018 = vmatpush.msra.mxu1 %v11868_v25  ;;  %v14613_v25 = vand.u32 4294901760, %v12092_v21  ;;  %v87_v42 = vld [vmem:[%s14441_s1 + $0x248] sm:$0xff]  ;;  %v5202_v46 = vsub.f32 %v12120_v18, %v14610_v51  ;;  %v4008_v56 = vpop.f32.mrf.mxu3 }
 0x2c9   :  { %5089 = vmatpush.msra.mxu2 %v4920_v49  ;;  %5128 = vmatpush.msra.mxu3 %v11881_v13  ;;  %v12149_v49 = vand.u32 4294901760, %v109_v11  ;;  %v5197_v52 = vand.u32 4294901760, %v5196_v24  ;;  %v362_v24 = vld [vmem:[%s14441_s1 + $0xae0] sm:$0xff] }
 0x2ca   :  { %4991 = vmatmul.f32.vlgmr.msra.gmra.mxu0 %v14963_v8  ;;  %5020 = vmatpush.msra.mxu1 %v11881_v13  ;;  %v3915_v13 = vpop.f32.mrf.mxu1  ;;  %v5190_v17 = vsub.f32 %v12092_v21, %v14613_v25  ;;  %v5203_v29 = vand.u32 4294901760, %v5202_v46  ;;  %v21_v46 = vld [vmem:[%s14441_s1 + $0x38] sm:$0xff] }
 0x2cb   :  { %5141 = vmatpush.msrb.mxu0 %v12056_v58  ;;  %5093 = vmatpush.msra.mxu2 %v4926_v1  ;;  %v3916_v53 = vadd.f32 %v3915_v13, %v3814_v12  ;;  %v12160_v1 = vand.u32 4294901760, %v98_v37  ;;  %v12185_v61 = vsub.f32 %v109_v11, %v12149_v49 }
 0x2cc   :  { %5130 = vmatpush.msra.mxu3 %v11903_v40  ;;  %5022 = vmatpush.msra.mxu1 %v11903_v40  ;;  %v12137_v40 = vsub.f32 %v142_v20, %v12102_v4  ;;  %v5191_v6 = vand.u32 4294901760, %v5190_v17  ;;  %v32_v17 = vld [vmem:[%s14441_s1 + $0x90] sm:$0xff] }
 0x2cd   :  { %5143 = vmatpush.msrb.mxu0 %v12066_v45  ;;  %5097 = vmatpush.msra.mxu2 %v4932_v27  ;;  %v12169_v27 = vsub.f32 %v120_v16, %v12133_v44  ;;  %v3970_v30 = vadd.f32 %v3969_v19, %v3916_v53  ;;  %v12190_v62 = vsub.f32 %v98_v37, %v12160_v1  ;;  %v14605_v23 = vand.u32 4294901760, %v12185_v61 }
 0x2ce   :  { %5132 = vmatpush.msra.mxu3 %v11916_v15  ;;  %5099 = vmatmul.f32.vlgmr.msra.gmra.mxu2 %v14959_v54  ;;  %v14609_v59 = vand.u32 4294901760, %v12137_v40  ;;  %v12230_v37 = vsub.f32 %v76_v47, %v12199_v60 }
 0x2cf   :  { %5145 = vmatpush.msrb.mxu0 %v12076_v9  ;;  %5284 = vmatpush.msrb.mxu2 %v12079_v5  ;;  %v14606_v36 = vand.u32 4294901760, %v12169_v27  ;;  %v4009_v7 = vadd.f32 %v4008_v56, %v3970_v30  ;;  %v14603_v20 = vand.u32 4294901760, %v12190_v62  ;;  %v4077_v16 = vpop.f32.mrf.mxu0  ;;  %v5226_v53 = vsub.f32 %v12185_v61, %v14605_v23  ;;  %v4155_v23 = vpop.f32.mrf.mxu2 }
 0x2d0   :  { %5024 = vmatpush.msra.mxu1 %v11916_v15  ;;  %5134 = vmatpush.msra.mxu3 %v11937_v63  ;;  %v12173_v15 = vand.u32 4294901760, %v87_v42  ;;  %v5208_v35 = vsub.f32 %v12137_v40, %v14609_v59  ;;  %v12259_v56 = vand.u32 4294901760, %v32_v17 }
 0x2d1   :  { %5136 = vmatmul.f32.vlgmr.msra.gmra.mxu3 %v14959_v54  ;;  %5147 = vmatpush.msrb.mxu0 %v12089_v31  ;;  %v5220_v13 = vsub.f32 %v12169_v27, %v14606_v36  ;;  %v4078_v47 = vadd.f32 %v4077_v16, %v4009_v7  ;;  %v351_v7 = vld [vmem:[%s14441_s1 + $0xa88] sm:$0xff]  ;;  %v5227_v16 = vand.u32 4294901760, %v5226_v53 }
 0x2d2   :  { %5287 = vmatpush.msrb.mxu2 %v12092_v21  ;;  %5337 = vmatpush.msrb.mxu3 %v12056_v58  ;;  %v12205_v0 = vsub.f32 %v87_v42, %v12173_v15  ;;  %v5209_v11 = vand.u32 4294901760, %v5208_v35  ;;  %v5215_v42 = vand.u32 4294901760, %v5214_v57  ;;  %v4114_v30 = vpop.f32.mrf.mxu1  ;;  %v12263_v35 = vsub.f32 %v54_v41, %v12227_v50  ;;  %v4256_v51 = vpop.f32.mrf.mxu3 }
 0x2d3   :  { %5026 = vmatpush.msra.mxu1 %v11937_v63  ;;  %5149 = vmatpush.msrb.mxu0 %v12102_v4  ;;  %v65_v63 = vld [vmem:[%s14441_s1 + $0x198] sm:$0xff]  ;;  %v12270_v57 = vand.u32 4294901760, %v362_v24  ;;  %v12276_v41 = vand.u32 4294901760, %v21_v46 }
 0x2d4   :  { %5030 = vmatmul.f32.vlgmr.msra.gmra.mxu1 %v14964_v38  ;;  %5290 = vmatpush.msrb.mxu2 %v12106_v10  ;;  %v12214_v43 = vand.u32 4294901760, %v65_v63  ;;  %v14604_v12 = vand.u32 4294901760, %v12205_v0 }
 0x2d5   :  { %5186 = vmatpush.msrb.mxu1 %v5185_v3  ;;  %5339 = vmatpush.msrb.mxu3 %v12066_v45  ;;  %v12242_v3 = vand.u32 4294901760, %v43_v34  ;;  %14966 = vst [vmem:[#allocation12_spill] sm:$0xff] %v12270_v57  ;;  %v12303_v36 = vsub.f32 %v362_v24, %v12270_v57  ;;  %v12311_v33 = vsub.f32 %v21_v46, %v12276_v41 }
 0x2d6   :  { %5151 = vmatpush.msrb.mxu0 %v12116_v39  ;;  %5293 = vmatpush.msrb.mxu2 %v12120_v18  ;;  %v12245_v19 = vsub.f32 %v65_v63, %v12214_v43  ;;  %v5221_v63 = vand.u32 4294901760, %v5220_v13 }
 0x2d7   :  { %5192 = vmatpush.msrb.mxu1 %v5191_v6  ;;  %5341 = vmatpush.msrb.mxu3 %v12076_v9  ;;  %14965 = vst [vmem:[#allocation11_spill] sm:$0xff] %v12242_v3  ;;  %v5232_v6 = vsub.f32 %v12190_v62, %v14603_v20  ;;  %v12280_v13 = vsub.f32 %v43_v34, %v12242_v3  ;;  %v14614_v34 = vand.u32 4294901760, %v12263_v35  ;;  %v14968_v38 = vand.u32 4294901760, %v12303_v36 }
 0x2d8   :  { %5153 = vmatpush.msrb.mxu0 %v12133_v44  ;;  %5296 = vmatpush.msrb.mxu2 %v12137_v40  ;;  %v4115_v20 = vadd.f32 %v4114_v30, %v4078_v47  ;;  %v12293_v47 = vsub.f32 %v32_v17, %v12259_v56  ;;  %v12295_v30 = vand.u32 4294901760, %v351_v7 }
 0x2d9   :  { %5198 = vmatpush.msrb.mxu1 %v5197_v52  ;;  %5343 = vmatpush.msrb.mxu3 %v12089_v31  ;;  %v14607_v52 = vand.u32 4294901760, %v12230_v37  ;;  %v5256_v46 = vsub.f32 %v12263_v35, %v14614_v34 }
 0x2da   :  { %5155 = vmatpush.msrb.mxu0 %v12149_v49  ;;  %5299 = vmatpush.msrb.mxu2 %v12153_v48  ;;  %v4156_v24 = vadd.f32 %v4155_v23, %v4115_v20  ;;  %v12328_v25 = vsub.f32 %v351_v7, %v12295_v30  ;;  %v14967_v28 = vand.u32 4294901760, %v12293_v47 }
 0x2db   :  { %5204 = vmatpush.msrb.mxu1 %v5203_v29  ;;  %5345 = vmatpush.msrb.mxu3 %v12102_v4  ;;  %v5238_v29 = vsub.f32 %v12205_v0, %v14604_v12  ;;  %v5233_v12 = vand.u32 4294901760, %v5232_v6  ;;  %v5244_v53 = vsub.f32 %v12230_v37, %v14607_v52  ;;  %v329_v6 = vld [vmem:[%s14441_s1 + $0x9d8] sm:$0xff]  ;;  %v14616_v52 = vand.u32 4294901760, %v12280_v13 }
 0x2dc   :  { %5157 = vmatpush.msrb.mxu0 %v12160_v1  ;;  %5302 = vmatpush.msrb.mxu2 %v12169_v27  ;;  %v4257_v23 = vadd.f32 %v4256_v51, %v4156_v24  ;;  %v14969_v51 = vand.u32 4294901760, %v12311_v33 }
 0x2dd   :  { %5210 = vmatpush.msrb.mxu1 %v5209_v11  ;;  %5347 = vmatpush.msrb.mxu3 %v12116_v39  ;;  %v14611_v11 = vand.u32 4294901760, %v12245_v19  ;;  %v5262_v7 = vsub.f32 %v12280_v13, %v14616_v52  ;;  %v5257_v52 = vand.u32 4294901760, %v5256_v46 }
 0x2de   :  { %5159 = vmatpush.msrb.mxu0 %v12173_v15  ;;  %5305 = vmatpush.msrb.mxu2 %v12185_v61  ;;  %v5274_v54 = vsub.f32 %v12311_v33, %v14969_v51 }
 0x2df   :  { %5216 = vmatpush.msrb.mxu1 %v5215_v42  ;;  %5349 = vmatpush.msrb.mxu3 %v12133_v44  ;;  %v340_v42 = vld [vmem:[%s14441_s1 + $0xa30] sm:$0xff]  ;;  %v5250_v17 = vsub.f32 %v12245_v19, %v14611_v11  ;;  %v5245_v11 = vand.u32 4294901760, %v5244_v53  ;;  %v5263_v46 = vand.u32 4294901760, %v5262_v7  ;;  %v274_v7 = vld [vmem:[%s14441_s1 + $0x820] sm:$0xff] }
 0x2e0   :  { %5161 = vmatpush.msrb.mxu0 %v12199_v60  ;;  %5308 = vmatpush.msrb.mxu2 %v12190_v62  ;;  %v12313_v59 = vand.u32 4294901760, %v340_v42 }
 0x2e1   :  { %5222 = vmatpush.msrb.mxu1 %v5221_v63  ;;  %5351 = vmatpush.msrb.mxu3 %v12149_v49  ;;  %v5239_v63 = vand.u32 4294901760, %v5238_v29  ;;  %v318_v29 = vld [vmem:[%s14441_s1 + $0x980] sm:$0xff]  ;;  %v5251_v53 = vand.u32 4294901760, %v5250_v17  ;;  %v4310_v34 = vpop.f32.mrf.mxu0  ;;  %v296_v17 = vld [vmem:[%s14441_s1 + $0x8d0] sm:$0xff] }
 0x2e2   :  { %5163 = vmatpush.msrb.mxu0 %v12214_v43  ;;  %5311 = vmatpush.msrb.mxu2 %v12205_v0  ;;  %v12333_v20 = vand.u32 4294901760, %v318_v29  ;;  %v12344_v55 = vsub.f32 %v340_v42, %v12313_v59  ;;  %v5268_v42 = vsub.f32 %v12293_v47, %v14967_v28  ;;  %v285_v28 = vld [vmem:[%s14441_s1 + $0x878] sm:$0xff] }
 0x2e3   :  { %5228 = vmatpush.msrb.mxu1 %v5227_v16  ;;  %5353 = vmatpush.msrb.mxu3 %v12160_v1  ;;  %v12320_v16 = vand.u32 4294901760, %v329_v6 }
 0x2e4   :  { %5165 = vmatpush.msrb.mxu0 %v12227_v50  ;;  %5314 = vmatpush.msrb.mxu2 %v12230_v37  ;;  %v12367_v8 = vsub.f32 %v318_v29, %v12333_v20  ;;  %v14970_v29 = vand.u32 4294901760, %v12079_v5  ;;  %v5269_v51 = vand.u32 4294901760, %v5268_v42  ;;  %v263_v42 = vld [vmem:[%s14441_s1 + $0x7c8] sm:$0xff] }
 0x2e5   :  { %5234 = vmatpush.msrb.mxu1 %v5233_v12  ;;  %5355 = vmatpush.msrb.mxu3 %v12173_v15  ;;  %v307_v12 = vld [vmem:[%s14441_s1 + $0x928] sm:$0xff] }
 0x2e6   :  { %5167 = vmatpush.msrb.mxu0 %v12242_v3  ;;  %5317 = vmatpush.msrb.mxu2 %v12245_v19  ;;  %v12359_v24 = vand.u32 4294901760, %v307_v12 }
 0x2e7   :  { %5240 = vmatpush.msrb.mxu1 %v5239_v63  ;;  %5357 = vmatpush.msrb.mxu3 %v12199_v60  ;;  %v12349_v63 = vsub.f32 %v329_v6, %v12320_v16  ;;  %v4311_v6 = vadd.f32 %v4310_v34, %v4257_v23  ;;  %v14971_v23 = vand.u32 4294901760, %v12328_v25 }
 0x2e8   :  { %5169 = vmatpush.msrb.mxu0 %v12259_v56  ;;  %5320 = vmatpush.msrb.mxu2 %v12263_v35  ;;  %v12391_v5 = vsub.f32 %v307_v12, %v12359_v24  ;;  %v5275_v12 = vand.u32 4294901760, %v5274_v54  ;;  %v252_v54 = vld [vmem:[%s14441_s1 + $0x770] sm:$0xff] }
 0x2e9   :  { %5246 = vmatpush.msrb.mxu1 %v5245_v11  ;;  %5359 = vmatpush.msrb.mxu3 %v12214_v43  ;;  %v5525_v11 = vsub.f32 %v12303_v36, %v14968_v38  ;;  %v12377_v38 = vand.u32 4294901760, %v296_v17  ;;  %v5531_v14 = vsub.f32 %v12328_v25, %v14971_v23  ;;  %v14973_v23 = vand.u32 4294901760, %v12344_v55 }
 0x2ea   :  { %5171 = vmatpush.msrb.mxu0 %v12276_v41  ;;  %5323 = vmatpush.msrb.mxu2 %v12280_v13 }
 0x2eb   :  { %5252 = vmatpush.msrb.mxu1 %v5251_v53  ;;  %5361 = vmatpush.msrb.mxu3 %v12227_v50  ;;  %v4349_v34 = vpop.f32.mrf.mxu1  ;;  %v4418_v32 = vpop.f32.mrf.mxu2 }
 0x2ec   :  { %5378 = vmatpush.msra.mxu0 %v14970_v29  ;;  %5326 = vmatpush.msrb.mxu2 %v12293_v47  ;;  %v4350_v22 = vadd.f32 %v4349_v34, %v4311_v6  ;;  %v12393_v29 = vand.u32 4294901760, %v285_v28  ;;  %v14972_v6 = vand.u32 4294901760, %v12092_v21  ;;  %v5526_v34 = vand.u32 4294901760, %v5525_v11 }
 0x2ed   :  { %5258 = vmatpush.msrb.mxu1 %v5257_v52  ;;  %5363 = vmatpush.msrb.mxu3 %v12242_v3  ;;  %v5537_v21 = vsub.f32 %v12344_v55, %v14973_v23  ;;  %v12409_v11 = vand.u32 4294901760, %v274_v7  ;;  %v5554_v23 = vand.u32 4294901760, %v12391_v5 }
 0x2ee   :  { %5382 = vmatpush.msra.mxu0 %v14972_v6  ;;  %5329 = vmatpush.msrb.mxu2 %v12311_v33  ;;  %v4419_v53 = vadd.f32 %v4418_v32, %v4350_v22  ;;  %v4455_v52 = vpop.f32.mrf.mxu3  ;;  %v12407_v6 = vsub.f32 %v296_v17, %v12377_v38  ;;  %v14974_v22 = vand.u32 4294901760, %v12106_v10  ;;  %v14975_v32 = vand.u32 4294901760, %v12349_v63 }
 0x2ef   :  { %5264 = vmatpush.msrb.mxu1 %v5263_v46  ;;  %5365 = vmatpush.msrb.mxu3 %v12259_v56  ;;  %v5532_v17 = vand.u32 4294901760, %v5531_v14  ;;  %v12423_v10 = vsub.f32 %v285_v28, %v12393_v29  ;;  %v241_v14 = vld [vmem:[%s14441_s1 + $0x718] sm:$0xff]  ;;  %v5538_v28 = vand.u32 4294901760, %v5537_v21 }
 0x2f0   :  { %5386 = vmatpush.msra.mxu0 %v14974_v22  ;;  %5482 = vmatpush.msra.mxu2 %v12270_v57  ;;  %v5543_v46 = vsub.f32 %v12349_v63, %v14975_v32  ;;  %v4456_v3 = vadd.f32 %v4455_v52, %v4419_v53  ;;  %v12425_v22 = vand.u32 4294901760, %v263_v42  ;;  %v14976_v57 = vand.u32 4294901760, %v12120_v18 }
 0x2f1   :  { %5270 = vmatpush.msrb.mxu1 %v5269_v51  ;;  %5367 = vmatpush.msrb.mxu3 %v12276_v41  ;;  %v14977_v53 = vand.u32 4294901760, %v12367_v8  ;;  %v5560_v52 = vand.u32 4294901760, %v12407_v6  ;;  %v12438_v32 = vsub.f32 %v274_v7, %v12409_v11  ;;  %v12440_v18 = vand.u32 4294901760, %v252_v54 }
 0x2f2   :  { %5390 = vmatpush.msra.mxu0 %v14976_v57  ;;  %5484 = vmatpush.msra.mxu2 %v12295_v30  ;;  %7873 = vst [vmem:[#allocation2 + $0x28] sm:$0xff] %v4456_v3  ;;  %v14978_v3 = vand.u32 4294901760, %v12137_v40  ;;  %v5544_v57 = vand.u32 4294901760, %v5543_v46  ;;  %v5555_v7 = vsub.f32 %v12391_v5, %v5554_v23  ;;  %v12456_v40 = vand.u32 4294901760, %v241_v14 }
 0x2f3   :  { %v5549_v51 = vsub.f32 %v12367_v8, %v14977_v53  ;;  %5527 = vmatpush.msra.mxu3 %v5526_v34  ;;  %5276 = vmatpush.msrb.mxu1 %v5275_v12  ;;  %v230_v53 = vld [vmem:[%s14441_s1 + $0x6c0] sm:$0xff]  ;;  %v14622_v34 = vand.u32 4294901760, %v12423_v10  ;;  %v12454_v12 = vsub.f32 %v263_v42, %v12425_v22  ;;  %v5561_v46 = vsub.f32 %v12407_v6, %v5560_v52 }
 0x2f4   :  { %5394 = vmatpush.msra.mxu0 %v14978_v3  ;;  %5486 = vmatpush.msra.mxu2 %v12313_v59  ;;  %v12467_v42 = vsub.f32 %v252_v54, %v12440_v18  ;;  %v12469_v3 = vand.u32 4294901760, %v230_v53 }
 0x2f5   :  { %5445 = vmatpush.msra.mxu1 %v12056_v58  ;;  %5533 = vmatpush.msra.mxu3 %v5532_v17  ;;  %v14979_v58 = vand.u32 4294901760, %v12153_v48  ;;  %v5550_v21 = vand.u32 4294901760, %v5549_v51  ;;  %v5572_v17 = vand.u32 4294901760, %v12438_v32  ;;  %v219_v48 = vld [vmem:[%s14441_s1 + $0x668] sm:$0xff]  ;;  %v5556_v51 = vand.u32 4294901760, %v5555_v7 }
 0x2f6   :  { %5488 = vmatpush.msra.mxu2 %v12320_v16  ;;  %v5567_v54 = vsub.f32 %v12423_v10, %v14622_v34  ;;  %v5584_v7 = vand.u32 4294901760, %v12467_v42  ;;  %v12499_v34 = vsub.f32 %v230_v53, %v12469_v3  ;;  %5177 = vmatmul.f32.vlgmr.msrb.gmra.mxu0 %v8434_v26 }
 0x2f7   :  { %5398 = vmatpush.msra.mxu0 %v14979_v58  ;;  %5447 = vmatpush.msra.mxu1 %v12066_v45  ;;  %v14980_v45 = vand.u32 4294901760, %v12169_v27  ;;  %v12483_v58 = vsub.f32 %v241_v14, %v12456_v40  ;;  %v208_v27 = vld [vmem:[%s14441_s1 + $0x610] sm:$0xff]  ;;  %v5573_v14 = vsub.f32 %v12438_v32, %v5572_v17 }
 0x2f8   :  { %5539 = vmatpush.msra.mxu3 %v5538_v28  ;;  %5490 = vmatpush.msra.mxu2 %v12333_v20  ;;  %v14623_v28 = vand.u32 4294901760, %v12454_v12 }
 0x2f9   :  { %5402 = vmatpush.msra.mxu0 %v14980_v45  ;;  %5449 = vmatpush.msra.mxu1 %v12076_v9  ;;  %v14981_v45 = vand.u32 4294901760, %v12185_v61  ;;  %v12491_v9 = vand.u32 4294901760, %v219_v48  ;;  %v14982_v61 = vand.u32 4294901760, %v12190_v62  ;;  %v14983_v62 = vand.u32 4294901760, %v12205_v0 }
 0x2fa   :  { %5545 = vmatpush.msra.mxu3 %v5544_v57  ;;  %5492 = vmatpush.msra.mxu2 %v12359_v24  ;;  %v5562_v57 = vand.u32 4294901760, %v5561_v46  ;;  %v5568_v46 = vand.u32 4294901760, %v5567_v54  ;;  %v5579_v53 = vsub.f32 %v12454_v12, %v14623_v28  ;;  %v5596_v54 = vand.u32 4294901760, %v12499_v34 }
 0x2fb   :  { %5406 = vmatpush.msra.mxu0 %v14981_v45  ;;  %5451 = vmatpush.msra.mxu1 %v12089_v31  ;;  %v12504_v31 = vand.u32 4294901760, %v208_v27  ;;  %v5590_v45 = vand.u32 4294901760, %v12483_v58  ;;  %v14984_v0 = vand.u32 4294901760, %v12230_v37 }
 0x2fc   :  { %5551 = vmatpush.msra.mxu3 %v5550_v21  ;;  %v197_v21 = vld [vmem:[%s14441_s1 + $0x5b8] sm:$0xff]  ;;  %5494 = vmatpush.msra.mxu2 %v12377_v38 }
 0x2fd   :  { %5410 = vmatpush.msra.mxu0 %v14982_v61  ;;  %5453 = vmatpush.msra.mxu1 %v12102_v4  ;;  %v12518_v4 = vsub.f32 %v219_v48, %v12491_v9  ;;  %v5574_v61 = vand.u32 4294901760, %v5573_v14  ;;  %v12525_v28 = vand.u32 4294901760, %v197_v21  ;;  %v5580_v48 = vand.u32 4294901760, %v5579_v53 }
 0x2fe   :  { %5557 = vmatpush.msra.mxu3 %v5556_v51  ;;  %5496 = vmatpush.msra.mxu2 %v12393_v29  ;;  %v5585_v51 = vsub.f32 %v12467_v42, %v5584_v7  ;;  %v14985_v14 = vand.u32 4294901760, %v12245_v19  ;;  %v14986_v53 = vand.u32 4294901760, %v12263_v35 }
 0x2ff   :  { %5414 = vmatpush.msra.mxu0 %v14983_v62  ;;  %5455 = vmatpush.msra.mxu1 %v12116_v39  ;;  %v12531_v39 = vsub.f32 %v208_v27, %v12504_v31  ;;  %v5602_v37 = vand.u32 4294901760, %v12518_v4  ;;  %v5597_v27 = vsub.f32 %v12499_v34, %v5596_v54  ;;  %v14987_v62 = vand.u32 4294901760, %v12280_v13 }
 0x300   :  { %5563 = vmatpush.msra.mxu3 %v5562_v57  ;;  %5498 = vmatpush.msra.mxu2 %v12409_v11  ;;  %v5591_v57 = vsub.f32 %v12483_v58, %v5590_v45 }
 0x301   :  { %5418 = vmatpush.msra.mxu0 %v14984_v0  ;;  %5457 = vmatpush.msra.mxu1 %v12133_v44  ;;  %v5586_v44 = vand.u32 4294901760, %v5585_v51  ;;  %v5598_v35 = vand.u32 4294901760, %v5597_v27  ;;  %v14991_v0 = vld [vmem:[#allocation6_spill] sm:$0xff] }
 0x302   :  { %5569 = vmatpush.msra.mxu3 %v5568_v46  ;;  %5500 = vmatpush.msra.mxu2 %v12425_v22  ;;  %v12546_v46 = vsub.f32 %v197_v21, %v12525_v28  ;;  %v5592_v19 = vand.u32 4294901760, %v5591_v57  ;;  %v5603_v21 = vsub.f32 %v12518_v4, %v5602_v37  ;;  %v14994_v57 = vand.u32 4294901760, %v12328_v25 }
 0x303   :  { %5422 = vmatpush.msra.mxu0 %v14985_v14  ;;  %5459 = vmatpush.msra.mxu1 %v12149_v49  ;;  %v5608_v49 = vand.u32 4294901760, %v12531_v39  ;;  %v14995_v14 = vld [vmem:[#allocation12_spill] sm:$0xff] }
 0x304   :  { %5575 = vmatpush.msra.mxu3 %v5574_v61  ;;  %5502 = vmatpush.msra.mxu2 %v12440_v18  ;;  %v14988_v61 = vand.u32 4294901760, %v12293_v47  ;;  %v5604_v51 = vand.u32 4294901760, %v5603_v21 }
 0x305   :  { %5426 = vmatpush.msra.mxu0 %v14986_v53  ;;  %5461 = vmatpush.msra.mxu1 %v12160_v1  ;;  %v5614_v1 = vand.u32 4294901760, %v12546_v46  ;;  %v5609_v13 = vsub.f32 %v12531_v39, %v5608_v49 }
 0x306   :  { %5581 = vmatpush.msra.mxu3 %v5580_v48  ;;  %5504 = vmatpush.msra.mxu2 %v12456_v40  ;;  %v14993_v48 = vld [vmem:[#allocation5_spill] sm:$0xff] }
 0x307   :  { %5430 = vmatpush.msra.mxu0 %v14987_v62  ;;  %5463 = vmatpush.msra.mxu1 %v12173_v15  ;;  %v14989_v15 = vand.u32 4294901760, %v12311_v33  ;;  %v5610_v47 = vand.u32 4294901760, %v5609_v13  ;;  %v14990_v33 = vld [vmem:[#allocation11_spill] sm:$0xff] }
 0x308   :  { %5587 = vmatpush.msra.mxu3 %v5586_v44  ;;  %5506 = vmatpush.msra.mxu2 %v12469_v3 }
 0x309   :  { %5434 = vmatpush.msra.mxu0 %v14988_v61  ;;  %5465 = vmatpush.msra.mxu1 %v12199_v60  ;;  %v5615_v60 = vsub.f32 %v12546_v46, %v5614_v1  ;;  %v77_v61 = vld [vmem:[%s14441_s1 + $0x1f8] sm:$0xff] }
 0x30a   :  { %5593 = vmatpush.msra.mxu3 %v5592_v19  ;;  %5508 = vmatpush.msra.mxu2 %v12491_v9 }
 0x30b   :  { %5438 = vmatpush.msra.mxu0 %v14989_v15  ;;  %5467 = vmatpush.msra.mxu1 %v12214_v43  ;;  %v5616_v43 = vand.u32 4294901760, %v5615_v60 }
 0x30c   :  { %5599 = vmatpush.msra.mxu3 %v5598_v35  ;;  %5510 = vmatpush.msra.mxu2 %v12504_v31 }
 0x30d   :  { %5469 = vmatpush.msra.mxu1 %v12227_v50  ;;  %5625 = vmatpush.msrb.mxu0 %v12303_v36  ;;  %v14992_v50 = vand.u32 4294901760, %v12303_v36  ;;  %v14996_v36 = vand.u32 4294901760, %v12344_v55 }
 0x30e   :  { %5605 = vmatpush.msra.mxu3 %v5604_v51  ;;  %5332 = vmatmul.f32.vlgmr.msrb.gmra.mxu2 %v8366_v2 }
 0x30f   :  { %5628 = vmatpush.msrb.mxu0 %v12328_v25  ;;  %5471 = vmatpush.msra.mxu1 %v14990_v33  ;;  %v14998_v25 = vand.u32 4294901760, %v12349_v63 }
 0x310   :  { %5512 = vmatpush.msra.mxu2 %v12525_v28  ;;  %5611 = vmatpush.msra.mxu3 %v5610_v47  ;;  %v15004_v47 = vld [vmem:[#allocation9_spill] sm:$0xff] }
 0x311   :  { %5371 = vmatmul.f32.vlgmr.msrb.gmra.mxu3 %v14991_v0  ;;  %5631 = vmatpush.msrb.mxu0 %v12344_v55  ;;  %v15000_v55 = vand.u32 4294901760, %v12367_v8 }
 0x312   :  { %5719 = vmatpush.msrb.mxu2 %v14992_v50  ;;  %5473 = vmatpush.msra.mxu1 %v12259_v56  ;;  %v14997_v56 = vld [vmem:[#allocation10_spill] sm:$0xff] }
 0x313   :  { %5617 = vmatpush.msra.mxu3 %v5616_v43  ;;  %5278 = vmatmul.f32.vlgmr.msrb.gmra.mxu1 %v14993_v48 }
 0x314   :  { %5634 = vmatpush.msrb.mxu0 %v12349_v63  ;;  %5723 = vmatpush.msrb.mxu2 %v14994_v57  ;;  %v165_v63 = vld [vmem:[%s14441_s1 + $0x4b8] sm:$0xff] }
 0x315   :  { %5786 = vmatpush.msrb.mxu3 %v14995_v14  ;;  %5475 = vmatpush.msra.mxu1 %v12276_v41  ;;  %v14999_v41 = vld [vmem:[#allocation7_spill] sm:$0xff] }
 0x316   :  { %5637 = vmatpush.msrb.mxu0 %v12367_v8  ;;  %5727 = vmatpush.msrb.mxu2 %v14996_v36  ;;  %v15001_v8 = vand.u32 4294901760, %v12423_v10  ;;  %v12787_v36 = vand.u32 4294901760, %v77_v61 }
 0x317   :  { %5678 = vmatpush.msrb.mxu1 %v14995_v14  ;;  %5788 = vmatpush.msrb.mxu3 %v12295_v30 }
 0x318   :  { %5518 = vmatmul.f32.vlgmr.msra.gmra.mxu2 %v14997_v56  ;;  %5640 = vmatpush.msrb.mxu0 %v12391_v5  ;;  %v12664_v5 = vand.u32 4294901760, %v165_v63 }
 0x319   :  { %5680 = vmatpush.msrb.mxu1 %v12295_v30  ;;  %5731 = vmatpush.msrb.mxu2 %v14998_v25  ;;  %v176_v30 = vld [vmem:[%s14441_s1 + $0x510] sm:$0xff] }
 0x31a   :  { %5790 = vmatpush.msrb.mxu3 %v12313_v59  ;;  %5440 = vmatmul.f32.vlgmr.msra.gmra.mxu0 %v14993_v48 }
 0x31b   :  { %5619 = vmatmul.f32.vlgmr.msra.gmra.mxu3 %v14999_v41  ;;  %5643 = vmatpush.msrb.mxu0 %v12407_v6  ;;  %v143_v6 = vld [vmem:[%s14441_s1 + $0x408] sm:$0xff] }
 0x31c   :  { %5682 = vmatpush.msrb.mxu1 %v12313_v59  ;;  %5735 = vmatpush.msrb.mxu2 %v15000_v55  ;;  %v187_v59 = vld [vmem:[%s14441_s1 + $0x568] sm:$0xff] }
 0x31d   :  { %5792 = vmatpush.msrb.mxu3 %v12320_v16  ;;  %5477 = vmatmul.f32.vlgmr.msra.gmra.mxu1 %v14993_v48 }
 0x31e   :  { %5646 = vmatpush.msrb.mxu0 %v12423_v10  ;;  %5684 = vmatpush.msrb.mxu1 %v12320_v16  ;;  %v15002_v16 = vand.u32 4294901760, %v12454_v12  ;;  %v132_v10 = vld [vmem:[%s14441_s1 + $0x3b0] sm:$0xff] }
 0x31f   :  { %5739 = vmatpush.msrb.mxu2 %v5554_v23  ;;  %5794 = vmatpush.msrb.mxu3 %v12333_v20 }
 0x320   :  { %5649 = vmatpush.msrb.mxu0 %v12438_v32  ;;  %5686 = vmatpush.msrb.mxu1 %v12333_v20  ;;  %v12644_v20 = vand.u32 4294901760, %v187_v59  ;;  %v12694_v32 = vsub.f32 %v165_v63, %v12664_v5 }
 0x321   :  { %5743 = vmatpush.msrb.mxu2 %v5560_v52  ;;  %5796 = vmatpush.msrb.mxu3 %v12359_v24 }
 0x322   :  { %5652 = vmatpush.msrb.mxu0 %v12454_v12  ;;  %5688 = vmatpush.msrb.mxu1 %v12359_v24  ;;  %v12654_v24 = vand.u32 4294901760, %v176_v30  ;;  %v12704_v12 = vand.u32 4294901760, %v132_v10 }
 0x323   :  { %5747 = vmatpush.msrb.mxu2 %v15001_v8  ;;  %5798 = vmatpush.msrb.mxu3 %v12377_v38  ;;  %v55_v8 = vld [vmem:[%s14441_s1 + $0x148] sm:$0xff] }
 0x324   :  { %5655 = vmatpush.msrb.mxu0 %v12467_v42  ;;  %5690 = vmatpush.msrb.mxu1 %v12377_v38  ;;  %v154_v38 = vld [vmem:[%s14441_s1 + $0x460] sm:$0xff]  ;;  %v12680_v23 = vsub.f32 %v176_v30, %v12654_v24  ;;  %v12741_v27 = vsub.f32 %v132_v10, %v12704_v12  ;;  %v44_v10 = vld [vmem:[%s14441_s1 + $0xf0] sm:$0xff] }
 0x325   :  { %5751 = vmatpush.msrb.mxu2 %v5572_v17  ;;  %5800 = vmatpush.msrb.mxu3 %v12393_v29  ;;  %v110_v42 = vld [vmem:[%s14441_s1 + $0x300] sm:$0xff] }
 0x326   :  { %5658 = vmatpush.msrb.mxu0 %v12483_v58  ;;  %5692 = vmatpush.msrb.mxu1 %v12393_v29  ;;  %v12667_v29 = vsub.f32 %v187_v59, %v12644_v20  ;;  %v14629_v51 = vand.u32 4294901760, %v12741_v27 }
 0x327   :  { %5755 = vmatpush.msrb.mxu2 %v15002_v16  ;;  %5802 = vmatpush.msrb.mxu3 %v12409_v11 }
 0x328   :  { %5661 = vmatpush.msrb.mxu0 %v12499_v34  ;;  %5694 = vmatpush.msrb.mxu1 %v12409_v11  ;;  %v12677_v11 = vand.u32 4294901760, %v154_v38  ;;  %v14636_v52 = vand.u32 4294901760, %v12667_v29  ;;  %v121_v34 = vld [vmem:[%s14441_s1 + $0x358] sm:$0xff]  ;;  %v5896_v30 = vsub.f32 %v12741_v27, %v14629_v51 }
 0x329   :  { %5759 = vmatpush.msrb.mxu2 %v5584_v7  ;;  %5804 = vmatpush.msrb.mxu3 %v12425_v22  ;;  %v12721_v7 = vand.u32 4294901760, %v121_v34 }
 0x32a   :  { %5664 = vmatpush.msrb.mxu0 %v12518_v4  ;;  %5696 = vmatpush.msrb.mxu1 %v12425_v22  ;;  %v12690_v22 = vand.u32 4294901760, %v143_v6  ;;  %v12708_v17 = vsub.f32 %v154_v38, %v12677_v11  ;;  %v5866_v58 = vsub.f32 %v12667_v29, %v14636_v52  ;;  %v99_v4 = vld [vmem:[%s14441_s1 + $0x2a8] sm:$0xff] }
 0x32b   :  { %5763 = vmatpush.msrb.mxu2 %v5590_v45  ;;  %5806 = vmatpush.msrb.mxu3 %v12440_v18  ;;  %v14633_v45 = vand.u32 4294901760, %v12694_v32  ;;  %v4651_v62 = vpop.f32.mrf.mxu2 }
 0x32c   :  { %5667 = vmatpush.msrb.mxu0 %v12531_v39  ;;  %5698 = vmatpush.msrb.mxu1 %v12440_v18  ;;  %v15003_v18 = vld [vmem:[#allocation8_spill] sm:$0xff]  ;;  %v14631_v44 = vand.u32 4294901760, %v12708_v17  ;;  %v5867_v19 = vand.u32 4294901760, %v5866_v58  ;;  %v12815_v58 = vand.u32 4294901760, %v55_v8 }
 0x32d   :  { %5767 = vmatpush.msrb.mxu2 %v5596_v54  ;;  %5808 = vmatpush.msrb.mxu3 %v12456_v40  ;;  %v4496_v54 = vpop.f32.mrf.mxu0  ;;  %v5878_v21 = vsub.f32 %v12694_v32, %v14633_v45 }
 0x32e   :  { %5670 = vmatpush.msrb.mxu0 %v12546_v46  ;;  %5700 = vmatpush.msrb.mxu1 %v12456_v40  ;;  %v14634_v40 = vand.u32 4294901760, %v12680_v23  ;;  %v88_v46 = vld [vmem:[%s14441_s1 + $0x250] sm:$0xff]  ;;  %v5884_v15 = vsub.f32 %v12708_v17, %v14631_v44  ;;  %v4690_v50 = vpop.f32.mrf.mxu3 }
 0x32f   :  { %5771 = vmatpush.msrb.mxu2 %v5602_v37  ;;  %5810 = vmatpush.msrb.mxu3 %v12469_v3  ;;  %v12737_v37 = vand.u32 4294901760, %v110_v42  ;;  %v5879_v57 = vand.u32 4294901760, %v5878_v21  ;;  %v363_v21 = vld [vmem:[%s14441_s1 + $0xae8] sm:$0xff] }
 0x330   :  { %5673 = vmatmul.f32.vlgmr.msrb.gmra.mxu0 %v15003_v18  ;;  %5702 = vmatpush.msrb.mxu1 %v12469_v3  ;;  %v4597_v3 = vpop.f32.mrf.mxu1  ;;  %v5872_v39 = vsub.f32 %v12680_v23, %v14634_v40  ;;  %v5885_v59 = vand.u32 4294901760, %v5884_v15  ;;  %v22_v15 = vld [vmem:[%s14441_s1 + $0x40] sm:$0xff] }
 0x331   :  { %5823 = vmatpush.msra.mxu0 %v12644_v20  ;;  %5775 = vmatpush.msrb.mxu2 %v5608_v49  ;;  %v4598_v53 = vadd.f32 %v4597_v3, %v4496_v54  ;;  %v12748_v49 = vand.u32 4294901760, %v99_v4  ;;  %v12773_v60 = vsub.f32 %v110_v42, %v12737_v37 }
 0x332   :  { %5812 = vmatpush.msrb.mxu3 %v12491_v9  ;;  %5704 = vmatpush.msrb.mxu1 %v12491_v9  ;;  %v12725_v9 = vsub.f32 %v143_v6, %v12690_v22  ;;  %v5873_v13 = vand.u32 4294901760, %v5872_v39  ;;  %v33_v39 = vld [vmem:[%s14441_s1 + $0x98] sm:$0xff] }
 0x333   :  { %5825 = vmatpush.msra.mxu0 %v12654_v24  ;;  %5779 = vmatpush.msrb.mxu2 %v5614_v1  ;;  %v12757_v1 = vsub.f32 %v121_v34, %v12721_v7  ;;  %v4652_v33 = vadd.f32 %v4651_v62, %v4598_v53  ;;  %v12778_v43 = vsub.f32 %v99_v4, %v12748_v49  ;;  %v14626_v63 = vand.u32 4294901760, %v12773_v60 }
 0x334   :  { %5814 = vmatpush.msrb.mxu3 %v12504_v31  ;;  %5781 = vmatmul.f32.vlgmr.msrb.gmra.mxu2 %v14999_v41  ;;  %v14630_v35 = vand.u32 4294901760, %v12725_v9  ;;  %v12818_v4 = vsub.f32 %v77_v61, %v12787_v36 }
 0x335   :  { %5827 = vmatpush.msra.mxu0 %v12664_v5  ;;  %5966 = vmatpush.msra.mxu2 %v12667_v29  ;;  %v14627_v25 = vand.u32 4294901760, %v12757_v1  ;;  %v4691_v38 = vadd.f32 %v4690_v50, %v4652_v33  ;;  %v14624_v6 = vand.u32 4294901760, %v12778_v43  ;;  %v4759_v34 = vpop.f32.mrf.mxu0  ;;  %v5908_v53 = vsub.f32 %v12773_v60, %v14626_v63  ;;  %v4837_v63 = vpop.f32.mrf.mxu2 }
 0x336   :  { %5706 = vmatpush.msrb.mxu1 %v12504_v31  ;;  %5816 = vmatpush.msrb.mxu3 %v12525_v28  ;;  %v12761_v31 = vand.u32 4294901760, %v88_v46  ;;  %v5890_v14 = vsub.f32 %v12725_v9, %v14630_v35  ;;  %v12847_v50 = vand.u32 4294901760, %v33_v39 }
 0x337   :  { %5818 = vmatmul.f32.vlgmr.msrb.gmra.mxu3 %v14999_v41  ;;  %5829 = vmatpush.msra.mxu0 %v12677_v11  ;;  %v5902_v3 = vsub.f32 %v12757_v1, %v14627_v25  ;;  %v4760_v61 = vadd.f32 %v4759_v34, %v4691_v38  ;;  %v352_v38 = vld [vmem:[%s14441_s1 + $0xa90] sm:$0xff]  ;;  %v5909_v34 = vand.u32 4294901760, %v5908_v53 }
 0x338   :  { %5969 = vmatpush.msra.mxu2 %v12680_v23  ;;  %6019 = vmatpush.msra.mxu3 %v12644_v20  ;;  %v12793_v55 = vsub.f32 %v88_v46, %v12761_v31  ;;  %v5891_v42 = vand.u32 4294901760, %v5890_v14  ;;  %v5897_v46 = vand.u32 4294901760, %v5896_v30  ;;  %v4796_v33 = vpop.f32.mrf.mxu1  ;;  %v12851_v14 = vsub.f32 %v55_v8, %v12815_v58  ;;  %v4938_v44 = vpop.f32.mrf.mxu3 }
 0x339   :  { %5708 = vmatpush.msrb.mxu1 %v12525_v28  ;;  %5831 = vmatpush.msra.mxu0 %v12690_v22  ;;  %v66_v28 = vld [vmem:[%s14441_s1 + $0x1a0] sm:$0xff]  ;;  %v12858_v30 = vand.u32 4294901760, %v363_v21  ;;  %v12864_v8 = vand.u32 4294901760, %v22_v15 }
 0x33a   :  { %5712 = vmatmul.f32.vlgmr.msrb.gmra.mxu1 %v15004_v47  ;;  %5972 = vmatpush.msra.mxu2 %v12694_v32  ;;  %v12802_v16 = vand.u32 4294901760, %v66_v28  ;;  %v14625_v54 = vand.u32 4294901760, %v12793_v55 }
 0x33b   :  { %5868 = vmatpush.msra.mxu1 %v5867_v19  ;;  %6021 = vmatpush.msra.mxu3 %v12654_v24  ;;  %v12830_v19 = vand.u32 4294901760, %v44_v10  ;;  %15006 = vst [vmem:[#allocation12_spill] sm:$0xff] %v12858_v30  ;;  %v12891_v25 = vsub.f32 %v363_v21, %v12858_v30  ;;  %v12899_v51 = vsub.f32 %v22_v15, %v12864_v8 }
 0x33c   :  { %5833 = vmatpush.msra.mxu0 %v12704_v12  ;;  %5975 = vmatpush.msra.mxu2 %v12708_v17  ;;  %v12833_v62 = vsub.f32 %v66_v28, %v12802_v16  ;;  %v5903_v28 = vand.u32 4294901760, %v5902_v3 }
 0x33d   :  { %5874 = vmatpush.msra.mxu1 %v5873_v13  ;;  %6023 = vmatpush.msra.mxu3 %v12664_v5  ;;  %15005 = vst [vmem:[#allocation11_spill] sm:$0xff] %v12830_v19  ;;  %v5914_v13 = vsub.f32 %v12778_v43, %v14624_v6  ;;  %v12868_v3 = vsub.f32 %v44_v10, %v12830_v19  ;;  %v14635_v10 = vand.u32 4294901760, %v12851_v14  ;;  %v15008_v47 = vand.u32 4294901760, %v12891_v25 }
 0x33e   :  { %5835 = vmatpush.msra.mxu0 %v12721_v7  ;;  %5978 = vmatpush.msra.mxu2 %v12725_v9  ;;  %v4797_v6 = vadd.f32 %v4796_v33, %v4760_v61  ;;  %v12881_v61 = vsub.f32 %v33_v39, %v12847_v50  ;;  %v12883_v33 = vand.u32 4294901760, %v352_v38 }
 0x33f   :  { %5880 = vmatpush.msra.mxu1 %v5879_v57  ;;  %6025 = vmatpush.msra.mxu3 %v12677_v11  ;;  %v14628_v57 = vand.u32 4294901760, %v12818_v4  ;;  %v5938_v15 = vsub.f32 %v12851_v14, %v14635_v10 }
 0x340   :  { %5837 = vmatpush.msra.mxu0 %v12737_v37  ;;  %5981 = vmatpush.msra.mxu2 %v12741_v27  ;;  %v4838_v21 = vadd.f32 %v4837_v63, %v4797_v6  ;;  %v12916_v40 = vsub.f32 %v352_v38, %v12883_v33  ;;  %v15007_v52 = vand.u32 4294901760, %v12881_v61 }
 0x341   :  { %5886 = vmatpush.msra.mxu1 %v5885_v59  ;;  %6027 = vmatpush.msra.mxu3 %v12690_v22  ;;  %v5920_v59 = vsub.f32 %v12793_v55, %v14625_v54  ;;  %v5915_v54 = vand.u32 4294901760, %v5914_v13  ;;  %v5926_v53 = vsub.f32 %v12818_v4, %v14628_v57  ;;  %v330_v13 = vld [vmem:[%s14441_s1 + $0x9e0] sm:$0xff]  ;;  %v14637_v57 = vand.u32 4294901760, %v12868_v3 }
 0x342   :  { %5839 = vmatpush.msra.mxu0 %v12748_v49  ;;  %5984 = vmatpush.msra.mxu2 %v12757_v1  ;;  %v4939_v63 = vadd.f32 %v4938_v44, %v4838_v21  ;;  %v15009_v44 = vand.u32 4294901760, %v12899_v51 }
 0x343   :  { %5892 = vmatpush.msra.mxu1 %v5891_v42  ;;  %6029 = vmatpush.msra.mxu3 %v12704_v12  ;;  %v14632_v42 = vand.u32 4294901760, %v12833_v62  ;;  %v5944_v38 = vsub.f32 %v12868_v3, %v14637_v57  ;;  %v5939_v57 = vand.u32 4294901760, %v5938_v15 }
 0x344   :  { %5841 = vmatpush.msra.mxu0 %v12761_v31  ;;  %5987 = vmatpush.msra.mxu2 %v12773_v60  ;;  %v5956_v41 = vsub.f32 %v12899_v51, %v15009_v44 }
 0x345   :  { %5898 = vmatpush.msra.mxu1 %v5897_v46  ;;  %6031 = vmatpush.msra.mxu3 %v12721_v7  ;;  %v341_v46 = vld [vmem:[%s14441_s1 + $0xa38] sm:$0xff]  ;;  %v5932_v39 = vsub.f32 %v12833_v62, %v14632_v42  ;;  %v5927_v42 = vand.u32 4294901760, %v5926_v53  ;;  %v5945_v15 = vand.u32 4294901760, %v5944_v38  ;;  %v275_v38 = vld [vmem:[%s14441_s1 + $0x828] sm:$0xff] }
 0x346   :  { %5843 = vmatpush.msra.mxu0 %v12787_v36  ;;  %5990 = vmatpush.msra.mxu2 %v12778_v43  ;;  %v12901_v35 = vand.u32 4294901760, %v341_v46 }
 0x347   :  { %5904 = vmatpush.msra.mxu1 %v5903_v28  ;;  %6033 = vmatpush.msra.mxu3 %v12737_v37  ;;  %v5921_v28 = vand.u32 4294901760, %v5920_v59  ;;  %v319_v59 = vld [vmem:[%s14441_s1 + $0x988] sm:$0xff]  ;;  %v5933_v53 = vand.u32 4294901760, %v5932_v39  ;;  %v4992_v10 = vpop.f32.mrf.mxu0  ;;  %v297_v39 = vld [vmem:[%s14441_s1 + $0x8d8] sm:$0xff] }
 0x348   :  { %5845 = vmatpush.msra.mxu0 %v12802_v16  ;;  %5993 = vmatpush.msra.mxu2 %v12793_v55  ;;  %v12921_v6 = vand.u32 4294901760, %v319_v59  ;;  %v12932_v45 = vsub.f32 %v341_v46, %v12901_v35  ;;  %v5950_v46 = vsub.f32 %v12881_v61, %v15007_v52  ;;  %v286_v52 = vld [vmem:[%s14441_s1 + $0x880] sm:$0xff] }
 0x349   :  { %5910 = vmatpush.msra.mxu1 %v5909_v34  ;;  %6035 = vmatpush.msra.mxu3 %v12748_v49  ;;  %v12908_v34 = vand.u32 4294901760, %v330_v13 }
 0x34a   :  { %5847 = vmatpush.msra.mxu0 %v12815_v58  ;;  %5996 = vmatpush.msra.mxu2 %v12818_v4  ;;  %v12955_v18 = vsub.f32 %v319_v59, %v12921_v6  ;;  %v15010_v59 = vand.u32 4294901760, %v12667_v29  ;;  %v5951_v44 = vand.u32 4294901760, %v5950_v46  ;;  %v264_v46 = vld [vmem:[%s14441_s1 + $0x7d0] sm:$0xff] }
 0x34b   :  { %5916 = vmatpush.msra.mxu1 %v5915_v54  ;;  %6037 = vmatpush.msra.mxu3 %v12761_v31  ;;  %v308_v54 = vld [vmem:[%s14441_s1 + $0x930] sm:$0xff] }
 0x34c   :  { %5849 = vmatpush.msra.mxu0 %v12830_v19  ;;  %5999 = vmatpush.msra.mxu2 %v12833_v62  ;;  %v12947_v21 = vand.u32 4294901760, %v308_v54 }
 0x34d   :  { %5922 = vmatpush.msra.mxu1 %v5921_v28  ;;  %6039 = vmatpush.msra.mxu3 %v12787_v36  ;;  %v12937_v28 = vsub.f32 %v330_v13, %v12908_v34  ;;  %v4993_v13 = vadd.f32 %v4992_v10, %v4939_v63  ;;  %v15011_v63 = vand.u32 4294901760, %v12916_v40 }
 0x34e   :  { %5851 = vmatpush.msra.mxu0 %v12847_v50  ;;  %6002 = vmatpush.msra.mxu2 %v12851_v14  ;;  %v12979_v29 = vsub.f32 %v308_v54, %v12947_v21  ;;  %v5957_v54 = vand.u32 4294901760, %v5956_v41  ;;  %v253_v41 = vld [vmem:[%s14441_s1 + $0x778] sm:$0xff] }
 0x34f   :  { %5928 = vmatpush.msra.mxu1 %v5927_v42  ;;  %6041 = vmatpush.msra.mxu3 %v12802_v16  ;;  %v6207_v42 = vsub.f32 %v12891_v25, %v15008_v47  ;;  %v12965_v47 = vand.u32 4294901760, %v297_v39  ;;  %v6213_v0 = vsub.f32 %v12916_v40, %v15011_v63  ;;  %v15013_v63 = vand.u32 4294901760, %v12932_v45 }
 0x350   :  { %5853 = vmatpush.msra.mxu0 %v12864_v8  ;;  %6005 = vmatpush.msra.mxu2 %v12868_v3 }
 0x351   :  { %5934 = vmatpush.msra.mxu1 %v5933_v53  ;;  %6043 = vmatpush.msra.mxu3 %v12815_v58  ;;  %v5031_v10 = vpop.f32.mrf.mxu1  ;;  %v5100_v56 = vpop.f32.mrf.mxu2 }
 0x352   :  { %6060 = vmatpush.msrb.mxu0 %v15010_v59  ;;  %6008 = vmatpush.msra.mxu2 %v12881_v61  ;;  %v5032_v48 = vadd.f32 %v5031_v10, %v4993_v13  ;;  %v12981_v59 = vand.u32 4294901760, %v286_v52  ;;  %v15012_v13 = vand.u32 4294901760, %v12680_v23  ;;  %v6208_v10 = vand.u32 4294901760, %v6207_v42 }
 0x353   :  { %5940 = vmatpush.msra.mxu1 %v5939_v57  ;;  %6045 = vmatpush.msra.mxu3 %v12830_v19  ;;  %v6219_v23 = vsub.f32 %v12932_v45, %v15013_v63  ;;  %v12997_v42 = vand.u32 4294901760, %v275_v38  ;;  %v6236_v63 = vand.u32 4294901760, %v12979_v29 }
 0x354   :  { %6064 = vmatpush.msrb.mxu0 %v15012_v13  ;;  %6011 = vmatpush.msra.mxu2 %v12899_v51  ;;  %v5101_v53 = vadd.f32 %v5100_v56, %v5032_v48  ;;  %v5137_v57 = vpop.f32.mrf.mxu3  ;;  %v12995_v13 = vsub.f32 %v297_v39, %v12965_v47  ;;  %v15014_v48 = vand.u32 4294901760, %v12694_v32  ;;  %v15015_v56 = vand.u32 4294901760, %v12937_v28 }
 0x355   :  { %5946 = vmatpush.msra.mxu1 %v5945_v15  ;;  %6047 = vmatpush.msra.mxu3 %v12847_v50  ;;  %v6214_v39 = vand.u32 4294901760, %v6213_v0  ;;  %v13011_v32 = vsub.f32 %v286_v52, %v12981_v59  ;;  %v242_v0 = vld [vmem:[%s14441_s1 + $0x720] sm:$0xff]  ;;  %v6220_v52 = vand.u32 4294901760, %v6219_v23 }
 0x356   :  { %6068 = vmatpush.msrb.mxu0 %v15014_v48  ;;  %6164 = vmatpush.msrb.mxu2 %v12858_v30  ;;  %v6225_v15 = vsub.f32 %v12937_v28, %v15015_v56  ;;  %v5138_v19 = vadd.f32 %v5137_v57, %v5101_v53  ;;  %v13013_v48 = vand.u32 4294901760, %v264_v46  ;;  %v15016_v30 = vand.u32 4294901760, %v12708_v17 }
 0x357   :  { %5952 = vmatpush.msra.mxu1 %v5951_v44  ;;  %6049 = vmatpush.msra.mxu3 %v12864_v8  ;;  %v15017_v53 = vand.u32 4294901760, %v12955_v18  ;;  %v6242_v57 = vand.u32 4294901760, %v12995_v13  ;;  %v13026_v56 = vsub.f32 %v275_v38, %v12997_v42  ;;  %v13028_v17 = vand.u32 4294901760, %v253_v41 }
 0x358   :  { %6072 = vmatpush.msrb.mxu0 %v15016_v30  ;;  %6166 = vmatpush.msrb.mxu2 %v12883_v33  ;;  %7874 = vst [vmem:[#allocation2 + $0x30] sm:$0xff] %v5138_v19  ;;  %v15018_v19 = vand.u32 4294901760, %v12725_v9  ;;  %v6226_v30 = vand.u32 4294901760, %v6225_v15  ;;  %v6237_v38 = vsub.f32 %v12979_v29, %v6236_v63  ;;  %v13044_v9 = vand.u32 4294901760, %v242_v0 }
 0x359   :  { %v6231_v44 = vsub.f32 %v12955_v18, %v15017_v53  ;;  %6209 = vmatpush.msrb.mxu3 %v6208_v10  ;;  %5958 = vmatpush.msra.mxu1 %v5957_v54  ;;  %v231_v53 = vld [vmem:[%s14441_s1 + $0x6c8] sm:$0xff]  ;;  %v14643_v10 = vand.u32 4294901760, %v13011_v32  ;;  %v13042_v54 = vsub.f32 %v264_v46, %v13013_v48  ;;  %v6243_v15 = vsub.f32 %v12995_v13, %v6242_v57 }
 0x35a   :  { %6076 = vmatpush.msrb.mxu0 %v15018_v19  ;;  %6168 = vmatpush.msrb.mxu2 %v12901_v35  ;;  %v13055_v46 = vsub.f32 %v253_v41, %v13028_v17  ;;  %v13057_v19 = vand.u32 4294901760, %v231_v53 }
 0x35b   :  { %6127 = vmatpush.msrb.mxu1 %v12644_v20  ;;  %6215 = vmatpush.msrb.mxu3 %v6214_v39  ;;  %v15019_v20 = vand.u32 4294901760, %v12741_v27  ;;  %v6232_v23 = vand.u32 4294901760, %v6231_v44  ;;  %v6254_v39 = vand.u32 4294901760, %v13026_v56  ;;  %v220_v27 = vld [vmem:[%s14441_s1 + $0x670] sm:$0xff]  ;;  %v6238_v44 = vand.u32 4294901760, %v6237_v38 }
 0x35c   :  { %6170 = vmatpush.msrb.mxu2 %v12908_v34  ;;  %v6249_v41 = vsub.f32 %v13011_v32, %v14643_v10  ;;  %v6266_v38 = vand.u32 4294901760, %v13055_v46  ;;  %v13087_v10 = vsub.f32 %v231_v53, %v13057_v19  ;;  %5859 = vmatmul.f32.vlgmr.msra.gmra.mxu0 %v8434_v26 }
 0x35d   :  { %6080 = vmatpush.msrb.mxu0 %v15019_v20  ;;  %6129 = vmatpush.msrb.mxu1 %v12654_v24  ;;  %v15020_v24 = vand.u32 4294901760, %v12757_v1  ;;  %v13071_v20 = vsub.f32 %v242_v0, %v13044_v9  ;;  %v209_v1 = vld [vmem:[%s14441_s1 + $0x618] sm:$0xff]  ;;  %v6255_v0 = vsub.f32 %v13026_v56, %v6254_v39 }
 0x35e   :  { %6221 = vmatpush.msrb.mxu3 %v6220_v52  ;;  %6172 = vmatpush.msrb.mxu2 %v12921_v6  ;;  %v14644_v52 = vand.u32 4294901760, %v13042_v54 }
 0x35f   :  { %6084 = vmatpush.msrb.mxu0 %v15020_v24  ;;  %6131 = vmatpush.msrb.mxu1 %v12664_v5  ;;  %v15021_v24 = vand.u32 4294901760, %v12773_v60  ;;  %v13079_v5 = vand.u32 4294901760, %v220_v27  ;;  %v15022_v60 = vand.u32 4294901760, %v12778_v43  ;;  %v15023_v43 = vand.u32 4294901760, %v12793_v55 }
 0x360   :  { %6227 = vmatpush.msrb.mxu3 %v6226_v30  ;;  %6174 = vmatpush.msrb.mxu2 %v12947_v21  ;;  %v6244_v30 = vand.u32 4294901760, %v6243_v15  ;;  %v6250_v15 = vand.u32 4294901760, %v6249_v41  ;;  %v6261_v53 = vsub.f32 %v13042_v54, %v14644_v52  ;;  %v6278_v41 = vand.u32 4294901760, %v13087_v10 }
 0x361   :  { %6088 = vmatpush.msrb.mxu0 %v15021_v24  ;;  %6133 = vmatpush.msrb.mxu1 %v12677_v11  ;;  %v13092_v11 = vand.u32 4294901760, %v209_v1  ;;  %v6272_v24 = vand.u32 4294901760, %v13071_v20  ;;  %v15024_v55 = vand.u32 4294901760, %v12818_v4 }
 0x362   :  { %6233 = vmatpush.msrb.mxu3 %v6232_v23  ;;  %v198_v23 = vld [vmem:[%s14441_s1 + $0x5c0] sm:$0xff]  ;;  %6176 = vmatpush.msrb.mxu2 %v12965_v47 }
 0x363   :  { %6092 = vmatpush.msrb.mxu0 %v15022_v60  ;;  %6135 = vmatpush.msrb.mxu1 %v12690_v22  ;;  %v13106_v22 = vsub.f32 %v220_v27, %v13079_v5  ;;  %v6256_v60 = vand.u32 4294901760, %v6255_v0  ;;  %v13113_v52 = vand.u32 4294901760, %v198_v23  ;;  %v6262_v27 = vand.u32 4294901760, %v6261_v53 }
 0x364   :  { %6239 = vmatpush.msrb.mxu3 %v6238_v44  ;;  %6178 = vmatpush.msrb.mxu2 %v12981_v59  ;;  %v6267_v44 = vsub.f32 %v13055_v46, %v6266_v38  ;;  %v15025_v0 = vand.u32 4294901760, %v12833_v62  ;;  %v15026_v53 = vand.u32 4294901760, %v12851_v14 }
 0x365   :  { %6096 = vmatpush.msrb.mxu0 %v15023_v43  ;;  %6137 = vmatpush.msrb.mxu1 %v12704_v12  ;;  %v13119_v12 = vsub.f32 %v209_v1, %v13092_v11  ;;  %v6284_v4 = vand.u32 4294901760, %v13106_v22  ;;  %v6279_v1 = vsub.f32 %v13087_v10, %v6278_v41  ;;  %v15027_v43 = vand.u32 4294901760, %v12868_v3 }
 0x366   :  { %6245 = vmatpush.msrb.mxu3 %v6244_v30  ;;  %6180 = vmatpush.msrb.mxu2 %v12997_v42  ;;  %v6273_v30 = vsub.f32 %v13071_v20, %v6272_v24 }
 0x367   :  { %6100 = vmatpush.msrb.mxu0 %v15024_v55  ;;  %6139 = vmatpush.msrb.mxu1 %v12721_v7  ;;  %v6268_v7 = vand.u32 4294901760, %v6267_v44  ;;  %v6280_v14 = vand.u32 4294901760, %v6279_v1  ;;  %v15031_v55 = vld [vmem:[#allocation6_spill] sm:$0xff] }
 0x368   :  { %6251 = vmatpush.msrb.mxu3 %v6250_v15  ;;  %6182 = vmatpush.msrb.mxu2 %v13013_v48  ;;  %v13134_v15 = vsub.f32 %v198_v23, %v13113_v52  ;;  %v6274_v62 = vand.u32 4294901760, %v6273_v30  ;;  %v6285_v23 = vsub.f32 %v13106_v22, %v6284_v4  ;;  %v15034_v30 = vand.u32 4294901760, %v12916_v40 }
 0x369   :  { %6104 = vmatpush.msrb.mxu0 %v15025_v0  ;;  %6141 = vmatpush.msrb.mxu1 %v12737_v37  ;;  %v6290_v37 = vand.u32 4294901760, %v13119_v12  ;;  %v15035_v0 = vld [vmem:[#allocation12_spill] sm:$0xff] }
 0x36a   :  { %6257 = vmatpush.msrb.mxu3 %v6256_v60  ;;  %6184 = vmatpush.msrb.mxu2 %v13028_v17  ;;  %v15028_v60 = vand.u32 4294901760, %v12881_v61  ;;  %v6286_v44 = vand.u32 4294901760, %v6285_v23 }
 0x36b   :  { %6108 = vmatpush.msrb.mxu0 %v15026_v53  ;;  %6143 = vmatpush.msrb.mxu1 %v12748_v49  ;;  %v6296_v49 = vand.u32 4294901760, %v13134_v15  ;;  %v6291_v3 = vsub.f32 %v13119_v12, %v6290_v37 }
 0x36c   :  { %6263 = vmatpush.msrb.mxu3 %v6262_v27  ;;  %6186 = vmatpush.msrb.mxu2 %v13044_v9  ;;  %v15033_v27 = vld [vmem:[#allocation5_spill] sm:$0xff] }
 0x36d   :  { %6112 = vmatpush.msrb.mxu0 %v15027_v43  ;;  %6145 = vmatpush.msrb.mxu1 %v12761_v31  ;;  %v15029_v31 = vand.u32 4294901760, %v12899_v51  ;;  %v6292_v61 = vand.u32 4294901760, %v6291_v3  ;;  %v15030_v51 = vld [vmem:[#allocation11_spill] sm:$0xff] }
 0x36e   :  { %6269 = vmatpush.msrb.mxu3 %v6268_v7  ;;  %6188 = vmatpush.msrb.mxu2 %v13057_v19 }
 0x36f   :  { %6116 = vmatpush.msrb.mxu0 %v15028_v60  ;;  %6147 = vmatpush.msrb.mxu1 %v12787_v36  ;;  %v6297_v36 = vsub.f32 %v13134_v15, %v6296_v49  ;;  %v78_v60 = vld [vmem:[%s14441_s1 + $0x200] sm:$0xff] }
 0x370   :  { %6275 = vmatpush.msrb.mxu3 %v6274_v62  ;;  %6190 = vmatpush.msrb.mxu2 %v13079_v5 }
 0x371   :  { %6120 = vmatpush.msrb.mxu0 %v15029_v31  ;;  %6149 = vmatpush.msrb.mxu1 %v12802_v16  ;;  %v6298_v16 = vand.u32 4294901760, %v6297_v36 }
 0x372   :  { %6281 = vmatpush.msrb.mxu3 %v6280_v14  ;;  %6192 = vmatpush.msrb.mxu2 %v13092_v11 }
 0x373   :  { %6151 = vmatpush.msrb.mxu1 %v12815_v58  ;;  %6307 = vmatpush.msra.mxu0 %v12891_v25  ;;  %v15032_v58 = vand.u32 4294901760, %v12891_v25  ;;  %v15036_v25 = vand.u32 4294901760, %v12932_v45 }
 0x374   :  { %6287 = vmatpush.msrb.mxu3 %v6286_v44  ;;  %6014 = vmatmul.f32.vlgmr.msra.gmra.mxu2 %v8366_v2 }
 0x375   :  { %6310 = vmatpush.msra.mxu0 %v12916_v40  ;;  %6153 = vmatpush.msrb.mxu1 %v15030_v51  ;;  %v15038_v40 = vand.u32 4294901760, %v12937_v28 }
 0x376   :  { %6194 = vmatpush.msrb.mxu2 %v13113_v52  ;;  %6293 = vmatpush.msrb.mxu3 %v6292_v61  ;;  %v15044_v61 = vld [vmem:[#allocation9_spill] sm:$0xff] }
 0x377   :  { %6053 = vmatmul.f32.vlgmr.msra.gmra.mxu3 %v15031_v55  ;;  %6313 = vmatpush.msra.mxu0 %v12932_v45  ;;  %v15040_v45 = vand.u32 4294901760, %v12955_v18 }
 0x378   :  { %6401 = vmatpush.msra.mxu2 %v15032_v58  ;;  %6155 = vmatpush.msrb.mxu1 %v12847_v50  ;;  %v15037_v50 = vld [vmem:[#allocation10_spill] sm:$0xff] }
 0x379   :  { %6299 = vmatpush.msrb.mxu3 %v6298_v16  ;;  %5960 = vmatmul.f32.vlgmr.msra.gmra.mxu1 %v15033_v27 }
 0x37a   :  { %6316 = vmatpush.msra.mxu0 %v12937_v28  ;;  %6405 = vmatpush.msra.mxu2 %v15034_v30  ;;  %v166_v28 = vld [vmem:[%s14441_s1 + $0x4c0] sm:$0xff] }
 0x37b   :  { %6468 = vmatpush.msra.mxu3 %v15035_v0  ;;  %6157 = vmatpush.msrb.mxu1 %v12864_v8  ;;  %v15039_v8 = vld [vmem:[#allocation7_spill] sm:$0xff] }
 0x37c   :  { %6319 = vmatpush.msra.mxu0 %v12955_v18  ;;  %6409 = vmatpush.msra.mxu2 %v15036_v25  ;;  %v15041_v18 = vand.u32 4294901760, %v13011_v32  ;;  %v13375_v25 = vand.u32 4294901760, %v78_v60 }
 0x37d   :  { %6360 = vmatpush.msra.mxu1 %v15035_v0  ;;  %6470 = vmatpush.msra.mxu3 %v12883_v33 }
 0x37e   :  { %6200 = vmatmul.f32.vlgmr.msrb.gmra.mxu2 %v15037_v50  ;;  %6322 = vmatpush.msra.mxu0 %v12979_v29  ;;  %v13252_v29 = vand.u32 4294901760, %v166_v28 }
 0x37f   :  { %6362 = vmatpush.msra.mxu1 %v12883_v33  ;;  %6413 = vmatpush.msra.mxu2 %v15038_v40  ;;  %v177_v33 = vld [vmem:[%s14441_s1 + $0x518] sm:$0xff] }
 0x380   :  { %6472 = vmatpush.msra.mxu3 %v12901_v35  ;;  %6122 = vmatmul.f32.vlgmr.msrb.gmra.mxu0 %v15033_v27 }
 0x381   :  { %6301 = vmatmul.f32.vlgmr.msrb.gmra.mxu3 %v15039_v8  ;;  %6325 = vmatpush.msra.mxu0 %v12995_v13  ;;  %v144_v13 = vld [vmem:[%s14441_s1 + $0x410] sm:$0xff] }
 0x382   :  { %6364 = vmatpush.msra.mxu1 %v12901_v35  ;;  %6417 = vmatpush.msra.mxu2 %v15040_v45  ;;  %v188_v35 = vld [vmem:[%s14441_s1 + $0x570] sm:$0xff] }
 0x383   :  { %6474 = vmatpush.msra.mxu3 %v12908_v34  ;;  %6159 = vmatmul.f32.vlgmr.msrb.gmra.mxu1 %v15033_v27 }
 0x384   :  { %6328 = vmatpush.msra.mxu0 %v13011_v32  ;;  %6366 = vmatpush.msra.mxu1 %v12908_v34  ;;  %v15042_v34 = vand.u32 4294901760, %v13042_v54  ;;  %v133_v32 = vld [vmem:[%s14441_s1 + $0x3b8] sm:$0xff] }
 0x385   :  { %6421 = vmatpush.msra.mxu2 %v6236_v63  ;;  %6476 = vmatpush.msra.mxu3 %v12921_v6 }
 0x386   :  { %6331 = vmatpush.msra.mxu0 %v13026_v56  ;;  %6368 = vmatpush.msra.mxu1 %v12921_v6  ;;  %v13232_v6 = vand.u32 4294901760, %v188_v35  ;;  %v13282_v56 = vsub.f32 %v166_v28, %v13252_v29 }
 0x387   :  { %6425 = vmatpush.msra.mxu2 %v6242_v57  ;;  %6478 = vmatpush.msra.mxu3 %v12947_v21 }
 0x388   :  { %6334 = vmatpush.msra.mxu0 %v13042_v54  ;;  %6370 = vmatpush.msra.mxu1 %v12947_v21  ;;  %v13242_v21 = vand.u32 4294901760, %v177_v33  ;;  %v13292_v54 = vand.u32 4294901760, %v133_v32 }
 0x389   :  { %6429 = vmatpush.msra.mxu2 %v15041_v18  ;;  %6480 = vmatpush.msra.mxu3 %v12965_v47  ;;  %v56_v18 = vld [vmem:[%s14441_s1 + $0x150] sm:$0xff] }
 0x38a   :  { %6337 = vmatpush.msra.mxu0 %v13055_v46  ;;  %6372 = vmatpush.msra.mxu1 %v12965_v47  ;;  %v155_v47 = vld [vmem:[%s14441_s1 + $0x468] sm:$0xff]  ;;  %v13268_v63 = vsub.f32 %v177_v33, %v13242_v21  ;;  %v13329_v1 = vsub.f32 %v133_v32, %v13292_v54  ;;  %v45_v32 = vld [vmem:[%s14441_s1 + $0xf8] sm:$0xff] }
 0x38b   :  { %6433 = vmatpush.msra.mxu2 %v6254_v39  ;;  %6482 = vmatpush.msra.mxu3 %v12981_v59  ;;  %v111_v46 = vld [vmem:[%s14441_s1 + $0x308] sm:$0xff] }
 0x38c   :  { %6340 = vmatpush.msra.mxu0 %v13071_v20  ;;  %6374 = vmatpush.msra.mxu1 %v12981_v59  ;;  %v13255_v59 = vsub.f32 %v188_v35, %v13232_v6  ;;  %v14650_v44 = vand.u32 4294901760, %v13329_v1 }
 0x38d   :  { %6437 = vmatpush.msra.mxu2 %v15042_v34  ;;  %6484 = vmatpush.msra.mxu3 %v12997_v42 }
 0x38e   :  { %6343 = vmatpush.msra.mxu0 %v13087_v10  ;;  %6376 = vmatpush.msra.mxu1 %v12997_v42  ;;  %v13265_v42 = vand.u32 4294901760, %v155_v47  ;;  %v14657_v57 = vand.u32 4294901760, %v13255_v59  ;;  %v122_v10 = vld [vmem:[%s14441_s1 + $0x360] sm:$0xff]  ;;  %v6578_v33 = vsub.f32 %v13329_v1, %v14650_v44 }
 0x38f   :  { %6441 = vmatpush.msra.mxu2 %v6266_v38  ;;  %6486 = vmatpush.msra.mxu3 %v13013_v48  ;;  %v13309_v38 = vand.u32 4294901760, %v122_v10 }
 0x390   :  { %6346 = vmatpush.msra.mxu0 %v13106_v22  ;;  %6378 = vmatpush.msra.mxu1 %v13013_v48  ;;  %v13278_v48 = vand.u32 4294901760, %v144_v13  ;;  %v13296_v39 = vsub.f32 %v155_v47, %v13265_v42  ;;  %v6548_v20 = vsub.f32 %v13255_v59, %v14657_v57  ;;  %v100_v22 = vld [vmem:[%s14441_s1 + $0x2b0] sm:$0xff] }
 0x391   :  { %6445 = vmatpush.msra.mxu2 %v6272_v24  ;;  %6488 = vmatpush.msra.mxu3 %v13028_v17  ;;  %v14654_v24 = vand.u32 4294901760, %v13282_v56  ;;  %v5333_v43 = vpop.f32.mrf.mxu2 }
 0x392   :  { %6349 = vmatpush.msra.mxu0 %v13119_v12  ;;  %6380 = vmatpush.msra.mxu1 %v13028_v17  ;;  %v15043_v17 = vld [vmem:[#allocation8_spill] sm:$0xff]  ;;  %v14652_v7 = vand.u32 4294901760, %v13296_v39  ;;  %v6549_v62 = vand.u32 4294901760, %v6548_v20  ;;  %v13403_v20 = vand.u32 4294901760, %v56_v18 }
 0x393   :  { %6449 = vmatpush.msra.mxu2 %v6278_v41  ;;  %6490 = vmatpush.msra.mxu3 %v13044_v9  ;;  %v5178_v41 = vpop.f32.mrf.mxu0  ;;  %v6560_v23 = vsub.f32 %v13282_v56, %v14654_v24 }
 0x394   :  { %6352 = vmatpush.msra.mxu0 %v13134_v15  ;;  %6382 = vmatpush.msra.mxu1 %v13044_v9  ;;  %v14655_v9 = vand.u32 4294901760, %v13268_v63  ;;  %v89_v15 = vld [vmem:[%s14441_s1 + $0x258] sm:$0xff]  ;;  %v6566_v31 = vsub.f32 %v13296_v39, %v14652_v7  ;;  %v5372_v58 = vpop.f32.mrf.mxu3 }
 0x395   :  { %6453 = vmatpush.msra.mxu2 %v6284_v4  ;;  %6492 = vmatpush.msra.mxu3 %v13057_v19  ;;  %v13325_v4 = vand.u32 4294901760, %v111_v46  ;;  %v6561_v30 = vand.u32 4294901760, %v6560_v23  ;;  %v364_v23 = vld [vmem:[%s14441_s1 + $0xaf0] sm:$0xff] }
 0x396   :  { %6355 = vmatmul.f32.vlgmr.msra.gmra.mxu0 %v15043_v17  ;;  %6384 = vmatpush.msra.mxu1 %v13057_v19  ;;  %v5279_v19 = vpop.f32.mrf.mxu1  ;;  %v6554_v12 = vsub.f32 %v13268_v63, %v14655_v9  ;;  %v6567_v35 = vand.u32 4294901760, %v6566_v31  ;;  %v23_v31 = vld [vmem:[%s14441_s1 + $0x48] sm:$0xff] }
 0x397   :  { %6505 = vmatpush.msrb.mxu0 %v13232_v6  ;;  %6457 = vmatpush.msra.mxu2 %v6290_v37  ;;  %v5280_v53 = vadd.f32 %v5279_v19, %v5178_v41  ;;  %v13336_v37 = vand.u32 4294901760, %v100_v22  ;;  %v13361_v36 = vsub.f32 %v111_v46, %v13325_v4 }
 0x398   :  { %6494 = vmatpush.msra.mxu3 %v13079_v5  ;;  %6386 = vmatpush.msra.mxu1 %v13079_v5  ;;  %v13313_v5 = vsub.f32 %v144_v13, %v13278_v48  ;;  %v6555_v3 = vand.u32 4294901760, %v6554_v12  ;;  %v34_v12 = vld [vmem:[%s14441_s1 + $0xa0] sm:$0xff] }
 0x399   :  { %6507 = vmatpush.msrb.mxu0 %v13242_v21  ;;  %6461 = vmatpush.msra.mxu2 %v6296_v49  ;;  %v13345_v49 = vsub.f32 %v122_v10, %v13309_v38  ;;  %v5334_v51 = vadd.f32 %v5333_v43, %v5280_v53  ;;  %v13366_v16 = vsub.f32 %v100_v22, %v13336_v37  ;;  %v14647_v28 = vand.u32 4294901760, %v13361_v36 }
 0x39a   :  { %6496 = vmatpush.msra.mxu3 %v13092_v11  ;;  %6463 = vmatmul.f32.vlgmr.msra.gmra.mxu2 %v15039_v8  ;;  %v14651_v14 = vand.u32 4294901760, %v13313_v5  ;;  %v13406_v22 = vsub.f32 %v78_v60, %v13375_v25 }
 0x39b   :  { %6509 = vmatpush.msrb.mxu0 %v13252_v29  ;;  %6648 = vmatpush.msrb.mxu2 %v13255_v59  ;;  %v14648_v40 = vand.u32 4294901760, %v13345_v49  ;;  %v5373_v47 = vadd.f32 %v5372_v58, %v5334_v51  ;;  %v14645_v13 = vand.u32 4294901760, %v13366_v16  ;;  %v5441_v10 = vpop.f32.mrf.mxu0  ;;  %v6590_v53 = vsub.f32 %v13361_v36, %v14647_v28  ;;  %v5519_v28 = vpop.f32.mrf.mxu2 }
 0x39c   :  { %6388 = vmatpush.msra.mxu1 %v13092_v11  ;;  %6498 = vmatpush.msra.mxu3 %v13113_v52  ;;  %v13349_v11 = vand.u32 4294901760, %v89_v15  ;;  %v6572_v0 = vsub.f32 %v13313_v5, %v14651_v14  ;;  %v13435_v58 = vand.u32 4294901760, %v34_v12 }
 0x39d   :  { %6500 = vmatmul.f32.vlgmr.msra.gmra.mxu3 %v15039_v8  ;;  %6511 = vmatpush.msrb.mxu0 %v13265_v42  ;;  %v6584_v19 = vsub.f32 %v13345_v49, %v14648_v40  ;;  %v5442_v60 = vadd.f32 %v5441_v10, %v5373_v47  ;;  %v353_v47 = vld [vmem:[%s14441_s1 + $0xa98] sm:$0xff]  ;;  %v6591_v10 = vand.u32 4294901760, %v6590_v53 }
 0x39e   :  { %6651 = vmatpush.msrb.mxu2 %v13268_v63  ;;  %6701 = vmatpush.msrb.mxu3 %v13232_v6  ;;  %v13381_v45 = vsub.f32 %v89_v15, %v13349_v11  ;;  %v6573_v46 = vand.u32 4294901760, %v6572_v0  ;;  %v6579_v15 = vand.u32 4294901760, %v6578_v33  ;;  %v5478_v51 = vpop.f32.mrf.mxu1  ;;  %v13439_v0 = vsub.f32 %v56_v18, %v13403_v20  ;;  %v5620_v7 = vpop.f32.mrf.mxu3 }
 0x39f   :  { %6390 = vmatpush.msra.mxu1 %v13113_v52  ;;  %6513 = vmatpush.msrb.mxu0 %v13278_v48  ;;  %v67_v52 = vld [vmem:[%s14441_s1 + $0x1a8] sm:$0xff]  ;;  %v13446_v33 = vand.u32 4294901760, %v364_v23  ;;  %v13452_v18 = vand.u32 4294901760, %v23_v31 }
 0x3a0   :  { %6394 = vmatmul.f32.vlgmr.msra.gmra.mxu1 %v15044_v61  ;;  %6654 = vmatpush.msrb.mxu2 %v13282_v56  ;;  %v13390_v34 = vand.u32 4294901760, %v67_v52  ;;  %v14646_v41 = vand.u32 4294901760, %v13381_v45 }
 0x3a1   :  { %6550 = vmatpush.msrb.mxu1 %v6549_v62  ;;  %6703 = vmatpush.msrb.mxu3 %v13242_v21  ;;  %v13418_v62 = vand.u32 4294901760, %v45_v32  ;;  %15046 = vst [vmem:[#allocation12_spill] sm:$0xff] %v13446_v33  ;;  %v13479_v40 = vsub.f32 %v364_v23, %v13446_v33  ;;  %v13487_v44 = vsub.f32 %v23_v31, %v13452_v18 }
 0x3a2   :  { %6515 = vmatpush.msrb.mxu0 %v13292_v54  ;;  %6657 = vmatpush.msrb.mxu2 %v13296_v39  ;;  %v13421_v43 = vsub.f32 %v67_v52, %v13390_v34  ;;  %v6585_v52 = vand.u32 4294901760, %v6584_v19 }
 0x3a3   :  { %6556 = vmatpush.msrb.mxu1 %v6555_v3  ;;  %6705 = vmatpush.msrb.mxu3 %v13252_v29  ;;  %15045 = vst [vmem:[#allocation11_spill] sm:$0xff] %v13418_v62  ;;  %v6596_v3 = vsub.f32 %v13366_v16, %v14645_v13  ;;  %v13456_v19 = vsub.f32 %v45_v32, %v13418_v62  ;;  %v14656_v32 = vand.u32 4294901760, %v13439_v0  ;;  %v15048_v61 = vand.u32 4294901760, %v13479_v40 }
 0x3a4   :  { %6517 = vmatpush.msrb.mxu0 %v13309_v38  ;;  %6660 = vmatpush.msrb.mxu2 %v13313_v5  ;;  %v5479_v13 = vadd.f32 %v5478_v51, %v5442_v60  ;;  %v13469_v60 = vsub.f32 %v34_v12, %v13435_v58  ;;  %v13471_v51 = vand.u32 4294901760, %v353_v47 }
 0x3a5   :  { %6562 = vmatpush.msrb.mxu1 %v6561_v30  ;;  %6707 = vmatpush.msrb.mxu3 %v13265_v42  ;;  %v14649_v30 = vand.u32 4294901760, %v13406_v22  ;;  %v6620_v31 = vsub.f32 %v13439_v0, %v14656_v32 }
 0x3a6   :  { %6519 = vmatpush.msrb.mxu0 %v13325_v4  ;;  %6663 = vmatpush.msrb.mxu2 %v13329_v1  ;;  %v5520_v23 = vadd.f32 %v5519_v28, %v5479_v13  ;;  %v13504_v9 = vsub.f32 %v353_v47, %v13471_v51  ;;  %v15047_v57 = vand.u32 4294901760, %v13469_v60 }
 0x3a7   :  { %6568 = vmatpush.msrb.mxu1 %v6567_v35  ;;  %6709 = vmatpush.msrb.mxu3 %v13278_v48  ;;  %v6602_v35 = vsub.f32 %v13381_v45, %v14646_v41  ;;  %v6597_v41 = vand.u32 4294901760, %v6596_v3  ;;  %v6608_v53 = vsub.f32 %v13406_v22, %v14649_v30  ;;  %v331_v3 = vld [vmem:[%s14441_s1 + $0x9e8] sm:$0xff]  ;;  %v14658_v30 = vand.u32 4294901760, %v13456_v19 }
 0x3a8   :  { %6521 = vmatpush.msrb.mxu0 %v13336_v37  ;;  %6666 = vmatpush.msrb.mxu2 %v13345_v49  ;;  %v5621_v28 = vadd.f32 %v5620_v7, %v5520_v23  ;;  %v15049_v7 = vand.u32 4294901760, %v13487_v44 }
 0x3a9   :  { %6574 = vmatpush.msrb.mxu1 %v6573_v46  ;;  %6711 = vmatpush.msrb.mxu3 %v13292_v54  ;;  %v14653_v46 = vand.u32 4294901760, %v13421_v43  ;;  %v6626_v47 = vsub.f32 %v13456_v19, %v14658_v30  ;;  %v6621_v30 = vand.u32 4294901760, %v6620_v31 }
 0x3aa   :  { %6523 = vmatpush.msrb.mxu0 %v13349_v11  ;;  %6669 = vmatpush.msrb.mxu2 %v13361_v36  ;;  %v6638_v8 = vsub.f32 %v13487_v44, %v15049_v7 }
 0x3ab   :  { %6580 = vmatpush.msrb.mxu1 %v6579_v15  ;;  %6713 = vmatpush.msrb.mxu3 %v13309_v38  ;;  %v342_v15 = vld [vmem:[%s14441_s1 + $0xa40] sm:$0xff]  ;;  %v6614_v12 = vsub.f32 %v13421_v43, %v14653_v46  ;;  %v6609_v46 = vand.u32 4294901760, %v6608_v53  ;;  %v6627_v31 = vand.u32 4294901760, %v6626_v47  ;;  %v276_v47 = vld [vmem:[%s14441_s1 + $0x830] sm:$0xff] }
 0x3ac   :  { %6525 = vmatpush.msrb.mxu0 %v13375_v25  ;;  %6672 = vmatpush.msrb.mxu2 %v13366_v16  ;;  %v13489_v14 = vand.u32 4294901760, %v342_v15 }
 0x3ad   :  { %6586 = vmatpush.msrb.mxu1 %v6585_v52  ;;  %6715 = vmatpush.msrb.mxu3 %v13325_v4  ;;  %v6603_v52 = vand.u32 4294901760, %v6602_v35  ;;  %v320_v35 = vld [vmem:[%s14441_s1 + $0x990] sm:$0xff]  ;;  %v6615_v53 = vand.u32 4294901760, %v6614_v12  ;;  %v5674_v32 = vpop.f32.mrf.mxu0  ;;  %v298_v12 = vld [vmem:[%s14441_s1 + $0x8e0] sm:$0xff] }
 0x3ae   :  { %6527 = vmatpush.msrb.mxu0 %v13390_v34  ;;  %6675 = vmatpush.msrb.mxu2 %v13381_v45  ;;  %v13509_v13 = vand.u32 4294901760, %v320_v35  ;;  %v13520_v24 = vsub.f32 %v342_v15, %v13489_v14  ;;  %v6632_v15 = vsub.f32 %v13469_v60, %v15047_v57  ;;  %v287_v57 = vld [vmem:[%s14441_s1 + $0x888] sm:$0xff] }
 0x3af   :  { %6592 = vmatpush.msrb.mxu1 %v6591_v10  ;;  %6717 = vmatpush.msrb.mxu3 %v13336_v37  ;;  %v13496_v10 = vand.u32 4294901760, %v331_v3 }
 0x3b0   :  { %6529 = vmatpush.msrb.mxu0 %v13403_v20  ;;  %6678 = vmatpush.msrb.mxu2 %v13406_v22  ;;  %v13543_v17 = vsub.f32 %v320_v35, %v13509_v13  ;;  %v15050_v35 = vand.u32 4294901760, %v13255_v59  ;;  %v6633_v7 = vand.u32 4294901760, %v6632_v15  ;;  %v265_v15 = vld [vmem:[%s14441_s1 + $0x7d8] sm:$0xff] }
 0x3b1   :  { %6598 = vmatpush.msrb.mxu1 %v6597_v41  ;;  %6719 = vmatpush.msrb.mxu3 %v13349_v11  ;;  %v309_v41 = vld [vmem:[%s14441_s1 + $0x938] sm:$0xff] }
 0x3b2   :  { %6531 = vmatpush.msrb.mxu0 %v13418_v62  ;;  %6681 = vmatpush.msrb.mxu2 %v13421_v43  ;;  %v13535_v23 = vand.u32 4294901760, %v309_v41 }
 0x3b3   :  { %6604 = vmatpush.msrb.mxu1 %v6603_v52  ;;  %6721 = vmatpush.msrb.mxu3 %v13375_v25  ;;  %v13525_v52 = vsub.f32 %v331_v3, %v13496_v10  ;;  %v5675_v3 = vadd.f32 %v5674_v32, %v5621_v28  ;;  %v15051_v28 = vand.u32 4294901760, %v13504_v9 }
 0x3b4   :  { %6533 = vmatpush.msrb.mxu0 %v13435_v58  ;;  %6684 = vmatpush.msrb.mxu2 %v13439_v0  ;;  %v13567_v59 = vsub.f32 %v309_v41, %v13535_v23  ;;  %v6639_v41 = vand.u32 4294901760, %v6638_v8  ;;  %v254_v8 = vld [vmem:[%s14441_s1 + $0x780] sm:$0xff] }
 0x3b5   :  { %6610 = vmatpush.msrb.mxu1 %v6609_v46  ;;  %6723 = vmatpush.msrb.mxu3 %v13390_v34  ;;  %v6889_v46 = vsub.f32 %v13479_v40, %v15048_v61  ;;  %v13553_v61 = vand.u32 4294901760, %v298_v12  ;;  %v6895_v55 = vsub.f32 %v13504_v9, %v15051_v28  ;;  %v15053_v28 = vand.u32 4294901760, %v13520_v24 }
 0x3b6   :  { %6535 = vmatpush.msrb.mxu0 %v13452_v18  ;;  %6687 = vmatpush.msrb.mxu2 %v13456_v19 }
 0x3b7   :  { %6616 = vmatpush.msrb.mxu1 %v6615_v53  ;;  %6725 = vmatpush.msrb.mxu3 %v13403_v20  ;;  %v5713_v32 = vpop.f32.mrf.mxu1  ;;  %v5782_v50 = vpop.f32.mrf.mxu2 }
 0x3b8   :  { %6742 = vmatpush.msra.mxu0 %v15050_v35  ;;  %6690 = vmatpush.msrb.mxu2 %v13469_v60  ;;  %v5714_v27 = vadd.f32 %v5713_v32, %v5675_v3  ;;  %v13569_v35 = vand.u32 4294901760, %v287_v57  ;;  %v15052_v3 = vand.u32 4294901760, %v13268_v63  ;;  %v6890_v32 = vand.u32 4294901760, %v6889_v46 }
 0x3b9   :  { %6622 = vmatpush.msrb.mxu1 %v6621_v30  ;;  %6727 = vmatpush.msrb.mxu3 %v13418_v62  ;;  %v6901_v63 = vsub.f32 %v13520_v24, %v15053_v28  ;;  %v13585_v46 = vand.u32 4294901760, %v276_v47  ;;  %v6918_v28 = vand.u32 4294901760, %v13567_v59 }
 0x3ba   :  { %6746 = vmatpush.msra.mxu0 %v15052_v3  ;;  %6693 = vmatpush.msrb.mxu2 %v13487_v44  ;;  %v5783_v53 = vadd.f32 %v5782_v50, %v5714_v27  ;;  %v5819_v30 = vpop.f32.mrf.mxu3  ;;  %v13583_v3 = vsub.f32 %v298_v12, %v13553_v61  ;;  %v15054_v27 = vand.u32 4294901760, %v13282_v56  ;;  %v15055_v50 = vand.u32 4294901760, %v13525_v52 }
 0x3bb   :  { %6628 = vmatpush.msrb.mxu1 %v6627_v31  ;;  %6729 = vmatpush.msrb.mxu3 %v13435_v58  ;;  %v6896_v12 = vand.u32 4294901760, %v6895_v55  ;;  %v13599_v56 = vsub.f32 %v287_v57, %v13569_v35  ;;  %v243_v55 = vld [vmem:[%s14441_s1 + $0x728] sm:$0xff]  ;;  %v6902_v57 = vand.u32 4294901760, %v6901_v63 }
 0x3bc   :  { %6750 = vmatpush.msra.mxu0 %v15054_v27  ;;  %6846 = vmatpush.msra.mxu2 %v13446_v33  ;;  %v6907_v31 = vsub.f32 %v13525_v52, %v15055_v50  ;;  %v5820_v62 = vadd.f32 %v5819_v30, %v5783_v53  ;;  %v13601_v27 = vand.u32 4294901760, %v265_v15  ;;  %v15056_v33 = vand.u32 4294901760, %v13296_v39 }
 0x3bd   :  { %6634 = vmatpush.msrb.mxu1 %v6633_v7  ;;  %6731 = vmatpush.msrb.mxu3 %v13452_v18  ;;  %v15057_v53 = vand.u32 4294901760, %v13543_v17  ;;  %v6924_v30 = vand.u32 4294901760, %v13583_v3  ;;  %v13614_v50 = vsub.f32 %v276_v47, %v13585_v46  ;;  %v13616_v39 = vand.u32 4294901760, %v254_v8 }
 0x3be   :  { %6754 = vmatpush.msra.mxu0 %v15056_v33  ;;  %6848 = vmatpush.msra.mxu2 %v13471_v51  ;;  %7875 = vst [vmem:[#allocation2 + $0x38] sm:$0xff] %v5820_v62  ;;  %v15058_v62 = vand.u32 4294901760, %v13313_v5  ;;  %v6908_v33 = vand.u32 4294901760, %v6907_v31  ;;  %v6919_v47 = vsub.f32 %v13567_v59, %v6918_v28  ;;  %v13632_v5 = vand.u32 4294901760, %v243_v55 }
 0x3bf   :  { %v6913_v7 = vsub.f32 %v13543_v17, %v15057_v53  ;;  %6891 = vmatpush.msra.mxu3 %v6890_v32  ;;  %6640 = vmatpush.msrb.mxu1 %v6639_v41  ;;  %v232_v53 = vld [vmem:[%s14441_s1 + $0x6d0] sm:$0xff]  ;;  %v14664_v32 = vand.u32 4294901760, %v13599_v56  ;;  %v13630_v41 = vsub.f32 %v265_v15, %v13601_v27  ;;  %v6925_v31 = vsub.f32 %v13583_v3, %v6924_v30 }
 0x3c0   :  { %6758 = vmatpush.msra.mxu0 %v15058_v62  ;;  %6850 = vmatpush.msra.mxu2 %v13489_v14  ;;  %v13643_v15 = vsub.f32 %v254_v8, %v13616_v39  ;;  %v13645_v62 = vand.u32 4294901760, %v232_v53 }
 0x3c1   :  { %6809 = vmatpush.msra.mxu1 %v13232_v6  ;;  %6897 = vmatpush.msra.mxu3 %v6896_v12  ;;  %v15059_v6 = vand.u32 4294901760, %v13329_v1  ;;  %v6914_v63 = vand.u32 4294901760, %v6913_v7  ;;  %v6936_v12 = vand.u32 4294901760, %v13614_v50  ;;  %v221_v1 = vld [vmem:[%s14441_s1 + $0x678] sm:$0xff]  ;;  %v6920_v7 = vand.u32 4294901760, %v6919_v47 }
 0x3c2   :  { %6852 = vmatpush.msra.mxu2 %v13496_v10  ;;  %v6931_v8 = vsub.f32 %v13599_v56, %v14664_v32  ;;  %v6948_v47 = vand.u32 4294901760, %v13643_v15  ;;  %v13675_v32 = vsub.f32 %v232_v53, %v13645_v62  ;;  %6541 = vmatmul.f32.vlgmr.msrb.gmra.mxu0 %v8434_v26 }
 0x3c3   :  { %6762 = vmatpush.msra.mxu0 %v15059_v6  ;;  %6811 = vmatpush.msra.mxu1 %v13242_v21  ;;  %v15060_v21 = vand.u32 4294901760, %v13345_v49  ;;  %v13659_v6 = vsub.f32 %v243_v55, %v13632_v5  ;;  %v210_v49 = vld [vmem:[%s14441_s1 + $0x620] sm:$0xff]  ;;  %v6937_v55 = vsub.f32 %v13614_v50, %v6936_v12 }
 0x3c4   :  { %6903 = vmatpush.msra.mxu3 %v6902_v57  ;;  %6854 = vmatpush.msra.mxu2 %v13509_v13  ;;  %v14665_v57 = vand.u32 4294901760, %v13630_v41 }
 0x3c5   :  { %6766 = vmatpush.msra.mxu0 %v15060_v21  ;;  %6813 = vmatpush.msra.mxu1 %v13252_v29  ;;  %v15061_v21 = vand.u32 4294901760, %v13361_v36  ;;  %v13667_v29 = vand.u32 4294901760, %v221_v1  ;;  %v15062_v36 = vand.u32 4294901760, %v13366_v16  ;;  %v15063_v16 = vand.u32 4294901760, %v13381_v45 }
 0x3c6   :  { %6909 = vmatpush.msra.mxu3 %v6908_v33  ;;  %6856 = vmatpush.msra.mxu2 %v13535_v23  ;;  %v6926_v33 = vand.u32 4294901760, %v6925_v31  ;;  %v6932_v31 = vand.u32 4294901760, %v6931_v8  ;;  %v6943_v53 = vsub.f32 %v13630_v41, %v14665_v57  ;;  %v6960_v8 = vand.u32 4294901760, %v13675_v32 }
 0x3c7   :  { %6770 = vmatpush.msra.mxu0 %v15061_v21  ;;  %6815 = vmatpush.msra.mxu1 %v13265_v42  ;;  %v13680_v42 = vand.u32 4294901760, %v210_v49  ;;  %v6954_v21 = vand.u32 4294901760, %v13659_v6  ;;  %v15064_v45 = vand.u32 4294901760, %v13406_v22 }
 0x3c8   :  { %6915 = vmatpush.msra.mxu3 %v6914_v63  ;;  %v199_v63 = vld [vmem:[%s14441_s1 + $0x5c8] sm:$0xff]  ;;  %6858 = vmatpush.msra.mxu2 %v13553_v61 }
 0x3c9   :  { %6774 = vmatpush.msra.mxu0 %v15062_v36  ;;  %6817 = vmatpush.msra.mxu1 %v13278_v48  ;;  %v13694_v48 = vsub.f32 %v221_v1, %v13667_v29  ;;  %v6938_v36 = vand.u32 4294901760, %v6937_v55  ;;  %v13701_v57 = vand.u32 4294901760, %v199_v63  ;;  %v6944_v1 = vand.u32 4294901760, %v6943_v53 }
 0x3ca   :  { %6921 = vmatpush.msra.mxu3 %v6920_v7  ;;  %6860 = vmatpush.msra.mxu2 %v13569_v35  ;;  %v6949_v7 = vsub.f32 %v13643_v15, %v6948_v47  ;;  %v15065_v55 = vand.u32 4294901760, %v13421_v43  ;;  %v15066_v53 = vand.u32 4294901760, %v13439_v0 }
 0x3cb   :  { %6778 = vmatpush.msra.mxu0 %v15063_v16  ;;  %6819 = vmatpush.msra.mxu1 %v13292_v54  ;;  %v13707_v54 = vsub.f32 %v210_v49, %v13680_v42  ;;  %v6966_v22 = vand.u32 4294901760, %v13694_v48  ;;  %v6961_v49 = vsub.f32 %v13675_v32, %v6960_v8  ;;  %v15067_v16 = vand.u32 4294901760, %v13456_v19 }
 0x3cc   :  { %6927 = vmatpush.msra.mxu3 %v6926_v33  ;;  %6862 = vmatpush.msra.mxu2 %v13585_v46  ;;  %v6955_v33 = vsub.f32 %v13659_v6, %v6954_v21 }
 0x3cd   :  { %6782 = vmatpush.msra.mxu0 %v15064_v45  ;;  %6821 = vmatpush.msra.mxu1 %v13309_v38  ;;  %v6950_v38 = vand.u32 4294901760, %v6949_v7  ;;  %v6962_v0 = vand.u32 4294901760, %v6961_v49  ;;  %v15071_v45 = vld [vmem:[#allocation6_spill] sm:$0xff] }
 0x3ce   :  { %6933 = vmatpush.msra.mxu3 %v6932_v31  ;;  %6864 = vmatpush.msra.mxu2 %v13601_v27  ;;  %v13722_v31 = vsub.f32 %v199_v63, %v13701_v57  ;;  %v6956_v43 = vand.u32 4294901760, %v6955_v33  ;;  %v6967_v63 = vsub.f32 %v13694_v48, %v6966_v22  ;;  %v15074_v33 = vand.u32 4294901760, %v13504_v9 }
 0x3cf   :  { %6786 = vmatpush.msra.mxu0 %v15065_v55  ;;  %6823 = vmatpush.msra.mxu1 %v13325_v4  ;;  %v6972_v4 = vand.u32 4294901760, %v13707_v54  ;;  %v15075_v55 = vld [vmem:[#allocation12_spill] sm:$0xff] }
 0x3d0   :  { %6939 = vmatpush.msra.mxu3 %v6938_v36  ;;  %6866 = vmatpush.msra.mxu2 %v13616_v39  ;;  %v15068_v36 = vand.u32 4294901760, %v13469_v60  ;;  %v6968_v7 = vand.u32 4294901760, %v6967_v63 }
 0x3d1   :  { %6790 = vmatpush.msra.mxu0 %v15066_v53  ;;  %6825 = vmatpush.msra.mxu1 %v13336_v37  ;;  %v6978_v37 = vand.u32 4294901760, %v13722_v31  ;;  %v6973_v19 = vsub.f32 %v13707_v54, %v6972_v4 }
 0x3d2   :  { %6945 = vmatpush.msra.mxu3 %v6944_v1  ;;  %6868 = vmatpush.msra.mxu2 %v13632_v5  ;;  %v15073_v1 = vld [vmem:[#allocation5_spill] sm:$0xff] }
 0x3d3   :  { %6794 = vmatpush.msra.mxu0 %v15067_v16  ;;  %6827 = vmatpush.msra.mxu1 %v13349_v11  ;;  %v15069_v11 = vand.u32 4294901760, %v13487_v44  ;;  %v6974_v60 = vand.u32 4294901760, %v6973_v19  ;;  %v15070_v44 = vld [vmem:[#allocation11_spill] sm:$0xff] }
 0x3d4   :  { %6951 = vmatpush.msra.mxu3 %v6950_v38  ;;  %6870 = vmatpush.msra.mxu2 %v13645_v62 }
 0x3d5   :  { %6798 = vmatpush.msra.mxu0 %v15068_v36  ;;  %6829 = vmatpush.msra.mxu1 %v13375_v25  ;;  %v6979_v25 = vsub.f32 %v13722_v31, %v6978_v37  ;;  %v79_v36 = vld [vmem:[%s14441_s1 + $0x208] sm:$0xff] }
 0x3d6   :  { %6957 = vmatpush.msra.mxu3 %v6956_v43  ;;  %6872 = vmatpush.msra.mxu2 %v13667_v29 }
 0x3d7   :  { %6802 = vmatpush.msra.mxu0 %v15069_v11  ;;  %6831 = vmatpush.msra.mxu1 %v13390_v34  ;;  %v6980_v34 = vand.u32 4294901760, %v6979_v25 }
 0x3d8   :  { %6963 = vmatpush.msra.mxu3 %v6962_v0  ;;  %6874 = vmatpush.msra.mxu2 %v13680_v42 }
 0x3d9   :  { %6833 = vmatpush.msra.mxu1 %v13403_v20  ;;  %6989 = vmatpush.msrb.mxu0 %v13479_v40  ;;  %v15072_v20 = vand.u32 4294901760, %v13479_v40  ;;  %v15076_v40 = vand.u32 4294901760, %v13520_v24 }
 0x3da   :  { %6969 = vmatpush.msra.mxu3 %v6968_v7  ;;  %6696 = vmatmul.f32.vlgmr.msrb.gmra.mxu2 %v8366_v2 }
 0x3db   :  { %6992 = vmatpush.msrb.mxu0 %v13504_v9  ;;  %6835 = vmatpush.msra.mxu1 %v15070_v44  ;;  %v15078_v9 = vand.u32 4294901760, %v13525_v52 }
 0x3dc   :  { %6876 = vmatpush.msra.mxu2 %v13701_v57  ;;  %6975 = vmatpush.msra.mxu3 %v6974_v60  ;;  %v15084_v60 = vld [vmem:[#allocation9_spill] sm:$0xff] }
 0x3dd   :  { %6735 = vmatmul.f32.vlgmr.msrb.gmra.mxu3 %v15071_v45  ;;  %6995 = vmatpush.msrb.mxu0 %v13520_v24  ;;  %v15080_v24 = vand.u32 4294901760, %v13543_v17 }
 0x3de   :  { %7083 = vmatpush.msrb.mxu2 %v15072_v20  ;;  %6837 = vmatpush.msra.mxu1 %v13435_v58  ;;  %v15077_v58 = vld [vmem:[#allocation10_spill] sm:$0xff] }
 0x3df   :  { %6981 = vmatpush.msra.mxu3 %v6980_v34  ;;  %6642 = vmatmul.f32.vlgmr.msrb.gmra.mxu1 %v15073_v1 }
 0x3e0   :  { %6998 = vmatpush.msrb.mxu0 %v13525_v52  ;;  %7087 = vmatpush.msrb.mxu2 %v15074_v33  ;;  %v167_v52 = vld [vmem:[%s14441_s1 + $0x4c8] sm:$0xff] }
 0x3e1   :  { %7150 = vmatpush.msrb.mxu3 %v15075_v55  ;;  %6839 = vmatpush.msra.mxu1 %v13452_v18  ;;  %v15079_v18 = vld [vmem:[#allocation7_spill] sm:$0xff] }
 0x3e2   :  { %7001 = vmatpush.msrb.mxu0 %v13543_v17  ;;  %7091 = vmatpush.msrb.mxu2 %v15076_v40  ;;  %v15081_v17 = vand.u32 4294901760, %v13599_v56  ;;  %v13963_v40 = vand.u32 4294901760, %v79_v36 }
 0x3e3   :  { %7042 = vmatpush.msrb.mxu1 %v15075_v55  ;;  %7152 = vmatpush.msrb.mxu3 %v13471_v51 }
 0x3e4   :  { %6882 = vmatmul.f32.vlgmr.msra.gmra.mxu2 %v15077_v58  ;;  %7004 = vmatpush.msrb.mxu0 %v13567_v59  ;;  %v13840_v59 = vand.u32 4294901760, %v167_v52 }
 0x3e5   :  { %7044 = vmatpush.msrb.mxu1 %v13471_v51  ;;  %7095 = vmatpush.msrb.mxu2 %v15078_v9  ;;  %v178_v51 = vld [vmem:[%s14441_s1 + $0x520] sm:$0xff] }
 0x3e6   :  { %7154 = vmatpush.msrb.mxu3 %v13489_v14  ;;  %6804 = vmatmul.f32.vlgmr.msra.gmra.mxu0 %v15073_v1 }
 0x3e7   :  { %6983 = vmatmul.f32.vlgmr.msra.gmra.mxu3 %v15079_v18  ;;  %7007 = vmatpush.msrb.mxu0 %v13583_v3  ;;  %v145_v3 = vld [vmem:[%s14441_s1 + $0x418] sm:$0xff] }
 0x3e8   :  { %7046 = vmatpush.msrb.mxu1 %v13489_v14  ;;  %7099 = vmatpush.msrb.mxu2 %v15080_v24  ;;  %v189_v14 = vld [vmem:[%s14441_s1 + $0x578] sm:$0xff] }
 0x3e9   :  { %7156 = vmatpush.msrb.mxu3 %v13496_v10  ;;  %6841 = vmatmul.f32.vlgmr.msra.gmra.mxu1 %v15073_v1 }
 0x3ea   :  { %7010 = vmatpush.msrb.mxu0 %v13599_v56  ;;  %7048 = vmatpush.msrb.mxu1 %v13496_v10  ;;  %v15082_v10 = vand.u32 4294901760, %v13630_v41  ;;  %v134_v56 = vld [vmem:[%s14441_s1 + $0x3c0] sm:$0xff] }
 0x3eb   :  { %7103 = vmatpush.msrb.mxu2 %v6918_v28  ;;  %7158 = vmatpush.msrb.mxu3 %v13509_v13 }
 0x3ec   :  { %7013 = vmatpush.msrb.mxu0 %v13614_v50  ;;  %7050 = vmatpush.msrb.mxu1 %v13509_v13  ;;  %v13820_v13 = vand.u32 4294901760, %v189_v14  ;;  %v13870_v50 = vsub.f32 %v167_v52, %v13840_v59 }
 0x3ed   :  { %7107 = vmatpush.msrb.mxu2 %v6924_v30  ;;  %7160 = vmatpush.msrb.mxu3 %v13535_v23 }
 0x3ee   :  { %7016 = vmatpush.msrb.mxu0 %v13630_v41  ;;  %7052 = vmatpush.msrb.mxu1 %v13535_v23  ;;  %v13830_v23 = vand.u32 4294901760, %v178_v51  ;;  %v13880_v41 = vand.u32 4294901760, %v134_v56 }
 0x3ef   :  { %7111 = vmatpush.msrb.mxu2 %v15081_v17  ;;  %7162 = vmatpush.msrb.mxu3 %v13553_v61  ;;  %v57_v17 = vld [vmem:[%s14441_s1 + $0x158] sm:$0xff] }
 0x3f0   :  { %7019 = vmatpush.msrb.mxu0 %v13643_v15  ;;  %7054 = vmatpush.msrb.mxu1 %v13553_v61  ;;  %v156_v61 = vld [vmem:[%s14441_s1 + $0x470] sm:$0xff]  ;;  %v13856_v28 = vsub.f32 %v178_v51, %v13830_v23  ;;  %v13917_v49 = vsub.f32 %v134_v56, %v13880_v41  ;;  %v46_v56 = vld [vmem:[%s14441_s1 + $0x100] sm:$0xff] }
 0x3f1   :  { %7115 = vmatpush.msrb.mxu2 %v6936_v12  ;;  %7164 = vmatpush.msrb.mxu3 %v13569_v35  ;;  %v112_v15 = vld [vmem:[%s14441_s1 + $0x310] sm:$0xff] }
 0x3f2   :  { %7022 = vmatpush.msrb.mxu0 %v13659_v6  ;;  %7056 = vmatpush.msrb.mxu1 %v13569_v35  ;;  %v13843_v35 = vsub.f32 %v189_v14, %v13820_v13  ;;  %v14671_v7 = vand.u32 4294901760, %v13917_v49 }
 0x3f3   :  { %7119 = vmatpush.msrb.mxu2 %v15082_v10  ;;  %7166 = vmatpush.msrb.mxu3 %v13585_v46 }
 0x3f4   :  { %7025 = vmatpush.msrb.mxu0 %v13675_v32  ;;  %7058 = vmatpush.msrb.mxu1 %v13585_v46  ;;  %v13853_v46 = vand.u32 4294901760, %v156_v61  ;;  %v14678_v30 = vand.u32 4294901760, %v13843_v35  ;;  %v123_v32 = vld [vmem:[%s14441_s1 + $0x368] sm:$0xff]  ;;  %v7260_v51 = vsub.f32 %v13917_v49, %v14671_v7 }
 0x3f5   :  { %7123 = vmatpush.msrb.mxu2 %v6948_v47  ;;  %7168 = vmatpush.msrb.mxu3 %v13601_v27  ;;  %v13897_v47 = vand.u32 4294901760, %v123_v32 }
 0x3f6   :  { %7028 = vmatpush.msrb.mxu0 %v13694_v48  ;;  %7060 = vmatpush.msrb.mxu1 %v13601_v27  ;;  %v13866_v27 = vand.u32 4294901760, %v145_v3  ;;  %v13884_v12 = vsub.f32 %v156_v61, %v13853_v46  ;;  %v7230_v6 = vsub.f32 %v13843_v35, %v14678_v30  ;;  %v101_v48 = vld [vmem:[%s14441_s1 + $0x2b8] sm:$0xff] }
 0x3f7   :  { %7127 = vmatpush.msrb.mxu2 %v6954_v21  ;;  %7170 = vmatpush.msrb.mxu3 %v13616_v39  ;;  %v14675_v21 = vand.u32 4294901760, %v13870_v50  ;;  %v6015_v16 = vpop.f32.mrf.mxu2 }
 0x3f8   :  { %7031 = vmatpush.msrb.mxu0 %v13707_v54  ;;  %7062 = vmatpush.msrb.mxu1 %v13616_v39  ;;  %v15083_v39 = vld [vmem:[#allocation8_spill] sm:$0xff]  ;;  %v14673_v38 = vand.u32 4294901760, %v13884_v12  ;;  %v7231_v43 = vand.u32 4294901760, %v7230_v6  ;;  %v13991_v6 = vand.u32 4294901760, %v57_v17 }
 0x3f9   :  { %7131 = vmatpush.msrb.mxu2 %v6960_v8  ;;  %7172 = vmatpush.msrb.mxu3 %v13632_v5  ;;  %v5860_v8 = vpop.f32.mrf.mxu0  ;;  %v7242_v63 = vsub.f32 %v13870_v50, %v14675_v21 }
 0x3fa   :  { %7034 = vmatpush.msrb.mxu0 %v13722_v31  ;;  %7064 = vmatpush.msrb.mxu1 %v13632_v5  ;;  %v14676_v5 = vand.u32 4294901760, %v13856_v28  ;;  %v90_v31 = vld [vmem:[%s14441_s1 + $0x260] sm:$0xff]  ;;  %v7248_v11 = vsub.f32 %v13884_v12, %v14673_v38  ;;  %v6054_v20 = vpop.f32.mrf.mxu3 }
 0x3fb   :  { %7135 = vmatpush.msrb.mxu2 %v6966_v22  ;;  %7174 = vmatpush.msrb.mxu3 %v13645_v62  ;;  %v13913_v22 = vand.u32 4294901760, %v112_v15  ;;  %v7243_v33 = vand.u32 4294901760, %v7242_v63  ;;  %v365_v63 = vld [vmem:[%s14441_s1 + $0xaf8] sm:$0xff] }
 0x3fc   :  { %7037 = vmatmul.f32.vlgmr.msrb.gmra.mxu0 %v15083_v39  ;;  %7066 = vmatpush.msrb.mxu1 %v13645_v62  ;;  %v5961_v62 = vpop.f32.mrf.mxu1  ;;  %v7236_v54 = vsub.f32 %v13856_v28, %v14676_v5  ;;  %v7249_v14 = vand.u32 4294901760, %v7248_v11  ;;  %v24_v11 = vld [vmem:[%s14441_s1 + $0x50] sm:$0xff] }
 0x3fd   :  { %7187 = vmatpush.msra.mxu0 %v13820_v13  ;;  %7139 = vmatpush.msrb.mxu2 %v6972_v4  ;;  %v5962_v53 = vadd.f32 %v5961_v62, %v5860_v8  ;;  %v13924_v4 = vand.u32 4294901760, %v101_v48  ;;  %v13949_v25 = vsub.f32 %v112_v15, %v13913_v22 }
 0x3fe   :  { %7176 = vmatpush.msrb.mxu3 %v13667_v29  ;;  %7068 = vmatpush.msrb.mxu1 %v13667_v29  ;;  %v13901_v29 = vsub.f32 %v145_v3, %v13866_v27  ;;  %v7237_v19 = vand.u32 4294901760, %v7236_v54  ;;  %v35_v54 = vld [vmem:[%s14441_s1 + $0xa8] sm:$0xff] }
 0x3ff   :  { %7189 = vmatpush.msra.mxu0 %v13830_v23  ;;  %7143 = vmatpush.msrb.mxu2 %v6978_v37  ;;  %v13933_v37 = vsub.f32 %v123_v32, %v13897_v47  ;;  %v6016_v44 = vadd.f32 %v6015_v16, %v5962_v53  ;;  %v13954_v34 = vsub.f32 %v101_v48, %v13924_v4  ;;  %v14668_v52 = vand.u32 4294901760, %v13949_v25 }
 0x400   :  { %7178 = vmatpush.msrb.mxu3 %v13680_v42  ;;  %7145 = vmatmul.f32.vlgmr.msrb.gmra.mxu2 %v15079_v18  ;;  %v14672_v0 = vand.u32 4294901760, %v13901_v29  ;;  %v13994_v48 = vsub.f32 %v79_v36, %v13963_v40 }
 0x401   :  { %7191 = vmatpush.msra.mxu0 %v13840_v59  ;;  %7330 = vmatpush.msra.mxu2 %v13843_v35  ;;  %v14669_v9 = vand.u32 4294901760, %v13933_v37  ;;  %v6055_v61 = vadd.f32 %v6054_v20, %v6016_v44  ;;  %v14666_v3 = vand.u32 4294901760, %v13954_v34  ;;  %v6123_v32 = vpop.f32.mrf.mxu0  ;;  %v7272_v53 = vsub.f32 %v13949_v25, %v14668_v52  ;;  %v6201_v52 = vpop.f32.mrf.mxu2 }
 0x402   :  { %7070 = vmatpush.msrb.mxu1 %v13680_v42  ;;  %7180 = vmatpush.msrb.mxu3 %v13701_v57  ;;  %v13937_v42 = vand.u32 4294901760, %v90_v31  ;;  %v7254_v55 = vsub.f32 %v13901_v29, %v14672_v0  ;;  %v14023_v20 = vand.u32 4294901760, %v35_v54 }
 0x403   :  { %7182 = vmatmul.f32.vlgmr.msrb.gmra.mxu3 %v15079_v18  ;;  %7193 = vmatpush.msra.mxu0 %v13853_v46  ;;  %v7266_v62 = vsub.f32 %v13933_v37, %v14669_v9  ;;  %v6124_v36 = vadd.f32 %v6123_v32, %v6055_v61  ;;  %v354_v61 = vld [vmem:[%s14441_s1 + $0xaa0] sm:$0xff]  ;;  %v7273_v32 = vand.u32 4294901760, %v7272_v53 }
 0x404   :  { %7333 = vmatpush.msra.mxu2 %v13856_v28  ;;  %7383 = vmatpush.msra.mxu3 %v13820_v13  ;;  %v13969_v24 = vsub.f32 %v90_v31, %v13937_v42  ;;  %v7255_v15 = vand.u32 4294901760, %v7254_v55  ;;  %v7261_v31 = vand.u32 4294901760, %v7260_v51  ;;  %v6160_v44 = vpop.f32.mrf.mxu1  ;;  %v14027_v55 = vsub.f32 %v57_v17, %v13991_v6  ;;  %v6302_v38 = vpop.f32.mrf.mxu3 }
 0x405   :  { %7072 = vmatpush.msrb.mxu1 %v13701_v57  ;;  %7195 = vmatpush.msra.mxu0 %v13866_v27  ;;  %v68_v57 = vld [vmem:[%s14441_s1 + $0x1b0] sm:$0xff]  ;;  %v14034_v51 = vand.u32 4294901760, %v365_v63  ;;  %v14040_v17 = vand.u32 4294901760, %v24_v11 }
 0x406   :  { %7076 = vmatmul.f32.vlgmr.msrb.gmra.mxu1 %v15084_v60  ;;  %7336 = vmatpush.msra.mxu2 %v13870_v50  ;;  %v13978_v10 = vand.u32 4294901760, %v68_v57  ;;  %v14667_v8 = vand.u32 4294901760, %v13969_v24 }
 0x407   :  { %7232 = vmatpush.msra.mxu1 %v7231_v43  ;;  %7385 = vmatpush.msra.mxu3 %v13830_v23  ;;  %v14006_v43 = vand.u32 4294901760, %v46_v56  ;;  %15086 = vst [vmem:[#allocation12_spill] sm:$0xff] %v14034_v51  ;;  %v14067_v9 = vsub.f32 %v365_v63, %v14034_v51  ;;  %v14075_v7 = vsub.f32 %v24_v11, %v14040_v17 }
 0x408   :  { %7197 = vmatpush.msra.mxu0 %v13880_v41  ;;  %7339 = vmatpush.msra.mxu2 %v13884_v12  ;;  %v14009_v16 = vsub.f32 %v68_v57, %v13978_v10  ;;  %v7267_v57 = vand.u32 4294901760, %v7266_v62 }
 0x409   :  { %7238 = vmatpush.msra.mxu1 %v7237_v19  ;;  %7387 = vmatpush.msra.mxu3 %v13840_v59  ;;  %15085 = vst [vmem:[#allocation11_spill] sm:$0xff] %v14006_v43  ;;  %v7278_v19 = vsub.f32 %v13954_v34, %v14666_v3  ;;  %v14044_v62 = vsub.f32 %v46_v56, %v14006_v43  ;;  %v14677_v56 = vand.u32 4294901760, %v14027_v55  ;;  %v15088_v60 = vand.u32 4294901760, %v14067_v9 }
 0x40a   :  { %7199 = vmatpush.msra.mxu0 %v13897_v47  ;;  %7342 = vmatpush.msra.mxu2 %v13901_v29  ;;  %v6161_v3 = vadd.f32 %v6160_v44, %v6124_v36  ;;  %v14057_v36 = vsub.f32 %v35_v54, %v14023_v20  ;;  %v14059_v44 = vand.u32 4294901760, %v354_v61 }
 0x40b   :  { %7244 = vmatpush.msra.mxu1 %v7243_v33  ;;  %7389 = vmatpush.msra.mxu3 %v13853_v46  ;;  %v14670_v33 = vand.u32 4294901760, %v13994_v48  ;;  %v7302_v11 = vsub.f32 %v14027_v55, %v14677_v56 }
 0x40c   :  { %7201 = vmatpush.msra.mxu0 %v13913_v22  ;;  %7345 = vmatpush.msra.mxu2 %v13917_v49  ;;  %v6202_v63 = vadd.f32 %v6201_v52, %v6161_v3  ;;  %v14092_v5 = vsub.f32 %v354_v61, %v14059_v44  ;;  %v15087_v30 = vand.u32 4294901760, %v14057_v36 }
 0x40d   :  { %7250 = vmatpush.msra.mxu1 %v7249_v14  ;;  %7391 = vmatpush.msra.mxu3 %v13866_v27  ;;  %v7284_v14 = vsub.f32 %v13969_v24, %v14667_v8  ;;  %v7279_v8 = vand.u32 4294901760, %v7278_v19  ;;  %v7290_v53 = vsub.f32 %v13994_v48, %v14670_v33  ;;  %v332_v19 = vld [vmem:[%s14441_s1 + $0x9f0] sm:$0xff]  ;;  %v14679_v33 = vand.u32 4294901760, %v14044_v62 }
 0x40e   :  { %7203 = vmatpush.msra.mxu0 %v13924_v4  ;;  %7348 = vmatpush.msra.mxu2 %v13933_v37  ;;  %v6303_v52 = vadd.f32 %v6302_v38, %v6202_v63  ;;  %v15089_v38 = vand.u32 4294901760, %v14075_v7 }
 0x40f   :  { %7256 = vmatpush.msra.mxu1 %v7255_v15  ;;  %7393 = vmatpush.msra.mxu3 %v13880_v41  ;;  %v14674_v15 = vand.u32 4294901760, %v14009_v16  ;;  %v7308_v61 = vsub.f32 %v14044_v62, %v14679_v33  ;;  %v7303_v33 = vand.u32 4294901760, %v7302_v11 }
 0x410   :  { %7205 = vmatpush.msra.mxu0 %v13937_v42  ;;  %7351 = vmatpush.msra.mxu2 %v13949_v25  ;;  %v7320_v18 = vsub.f32 %v14075_v7, %v15089_v38 }
 0x411   :  { %7262 = vmatpush.msra.mxu1 %v7261_v31  ;;  %7395 = vmatpush.msra.mxu3 %v13897_v47  ;;  %v343_v31 = vld [vmem:[%s14441_s1 + $0xa48] sm:$0xff]  ;;  %v7296_v54 = vsub.f32 %v14009_v16, %v14674_v15  ;;  %v7291_v15 = vand.u32 4294901760, %v7290_v53  ;;  %v7309_v11 = vand.u32 4294901760, %v7308_v61  ;;  %v277_v61 = vld [vmem:[%s14441_s1 + $0x838] sm:$0xff] }
 0x412   :  { %7207 = vmatpush.msra.mxu0 %v13963_v40  ;;  %7354 = vmatpush.msra.mxu2 %v13954_v34  ;;  %v14077_v0 = vand.u32 4294901760, %v343_v31 }
 0x413   :  { %7268 = vmatpush.msra.mxu1 %v7267_v57  ;;  %7397 = vmatpush.msra.mxu3 %v13913_v22  ;;  %v7285_v57 = vand.u32 4294901760, %v7284_v14  ;;  %v321_v14 = vld [vmem:[%s14441_s1 + $0x998] sm:$0xff]  ;;  %v7297_v53 = vand.u32 4294901760, %v7296_v54  ;;  %v6356_v56 = vpop.f32.mrf.mxu0  ;;  %v299_v54 = vld [vmem:[%s14441_s1 + $0x8e8] sm:$0xff] }
 0x414   :  { %7209 = vmatpush.msra.mxu0 %v13978_v10  ;;  %7357 = vmatpush.msra.mxu2 %v13969_v24  ;;  %v14097_v3 = vand.u32 4294901760, %v321_v14  ;;  %v14108_v21 = vsub.f32 %v343_v31, %v14077_v0  ;;  %v7314_v31 = vsub.f32 %v14057_v36, %v15087_v30  ;;  %v288_v30 = vld [vmem:[%s14441_s1 + $0x890] sm:$0xff] }
 0x415   :  { %7274 = vmatpush.msra.mxu1 %v7273_v32  ;;  %7399 = vmatpush.msra.mxu3 %v13924_v4  ;;  %v14084_v32 = vand.u32 4294901760, %v332_v19 }
 0x416   :  { %7211 = vmatpush.msra.mxu0 %v13991_v6  ;;  %7360 = vmatpush.msra.mxu2 %v13994_v48  ;;  %v14131_v39 = vsub.f32 %v321_v14, %v14097_v3  ;;  %v15090_v14 = vand.u32 4294901760, %v13843_v35  ;;  %v7315_v38 = vand.u32 4294901760, %v7314_v31  ;;  %v266_v31 = vld [vmem:[%s14441_s1 + $0x7e0] sm:$0xff] }
 0x417   :  { %7280 = vmatpush.msra.mxu1 %v7279_v8  ;;  %7401 = vmatpush.msra.mxu3 %v13937_v42  ;;  %v310_v8 = vld [vmem:[%s14441_s1 + $0x940] sm:$0xff] }
 0x418   :  { %7213 = vmatpush.msra.mxu0 %v14006_v43  ;;  %7363 = vmatpush.msra.mxu2 %v14009_v16  ;;  %v14123_v63 = vand.u32 4294901760, %v310_v8 }
 0x419   :  { %7286 = vmatpush.msra.mxu1 %v7285_v57  ;;  %7403 = vmatpush.msra.mxu3 %v13963_v40  ;;  %v14113_v57 = vsub.f32 %v332_v19, %v14084_v32  ;;  %v6357_v19 = vadd.f32 %v6356_v56, %v6303_v52  ;;  %v15091_v52 = vand.u32 4294901760, %v14092_v5 }
 0x41a   :  { %7215 = vmatpush.msra.mxu0 %v14023_v20  ;;  %7366 = vmatpush.msra.mxu2 %v14027_v55  ;;  %v14155_v35 = vsub.f32 %v310_v8, %v14123_v63  ;;  %v7321_v8 = vand.u32 4294901760, %v7320_v18  ;;  %v255_v18 = vld [vmem:[%s14441_s1 + $0x788] sm:$0xff] }
 0x41b   :  { %7292 = vmatpush.msra.mxu1 %v7291_v15  ;;  %7405 = vmatpush.msra.mxu3 %v13978_v10  ;;  %v7571_v15 = vsub.f32 %v14067_v9, %v15088_v60  ;;  %v14141_v60 = vand.u32 4294901760, %v299_v54  ;;  %v7577_v45 = vsub.f32 %v14092_v5, %v15091_v52  ;;  %v15093_v52 = vand.u32 4294901760, %v14108_v21 }
 0x41c   :  { %7217 = vmatpush.msra.mxu0 %v14040_v17  ;;  %7369 = vmatpush.msra.mxu2 %v14044_v62 }
 0x41d   :  { %7298 = vmatpush.msra.mxu1 %v7297_v53  ;;  %7407 = vmatpush.msra.mxu3 %v13991_v6  ;;  %v6395_v56 = vpop.f32.mrf.mxu1  ;;  %v6464_v58 = vpop.f32.mrf.mxu2 }
 0x41e   :  { %7424 = vmatpush.msrb.mxu0 %v15090_v14  ;;  %7372 = vmatpush.msra.mxu2 %v14057_v36  ;;  %v6396_v1 = vadd.f32 %v6395_v56, %v6357_v19  ;;  %v14157_v14 = vand.u32 4294901760, %v288_v30  ;;  %v15092_v19 = vand.u32 4294901760, %v13856_v28  ;;  %v7572_v56 = vand.u32 4294901760, %v7571_v15 }
 0x41f   :  { %7304 = vmatpush.msra.mxu1 %v7303_v33  ;;  %7409 = vmatpush.msra.mxu3 %v14006_v43  ;;  %v7583_v28 = vsub.f32 %v14108_v21, %v15093_v52  ;;  %v14173_v15 = vand.u32 4294901760, %v277_v61  ;;  %v7600_v52 = vand.u32 4294901760, %v14155_v35 }
 0x420   :  { %7428 = vmatpush.msrb.mxu0 %v15092_v19  ;;  %7375 = vmatpush.msra.mxu2 %v14075_v7  ;;  %v6465_v53 = vadd.f32 %v6464_v58, %v6396_v1  ;;  %v6501_v33 = vpop.f32.mrf.mxu3  ;;  %v14171_v19 = vsub.f32 %v299_v54, %v14141_v60  ;;  %v15094_v1 = vand.u32 4294901760, %v13870_v50  ;;  %v15095_v58 = vand.u32 4294901760, %v14113_v57 }
 0x421   :  { %7310 = vmatpush.msra.mxu1 %v7309_v11  ;;  %7411 = vmatpush.msra.mxu3 %v14023_v20  ;;  %v7578_v54 = vand.u32 4294901760, %v7577_v45  ;;  %v14187_v50 = vsub.f32 %v288_v30, %v14157_v14  ;;  %v244_v45 = vld [vmem:[%s14441_s1 + $0x730] sm:$0xff]  ;;  %v7584_v30 = vand.u32 4294901760, %v7583_v28 }
 0x422   :  { %7432 = vmatpush.msrb.mxu0 %v15094_v1  ;;  %7528 = vmatpush.msrb.mxu2 %v14034_v51  ;;  %v7589_v11 = vsub.f32 %v14113_v57, %v15095_v58  ;;  %v6502_v43 = vadd.f32 %v6501_v33, %v6465_v53  ;;  %v14189_v1 = vand.u32 4294901760, %v266_v31  ;;  %v15096_v51 = vand.u32 4294901760, %v13884_v12 }
 0x423   :  { %7316 = vmatpush.msra.mxu1 %v7315_v38  ;;  %7413 = vmatpush.msra.mxu3 %v14040_v17  ;;  %v15097_v53 = vand.u32 4294901760, %v14131_v39  ;;  %v7606_v33 = vand.u32 4294901760, %v14171_v19  ;;  %v14202_v58 = vsub.f32 %v277_v61, %v14173_v15  ;;  %v14204_v12 = vand.u32 4294901760, %v255_v18 }
 0x424   :  { %7436 = vmatpush.msrb.mxu0 %v15096_v51  ;;  %7530 = vmatpush.msrb.mxu2 %v14059_v44  ;;  %7876 = vst [vmem:[#allocation2 + $0x40] sm:$0xff] %v6502_v43  ;;  %v15098_v43 = vand.u32 4294901760, %v13901_v29  ;;  %v7590_v51 = vand.u32 4294901760, %v7589_v11  ;;  %v7601_v61 = vsub.f32 %v14155_v35, %v7600_v52  ;;  %v14220_v29 = vand.u32 4294901760, %v244_v45 }
 0x425   :  { %v7595_v38 = vsub.f32 %v14131_v39, %v15097_v53  ;;  %7573 = vmatpush.msrb.mxu3 %v7572_v56  ;;  %7322 = vmatpush.msra.mxu1 %v7321_v8  ;;  %v233_v53 = vld [vmem:[%s14441_s1 + $0x6d8] sm:$0xff]  ;;  %v14685_v56 = vand.u32 4294901760, %v14187_v50  ;;  %v14218_v8 = vsub.f32 %v266_v31, %v14189_v1  ;;  %v7607_v11 = vsub.f32 %v14171_v19, %v7606_v33 }
 0x426   :  { %7440 = vmatpush.msrb.mxu0 %v15098_v43  ;;  %7532 = vmatpush.msrb.mxu2 %v14077_v0  ;;  %v14231_v31 = vsub.f32 %v255_v18, %v14204_v12  ;;  %v14233_v43 = vand.u32 4294901760, %v233_v53 }
 0x427   :  { %7491 = vmatpush.msrb.mxu1 %v13820_v13  ;;  %7579 = vmatpush.msrb.mxu3 %v7578_v54  ;;  %v15099_v13 = vand.u32 4294901760, %v13917_v49  ;;  %v7596_v28 = vand.u32 4294901760, %v7595_v38  ;;  %v7618_v54 = vand.u32 4294901760, %v14202_v58  ;;  %v222_v49 = vld [vmem:[%s14441_s1 + $0x680] sm:$0xff]  ;;  %v7602_v38 = vand.u32 4294901760, %v7601_v61 }
 0x428   :  { %7534 = vmatpush.msrb.mxu2 %v14084_v32  ;;  %v7613_v18 = vsub.f32 %v14187_v50, %v14685_v56  ;;  %v7630_v61 = vand.u32 4294901760, %v14231_v31  ;;  %v14263_v56 = vsub.f32 %v233_v53, %v14233_v43  ;;  %7223 = vmatmul.f32.vlgmr.msra.gmra.mxu0 %v8434_v26  ;;  %v15112_v26 = vand.u32 4294901760, %v14067_v9 }
 0x429   :  { %7444 = vmatpush.msrb.mxu0 %v15099_v13  ;;  %7493 = vmatpush.msrb.mxu1 %v13830_v23  ;;  %v15100_v23 = vand.u32 4294901760, %v13933_v37  ;;  %v14247_v13 = vsub.f32 %v244_v45, %v14220_v29  ;;  %v211_v37 = vld [vmem:[%s14441_s1 + $0x628] sm:$0xff]  ;;  %v7619_v45 = vsub.f32 %v14202_v58, %v7618_v54 }
 0x42a   :  { %7585 = vmatpush.msrb.mxu3 %v7584_v30  ;;  %7536 = vmatpush.msrb.mxu2 %v14097_v3  ;;  %v14686_v30 = vand.u32 4294901760, %v14218_v8 }
 0x42b   :  { %7448 = vmatpush.msrb.mxu0 %v15100_v23  ;;  %7495 = vmatpush.msrb.mxu1 %v13840_v59  ;;  %v15101_v23 = vand.u32 4294901760, %v13949_v25  ;;  %v14255_v59 = vand.u32 4294901760, %v222_v49  ;;  %v15102_v25 = vand.u32 4294901760, %v13954_v34  ;;  %v15103_v34 = vand.u32 4294901760, %v13969_v24 }
 0x42c   :  { %7591 = vmatpush.msrb.mxu3 %v7590_v51  ;;  %7538 = vmatpush.msrb.mxu2 %v14123_v63  ;;  %v7608_v51 = vand.u32 4294901760, %v7607_v11  ;;  %v7614_v11 = vand.u32 4294901760, %v7613_v18  ;;  %v7625_v53 = vsub.f32 %v14218_v8, %v14686_v30  ;;  %v7642_v18 = vand.u32 4294901760, %v14263_v56 }
 0x42d   :  { %7452 = vmatpush.msrb.mxu0 %v15101_v23  ;;  %7497 = vmatpush.msrb.mxu1 %v13853_v46  ;;  %v14268_v46 = vand.u32 4294901760, %v211_v37  ;;  %v7636_v23 = vand.u32 4294901760, %v14247_v13  ;;  %v15104_v24 = vand.u32 4294901760, %v13994_v48 }
 0x42e   :  { %7597 = vmatpush.msrb.mxu3 %v7596_v28  ;;  %v200_v28 = vld [vmem:[%s14441_s1 + $0x5d0] sm:$0xff]  ;;  %7540 = vmatpush.msrb.mxu2 %v14141_v60  ;;  %s7923_s1 = smov [#allocation2]  }
 0x42f   :  { %7456 = vmatpush.msrb.mxu0 %v15102_v25  ;;  %7499 = vmatpush.msrb.mxu1 %v13866_v27  ;;  %v14282_v27 = vsub.f32 %v222_v49, %v14255_v59  ;;  %v7620_v25 = vand.u32 4294901760, %v7619_v45  ;;  %v14289_v30 = vand.u32 4294901760, %v200_v28  ;;  %v7626_v49 = vand.u32 4294901760, %v7625_v53  ;;  %s7885_s22 = sshll.u32 %s7923_s1, 4  ;;  %s7886_s22 = int_to_ptr.vmem [resolvable:$true] %s7885_s22 }
 0x430   :  { %7603 = vmatpush.msrb.mxu3 %v7602_v38  ;;  %7542 = vmatpush.msrb.mxu2 %v14157_v14  ;;  %v7631_v38 = vsub.f32 %v14231_v31, %v7630_v61  ;;  %v15105_v45 = vand.u32 4294901760, %v14009_v16  ;;  %v15106_v53 = vand.u32 4294901760, %v14027_v55 }
 0x431   :  { %7460 = vmatpush.msrb.mxu0 %v15103_v34  ;;  %7501 = vmatpush.msrb.mxu1 %v13880_v41  ;;  %v14295_v41 = vsub.f32 %v211_v37, %v14268_v46  ;;  %v7648_v48 = vand.u32 4294901760, %v14282_v27  ;;  %v7643_v37 = vsub.f32 %v14263_v56, %v7642_v18  ;;  %v15107_v34 = vand.u32 4294901760, %v14044_v62 }
 0x432   :  { %7609 = vmatpush.msrb.mxu3 %v7608_v51  ;;  %7544 = vmatpush.msrb.mxu2 %v14173_v15  ;;  %v7637_v51 = vsub.f32 %v14247_v13, %v7636_v23 }
 0x433   :  { %7464 = vmatpush.msrb.mxu0 %v15104_v24  ;;  %7503 = vmatpush.msrb.mxu1 %v13897_v47  ;;  %v7632_v47 = vand.u32 4294901760, %v7631_v38  ;;  %v7644_v55 = vand.u32 4294901760, %v7643_v37  ;;  %v15111_v24 = vld [vmem:[#allocation6_spill] sm:$0xff] }
 0x434   :  { %7615 = vmatpush.msrb.mxu3 %v7614_v11  ;;  %7546 = vmatpush.msrb.mxu2 %v14189_v1  ;;  %v14310_v11 = vsub.f32 %v200_v28, %v14289_v30  ;;  %v7638_v16 = vand.u32 4294901760, %v7637_v51  ;;  %v7649_v28 = vsub.f32 %v14282_v27, %v7648_v48 }
 0x435   :  { %7468 = vmatpush.msrb.mxu0 %v15105_v45  ;;  %7505 = vmatpush.msrb.mxu1 %v13913_v22  ;;  %v7654_v22 = vand.u32 4294901760, %v14295_v41 }
 0x436   :  { %7621 = vmatpush.msrb.mxu3 %v7620_v25  ;;  %7548 = vmatpush.msrb.mxu2 %v14204_v12  ;;  %v15108_v25 = vand.u32 4294901760, %v14057_v36  ;;  %v7650_v38 = vand.u32 4294901760, %v7649_v28 }
 0x437   :  { %7472 = vmatpush.msrb.mxu0 %v15106_v53  ;;  %7507 = vmatpush.msrb.mxu1 %v13924_v4  ;;  %v7660_v4 = vand.u32 4294901760, %v14310_v11  ;;  %v7655_v62 = vsub.f32 %v14295_v41, %v7654_v22 }
 0x438   :  { %7627 = vmatpush.msrb.mxu3 %v7626_v49  ;;  %7550 = vmatpush.msrb.mxu2 %v14220_v29  ;;  %v15115_v49 = vld [vmem:[#allocation12_spill] sm:$0xff] }
 0x439   :  { %7476 = vmatpush.msrb.mxu0 %v15107_v34  ;;  %7509 = vmatpush.msrb.mxu1 %v13937_v42  ;;  %v15109_v42 = vand.u32 4294901760, %v14075_v7  ;;  %v7656_v36 = vand.u32 4294901760, %v7655_v62  ;;  %v15110_v7 = vld [vmem:[#allocation11_spill] sm:$0xff] }
 0x43a   :  { %7633 = vmatpush.msrb.mxu3 %v7632_v47  ;;  %7552 = vmatpush.msrb.mxu2 %v14233_v43 }
 0x43b   :  { %7480 = vmatpush.msrb.mxu0 %v15108_v25  ;;  %7511 = vmatpush.msrb.mxu1 %v13963_v40  ;;  %v7661_v40 = vsub.f32 %v14310_v11, %v7660_v4 }
 0x43c   :  { %7639 = vmatpush.msrb.mxu3 %v7638_v16  ;;  %7554 = vmatpush.msrb.mxu2 %v14255_v59 }
 0x43d   :  { %7484 = vmatpush.msrb.mxu0 %v15109_v42  ;;  %7513 = vmatpush.msrb.mxu1 %v13978_v10  ;;  %v7662_v10 = vand.u32 4294901760, %v7661_v40 }
 0x43e   :  { %7645 = vmatpush.msrb.mxu3 %v7644_v55  ;;  %7556 = vmatpush.msrb.mxu2 %v14268_v46 }
 0x43f   :  { %7515 = vmatpush.msrb.mxu1 %v13991_v6  ;;  %7671 = vmatpush.msra.mxu0 %v14067_v9  ;;  %v15113_v6 = vld [vmem:[#allocation5_spill] sm:$0xff]  ;;  %v15116_v9 = vand.u32 4294901760, %v14108_v21 }
 0x440   :  { %7651 = vmatpush.msrb.mxu3 %v7650_v38  ;;  %7378 = vmatmul.f32.vlgmr.msra.gmra.mxu2 %v8366_v2  ;;  %v15114_v2 = vand.u32 4294901760, %v14092_v5 }
 0x441   :  { %7674 = vmatpush.msra.mxu0 %v14092_v5  ;;  %7517 = vmatpush.msrb.mxu1 %v15110_v7  ;;  %v15118_v5 = vand.u32 4294901760, %v14113_v57 }
 0x442   :  { %7558 = vmatpush.msrb.mxu2 %v14289_v30  ;;  %7657 = vmatpush.msrb.mxu3 %v7656_v36 }
 0x443   :  { %7417 = vmatmul.f32.vlgmr.msra.gmra.mxu3 %v15111_v24  ;;  %7677 = vmatpush.msra.mxu0 %v14108_v21  ;;  %v15120_v21 = vand.u32 4294901760, %v14131_v39 }
 0x444   :  { %7765 = vmatpush.msra.mxu2 %v15112_v26  ;;  %7519 = vmatpush.msrb.mxu1 %v14023_v20  ;;  %v15117_v20 = vld [vmem:[#allocation10_spill] sm:$0xff] }
 0x445   :  { %7663 = vmatpush.msrb.mxu3 %v7662_v10  ;;  %7324 = vmatmul.f32.vlgmr.msra.gmra.mxu1 %v15113_v6 }
 0x446   :  { %7680 = vmatpush.msra.mxu0 %v14113_v57  ;;  %7769 = vmatpush.msra.mxu2 %v15114_v2 }
 0x447   :  { %7832 = vmatpush.msra.mxu3 %v15115_v49  ;;  %7521 = vmatpush.msrb.mxu1 %v14040_v17  ;;  %v15119_v17 = vld [vmem:[#allocation7_spill] sm:$0xff] }
 0x448   :  { %7683 = vmatpush.msra.mxu0 %v14131_v39  ;;  %7773 = vmatpush.msra.mxu2 %v15116_v9  ;;  %v15121_v39 = vand.u32 4294901760, %v14187_v50 }
 0x449   :  { %7724 = vmatpush.msra.mxu1 %v15115_v49  ;;  %7834 = vmatpush.msra.mxu3 %v14059_v44 }
 0x44a   :  { %7564 = vmatmul.f32.vlgmr.msrb.gmra.mxu2 %v15117_v20  ;;  %7686 = vmatpush.msra.mxu0 %v14155_v35 }
 0x44b   :  { %7726 = vmatpush.msra.mxu1 %v14059_v44  ;;  %7777 = vmatpush.msra.mxu2 %v15118_v5  ;;  %v15123_v44 = vld [vmem:[#allocation8_spill] sm:$0xff] }
 0x44c   :  { %7836 = vmatpush.msra.mxu3 %v14077_v0  ;;  %7486 = vmatmul.f32.vlgmr.msrb.gmra.mxu0 %v15113_v6 }
 0x44d   :  { %7665 = vmatmul.f32.vlgmr.msrb.gmra.mxu3 %v15119_v17  ;;  %7689 = vmatpush.msra.mxu0 %v14171_v19 }
 0x44e   :  { %7728 = vmatpush.msra.mxu1 %v14077_v0  ;;  %7781 = vmatpush.msra.mxu2 %v15120_v21  ;;  %v15122_v0 = vand.u32 4294901760, %v14218_v8 }
 0x44f   :  { %7838 = vmatpush.msra.mxu3 %v14084_v32  ;;  %7523 = vmatmul.f32.vlgmr.msrb.gmra.mxu1 %v15113_v6 }
 0x450   :  { %7692 = vmatpush.msra.mxu0 %v14187_v50  ;;  %7730 = vmatpush.msra.mxu1 %v14084_v32 }
 0x451   :  { %7785 = vmatpush.msra.mxu2 %v7600_v52  ;;  %7840 = vmatpush.msra.mxu3 %v14097_v3 }
 0x452   :  { %7695 = vmatpush.msra.mxu0 %v14202_v58  ;;  %7732 = vmatpush.msra.mxu1 %v14097_v3  ;;  %v6542_v3 = vpop.f32.mrf.mxu0 }
 0x453   :  { %7789 = vmatpush.msra.mxu2 %v7606_v33  ;;  %7842 = vmatpush.msra.mxu3 %v14123_v63 }
 0x454   :  { %7698 = vmatpush.msra.mxu0 %v14218_v8  ;;  %7734 = vmatpush.msra.mxu1 %v14123_v63  ;;  %v15124_v63 = vld [vmem:[#allocation9_spill] sm:$0xff] }
 0x455   :  { %7793 = vmatpush.msra.mxu2 %v15121_v39  ;;  %7844 = vmatpush.msra.mxu3 %v14141_v60 }
 0x456   :  { %7701 = vmatpush.msra.mxu0 %v14231_v31  ;;  %7736 = vmatpush.msra.mxu1 %v14141_v60 }
 0x457   :  { %7797 = vmatpush.msra.mxu2 %v7618_v54  ;;  %7846 = vmatpush.msra.mxu3 %v14157_v14 }
 0x458   :  { %7704 = vmatpush.msra.mxu0 %v14247_v13  ;;  %7738 = vmatpush.msra.mxu1 %v14157_v14 }
 0x459   :  { %7801 = vmatpush.msra.mxu2 %v15122_v0  ;;  %7848 = vmatpush.msra.mxu3 %v14173_v15 }
 0x45a   :  { %7707 = vmatpush.msra.mxu0 %v14263_v56  ;;  %7740 = vmatpush.msra.mxu1 %v14173_v15 }
 0x45b   :  { %7805 = vmatpush.msra.mxu2 %v7630_v61  ;;  %7850 = vmatpush.msra.mxu3 %v14189_v1 }
 0x45c   :  { %7710 = vmatpush.msra.mxu0 %v14282_v27  ;;  %7742 = vmatpush.msra.mxu1 %v14189_v1  ;;  %v6643_v32 = vpop.f32.mrf.mxu1 }
 0x45d   :  { %7809 = vmatpush.msra.mxu2 %v7636_v23  ;;  %7852 = vmatpush.msra.mxu3 %v14204_v12  ;;  %v6644_v57 = vadd.f32 %v6643_v32, %v6542_v3  ;;  %v6697_v60 = vpop.f32.mrf.mxu2 }
 0x45e   :  { %7713 = vmatpush.msra.mxu0 %v14295_v41  ;;  %7744 = vmatpush.msra.mxu1 %v14204_v12 }
 0x45f   :  { %7813 = vmatpush.msra.mxu2 %v7642_v18  ;;  %7854 = vmatpush.msra.mxu3 %v14220_v29  ;;  %v6698_v35 = vadd.f32 %v6697_v60, %v6644_v57 }
 0x460   :  { %7716 = vmatpush.msra.mxu0 %v14310_v11  ;;  %7746 = vmatpush.msra.mxu1 %v14220_v29  ;;  %v6736_v14 = vpop.f32.mrf.mxu3 }
 0x461   :  { %7817 = vmatpush.msra.mxu2 %v7648_v48  ;;  %7856 = vmatpush.msra.mxu3 %v14233_v43  ;;  %v6737_v19 = vadd.f32 %v6736_v14, %v6698_v35 }
 0x462   :  { %7719 = vmatmul.f32.vlgmr.msra.gmra.mxu0 %v15123_v44  ;;  %7748 = vmatpush.msra.mxu1 %v14233_v43 }
 0x463   :  { %7821 = vmatpush.msra.mxu2 %v7654_v22  ;;  %7858 = vmatpush.msra.mxu3 %v14255_v59  ;;  %v6805_v15 = vpop.f32.mrf.mxu0 }
 0x464   :  { %7750 = vmatpush.msra.mxu1 %v14255_v59  ;;  %v6806_v52 = vadd.f32 %v6805_v15, %v6737_v19 }
 0x465   :  { %7825 = vmatpush.msra.mxu2 %v7660_v4  ;;  %7860 = vmatpush.msra.mxu3 %v14268_v46 }
 0x466   :  { %7827 = vmatmul.f32.vlgmr.msra.gmra.mxu2 %v15119_v17  ;;  %7752 = vmatpush.msra.mxu1 %v14268_v46  ;;  %v6842_v50 = vpop.f32.mrf.mxu1 }
 0x467   :  { %7862 = vmatpush.msra.mxu3 %v14289_v30  ;;  %v6843_v1 = vadd.f32 %v6842_v50, %v6806_v52  ;;  %v6883_v33 = vpop.f32.mrf.mxu2 }
 0x468   :  { %7864 = vmatmul.f32.vlgmr.msra.gmra.mxu3 %v15119_v17  ;;  %7754 = vmatpush.msra.mxu1 %v14289_v30 }
 0x469   :  { %7758 = vmatmul.f32.vlgmr.msra.gmra.mxu1 %v15124_v63  ;;  %v6884_v58 = vadd.f32 %v6883_v33, %v6843_v1 }
 0x46a   :  { %v6984_v12 = vpop.f32.mrf.mxu3 }
 0x46b   :  { %v6985_v8 = vadd.f32 %v6984_v12, %v6884_v58 }
 0x479   :  { %v7038_v56 = vpop.f32.mrf.mxu0 }
 0x47a   :  { %v7039_v29 = vadd.f32 %v7038_v56, %v6985_v8 }
 0x483   :  { %v7077_v54 = vpop.f32.mrf.mxu1  ;;  %v7146_v31 = vpop.f32.mrf.mxu2 }
 0x484   :  { %v7078_v43 = vadd.f32 %v7077_v54, %v7039_v29 }
 0x486   :  { %v7147_v30 = vadd.f32 %v7146_v31, %v7078_v43  ;;  %v7183_v13 = vpop.f32.mrf.mxu3 }
 0x488   :  { %v7184_v59 = vadd.f32 %v7183_v13, %v7147_v30 }
 0x48a   :  { %7877 = vst [vmem:[#allocation2 + $0x48] sm:$0xff] %v7184_v59 }
 0x4a5   :  { %v7224_v46 = vpop.f32.mrf.mxu0 }
 0x4c2   :  { %v7325_v61 = vpop.f32.mrf.mxu1 }
 0x4c3   :  { %v7326_v23 = vadd.f32 %v7325_v61, %v7224_v46  ;;  %v7379_v27 = vpop.f32.mrf.mxu2 }
 0x4c5   :  { %v7380_v18 = vadd.f32 %v7379_v27, %v7326_v23 }
 0x4c6   :  { %v7418_v41 = vpop.f32.mrf.mxu3 }
 0x4c7   :  { %v7419_v51 = vadd.f32 %v7418_v41, %v7380_v18 }
 0x4c9   :  { %v7487_v45 = vpop.f32.mrf.mxu0 }
 0x4ca   :  { %v7488_v48 = vadd.f32 %v7487_v45, %v7419_v51 }
 0x4cc   :  { %v7524_v47 = vpop.f32.mrf.mxu1 }
 0x4cd   :  { %v7525_v37 = vadd.f32 %v7524_v47, %v7488_v48  ;;  %v7565_v11 = vpop.f32.mrf.mxu2 }
 0x4cf   :  { %v7566_v53 = vadd.f32 %v7565_v11, %v7525_v37 }
 0x4d0   :  { %v7666_v22 = vpop.f32.mrf.mxu3 }
 0x4d1   :  { %v7667_v34 = vadd.f32 %v7666_v22, %v7566_v53 }
 0x4df   :  { %v7720_v16 = vpop.f32.mrf.mxu0 }
 0x4e0   :  { %v7721_v28 = vadd.f32 %v7720_v16, %v7667_v34 }
 0x4e6   :  { %v7759_v55 = vpop.f32.mrf.mxu1 }
 0x4e7   :  { %v7760_v4 = vadd.f32 %v7759_v55, %v7721_v28 }
 0x4e9   :  { %v7828_v25 = vpop.f32.mrf.mxu2 }
 0x4ea   :  { %v7829_v62 = vadd.f32 %v7828_v25, %v7760_v4 }
 0x4eb   :  { %v7865_v42 = vpop.f32.mrf.mxu3 }
 0x4ec   :  { %v7866_v38 = vadd.f32 %v7865_v42, %v7829_v62 }
 0x4ee   :  { %7879 = vst.msk [vmem:[#allocation2 + $0x50] sm:$0xff] %vm7878_vm0, %v7866_v38 }
 0x4ef   :  { %7890 = dma.vmem_to_hbm [thread:$0]  %s7886_s22, 1408, %s7888_s25, [#allocation3]  }
 0x4f0   :  { %7921 = dma.done.wait [#allocation3], 1408  }
 0x4f1   :  { %7922 = vsyncadd [#allocation3], 4294965888 }
 0x4f2   :  { %7895 = vsyncpa [#allocation3], 1 }

</bundles_post_ra>
